<compile_context>
chip_gen: v7x
topology: tpu7x:2x2x1
jax: 0.10.0
libtpu: 0.0.40
codegen_flags: <defaults>
</compile_context>

<pallas_src>
import jax
import jax.numpy as jnp
from jax.experimental import pallas as pl
from jax.experimental.pallas import tpu as pltpu


def _sepconv_kernel(x_ref, w1_dw_ref, w1_pw_ref, w2a_ref, w2b_ref, w2_pw_ref,
                    wr_x_ref, wr_x1_ref, wr_x2_ref, o_ref):
    # x_ref block: (1, H + 4p, W + 4p, C) -- input zero-padded by 2p host-side.
    k = w1_dw_ref.shape[0]
    p = k // 2
    _, hpp, wpp, C = x_ref.shape
    Hp, Wp = hpp - 2 * p, wpp - 2 * p          # extended grid = (H + 2p, W + 2p)
    H, W = Hp - 2 * p, Wp - 2 * p
    HW = H * W

    w1_dw = w1_dw_ref[...]                     # (k, k, C)    per-tap per-channel
    w1_pw = w1_pw_ref[...]                     # (C, C)       [cin, cout]
    w2a = w2a_ref[...]                         # (k, k, C, C) grouped conv, x part
    w2b = w2b_ref[...]                         # (k, k, C, C) grouped conv, x1 part

    # ---- op1 depthwise KxK on the extended grid (VPU MACs), fused with op2's
    # ---- x-contribution (MXU matmuls) over the same tap loop ---------------
    dw1_ext = jnp.zeros((Hp, Wp, C), jnp.float32)
    acc2 = jnp.zeros((HW, C), jnp.float32)
    for dy in range(k):
        for dx in range(k):
            xt_ext = x_ref[0, pl.ds(dy, Hp), pl.ds(dx, Wp), :].astype(jnp.float32)
            dw1_ext = dw1_ext + xt_ext * w1_dw[dy, dx, :]
            xt = xt_ext[p:p + H, p:p + W, :]   # tap over x zero-padded by p
            acc2 = acc2 + jnp.dot(xt.reshape(HW, C), w2a[dy, dx],
                                  preferred_element_type=jnp.float32)

    # ---- op1 pointwise 1x1 + ReLU on the extended grid.  C is tiny here so
    # ---- this is C broadcast multiply-accumulates on the VPU ---------------
    x1_ext = jnp.zeros((Hp, Wp, C), jnp.float32)
    for c in range(C):
        x1_ext = x1_ext + dw1_ext[:, :, c:c + 1] * w1_pw[c, :]
    x1_ext = jnp.maximum(x1_ext, 0.0)

    # Zero the p-wide border ring -> x1_ext becomes x1 zero-padded by p, which
    # is exactly the "same" padding the grouped conv needs.
    row = jax.lax.broadcasted_iota(jnp.int32, (Hp, Wp, C), 0)
    col = jax.lax.broadcasted_iota(jnp.int32, (Hp, Wp, C), 1)
    interior = (row >= p) & (row < p + H) & (col >= p) & (col < p + W)
    x1p = jnp.where(interior, x1_ext, 0.0)     # (Hp, Wp, C)

    # ---- op2 grouped KxK: x1 contribution (MXU matmuls) --------------------
    for dy in range(k):
        for dx in range(k):
            x1t = x1p[dy:dy + H, dx:dx + W, :].reshape(HW, C)
            acc2 = acc2 + jnp.dot(x1t, w2b[dy, dx],
                                  preferred_element_type=jnp.float32)

    # ---- op2 pointwise 1x1 + ReLU (MXU) ------------------------------------
    x2 = jnp.maximum(
        jnp.dot(acc2, w2_pw_ref[...], preferred_element_type=jnp.float32), 0.0)

    # ---- reduce 1x1 over cat([x, x1, x2]) (MXU) + residual -----------------
    xf = x_ref[0, pl.ds(2 * p, H), pl.ds(2 * p, W), :].astype(jnp.float32)
    xf = xf.reshape(HW, C)
    x1f = x1p[p:p + H, p:p + W, :].reshape(HW, C)
    out = (jnp.dot(xf, wr_x_ref[...], preferred_element_type=jnp.float32)
           + jnp.dot(x1f, wr_x1_ref[...], preferred_element_type=jnp.float32)
           + jnp.dot(x2, wr_x2_ref[...], preferred_element_type=jnp.float32)
           + xf)

    o_ref[0] = out.reshape(H, W, C).astype(o_ref.dtype)


@jax.jit
def sepconv_forward(x_nchw, params):
    """SepConv forward.  x_nchw: (N, C, H, W); params: torch-layout weights."""
    N, C, H, W = x_nchw.shape
    k = params["w1_dw"].shape[-1]
    p = k // 2

    # NCHW -> NHWC, zero-pad spatially by 2p so every KxK tap in the kernel is
    # a plain static window read.
    x_nhwc = jnp.transpose(x_nchw, (0, 2, 3, 1)).astype(jnp.float32)
    x_pad = jnp.pad(x_nhwc, ((0, 0), (2 * p, 2 * p), (2 * p, 2 * p), (0, 0)))

    # ---- host-side (trace-time) weight preparation -------------------------
    # op1 depthwise (C, 1, k, k) -> (k, k, C) per-tap per-channel scales.
    w1_dw = jnp.transpose(params["w1_dw"][:, 0].astype(jnp.float32), (1, 2, 0))
    # 1x1 convs (Cout, Cin, 1, 1) -> (Cin, Cout) matmul weights.
    w1_pw = params["w1_pw"][:, :, 0, 0].astype(jnp.float32).T
    w2_pw = params["w2_pw"][:, :, 0, 0].astype(jnp.float32).T
    wr = params["wr"][:, :, 0, 0].astype(jnp.float32).T          # (3C, C)
    wr_x, wr_x1, wr_x2 = wr[:C], wr[C:2 * C], wr[2 * C:]
    # op2 grouped conv (2C -> C, groups=C, weight (C, 2, k, k)): group o reads
    # channels [2o, 2o+1] of cat([x, x1]); dense-expand to per-tap (2C, C)
    # matrices and split into the part acting on x and the part acting on x1.
    w2_dw = params["w2_dw"].astype(jnp.float32)
    w2_full = jnp.zeros((k, k, 2 * C, C), jnp.float32)
    for o in range(C):
        for j in range(2):
            w2_full = w2_full.at[:, :, 2 * o + j, o].set(w2_dw[o, j])
    w2a, w2b = w2_full[:, :, :C, :], w2_full[:, :, C:, :]

    out_nhwc = pl.pallas_call(
        _sepconv_kernel,
        out_shape=jax.ShapeDtypeStruct((N, H, W, C), jnp.float32),
        grid_spec=pltpu.PrefetchScalarGridSpec(
            num_scalar_prefetch=0,
            grid=(N,),
            in_specs=[
                # activations: one image per grid step
                pl.BlockSpec((1, H + 4 * p, W + 4 * p, C),
                             lambda n: (n, 0, 0, 0)),
                # weights: constant index_map -> held resident in VMEM
                pl.BlockSpec((k, k, C), lambda n: (0, 0, 0)),
                pl.BlockSpec((C, C), lambda n: (0, 0)),
                pl.BlockSpec((k, k, C, C), lambda n: (0, 0, 0, 0)),
                pl.BlockSpec((k, k, C, C), lambda n: (0, 0, 0, 0)),
                pl.BlockSpec((C, C), lambda n: (0, 0)),
                pl.BlockSpec((C, C), lambda n: (0, 0)),
                pl.BlockSpec((C, C), lambda n: (0, 0)),
                pl.BlockSpec((C, C), lambda n: (0, 0)),
            ],
            out_specs=pl.BlockSpec((1, H, W, C), lambda n: (n, 0, 0, 0)),
        ),
        compiler_params=pltpu.CompilerParams(
            dimension_semantics=("parallel",)),
    )(x_pad, w1_dw, w1_pw, w2a, w2b, w2_pw, wr_x, wr_x1, wr_x2)

    return jnp.transpose(out_nhwc, (0, 3, 1, 2)).astype(x_nchw.dtype)


def _sepconv_reference(x, params):
    """Pure-JAX reference (lax.conv) matching the PyTorch module."""
    C = x.shape[1]
    k = params["w1_dw"].shape[-1]
    p = k // 2
    dn = ("NCHW", "OIHW", "NCHW")

    def conv(v, w, pad, groups=1):
        return jax.lax.conv_general_dilated(
            v, w, window_strides=(1, 1), padding=pad,
            dimension_numbers=dn, feature_group_count=groups)

    same, pt = [(p, p), (p, p)], [(0, 0), (0, 0)]
    relu = lambda v: jnp.maximum(v, 0.0)

    x1 = relu(conv(conv(x, params["w1_dw"], same, groups=C),
                   params["w1_pw"], pt))
    x2 = relu(conv(conv(jnp.concatenate([x, x1], axis=1),
                        params["w2_dw"], same, groups=C),
                   params["w2_pw"], pt))
    out = conv(jnp.concatenate([x, x1, x2], axis=1), params["wr"], pt) + x
    return out


if __name__ == "__main__":
    N, C, H, W, k = 2, 4, 16, 16, 3
    key = jax.random.PRNGKey(0)
    ks = jax.random.split(key, 6)
    x = jax.random.normal(ks[0], (N, C, H, W), dtype=jnp.float32)
    params = {
        "w1_dw": 0.2 * jax.random.normal(ks[1], (C, 1, k, k), dtype=jnp.float32),
        "w1_pw": 0.2 * jax.random.normal(ks[2], (C, C, 1, 1), dtype=jnp.float32),
        "w2_dw": 0.2 * jax.random.normal(ks[3], (C, 2, k, k), dtype=jnp.float32),
        "w2_pw": 0.2 * jax.random.normal(ks[4], (C, C, 1, 1), dtype=jnp.float32),
        "wr": 0.2 * jax.random.normal(ks[5], (C, 3 * C, 1, 1), dtype=jnp.float32),
    }

    y = sepconv_forward(x, params)
    jax.block_until_ready(y)

    y_ref = _sepconv_reference(x, params)
    assert y.shape == x.shape and y.dtype == x.dtype
    err = float(jnp.max(jnp.abs(y - y_ref)))
    assert err < 1e-4, f"max abs error vs reference = {err}"
    print("KERNEL_OK")
</pallas_src>

<mosaic_0001>
module attributes {stable_mosaic.version = 11 : i64} {
  func.func @_sepconv_kernel(%arg0: i32, %arg1: memref<1x20x20x4xf32, #tpu.memory_space<vmem>>, %arg2: memref<3x3x4xf32, #tpu.memory_space<vmem>>, %arg3: memref<4x4xf32, #tpu.memory_space<vmem>>, %arg4: memref<3x3x4x4xf32, #tpu.memory_space<vmem>>, %arg5: memref<3x3x4x4xf32, #tpu.memory_space<vmem>>, %arg6: memref<4x4xf32, #tpu.memory_space<vmem>>, %arg7: memref<4x4xf32, #tpu.memory_space<vmem>>, %arg8: memref<4x4xf32, #tpu.memory_space<vmem>>, %arg9: memref<4x4xf32, #tpu.memory_space<vmem>>, %arg10: memref<1x16x16x4xf32, #tpu.memory_space<vmem>>) attributes {dimension_semantics = [#tpu.dimension_semantics<parallel>], iteration_bounds = array<i64: 2>, scalar_prefetch = 0 : i64, scratch_operands = 0 : i64, tpu.core_type = #tpu.core_type<tc>, window_params = [{transform_indices = @transform_0, window_bounds = array<i64: 1, 20, 20, 4>}, {pipeline_mode = #tpu.pipeline_mode<synchronous>, transform_indices = @transform_1, window_bounds = array<i64: 3, 3, 4>}, {pipeline_mode = #tpu.pipeline_mode<synchronous>, transform_indices = @transform_2, window_bounds = array<i64: 4, 4>}, {pipeline_mode = #tpu.pipeline_mode<synchronous>, transform_indices = @transform_3, window_bounds = array<i64: 3, 3, 4, 4>}, {pipeline_mode = #tpu.pipeline_mode<synchronous>, transform_indices = @transform_4, window_bounds = array<i64: 3, 3, 4, 4>}, {pipeline_mode = #tpu.pipeline_mode<synchronous>, transform_indices = @transform_5, window_bounds = array<i64: 4, 4>}, {pipeline_mode = #tpu.pipeline_mode<synchronous>, transform_indices = @transform_6, window_bounds = array<i64: 4, 4>}, {pipeline_mode = #tpu.pipeline_mode<synchronous>, transform_indices = @transform_7, window_bounds = array<i64: 4, 4>}, {pipeline_mode = #tpu.pipeline_mode<synchronous>, transform_indices = @transform_8, window_bounds = array<i64: 4, 4>}, {transform_indices = @transform_9, window_bounds = array<i64: 1, 16, 16, 4>}]} {
    %c0 = arith.constant 0 : index
    %c0_0 = arith.constant 0 : index
    %c0_1 = arith.constant 0 : index
    %0 = vector.load %arg2[%c0, %c0_0, %c0_1] : memref<3x3x4xf32, #tpu.memory_space<vmem>>, vector<3x3x4xf32>
    %c0_2 = arith.constant 0 : index
    %c0_3 = arith.constant 0 : index
    %1 = vector.load %arg3[%c0_2, %c0_3] : memref<4x4xf32, #tpu.memory_space<vmem>>, vector<4x4xf32>
    %c0_4 = arith.constant 0 : index
    %c0_5 = arith.constant 0 : index
    %c0_6 = arith.constant 0 : index
    %c0_7 = arith.constant 0 : index
    %2 = vector.load %arg4[%c0_4, %c0_5, %c0_6, %c0_7] : memref<3x3x4x4xf32, #tpu.memory_space<vmem>>, vector<3x3x4x4xf32>
    %c0_8 = arith.constant 0 : index
    %c0_9 = arith.constant 0 : index
    %c0_10 = arith.constant 0 : index
    %c0_11 = arith.constant 0 : index
    %3 = vector.load %arg5[%c0_8, %c0_9, %c0_10, %c0_11] : memref<3x3x4x4xf32, #tpu.memory_space<vmem>>, vector<3x3x4x4xf32>
    %cst = arith.constant 0.000000e+00 : f32
    %4 = vector.broadcast %cst : f32 to vector<18x18x4xf32>
    %cst_12 = arith.constant 0.000000e+00 : f32
    %5 = vector.broadcast %cst_12 : f32 to vector<256x4xf32>
    %c0_13 = arith.constant 0 : index
    %c0_14 = arith.constant 0 : index
    %c0_15 = arith.constant 0 : index
    %c0_16 = arith.constant 0 : index
    %6 = vector.load %arg1[%c0_13, %c0_14, %c0_15, %c0_16] : memref<1x20x20x4xf32, #tpu.memory_space<vmem>>, vector<1x18x18x4xf32>
    %7 = vector.shape_cast %6 : vector<1x18x18x4xf32> to vector<18x18x4xf32>
    %8 = vector.extract_strided_slice %0 {offsets = [0, 0, 0], sizes = [1, 1, 4], strides = [1, 1, 1]} : vector<3x3x4xf32> to vector<1x1x4xf32>
    %9 = vector.shape_cast %8 : vector<1x1x4xf32> to vector<4xf32>
    %10 = vector.shape_cast %9 : vector<4xf32> to vector<1x1x4xf32>
    %11 = vector.broadcast %10 : vector<1x1x4xf32> to vector<18x18x4xf32>
    %12 = arith.mulf %7, %11 : vector<18x18x4xf32>
    %13 = arith.addf %4, %12 : vector<18x18x4xf32>
    %14 = vector.extract_strided_slice %7 {offsets = [1, 1, 0], sizes = [16, 16, 4], strides = [1, 1, 1]} : vector<18x18x4xf32> to vector<16x16x4xf32>
    %15 = vector.shape_cast %14 : vector<16x16x4xf32> to vector<256x4xf32>
    %16 = vector.extract_strided_slice %2 {offsets = [0, 0, 0, 0], sizes = [1, 1, 4, 4], strides = [1, 1, 1, 1]} : vector<3x3x4x4xf32> to vector<1x1x4x4xf32>
    %17 = vector.shape_cast %16 : vector<1x1x4x4xf32> to vector<4x4xf32>
    %cst_17 = arith.constant dense<0.000000e+00> : vector<256x4xf32>
    %18 = tpu.matmul %15, %17, %cst_17 {dimension_numbers = #tpu.dot_dimension_numbers<[1], [0], [0], [1], [0, 0, 1, 1], [], []>} : vector<256x4xf32>, vector<4x4xf32>, vector<256x4xf32> -> vector<256x4xf32>
    %19 = arith.addf %5, %18 : vector<256x4xf32>
    %c0_18 = arith.constant 0 : index
    %c0_19 = arith.constant 0 : index
    %c1 = arith.constant 1 : index
    %c0_20 = arith.constant 0 : index
    %20 = vector.load %arg1[%c0_18, %c0_19, %c1, %c0_20] : memref<1x20x20x4xf32, #tpu.memory_space<vmem>>, vector<1x18x18x4xf32>
    %21 = vector.shape_cast %20 : vector<1x18x18x4xf32> to vector<18x18x4xf32>
    %22 = vector.extract_strided_slice %0 {offsets = [0, 1, 0], sizes = [1, 1, 4], strides = [1, 1, 1]} : vector<3x3x4xf32> to vector<1x1x4xf32>
    %23 = vector.shape_cast %22 : vector<1x1x4xf32> to vector<4xf32>
    %24 = vector.shape_cast %23 : vector<4xf32> to vector<1x1x4xf32>
    %25 = vector.broadcast %24 : vector<1x1x4xf32> to vector<18x18x4xf32>
    %26 = arith.mulf %21, %25 : vector<18x18x4xf32>
    %27 = arith.addf %13, %26 : vector<18x18x4xf32>
    %28 = vector.extract_strided_slice %21 {offsets = [1, 1, 0], sizes = [16, 16, 4], strides = [1, 1, 1]} : vector<18x18x4xf32> to vector<16x16x4xf32>
    %29 = vector.shape_cast %28 : vector<16x16x4xf32> to vector<256x4xf32>
    %30 = vector.extract_strided_slice %2 {offsets = [0, 1, 0, 0], sizes = [1, 1, 4, 4], strides = [1, 1, 1, 1]} : vector<3x3x4x4xf32> to vector<1x1x4x4xf32>
    %31 = vector.shape_cast %30 : vector<1x1x4x4xf32> to vector<4x4xf32>
    %cst_21 = arith.constant dense<0.000000e+00> : vector<256x4xf32>
    %32 = tpu.matmul %29, %31, %cst_21 {dimension_numbers = #tpu.dot_dimension_numbers<[1], [0], [0], [1], [0, 0, 1, 1], [], []>} : vector<256x4xf32>, vector<4x4xf32>, vector<256x4xf32> -> vector<256x4xf32>
    %33 = arith.addf %19, %32 : vector<256x4xf32>
    %c0_22 = arith.constant 0 : index
    %c0_23 = arith.constant 0 : index
    %c2 = arith.constant 2 : index
    %c0_24 = arith.constant 0 : index
    %34 = vector.load %arg1[%c0_22, %c0_23, %c2, %c0_24] : memref<1x20x20x4xf32, #tpu.memory_space<vmem>>, vector<1x18x18x4xf32>
    %35 = vector.shape_cast %34 : vector<1x18x18x4xf32> to vector<18x18x4xf32>
    %36 = vector.extract_strided_slice %0 {offsets = [0, 2, 0], sizes = [1, 1, 4], strides = [1, 1, 1]} : vector<3x3x4xf32> to vector<1x1x4xf32>
    %37 = vector.shape_cast %36 : vector<1x1x4xf32> to vector<4xf32>
    %38 = vector.shape_cast %37 : vector<4xf32> to vector<1x1x4xf32>
    %39 = vector.broadcast %38 : vector<1x1x4xf32> to vector<18x18x4xf32>
    %40 = arith.mulf %35, %39 : vector<18x18x4xf32>
    %41 = arith.addf %27, %40 : vector<18x18x4xf32>
    %42 = vector.extract_strided_slice %35 {offsets = [1, 1, 0], sizes = [16, 16, 4], strides = [1, 1, 1]} : vector<18x18x4xf32> to vector<16x16x4xf32>
    %43 = vector.shape_cast %42 : vector<16x16x4xf32> to vector<256x4xf32>
    %44 = vector.extract_strided_slice %2 {offsets = [0, 2, 0, 0], sizes = [1, 1, 4, 4], strides = [1, 1, 1, 1]} : vector<3x3x4x4xf32> to vector<1x1x4x4xf32>
    %45 = vector.shape_cast %44 : vector<1x1x4x4xf32> to vector<4x4xf32>
    %cst_25 = arith.constant dense<0.000000e+00> : vector<256x4xf32>
    %46 = tpu.matmul %43, %45, %cst_25 {dimension_numbers = #tpu.dot_dimension_numbers<[1], [0], [0], [1], [0, 0, 1, 1], [], []>} : vector<256x4xf32>, vector<4x4xf32>, vector<256x4xf32> -> vector<256x4xf32>
    %47 = arith.addf %33, %46 : vector<256x4xf32>
    %c0_26 = arith.constant 0 : index
    %c1_27 = arith.constant 1 : index
    %c0_28 = arith.constant 0 : index
    %c0_29 = arith.constant 0 : index
    %48 = vector.load %arg1[%c0_26, %c1_27, %c0_28, %c0_29] : memref<1x20x20x4xf32, #tpu.memory_space<vmem>>, vector<1x18x18x4xf32>
    %49 = vector.shape_cast %48 : vector<1x18x18x4xf32> to vector<18x18x4xf32>
    %50 = vector.extract_strided_slice %0 {offsets = [1, 0, 0], sizes = [1, 1, 4], strides = [1, 1, 1]} : vector<3x3x4xf32> to vector<1x1x4xf32>
    %51 = vector.shape_cast %50 : vector<1x1x4xf32> to vector<4xf32>
    %52 = vector.shape_cast %51 : vector<4xf32> to vector<1x1x4xf32>
    %53 = vector.broadcast %52 : vector<1x1x4xf32> to vector<18x18x4xf32>
    %54 = arith.mulf %49, %53 : vector<18x18x4xf32>
    %55 = arith.addf %41, %54 : vector<18x18x4xf32>
    %56 = vector.extract_strided_slice %49 {offsets = [1, 1, 0], sizes = [16, 16, 4], strides = [1, 1, 1]} : vector<18x18x4xf32> to vector<16x16x4xf32>
    %57 = vector.shape_cast %56 : vector<16x16x4xf32> to vector<256x4xf32>
    %58 = vector.extract_strided_slice %2 {offsets = [1, 0, 0, 0], sizes = [1, 1, 4, 4], strides = [1, 1, 1, 1]} : vector<3x3x4x4xf32> to vector<1x1x4x4xf32>
    %59 = vector.shape_cast %58 : vector<1x1x4x4xf32> to vector<4x4xf32>
    %cst_30 = arith.constant dense<0.000000e+00> : vector<256x4xf32>
    %60 = tpu.matmul %57, %59, %cst_30 {dimension_numbers = #tpu.dot_dimension_numbers<[1], [0], [0], [1], [0, 0, 1, 1], [], []>} : vector<256x4xf32>, vector<4x4xf32>, vector<256x4xf32> -> vector<256x4xf32>
    %61 = arith.addf %47, %60 : vector<256x4xf32>
    %c0_31 = arith.constant 0 : index
    %c1_32 = arith.constant 1 : index
    %c1_33 = arith.constant 1 : index
    %c0_34 = arith.constant 0 : index
    %62 = vector.load %arg1[%c0_31, %c1_32, %c1_33, %c0_34] : memref<1x20x20x4xf32, #tpu.memory_space<vmem>>, vector<1x18x18x4xf32>
    %63 = vector.shape_cast %62 : vector<1x18x18x4xf32> to vector<18x18x4xf32>
    %64 = vector.extract_strided_slice %0 {offsets = [1, 1, 0], sizes = [1, 1, 4], strides = [1, 1, 1]} : vector<3x3x4xf32> to vector<1x1x4xf32>
    %65 = vector.shape_cast %64 : vector<1x1x4xf32> to vector<4xf32>
    %66 = vector.shape_cast %65 : vector<4xf32> to vector<1x1x4xf32>
    %67 = vector.broadcast %66 : vector<1x1x4xf32> to vector<18x18x4xf32>
    %68 = arith.mulf %63, %67 : vector<18x18x4xf32>
    %69 = arith.addf %55, %68 : vector<18x18x4xf32>
    %70 = vector.extract_strided_slice %63 {offsets = [1, 1, 0], sizes = [16, 16, 4], strides = [1, 1, 1]} : vector<18x18x4xf32> to vector<16x16x4xf32>
    %71 = vector.shape_cast %70 : vector<16x16x4xf32> to vector<256x4xf32>
    %72 = vector.extract_strided_slice %2 {offsets = [1, 1, 0, 0], sizes = [1, 1, 4, 4], strides = [1, 1, 1, 1]} : vector<3x3x4x4xf32> to vector<1x1x4x4xf32>
    %73 = vector.shape_cast %72 : vector<1x1x4x4xf32> to vector<4x4xf32>
    %cst_35 = arith.constant dense<0.000000e+00> : vector<256x4xf32>
    %74 = tpu.matmul %71, %73, %cst_35 {dimension_numbers = #tpu.dot_dimension_numbers<[1], [0], [0], [1], [0, 0, 1, 1], [], []>} : vector<256x4xf32>, vector<4x4xf32>, vector<256x4xf32> -> vector<256x4xf32>
    %75 = arith.addf %61, %74 : vector<256x4xf32>
    %c0_36 = arith.constant 0 : index
    %c1_37 = arith.constant 1 : index
    %c2_38 = arith.constant 2 : index
    %c0_39 = arith.constant 0 : index
    %76 = vector.load %arg1[%c0_36, %c1_37, %c2_38, %c0_39] : memref<1x20x20x4xf32, #tpu.memory_space<vmem>>, vector<1x18x18x4xf32>
    %77 = vector.shape_cast %76 : vector<1x18x18x4xf32> to vector<18x18x4xf32>
    %78 = vector.extract_strided_slice %0 {offsets = [1, 2, 0], sizes = [1, 1, 4], strides = [1, 1, 1]} : vector<3x3x4xf32> to vector<1x1x4xf32>
    %79 = vector.shape_cast %78 : vector<1x1x4xf32> to vector<4xf32>
    %80 = vector.shape_cast %79 : vector<4xf32> to vector<1x1x4xf32>
    %81 = vector.broadcast %80 : vector<1x1x4xf32> to vector<18x18x4xf32>
    %82 = arith.mulf %77, %81 : vector<18x18x4xf32>
    %83 = arith.addf %69, %82 : vector<18x18x4xf32>
    %84 = vector.extract_strided_slice %77 {offsets = [1, 1, 0], sizes = [16, 16, 4], strides = [1, 1, 1]} : vector<18x18x4xf32> to vector<16x16x4xf32>
    %85 = vector.shape_cast %84 : vector<16x16x4xf32> to vector<256x4xf32>
    %86 = vector.extract_strided_slice %2 {offsets = [1, 2, 0, 0], sizes = [1, 1, 4, 4], strides = [1, 1, 1, 1]} : vector<3x3x4x4xf32> to vector<1x1x4x4xf32>
    %87 = vector.shape_cast %86 : vector<1x1x4x4xf32> to vector<4x4xf32>
    %cst_40 = arith.constant dense<0.000000e+00> : vector<256x4xf32>
    %88 = tpu.matmul %85, %87, %cst_40 {dimension_numbers = #tpu.dot_dimension_numbers<[1], [0], [0], [1], [0, 0, 1, 1], [], []>} : vector<256x4xf32>, vector<4x4xf32>, vector<256x4xf32> -> vector<256x4xf32>
    %89 = arith.addf %75, %88 : vector<256x4xf32>
    %c0_41 = arith.constant 0 : index
    %c2_42 = arith.constant 2 : index
    %c0_43 = arith.constant 0 : index
    %c0_44 = arith.constant 0 : index
    %90 = vector.load %arg1[%c0_41, %c2_42, %c0_43, %c0_44] : memref<1x20x20x4xf32, #tpu.memory_space<vmem>>, vector<1x18x18x4xf32>
    %91 = vector.shape_cast %90 : vector<1x18x18x4xf32> to vector<18x18x4xf32>
    %92 = vector.extract_strided_slice %0 {offsets = [2, 0, 0], sizes = [1, 1, 4], strides = [1, 1, 1]} : vector<3x3x4xf32> to vector<1x1x4xf32>
    %93 = vector.shape_cast %92 : vector<1x1x4xf32> to vector<4xf32>
    %94 = vector.shape_cast %93 : vector<4xf32> to vector<1x1x4xf32>
    %95 = vector.broadcast %94 : vector<1x1x4xf32> to vector<18x18x4xf32>
    %96 = arith.mulf %91, %95 : vector<18x18x4xf32>
    %97 = arith.addf %83, %96 : vector<18x18x4xf32>
    %98 = vector.extract_strided_slice %91 {offsets = [1, 1, 0], sizes = [16, 16, 4], strides = [1, 1, 1]} : vector<18x18x4xf32> to vector<16x16x4xf32>
    %99 = vector.shape_cast %98 : vector<16x16x4xf32> to vector<256x4xf32>
    %100 = vector.extract_strided_slice %2 {offsets = [2, 0, 0, 0], sizes = [1, 1, 4, 4], strides = [1, 1, 1, 1]} : vector<3x3x4x4xf32> to vector<1x1x4x4xf32>
    %101 = vector.shape_cast %100 : vector<1x1x4x4xf32> to vector<4x4xf32>
    %cst_45 = arith.constant dense<0.000000e+00> : vector<256x4xf32>
    %102 = tpu.matmul %99, %101, %cst_45 {dimension_numbers = #tpu.dot_dimension_numbers<[1], [0], [0], [1], [0, 0, 1, 1], [], []>} : vector<256x4xf32>, vector<4x4xf32>, vector<256x4xf32> -> vector<256x4xf32>
    %103 = arith.addf %89, %102 : vector<256x4xf32>
    %c0_46 = arith.constant 0 : index
    %c2_47 = arith.constant 2 : index
    %c1_48 = arith.constant 1 : index
    %c0_49 = arith.constant 0 : index
    %104 = vector.load %arg1[%c0_46, %c2_47, %c1_48, %c0_49] : memref<1x20x20x4xf32, #tpu.memory_space<vmem>>, vector<1x18x18x4xf32>
    %105 = vector.shape_cast %104 : vector<1x18x18x4xf32> to vector<18x18x4xf32>
    %106 = vector.extract_strided_slice %0 {offsets = [2, 1, 0], sizes = [1, 1, 4], strides = [1, 1, 1]} : vector<3x3x4xf32> to vector<1x1x4xf32>
    %107 = vector.shape_cast %106 : vector<1x1x4xf32> to vector<4xf32>
    %108 = vector.shape_cast %107 : vector<4xf32> to vector<1x1x4xf32>
    %109 = vector.broadcast %108 : vector<1x1x4xf32> to vector<18x18x4xf32>
    %110 = arith.mulf %105, %109 : vector<18x18x4xf32>
    %111 = arith.addf %97, %110 : vector<18x18x4xf32>
    %112 = vector.extract_strided_slice %105 {offsets = [1, 1, 0], sizes = [16, 16, 4], strides = [1, 1, 1]} : vector<18x18x4xf32> to vector<16x16x4xf32>
    %113 = vector.shape_cast %112 : vector<16x16x4xf32> to vector<256x4xf32>
    %114 = vector.extract_strided_slice %2 {offsets = [2, 1, 0, 0], sizes = [1, 1, 4, 4], strides = [1, 1, 1, 1]} : vector<3x3x4x4xf32> to vector<1x1x4x4xf32>
    %115 = vector.shape_cast %114 : vector<1x1x4x4xf32> to vector<4x4xf32>
    %cst_50 = arith.constant dense<0.000000e+00> : vector<256x4xf32>
    %116 = tpu.matmul %113, %115, %cst_50 {dimension_numbers = #tpu.dot_dimension_numbers<[1], [0], [0], [1], [0, 0, 1, 1], [], []>} : vector<256x4xf32>, vector<4x4xf32>, vector<256x4xf32> -> vector<256x4xf32>
    %117 = arith.addf %103, %116 : vector<256x4xf32>
    %c0_51 = arith.constant 0 : index
    %c2_52 = arith.constant 2 : index
    %c2_53 = arith.constant 2 : index
    %c0_54 = arith.constant 0 : index
    %118 = vector.load %arg1[%c0_51, %c2_52, %c2_53, %c0_54] : memref<1x20x20x4xf32, #tpu.memory_space<vmem>>, vector<1x18x18x4xf32>
    %119 = vector.shape_cast %118 : vector<1x18x18x4xf32> to vector<18x18x4xf32>
    %120 = vector.extract_strided_slice %0 {offsets = [2, 2, 0], sizes = [1, 1, 4], strides = [1, 1, 1]} : vector<3x3x4xf32> to vector<1x1x4xf32>
    %121 = vector.shape_cast %120 : vector<1x1x4xf32> to vector<4xf32>
    %122 = vector.shape_cast %121 : vector<4xf32> to vector<1x1x4xf32>
    %123 = vector.broadcast %122 : vector<1x1x4xf32> to vector<18x18x4xf32>
    %124 = arith.mulf %119, %123 : vector<18x18x4xf32>
    %125 = arith.addf %111, %124 : vector<18x18x4xf32>
    %126 = vector.extract_strided_slice %119 {offsets = [1, 1, 0], sizes = [16, 16, 4], strides = [1, 1, 1]} : vector<18x18x4xf32> to vector<16x16x4xf32>
    %127 = vector.shape_cast %126 : vector<16x16x4xf32> to vector<256x4xf32>
    %128 = vector.extract_strided_slice %2 {offsets = [2, 2, 0, 0], sizes = [1, 1, 4, 4], strides = [1, 1, 1, 1]} : vector<3x3x4x4xf32> to vector<1x1x4x4xf32>
    %129 = vector.shape_cast %128 : vector<1x1x4x4xf32> to vector<4x4xf32>
    %cst_55 = arith.constant dense<0.000000e+00> : vector<256x4xf32>
    %130 = tpu.matmul %127, %129, %cst_55 {dimension_numbers = #tpu.dot_dimension_numbers<[1], [0], [0], [1], [0, 0, 1, 1], [], []>} : vector<256x4xf32>, vector<4x4xf32>, vector<256x4xf32> -> vector<256x4xf32>
    %131 = arith.addf %117, %130 : vector<256x4xf32>
    %cst_56 = arith.constant 0.000000e+00 : f32
    %132 = vector.broadcast %cst_56 : f32 to vector<18x18x4xf32>
    %133 = vector.extract_strided_slice %125 {offsets = [0, 0, 0], sizes = [18, 18, 1], strides = [1, 1, 1]} : vector<18x18x4xf32> to vector<18x18x1xf32>
    %134 = vector.extract_strided_slice %1 {offsets = [0, 0], sizes = [1, 4], strides = [1, 1]} : vector<4x4xf32> to vector<1x4xf32>
    %135 = vector.shape_cast %134 : vector<1x4xf32> to vector<4xf32>
    %136 = vector.shape_cast %135 : vector<4xf32> to vector<1x1x4xf32>
    %137 = vector.broadcast %133 : vector<18x18x1xf32> to vector<18x18x4xf32>
    %138 = vector.broadcast %136 : vector<1x1x4xf32> to vector<18x18x4xf32>
    %139 = arith.mulf %137, %138 : vector<18x18x4xf32>
    %140 = arith.addf %132, %139 : vector<18x18x4xf32>
    %141 = vector.extract_strided_slice %125 {offsets = [0, 0, 1], sizes = [18, 18, 1], strides = [1, 1, 1]} : vector<18x18x4xf32> to vector<18x18x1xf32>
    %142 = vector.extract_strided_slice %1 {offsets = [1, 0], sizes = [1, 4], strides = [1, 1]} : vector<4x4xf32> to vector<1x4xf32>
    %143 = vector.shape_cast %142 : vector<1x4xf32> to vector<4xf32>
    %144 = vector.shape_cast %143 : vector<4xf32> to vector<1x1x4xf32>
    %145 = vector.broadcast %141 : vector<18x18x1xf32> to vector<18x18x4xf32>
    %146 = vector.broadcast %144 : vector<1x1x4xf32> to vector<18x18x4xf32>
    %147 = arith.mulf %145, %146 : vector<18x18x4xf32>
    %148 = arith.addf %140, %147 : vector<18x18x4xf32>
    %149 = vector.extract_strided_slice %125 {offsets = [0, 0, 2], sizes = [18, 18, 1], strides = [1, 1, 1]} : vector<18x18x4xf32> to vector<18x18x1xf32>
    %150 = vector.extract_strided_slice %1 {offsets = [2, 0], sizes = [1, 4], strides = [1, 1]} : vector<4x4xf32> to vector<1x4xf32>
    %151 = vector.shape_cast %150 : vector<1x4xf32> to vector<4xf32>
    %152 = vector.shape_cast %151 : vector<4xf32> to vector<1x1x4xf32>
    %153 = vector.broadcast %149 : vector<18x18x1xf32> to vector<18x18x4xf32>
    %154 = vector.broadcast %152 : vector<1x1x4xf32> to vector<18x18x4xf32>
    %155 = arith.mulf %153, %154 : vector<18x18x4xf32>
    %156 = arith.addf %148, %155 : vector<18x18x4xf32>
    %157 = vector.extract_strided_slice %125 {offsets = [0, 0, 3], sizes = [18, 18, 1], strides = [1, 1, 1]} : vector<18x18x4xf32> to vector<18x18x1xf32>
    %158 = vector.extract_strided_slice %1 {offsets = [3, 0], sizes = [1, 4], strides = [1, 1]} : vector<4x4xf32> to vector<1x4xf32>
    %159 = vector.shape_cast %158 : vector<1x4xf32> to vector<4xf32>
    %160 = vector.shape_cast %159 : vector<4xf32> to vector<1x1x4xf32>
    %161 = vector.broadcast %157 : vector<18x18x1xf32> to vector<18x18x4xf32>
    %162 = vector.broadcast %160 : vector<1x1x4xf32> to vector<18x18x4xf32>
    %163 = arith.mulf %161, %162 : vector<18x18x4xf32>
    %164 = arith.addf %156, %163 : vector<18x18x4xf32>
    %cst_57 = arith.constant 0.000000e+00 : f32
    %165 = vector.broadcast %cst_57 : f32 to vector<18x18x4xf32>
    %166 = arith.maximumf %164, %165 : vector<18x18x4xf32>
    %167 = tpu.iota {dimensions = array<i32: 0>} : vector<18x18x4xi32>
    %168 = tpu.iota {dimensions = array<i32: 1>} : vector<18x18x4xi32>
    %c1_i32 = arith.constant 1 : i32
    %169 = vector.broadcast %c1_i32 : i32 to vector<18x18x4xi32>
    %170 = arith.cmpi sge, %167, %169 : vector<18x18x4xi32>
    %c17_i32 = arith.constant 17 : i32
    %171 = vector.broadcast %c17_i32 : i32 to vector<18x18x4xi32>
    %172 = arith.cmpi slt, %167, %171 : vector<18x18x4xi32>
    %173 = arith.andi %170, %172 : vector<18x18x4xi1>
    %c1_i32_58 = arith.constant 1 : i32
    %174 = vector.broadcast %c1_i32_58 : i32 to vector<18x18x4xi32>
    %175 = arith.cmpi sge, %168, %174 : vector<18x18x4xi32>
    %176 = arith.andi %173, %175 : vector<18x18x4xi1>
    %c17_i32_59 = arith.constant 17 : i32
    %177 = vector.broadcast %c17_i32_59 : i32 to vector<18x18x4xi32>
    %178 = arith.cmpi slt, %168, %177 : vector<18x18x4xi32>
    %179 = arith.andi %176, %178 : vector<18x18x4xi1>
    %cst_60 = arith.constant 0.000000e+00 : f32
    %180 = vector.broadcast %cst_60 : f32 to vector<18x18x4xf32>
    %181 = arith.select %179, %166, %180 : vector<18x18x4xi1>, vector<18x18x4xf32>
    %182 = vector.extract_strided_slice %181 {offsets = [0, 0, 0], sizes = [16, 16, 4], strides = [1, 1, 1]} : vector<18x18x4xf32> to vector<16x16x4xf32>
    %183 = vector.shape_cast %182 : vector<16x16x4xf32> to vector<256x4xf32>
    %184 = vector.extract_strided_slice %3 {offsets = [0, 0, 0, 0], sizes = [1, 1, 4, 4], strides = [1, 1, 1, 1]} : vector<3x3x4x4xf32> to vector<1x1x4x4xf32>
    %185 = vector.shape_cast %184 : vector<1x1x4x4xf32> to vector<4x4xf32>
    %cst_61 = arith.constant dense<0.000000e+00> : vector<256x4xf32>
    %186 = tpu.matmul %183, %185, %cst_61 {dimension_numbers = #tpu.dot_dimension_numbers<[1], [0], [0], [1], [0, 0, 1, 1], [], []>} : vector<256x4xf32>, vector<4x4xf32>, vector<256x4xf32> -> vector<256x4xf32>
    %187 = arith.addf %131, %186 : vector<256x4xf32>
    %188 = vector.extract_strided_slice %181 {offsets = [0, 1, 0], sizes = [16, 16, 4], strides = [1, 1, 1]} : vector<18x18x4xf32> to vector<16x16x4xf32>
    %189 = vector.shape_cast %188 : vector<16x16x4xf32> to vector<256x4xf32>
    %190 = vector.extract_strided_slice %3 {offsets = [0, 1, 0, 0], sizes = [1, 1, 4, 4], strides = [1, 1, 1, 1]} : vector<3x3x4x4xf32> to vector<1x1x4x4xf32>
    %191 = vector.shape_cast %190 : vector<1x1x4x4xf32> to vector<4x4xf32>
    %cst_62 = arith.constant dense<0.000000e+00> : vector<256x4xf32>
    %192 = tpu.matmul %189, %191, %cst_62 {dimension_numbers = #tpu.dot_dimension_numbers<[1], [0], [0], [1], [0, 0, 1, 1], [], []>} : vector<256x4xf32>, vector<4x4xf32>, vector<256x4xf32> -> vector<256x4xf32>
    %193 = arith.addf %187, %192 : vector<256x4xf32>
    %194 = vector.extract_strided_slice %181 {offsets = [0, 2, 0], sizes = [16, 16, 4], strides = [1, 1, 1]} : vector<18x18x4xf32> to vector<16x16x4xf32>
    %195 = vector.shape_cast %194 : vector<16x16x4xf32> to vector<256x4xf32>
    %196 = vector.extract_strided_slice %3 {offsets = [0, 2, 0, 0], sizes = [1, 1, 4, 4], strides = [1, 1, 1, 1]} : vector<3x3x4x4xf32> to vector<1x1x4x4xf32>
    %197 = vector.shape_cast %196 : vector<1x1x4x4xf32> to vector<4x4xf32>
    %cst_63 = arith.constant dense<0.000000e+00> : vector<256x4xf32>
    %198 = tpu.matmul %195, %197, %cst_63 {dimension_numbers = #tpu.dot_dimension_numbers<[1], [0], [0], [1], [0, 0, 1, 1], [], []>} : vector<256x4xf32>, vector<4x4xf32>, vector<256x4xf32> -> vector<256x4xf32>
    %199 = arith.addf %193, %198 : vector<256x4xf32>
    %200 = vector.extract_strided_slice %181 {offsets = [1, 0, 0], sizes = [16, 16, 4], strides = [1, 1, 1]} : vector<18x18x4xf32> to vector<16x16x4xf32>
    %201 = vector.shape_cast %200 : vector<16x16x4xf32> to vector<256x4xf32>
    %202 = vector.extract_strided_slice %3 {offsets = [1, 0, 0, 0], sizes = [1, 1, 4, 4], strides = [1, 1, 1, 1]} : vector<3x3x4x4xf32> to vector<1x1x4x4xf32>
    %203 = vector.shape_cast %202 : vector<1x1x4x4xf32> to vector<4x4xf32>
    %cst_64 = arith.constant dense<0.000000e+00> : vector<256x4xf32>
    %204 = tpu.matmul %201, %203, %cst_64 {dimension_numbers = #tpu.dot_dimension_numbers<[1], [0], [0], [1], [0, 0, 1, 1], [], []>} : vector<256x4xf32>, vector<4x4xf32>, vector<256x4xf32> -> vector<256x4xf32>
    %205 = arith.addf %199, %204 : vector<256x4xf32>
    %206 = vector.extract_strided_slice %181 {offsets = [1, 1, 0], sizes = [16, 16, 4], strides = [1, 1, 1]} : vector<18x18x4xf32> to vector<16x16x4xf32>
    %207 = vector.shape_cast %206 : vector<16x16x4xf32> to vector<256x4xf32>
    %208 = vector.extract_strided_slice %3 {offsets = [1, 1, 0, 0], sizes = [1, 1, 4, 4], strides = [1, 1, 1, 1]} : vector<3x3x4x4xf32> to vector<1x1x4x4xf32>
    %209 = vector.shape_cast %208 : vector<1x1x4x4xf32> to vector<4x4xf32>
    %cst_65 = arith.constant dense<0.000000e+00> : vector<256x4xf32>
    %210 = tpu.matmul %207, %209, %cst_65 {dimension_numbers = #tpu.dot_dimension_numbers<[1], [0], [0], [1], [0, 0, 1, 1], [], []>} : vector<256x4xf32>, vector<4x4xf32>, vector<256x4xf32> -> vector<256x4xf32>
    %211 = arith.addf %205, %210 : vector<256x4xf32>
    %212 = vector.extract_strided_slice %181 {offsets = [1, 2, 0], sizes = [16, 16, 4], strides = [1, 1, 1]} : vector<18x18x4xf32> to vector<16x16x4xf32>
    %213 = vector.shape_cast %212 : vector<16x16x4xf32> to vector<256x4xf32>
    %214 = vector.extract_strided_slice %3 {offsets = [1, 2, 0, 0], sizes = [1, 1, 4, 4], strides = [1, 1, 1, 1]} : vector<3x3x4x4xf32> to vector<1x1x4x4xf32>
    %215 = vector.shape_cast %214 : vector<1x1x4x4xf32> to vector<4x4xf32>
    %cst_66 = arith.constant dense<0.000000e+00> : vector<256x4xf32>
    %216 = tpu.matmul %213, %215, %cst_66 {dimension_numbers = #tpu.dot_dimension_numbers<[1], [0], [0], [1], [0, 0, 1, 1], [], []>} : vector<256x4xf32>, vector<4x4xf32>, vector<256x4xf32> -> vector<256x4xf32>
    %217 = arith.addf %211, %216 : vector<256x4xf32>
    %218 = vector.extract_strided_slice %181 {offsets = [2, 0, 0], sizes = [16, 16, 4], strides = [1, 1, 1]} : vector<18x18x4xf32> to vector<16x16x4xf32>
    %219 = vector.shape_cast %218 : vector<16x16x4xf32> to vector<256x4xf32>
    %220 = vector.extract_strided_slice %3 {offsets = [2, 0, 0, 0], sizes = [1, 1, 4, 4], strides = [1, 1, 1, 1]} : vector<3x3x4x4xf32> to vector<1x1x4x4xf32>
    %221 = vector.shape_cast %220 : vector<1x1x4x4xf32> to vector<4x4xf32>
    %cst_67 = arith.constant dense<0.000000e+00> : vector<256x4xf32>
    %222 = tpu.matmul %219, %221, %cst_67 {dimension_numbers = #tpu.dot_dimension_numbers<[1], [0], [0], [1], [0, 0, 1, 1], [], []>} : vector<256x4xf32>, vector<4x4xf32>, vector<256x4xf32> -> vector<256x4xf32>
    %223 = arith.addf %217, %222 : vector<256x4xf32>
    %224 = vector.extract_strided_slice %181 {offsets = [2, 1, 0], sizes = [16, 16, 4], strides = [1, 1, 1]} : vector<18x18x4xf32> to vector<16x16x4xf32>
    %225 = vector.shape_cast %224 : vector<16x16x4xf32> to vector<256x4xf32>
    %226 = vector.extract_strided_slice %3 {offsets = [2, 1, 0, 0], sizes = [1, 1, 4, 4], strides = [1, 1, 1, 1]} : vector<3x3x4x4xf32> to vector<1x1x4x4xf32>
    %227 = vector.shape_cast %226 : vector<1x1x4x4xf32> to vector<4x4xf32>
    %cst_68 = arith.constant dense<0.000000e+00> : vector<256x4xf32>
    %228 = tpu.matmul %225, %227, %cst_68 {dimension_numbers = #tpu.dot_dimension_numbers<[1], [0], [0], [1], [0, 0, 1, 1], [], []>} : vector<256x4xf32>, vector<4x4xf32>, vector<256x4xf32> -> vector<256x4xf32>
    %229 = arith.addf %223, %228 : vector<256x4xf32>
    %230 = vector.extract_strided_slice %181 {offsets = [2, 2, 0], sizes = [16, 16, 4], strides = [1, 1, 1]} : vector<18x18x4xf32> to vector<16x16x4xf32>
    %231 = vector.shape_cast %230 : vector<16x16x4xf32> to vector<256x4xf32>
    %232 = vector.extract_strided_slice %3 {offsets = [2, 2, 0, 0], sizes = [1, 1, 4, 4], strides = [1, 1, 1, 1]} : vector<3x3x4x4xf32> to vector<1x1x4x4xf32>
    %233 = vector.shape_cast %232 : vector<1x1x4x4xf32> to vector<4x4xf32>
    %cst_69 = arith.constant dense<0.000000e+00> : vector<256x4xf32>
    %234 = tpu.matmul %231, %233, %cst_69 {dimension_numbers = #tpu.dot_dimension_numbers<[1], [0], [0], [1], [0, 0, 1, 1], [], []>} : vector<256x4xf32>, vector<4x4xf32>, vector<256x4xf32> -> vector<256x4xf32>
    %235 = arith.addf %229, %234 : vector<256x4xf32>
    %c0_70 = arith.constant 0 : index
    %c0_71 = arith.constant 0 : index
    %236 = vector.load %arg6[%c0_70, %c0_71] : memref<4x4xf32, #tpu.memory_space<vmem>>, vector<4x4xf32>
    %cst_72 = arith.constant dense<0.000000e+00> : vector<256x4xf32>
    %237 = tpu.matmul %235, %236, %cst_72 {dimension_numbers = #tpu.dot_dimension_numbers<[1], [0], [0], [1], [0, 0, 1, 1], [], []>} : vector<256x4xf32>, vector<4x4xf32>, vector<256x4xf32> -> vector<256x4xf32>
    %cst_73 = arith.constant 0.000000e+00 : f32
    %238 = vector.broadcast %cst_73 : f32 to vector<256x4xf32>
    %239 = arith.maximumf %237, %238 : vector<256x4xf32>
    %c0_74 = arith.constant 0 : index
    %c2_75 = arith.constant 2 : index
    %c2_76 = arith.constant 2 : index
    %c0_77 = arith.constant 0 : index
    %240 = vector.load %arg1[%c0_74, %c2_75, %c2_76, %c0_77] : memref<1x20x20x4xf32, #tpu.memory_space<vmem>>, vector<1x16x16x4xf32>
    %241 = vector.shape_cast %240 : vector<1x16x16x4xf32> to vector<16x16x4xf32>
    %242 = vector.shape_cast %241 : vector<16x16x4xf32> to vector<256x4xf32>
    %243 = vector.extract_strided_slice %181 {offsets = [1, 1, 0], sizes = [16, 16, 4], strides = [1, 1, 1]} : vector<18x18x4xf32> to vector<16x16x4xf32>
    %244 = vector.shape_cast %243 : vector<16x16x4xf32> to vector<256x4xf32>
    %c0_78 = arith.constant 0 : index
    %c0_79 = arith.constant 0 : index
    %245 = vector.load %arg7[%c0_78, %c0_79] : memref<4x4xf32, #tpu.memory_space<vmem>>, vector<4x4xf32>
    %cst_80 = arith.constant dense<0.000000e+00> : vector<256x4xf32>
    %246 = tpu.matmul %242, %245, %cst_80 {dimension_numbers = #tpu.dot_dimension_numbers<[1], [0], [0], [1], [0, 0, 1, 1], [], []>} : vector<256x4xf32>, vector<4x4xf32>, vector<256x4xf32> -> vector<256x4xf32>
    %c0_81 = arith.constant 0 : index
    %c0_82 = arith.constant 0 : index
    %247 = vector.load %arg8[%c0_81, %c0_82] : memref<4x4xf32, #tpu.memory_space<vmem>>, vector<4x4xf32>
    %cst_83 = arith.constant dense<0.000000e+00> : vector<256x4xf32>
    %248 = tpu.matmul %244, %247, %cst_83 {dimension_numbers = #tpu.dot_dimension_numbers<[1], [0], [0], [1], [0, 0, 1, 1], [], []>} : vector<256x4xf32>, vector<4x4xf32>, vector<256x4xf32> -> vector<256x4xf32>
    %249 = arith.addf %246, %248 : vector<256x4xf32>
    %c0_84 = arith.constant 0 : index
    %c0_85 = arith.constant 0 : index
    %250 = vector.load %arg9[%c0_84, %c0_85] : memref<4x4xf32, #tpu.memory_space<vmem>>, vector<4x4xf32>
    %cst_86 = arith.constant dense<0.000000e+00> : vector<256x4xf32>
    %251 = tpu.matmul %239, %250, %cst_86 {dimension_numbers = #tpu.dot_dimension_numbers<[1], [0], [0], [1], [0, 0, 1, 1], [], []>} : vector<256x4xf32>, vector<4x4xf32>, vector<256x4xf32> -> vector<256x4xf32>
    %252 = arith.addf %249, %251 : vector<256x4xf32>
    %253 = arith.addf %252, %242 : vector<256x4xf32>
    %254 = vector.shape_cast %253 : vector<256x4xf32> to vector<16x16x4xf32>
    %c0_87 = arith.constant 0 : index
    %c0_88 = arith.constant 0 : index
    %c0_89 = arith.constant 0 : index
    %c0_90 = arith.constant 0 : index
    %255 = vector.load %arg10[%c0_87, %c0_88, %c0_89, %c0_90] : memref<1x16x16x4xf32, #tpu.memory_space<vmem>>, vector<1x16x16x4xf32>
    %256 = vector.shape_cast %255 : vector<1x16x16x4xf32> to vector<16x16x4xf32>
    %257 = vector.shape_cast %254 : vector<16x16x4xf32> to vector<1x16x16x4xf32>
    tpu.vector_store %arg10[%c0_87, %c0_88, %c0_89, %c0_90], %257 {strides = array<i32>} : memref<1x16x16x4xf32, #tpu.memory_space<vmem>>, vector<1x16x16x4xf32>,
    return
  }
  func.func @transform_0(%arg0: i32) -> (i32, i32, i32, i32) {
    %c0_i32 = arith.constant 0 : i32
    %c0_i32_0 = arith.constant 0 : i32
    %c0_i32_1 = arith.constant 0 : i32
    %c0_i32_2 = arith.constant 0 : i32
    return %arg0, %c0_i32, %c0_i32_0, %c0_i32_1 : i32, i32, i32, i32
  }
  func.func @transform_1(%arg0: i32) -> (i32, i32, i32) {
    %c0_i32 = arith.constant 0 : i32
    %c0_i32_0 = arith.constant 0 : i32
    %c0_i32_1 = arith.constant 0 : i32
    %c0_i32_2 = arith.constant 0 : i32
    return %c0_i32, %c0_i32_0, %c0_i32_1 : i32, i32, i32
  }
  func.func @transform_2(%arg0: i32) -> (i32, i32) {
    %c0_i32 = arith.constant 0 : i32
    %c0_i32_0 = arith.constant 0 : i32
    %c0_i32_1 = arith.constant 0 : i32
    return %c0_i32, %c0_i32_0 : i32, i32
  }
  func.func @transform_3(%arg0: i32) -> (i32, i32, i32, i32) {
    %c0_i32 = arith.constant 0 : i32
    %c0_i32_0 = arith.constant 0 : i32
    %c0_i32_1 = arith.constant 0 : i32
    %c0_i32_2 = arith.constant 0 : i32
    %c0_i32_3 = arith.constant 0 : i32
    return %c0_i32, %c0_i32_0, %c0_i32_1, %c0_i32_2 : i32, i32, i32, i32
  }
  func.func @transform_4(%arg0: i32) -> (i32, i32, i32, i32) {
    %c0_i32 = arith.constant 0 : i32
    %c0_i32_0 = arith.constant 0 : i32
    %c0_i32_1 = arith.constant 0 : i32
    %c0_i32_2 = arith.constant 0 : i32
    %c0_i32_3 = arith.constant 0 : i32
    return %c0_i32, %c0_i32_0, %c0_i32_1, %c0_i32_2 : i32, i32, i32, i32
  }
  func.func @transform_5(%arg0: i32) -> (i32, i32) {
    %c0_i32 = arith.constant 0 : i32
    %c0_i32_0 = arith.constant 0 : i32
    %c0_i32_1 = arith.constant 0 : i32
    return %c0_i32, %c0_i32_0 : i32, i32
  }
  func.func @transform_6(%arg0: i32) -> (i32, i32) {
    %c0_i32 = arith.constant 0 : i32
    %c0_i32_0 = arith.constant 0 : i32
    %c0_i32_1 = arith.constant 0 : i32
    return %c0_i32, %c0_i32_0 : i32, i32
  }
  func.func @transform_7(%arg0: i32) -> (i32, i32) {
    %c0_i32 = arith.constant 0 : i32
    %c0_i32_0 = arith.constant 0 : i32
    %c0_i32_1 = arith.constant 0 : i32
    return %c0_i32, %c0_i32_0 : i32, i32
  }
  func.func @transform_8(%arg0: i32) -> (i32, i32) {
    %c0_i32 = arith.constant 0 : i32
    %c0_i32_0 = arith.constant 0 : i32
    %c0_i32_1 = arith.constant 0 : i32
    return %c0_i32, %c0_i32_0 : i32, i32
  }
  func.func @transform_9(%arg0: i32) -> (i32, i32, i32, i32) {
    %c0_i32 = arith.constant 0 : i32
    %c0_i32_0 = arith.constant 0 : i32
    %c0_i32_1 = arith.constant 0 : i32
    %c0_i32_2 = arith.constant 0 : i32
    return %arg0, %c0_i32, %c0_i32_0, %c0_i32_1 : i32, i32, i32, i32
  }
}

</mosaic_0001>

<bundles_post_ra>
// kernel: sepconv_forward.1
= control target key start
LH: loop header
LB: loop body
LE: loop exit
PB: predicated region body
PF: predicated region fallthrough
CT: control target
= control target key end

     0   :  { %s15622_s30 = smov 0   ;;  %s20793_s0 = inlined_call_operand.vmem [shape: f32[2,20,20,4], index: 0, kind: input, shape index: {}]   ;;  %s20794_s1 = inlined_call_operand.vmem [shape: f32[3,3,4], index: 1, kind: input, shape index: {}]   ;;  %s20795_s2 = inlined_call_operand.vmem [shape: f32[4,4], index: 2, kind: input, shape index: {}]   ;;  %s20796_s3 = inlined_call_operand.vmem [shape: f32[3,3,4,4], index: 3, kind: input, shape index: {}]   ;;  %s20797_s4 = inlined_call_operand.vmem [shape: f32[3,3,4,4], index: 4, kind: input, shape index: {}]   ;;  %s20798_s5 = inlined_call_operand.vmem [shape: f32[4,4], index: 5, kind: input, shape index: {}]   ;;  %s20799_s6 = inlined_call_operand.vmem [shape: f32[4,4], index: 6, kind: input, shape index: {}]   ;;  %s20800_s7 = inlined_call_operand.vmem [shape: f32[4,4], index: 7, kind: input, shape index: {}]   ;;  %s20801_s8 = inlined_call_operand.vmem [shape: f32[4,4], index: 8, kind: input, shape index: {}]   ;;  %s20802_s9 = inlined_call_operand.vmem [shape: f32[2,16,16,4], index: 9, kind: output, shape index: {}]  }
   0x1 LB: > { %s11564_s10 = sadd.s32 4294967295, %s15565_s30   ;;  %p11568_p0 = scmp.ge.s32.totalorder %s15565_s30, 1  ;;  %s15565_s30 = sphi %s15622_s30, %s19_s30  }
   0x2   : > { %p287_p1 = scmp.lt.s32.totalorder %s15565_s30, 3 }
   0x4   : > { %p288_p2 = pnand %p11568_p0, %p287_p1 }
   0x6   : > { %291 = sbr.rel (%p288_p2) target bundleno = 1878 (0x756), region = 56 }
   0xd   : > { %p323_p3 = scmp.lt.s32.totalorder %s11564_s10, 1  ;;  %v409_v0 = vlaneseq  ;;  %v20803_v1 = vmov 0   ;;  %v333_v3 = vld [vmem:[%s20794_s1] sm:$0x7]  ;;  %v334_v4 = vld [vmem:[%s20794_s1 + $0x4] sm:$0x7] }
   0xe   : > { %15102 = vset.pattern.permute.xlu1 %v20803_v1  ;;  %15101 = vset.pattern.permute.xlu0 %v20803_v1  ;;  %v335_v5 = vld [vmem:[%s20794_s1 + $0x8] sm:$0x7]  ;;  %vm1009_vm0 = vcmask 1043456   ;;  %vm569_vm1 = vcmask 1046528   ;;  %vm944_vm2 = vcmask 31744   ;;  %vm8130_vm5 = vcmask 1045504  }
   0xf   : > { %s21661_s10 = smov (!%p323_p3, %s11564_s10), 1  ;;  %v15634_v2 = vshrl.u32 %v409_v0, 7 }
  0x10   : > { %s15087_s15 = smul.u32 480, %s21661_s10 }
  0x11   : > { %21093 = vst [vmem:[#allocation2_spill] sm:$0xff] %v15634_v2  ;;  %v15647_v6 = vsub.s32 0, %v15634_v2  ;;  %v15650_v7 = vsub.s32 1, %v15634_v2  ;;  %v15653_v8 = vsub.s32 2, %v15634_v2 }
  0x12   : > { %s15658_s20 = scalar_lea.vmem %s20793_s0, %s15087_s15 }
  0x13   : > { %21094 = vst [vmem:[#allocation3_spill] sm:$0xff] %v15647_v6  ;;  %21095 = vst [vmem:[#allocation4_spill] sm:$0xff] %v15650_v7  ;;  %v15661_v9 = vrot.slane %v333_v3, %v15647_v6  ;;  %v15664_v10 = vrot.slane %v333_v3, %v15650_v7  ;;  %v15667_v11 = vrot.slane %v333_v3, %v15653_v8  ;;  %v359_v13 = vld [vmem:[%s15658_s20 + $0x20] sm:$0xff]  ;;  %v15691_v23 = vld [vmem:[%s15658_s20 + $0x38] sm:$0xff] }
  0x14   : > { %21096 = vst [vmem:[#allocation5_spill] sm:$0xff] %v15653_v8  ;;  %v15670_v12 = vrot.slane %v334_v4, %v15647_v6  ;;  %v654_v14 = vld [vmem:[%s15658_s20 + $0x21] sm:$0xff]  ;;  %v15676_v16 = vrot.slane %v334_v4, %v15650_v7  ;;  %v15679_v17 = vrot.slane %v334_v4, %v15653_v8  ;;  %v15682_v18 = vrot.slane %v335_v5, %v15647_v6  ;;  %v15694_v24 = vld [vmem:[%s15658_s20 + $0x39] sm:$0xff]  ;;  %v15703_v27 = vld [vmem:[%s15658_s20 + $0x50] sm:$0xff] }
  0x15   : > { %v1534_v15 = vld [vmem:[%s15658_s20 + $0x22] sm:$0xff]  ;;  %v15685_v19 = vrot.slane %v335_v5, %v15650_v7  ;;  %v417_v20 = vmul.f32 %v15661_v9, %v359_v13  ;;  %v712_v21 = vmul.f32 %v15664_v10, %v654_v14  ;;  %v15697_v25 = vld [vmem:[%s15658_s20 + $0x3a] sm:$0xff]  ;;  %v15700_v26 = vrot.slane %v335_v5, %v15653_v8  ;;  %v15706_v28 = vld [vmem:[%s15658_s20 + $0x51] sm:$0xff] }
  0x16   : > { %v1592_v22 = vmul.f32 %v15667_v11, %v1534_v15  ;;  %21099 = vst [vmem:[#allocation8_spill] sm:$0xff] %v15706_v28  ;;  %v15709_v29 = vld [vmem:[%s15658_s20 + $0x52] sm:$0xff]  ;;  %v2211_v31 = vmul.f32 %v15691_v23, %v15670_v12  ;;  %v2829_v32 = vmul.f32 %v15694_v24, %v15676_v16  ;;  %v1533_v35 = vld [vmem:[%s15658_s20 + $0x1a] sm:$0xff]  ;;  %v3447_v36 = vmul.f32 %v15697_v25, %v15679_v17  ;;  %v15737_v50 = vld [vmem:[%s15658_s20 + $0x48] sm:$0xff] }
  0x17   : > { %21097 = vst [vmem:[#allocation6_spill] sm:$0xff] %v15685_v19  ;;  %21098 = vst [vmem:[#allocation7_spill] sm:$0xff] %v15700_v26  ;;  %v766_v30 = vadd.f32 %v712_v21, %v417_v20  ;;  %v358_v33 = vld [vmem:[%s15658_s20 + $0x18] sm:$0xff]  ;;  %v1591_v39 = vmul.f32 %v15667_v11, %v1533_v35  ;;  %v11674_v40 = vld [vmem:[%s15658_s20 + $0x30] sm:$0xff]  ;;  %v4066_v44 = vmul.f32 %v15703_v27, %v15682_v18 }
  0x18   : > { %v653_v34 = vld [vmem:[%s15658_s20 + $0x19] sm:$0xff]  ;;  %v416_v37 = vmul.f32 %v15661_v9, %v358_v33  ;;  %v11761_v41 = vld [vmem:[%s15658_s20 + $0x31] sm:$0xff]  ;;  %v4684_v45 = vmul.f32 %v15706_v28, %v15685_v19  ;;  %v15732_v46 = vmul.f32 %v15709_v29, %v15700_v26  ;;  %v2210_v48 = vmul.f32 %v11674_v40, %v15670_v12  ;;  %v15742_v53 = vld [vmem:[%s15658_s20 + $0x49] sm:$0xff] }
  0x19   : > { %v711_v38 = vmul.f32 %v15664_v10, %v653_v34  ;;  %v11848_v42 = vld [vmem:[%s15658_s20 + $0x32] sm:$0xff]  ;;  %v1646_v43 = vadd.f32 %v1592_v22, %v766_v30  ;;  %v2828_v49 = vmul.f32 %v11761_v41, %v15676_v16  ;;  %v423_v51 = vmul.f32 %v15703_v27, %v15661_v9  ;;  %v15753_v61 = vld [vmem:[%s15658_s20 + $0x4a] sm:$0xff]  ;;  %v15756_v62 = vld [vmem:[%s15658_s20 + $0x60] sm:$0xff] }
  0x1a   : > { %v419_v54 = vmul.f32 %v11674_v40, %v15661_v9  ;;  %v714_v55 = vmul.f32 %v11761_v41, %v15664_v10  ;;  %v1594_v56 = vmul.f32 %v11848_v42, %v15667_v11  ;;  %v3446_v58 = vmul.f32 %v11848_v42, %v15679_v17  ;;  %v15765_v5 = vld [vmem:[%s15658_s20 + $0x61] sm:$0xff]  ;;  %v15780_v30 = vld [vmem:[%s15658_s20 + $0x69] sm:$0xff]  ;;  %v15787_v35 = vld [vmem:[%s15658_s20 + $0x78] sm:$0xff] }
  0x1b   : > { %v765_v47 = vadd.f32 %v711_v38, %v416_v37  ;;  %v2265_v52 = vadd.f32 %v2211_v31, %v1646_v43  ;;  %v4065_v59 = vmul.f32 %v15737_v50, %v15682_v18  ;;  %v4683_v60 = vmul.f32 %v15742_v53, %v15685_v19  ;;  %v15768_v13 = vld [vmem:[%s15658_s20 + $0x68] sm:$0xff]  ;;  %v15790_v37 = vld [vmem:[%s15658_s20 + $0x79] sm:$0xff]  ;;  %v15850_v1 = vld [vmem:[%s15658_s20 + $0xb0] sm:$0xff] }
  0x1c   : > { %v15760_v0 = vmul.f32 %v15753_v61, %v15700_v26  ;;  %v768_v3 = vadd.f32 %v714_v55, %v419_v54  ;;  %v2213_v4 = vmul.f32 %v15737_v50, %v15670_v12  ;;  %v2831_v15 = vmul.f32 %v15742_v53, %v15676_v16  ;;  %v15773_v20 = vld [vmem:[%s15658_s20 + $0x62] sm:$0xff]  ;;  %v15797_v41 = vld [vmem:[%s15658_s20 + $0x6a] sm:$0xff]  ;;  %v15800_v42 = vld [vmem:[%s15658_s20 + $0x7a] sm:$0xff]  ;;  %21104 = vst [vmem:[#allocation13_spill] sm:$0xff] %v15850_v1 }
  0x1d   : > { %v1645_v57 = vadd.f32 %v1591_v39, %v765_v47  ;;  %v2883_v63 = vadd.f32 %v2829_v32, %v2265_v52  ;;  %v718_v21 = vmul.f32 %v15706_v28, %v15664_v10  ;;  %v1598_v22 = vmul.f32 %v15709_v29, %v15667_v11  ;;  %v15807_v52 = vld [vmem:[%s15658_s20 + $0x90] sm:$0xff]  ;;  %v15810_v55 = vld [vmem:[%s15658_s20 + $0x80] sm:$0xff] }
  0x1e   : > { %v1648_v32 = vadd.f32 %v1594_v56, %v768_v3  ;;  %v3449_v33 = vmul.f32 %v15753_v61, %v15679_v17  ;;  %v4068_v34 = vmul.f32 %v15756_v62, %v15682_v18  ;;  %v4686_v39 = vmul.f32 %v15765_v5, %v15685_v19  ;;  %v15813_v56 = vld [vmem:[%s15658_s20 + $0x81] sm:$0xff] }
  0x1f   : > { %v2264_v14 = vadd.f32 %v2210_v48, %v1645_v57  ;;  %v3501_v31 = vadd.f32 %v3447_v36, %v2883_v63  ;;  %v772_v40 = vadd.f32 %v718_v21, %v423_v51  ;;  %v2217_v36 = vmul.f32 %v15768_v13, %v15670_v12  ;;  %v15879_v2 = vld [vmem:[%s15658_s20 + $0xc0] sm:$0xff] }
  0x20   : > { %v2267_v47 = vadd.f32 %v2213_v4, %v1648_v32  ;;  %v5304_v48 = vmul.f32 %v15773_v20, %v15700_v26  ;;  %v723_v57 = vmul.f32 %v15664_v10, %v15790_v37  ;;  %v3453_v4 = vmul.f32 %v15797_v41, %v15679_v17  ;;  %21107 = vst [vmem:[#allocation16_spill] sm:$0xff] %v15879_v2 }
  0x21   : > { %v2882_v38 = vadd.f32 %v2828_v49, %v2264_v14  ;;  %v4120_v43 = vadd.f32 %v4066_v44, %v3501_v31  ;;  %v2835_v49 = vmul.f32 %v15780_v30, %v15676_v16  ;;  %v1652_v54 = vadd.f32 %v1598_v22, %v772_v40  ;;  %v15824_v14 = vld [vmem:[%s15658_s20 + $0x91] sm:$0xff] }
  0x22   : > { %v428_v44 = vmul.f32 %v15661_v9, %v15787_v35  ;;  %v2885_v3 = vadd.f32 %v2831_v15, %v2267_v47  ;;  %v2222_v32 = vmul.f32 %v15807_v52, %v15670_v12  ;;  %v15835_v15 = vld [vmem:[%s15658_s20 + $0x99] sm:$0xff]  ;;  %v2226_v6 = vmul.f32 %v15850_v1, %v15670_v12 }
  0x23   : > { %v3500_v51 = vadd.f32 %v3446_v58, %v2882_v38  ;;  %v4738_v63 = vadd.f32 %v4684_v45, %v4120_v43  ;;  %v1603_v58 = vmul.f32 %v15667_v11, %v15800_v42  ;;  %v2271_v22 = vadd.f32 %v2217_v36, %v1652_v54  ;;  %v15829_v38 = vld [vmem:[%s15658_s20 + $0x92] sm:$0xff]  ;;  %21102 = vst [vmem:[#allocation11_spill] sm:$0xff] %v15835_v15  ;;  %v15845_v47 = vld [vmem:[%s15658_s20 + $0x9a] sm:$0xff] }
  0x24   : > { %v777_v31 = vadd.f32 %v723_v57, %v428_v44  ;;  %21100 = vst [vmem:[#allocation9_spill] sm:$0xff] %v15829_v38  ;;  %v15832_v45 = vld [vmem:[%s15658_s20 + $0x98] sm:$0xff]  ;;  %v3503_v43 = vadd.f32 %v3449_v33, %v2885_v3  ;;  %v4690_v36 = vmul.f32 %v15813_v56, %v15685_v19  ;;  %21103 = vst [vmem:[#allocation12_spill] sm:$0xff] %v15845_v47  ;;  %v15854_v33 = vld [vmem:[%s15658_s20 + $0x82] sm:$0xff] }
  0x25   : > { %v4119_v21 = vadd.f32 %v4065_v59, %v3500_v51  ;;  %21101 = vst [vmem:[#allocation10_spill] sm:$0xff] %v15832_v45  ;;  %v15838_v40 = vadd.f32 %v15732_v46, %v4738_v63  ;;  %v4072_v59 = vmul.f32 %v15810_v55, %v15682_v18  ;;  %v2889_v54 = vadd.f32 %v2835_v49, %v2271_v22  ;;  %v15859_v3 = vld [vmem:[%s15658_s20 + $0xa8] sm:$0xff] }
  0x26   : > { %v1657_v44 = vadd.f32 %v1603_v58, %v777_v31  ;;  %v2840_v57 = vmul.f32 %v15824_v14, %v15676_v16  ;;  %v4122_v46 = vadd.f32 %v4068_v34, %v3503_v43  ;;  %v3458_v63 = vmul.f32 %v15829_v38, %v15679_v17  ;;  %v15869_v22 = vld [vmem:[%s15658_s20 + $0xa9] sm:$0xff]  ;;  %v15874_v43 = vld [vmem:[%s15658_s20 + $0xb1] sm:$0xff] }
  0x27   : > { %v4737_v51 = vadd.f32 %v4683_v60, %v4119_v21  ;;  %5880 = vperm.xlu1 %15102, %v15838_v40   ;;  %v432_v60 = vmul.f32 %v15661_v9, %v15832_v45  ;;  %v727_v49 = vmul.f32 %v15664_v10, %v15835_v15  ;;  %v3507_v21 = vadd.f32 %v3453_v4, %v2889_v54  ;;  %v15890_v54 = vld [vmem:[%s15658_s20 + $0xaa] sm:$0xff] }
  0x28   : > { %v2276_v34 = vadd.f32 %v2222_v32, %v1657_v44  ;;  %v1607_v31 = vmul.f32 %v15667_v11, %v15845_v47  ;;  %21106 = vst [vmem:[#allocation15_spill] sm:$0xff] %v15874_v43  ;;  %v4740_v8 = vadd.f32 %v4686_v39, %v4122_v46  ;;  %v5308_v32 = vmul.f32 %v15854_v33, %v15700_v26  ;;  %v15893_v44 = vld [vmem:[%s15658_s20 + $0xb2] sm:$0xff]  ;;  %v15896_v46 = vld [vmem:[%s15658_s20 + $0xc2] sm:$0xff] }
  0x29   : > { %v15866_v58 = vadd.f32 %v15760_v0, %v4737_v51  ;;  %v781_v7 = vadd.f32 %v727_v49, %v432_v60  ;;  %v15882_v0 = vld [vmem:[%s15658_s20 + $0xc1] sm:$0xff]  ;;  %v4126_v4 = vadd.f32 %v4072_v59, %v3507_v21  ;;  %v4077_v39 = vmul.f32 %v15859_v3, %v15682_v18  ;;  %21109 = vst [vmem:[#allocation18_spill] sm:$0xff] %v15890_v54 }
  0x2a   : > { %21108 = vst [vmem:[#allocation17_spill] sm:$0xff] %v15882_v0  ;;  %v2894_v51 = vadd.f32 %v2840_v57, %v2276_v34  ;;  %21110 = vst [vmem:[#allocation19_spill] sm:$0xff] %v15893_v44  ;;  %v20815_v60 = vmov 1   ;;  %v15899_v49 = vadd.f32 %v5304_v48, %v4740_v8  ;;  %v4695_v59 = vmul.f32 %v15869_v22, %v15685_v19  ;;  %v15906_v34 = vld [vmem:[%s15658_s20 + $0xd8] sm:$0xff]  ;;  %v15910_v15 = vld [vmem:[%s15658_s20 + $0xc8] sm:$0xff] }
  0x2b   : > { %21105 = vst [vmem:[#allocation14_spill] sm:$0xff] %v15866_v58  ;;  %5875 = vperm.xlu0 %15101, %v15866_v58   ;;  %21111 = vst [vmem:[#allocation20_spill] sm:$0xff] %v15896_v46  ;;  %15103 = vset.pattern.permute.xlu1 %v20815_v60  ;;  %v1661_v57 = vadd.f32 %v1607_v31, %v781_v7  ;;  %v2844_v21 = vmul.f32 %v15874_v43, %v15676_v16  ;;  %v15917_v48 = vld [vmem:[%s15658_s20 + $0xd9] sm:$0xff] }
  0x2c   : > { %21112 = vst [vmem:[#allocation21_spill] sm:$0xff] %v15906_v34  ;;  %6257 = vperm.xlu1 %15103, %v15838_v40   ;;  %v4744_v1 = vadd.f32 %v4690_v36, %v4126_v4  ;;  %v3512_v47 = vadd.f32 %v3458_v63, %v2894_v51  ;;  %21113 = vst [vmem:[#allocation22_spill] sm:$0xff] %v15910_v15  ;;  %v437_v8 = vmul.f32 %v15661_v9, %v15879_v2  ;;  %v15926_v4 = vld [vmem:[%s15658_s20 + $0xe0] sm:$0xff]  ;;  %v15935_v2 = vld [vmem:[%s15658_s20 + $0xc9] sm:$0xff] }
  0x2d   : > { %v732_v7 = vmul.f32 %v15664_v10, %v15882_v0  ;;  %21114 = vst [vmem:[#allocation23_spill] sm:$0xff] %v15917_v48  ;;  %v5313_v31 = vmul.f32 %v15890_v54, %v15700_v26  ;;  %v2280_v60 = vadd.f32 %v2226_v6, %v1661_v57  ;;  %v3462_v36 = vmul.f32 %v15893_v44, %v15679_v17  ;;  %v15929_v51 = vld [vmem:[%s15658_s20 + $0xe1] sm:$0xff] }
  0x2e   : > { %v1612_v63 = vmul.f32 %v15667_v11, %v15896_v46  ;;  %21115 = vst [vmem:[#allocation24_spill] sm:$0xff] %v15926_v4  ;;  %21116 = vst [vmem:[#allocation25_spill] sm:$0xff] %v15929_v51  ;;  %v15932_v43 = vadd.f32 %v5308_v32, %v4744_v1  ;;  %v4131_v0 = vadd.f32 %v4077_v39, %v3512_v47  ;;  %v15940_v44 = vld [vmem:[%s15658_s20 + $0xda] sm:$0xff]  ;;  %v15943_v46 = vld [vmem:[%s15658_s20 + $0xe2] sm:$0xff]  ;;  %v20829_v39 = vmov 2  }
  0x2f   : > { %5890 = vperm.xlu0 %15101, %v15899_v49   ;;  %21117 = vst [vmem:[#allocation26_spill] sm:$0xff] %v15935_v2  ;;  %v786_v6 = vadd.f32 %v732_v7, %v437_v8  ;;  %v2231_v57 = vmul.f32 %v15906_v34, %v15670_v12  ;;  %21118 = vst [vmem:[#allocation27_spill] sm:$0xff] %v15940_v44  ;;  %v2898_v54 = vadd.f32 %v2844_v21, %v2280_v60  ;;  %v15950_v47 = vld [vmem:[%s15658_s20 + $0xf8] sm:$0xff]  ;;  %v15956_v7 = vld [vmem:[%s15658_s20 + $0xca] sm:$0xff] }
  0x30   : > { %21119 = vst [vmem:[#allocation28_spill] sm:$0xff] %v15943_v46  ;;  %v4081_v45 = vmul.f32 %v15910_v15, %v15682_v18  ;;  %v2849_v1 = vmul.f32 %v15917_v48, %v15676_v16  ;;  %21120 = vst [vmem:[#allocation29_spill] sm:$0xff] %v15950_v47  ;;  %v420_v32 = vmul.f32 %v15691_v23, %v15661_v9  ;;  %15104 = vset.pattern.permute.xlu1 %v20829_v39  ;;  %v15959_v60 = vld [vmem:[%s15658_s20 + $0xf0] sm:$0xff]  ;;  %v15966_v15 = vld [vmem:[%s15658_s20 + $0xf9] sm:$0xff] }
  0x31   : > { %v4749_v8 = vadd.f32 %v4695_v59, %v4131_v0  ;;  %21121 = vst [vmem:[#allocation30_spill] sm:$0xff] %v15956_v7  ;;  %v1666_v34 = vadd.f32 %v1612_v63, %v786_v6  ;;  %21122 = vst [vmem:[#allocation31_spill] sm:$0xff] %v15959_v60  ;;  %v441_v21 = vmul.f32 %v15661_v9, %v15926_v4  ;;  %6581 = vperm.xlu1 %15104, %v15866_v58  }
  0x32   : > { %v736_v48 = vmul.f32 %v15664_v10, %v15929_v51  ;;  %21123 = vst [vmem:[#allocation32_spill] sm:$0xff] %v15966_v15  ;;  %v3516_v23 = vadd.f32 %v3462_v36, %v2898_v54  ;;  %v4699_v0 = vmul.f32 %v15935_v2, %v15685_v19  ;;  %v3467_v59 = vmul.f32 %v15940_v44, %v15679_v17  ;;  %v15979_v51 = vld [vmem:[%s15658_s20 + $0xf1] sm:$0xff]  ;;  %v15984_v36 = vld [vmem:[%s15658_s20 + $0xfa] sm:$0xff] }
  0x33   : > { %v1616_v63 = vmul.f32 %v15667_v11, %v15943_v46  ;;  %5910 = vperm.xlu0 %15101, %v15932_v43   ;;  %v15976_v6 = vadd.f32 %v5313_v31, %v4749_v8  ;;  %v2285_v39 = vadd.f32 %v2231_v57, %v1666_v34  ;;  %21124 = vst [vmem:[#allocation33_spill] sm:$0xff] %v15979_v51  ;;  %21125 = vst [vmem:[#allocation34_spill] sm:$0xff] %v15984_v36  ;;  %v15993_v57 = vld [vmem:[%s15658_s20 + $0xf2] sm:$0xff] }
  0x34   : > { %v790_v58 = vadd.f32 %v736_v48, %v441_v21  ;;  %v2235_v54 = vmul.f32 %v15950_v47, %v15670_v12  ;;  %v4135_v4 = vadd.f32 %v4081_v45, %v3516_v23  ;;  %v5317_v44 = vmul.f32 %v15956_v7, %v15700_v26  ;;  %21126 = vst [vmem:[#allocation35_spill] sm:$0xff] %v15993_v57  ;;  %v15996_v8 = vld [vmem:[%s15658_s20 + $0x110] sm:$0xff]  ;;  %v16076_v7 = vld [vmem:[%s15658_s20 + $0x140] sm:$0xff]  ;;  %v16079_v2 = vld [vmem:[%s15658_s20 + $0x138] sm:$0xff] }
  0x35   : > { %v4086_v46 = vmul.f32 %v15959_v60, %v15682_v18  ;;  %v2853_v31 = vmul.f32 %v15966_v15, %v15676_v16  ;;  %v2903_v34 = vadd.f32 %v2849_v1, %v2285_v39  ;;  %21127 = vst [vmem:[#allocation36_spill] sm:$0xff] %v15996_v8  ;;  %v715_v45 = vmul.f32 %v15694_v24, %v15664_v10  ;;  %v16018_v15 = vld [vmem:[%s15658_s20 + $0x109] sm:$0xff] }
  0x36   : > { %v1670_v48 = vadd.f32 %v1616_v63, %v790_v58  ;;  %v1595_v21 = vmul.f32 %v15697_v25, %v15667_v11  ;;  %v21128_v23 = vmov 1   ;;  %v4753_v47 = vadd.f32 %v4699_v0, %v4135_v4  ;;  %v16010_v63 = vld [vmem:[%s15658_s20 + $0x108] sm:$0xff]  ;;  %v16015_v4 = vld [vmem:[%s15658_s20 + $0x111] sm:$0xff]  ;;  %21131 = vst [vmem:[#allocation39_spill] sm:$0xff] %v16018_v15  ;;  %21143 = vst [vmem:[#allocation50_spill] sm:$0xff] %v16076_v7 }
  0x37   : > { %15105 = vset.pattern.permute.xlu1 %v21128_v23  ;;  %v4704_v1 = vmul.f32 %v15979_v51, %v15685_v19  ;;  %v3471_v39 = vmul.f32 %v15984_v36, %v15679_v17  ;;  %v2214_v58 = vmul.f32 %v15703_v27, %v15670_v12  ;;  %21129 = vst [vmem:[#allocation37_spill] sm:$0xff] %v16010_v63  ;;  %21130 = vst [vmem:[#allocation38_spill] sm:$0xff] %v16015_v4  ;;  %v16021_v36 = vld [vmem:[%s15658_s20 + $0x10a] sm:$0xff] }
  0x38   : > { %5935 = vperm.xlu0 %15101, %v15976_v6   ;;  %6265 = vperm.xlu1 %15105, %v15899_v49   ;;  %v3521_v24 = vadd.f32 %v3467_v59, %v2903_v34  ;;  %v2289_v25 = vadd.f32 %v2235_v54, %v1670_v48  ;;  %v769_v0 = vadd.f32 %v715_v45, %v420_v32  ;;  %v16032_v32 = vld [vmem:[%s15658_s20 + $0x112] sm:$0xff] }
  0x39   : > { %21132 = vst [vmem:[#allocation40_spill] sm:$0xff] %v16021_v36  ;;  %v16023_v51 = vadd.f32 %v5317_v44, %v4753_v47  ;;  %v5322_v27 = vmul.f32 %v15993_v57, %v15700_v26  ;;  %v4090_v60 = vmul.f32 %v15996_v8, %v15682_v18  ;;  %v2832_v59 = vmul.f32 %v15706_v28, %v15676_v16  ;;  %v16037_v47 = vld [vmem:[%s15658_s20 + $0x120] sm:$0xff] }
  0x3a   : > { %v4140_v54 = vadd.f32 %v4086_v46, %v3521_v24  ;;  %v2907_v34 = vadd.f32 %v2853_v31, %v2289_v25  ;;  %21134 = vst [vmem:[#allocation42_spill] sm:$0xff] %v16032_v32  ;;  %v1649_v48 = vadd.f32 %v1595_v21, %v769_v0  ;;  %v446_v44 = vmul.f32 %v15661_v9, %v16010_v63  ;;  %v16048_v24 = vld [vmem:[%s15658_s20 + $0x121] sm:$0xff] }
  0x3b   : > { %21133 = vst [vmem:[#allocation41_spill] sm:$0xff] %v16023_v51  ;;  %21135 = vst [vmem:[#allocation43_spill] sm:$0xff] %v16037_v47  ;;  %v4708_v45 = vmul.f32 %v16015_v4, %v15685_v19  ;;  %v3450_v8 = vmul.f32 %v15709_v29, %v15679_v17  ;;  %v741_v46 = vmul.f32 %v15664_v10, %v16018_v15  ;;  %v21137_v21 = vmov 2   ;;  %v16053_v4 = vld [vmem:[%s15658_s20 + $0x128] sm:$0xff] }
  0x3c   : > { %v1621_v31 = vmul.f32 %v15667_v11, %v16021_v36  ;;  %21136 = vst [vmem:[#allocation44_spill] sm:$0xff] %v16048_v24  ;;  %5955 = vperm.xlu0 %15101, %v16023_v51   ;;  %15106 = vset.pattern.permute.xlu1 %v21137_v21  ;;  %v4758_v25 = vadd.f32 %v4704_v1, %v4140_v54  ;;  %21138 = vst [vmem:[#allocation45_spill] sm:$0xff] %v16053_v4  ;;  %v16056_v29 = vld [vmem:[%s15658_s20 + $0x129] sm:$0xff] }
  0x3d   : > { %v3525_v0 = vadd.f32 %v3471_v39, %v2907_v34  ;;  %v2268_v28 = vadd.f32 %v2214_v58, %v1649_v48  ;;  %21139 = vst [vmem:[#allocation46_spill] sm:$0xff] %v16056_v29  ;;  %v16059_v15 = vld [vmem:[%s15658_s20 + $0x12a] sm:$0xff]  ;;  %6585 = vperm.xlu1 %15106, %v15838_v40   ;;  %v5326_v36 = vmul.f32 %v16032_v32, %v15700_v26  ;;  %v16073_v57 = vld [vmem:[%s15658_s20 + $0x122] sm:$0xff]  ;;  %21144 = vst [vmem:[#allocation51_spill] sm:$0xff] %v16079_v2 }
  0x3e   : > { %21140 = vst [vmem:[#allocation47_spill] sm:$0xff] %v16059_v15  ;;  %v4069_v63 = vmul.f32 %v15768_v13, %v15682_v18  ;;  %v795_v1 = vadd.f32 %v741_v46, %v446_v44  ;;  %v2240_v39 = vmul.f32 %v16037_v47, %v15670_v12  ;;  %v16068_v58 = vadd.f32 %v5322_v27, %v4758_v25  ;;  %v16088_v27 = vld [vmem:[%s15658_s20 + $0x141] sm:$0xff] }
  0x3f   : > { %v4144_v54 = vadd.f32 %v4090_v60, %v3525_v0  ;;  %v2886_v34 = vadd.f32 %v2832_v59, %v2268_v28  ;;  %v2858_v48 = vmul.f32 %v16048_v24, %v15676_v16  ;;  %21142 = vst [vmem:[#allocation49_spill] sm:$0xff] %v16073_v57  ;;  %v450_v44 = vmul.f32 %v15661_v9, %v16053_v4  ;;  %v16096_v0 = vld [vmem:[%s15658_s20 + $0x150] sm:$0xff]  ;;  %v16110_v4 = vld [vmem:[%s15658_s20 + $0x142] sm:$0xff] }
  0x40   : > { %21141 = vst [vmem:[#allocation48_spill] sm:$0xff] %v16068_v58  ;;  %v1675_v32 = vadd.f32 %v1621_v31, %v795_v1  ;;  %v745_v60 = vmul.f32 %v15664_v10, %v16056_v29  ;;  %v1625_v28 = vmul.f32 %v15667_v11, %v16059_v15  ;;  %21145 = vst [vmem:[#allocation52_spill] sm:$0xff] %v16088_v27  ;;  %5980 = vperm.xlu0 %15101, %v16068_v58   ;;  %v16099_v1 = vld [vmem:[%s15658_s20 + $0x151] sm:$0xff]  ;;  %v21148_v15 = vmov 0  }
  0x41   : > { %v4762_v59 = vadd.f32 %v4708_v45, %v4144_v54  ;;  %v3504_v46 = vadd.f32 %v3450_v8, %v2886_v34  ;;  %v4687_v31 = vmul.f32 %v15780_v30, %v15685_v19  ;;  %v5305_v25 = vmul.f32 %v15797_v41, %v15700_v26  ;;  %21146 = vst [vmem:[#allocation53_spill] sm:$0xff] %v16096_v0  ;;  %v16105_v8 = vld [vmem:[%s15658_s20 + $0x139] sm:$0xff] }
  0x42   : > { %21147 = vst [vmem:[#allocation54_spill] sm:$0xff] %v16099_v1  ;;  %15107 = vset.pattern.permute.xlu1 %v21148_v15  ;;  %v2294_v29 = vadd.f32 %v2240_v39, %v1675_v32  ;;  %v3476_v45 = vmul.f32 %v16073_v57, %v15679_v17  ;;  %21149 = vst [vmem:[#allocation55_spill] sm:$0xff] %v16105_v8  ;;  %v799_v54 = vadd.f32 %v745_v60, %v450_v44  ;;  %v16113_v24 = vld [vmem:[%s15658_s20 + $0x152] sm:$0xff]  ;;  %v16122_v57 = vld [vmem:[%s15658_s20 + $0x168] sm:$0xff] }
  0x43   : > { %v2244_v34 = vmul.f32 %v16076_v7, %v15670_v12  ;;  %21150 = vst [vmem:[#allocation56_spill] sm:$0xff] %v16110_v4  ;;  %21151 = vst [vmem:[#allocation57_spill] sm:$0xff] %v16113_v24  ;;  %v16115_v47 = vadd.f32 %v5326_v36, %v4762_v59  ;;  %v4123_v38 = vadd.f32 %v4069_v63, %v3504_v46  ;;  %v16125_v60 = vld [vmem:[%s15658_s20 + $0x13a] sm:$0xff]  ;;  %v16135_v59 = vld [vmem:[%s15658_s20 + $0x169] sm:$0xff] }
  0x44   : > { %v4095_v32 = vmul.f32 %v16079_v2, %v15682_v18  ;;  %v2862_v39 = vmul.f32 %v16088_v27, %v15676_v16  ;;  %21153 = vst [vmem:[#allocation59_spill] sm:$0xff] %v16122_v57  ;;  %v2912_v44 = vadd.f32 %v2858_v48, %v2294_v29  ;;  %21154 = vst [vmem:[#allocation60_spill] sm:$0xff] %v16125_v60  ;;  %v16128_v58 = vld [vmem:[%s15658_s20 + $0x158] sm:$0xff] }
  0x45   : > { %21152 = vst [vmem:[#allocation58_spill] sm:$0xff] %v16115_v47  ;;  %v1679_v7 = vadd.f32 %v1625_v28, %v799_v54  ;;  %21155 = vst [vmem:[#allocation61_spill] sm:$0xff] %v16128_v58  ;;  %v455_v36 = vmul.f32 %v15661_v9, %v16096_v0  ;;  %v750_v63 = vmul.f32 %v15664_v10, %v16099_v1  ;;  %6000 = vperm.xlu0 %15101, %v16115_v47   ;;  %v16145_v1 = vld [vmem:[%s15658_s20 + $0x159] sm:$0xff] }
  0x46   : > { %21156 = vst [vmem:[#allocation62_spill] sm:$0xff] %v16135_v59  ;;  %v4741_v46 = vadd.f32 %v4687_v31, %v4123_v38  ;;  %v4713_v29 = vmul.f32 %v16105_v8, %v15685_v19  ;;  %v3480_v48 = vmul.f32 %v16110_v4, %v15679_v17  ;;  %v1630_v28 = vmul.f32 %v15667_v11, %v16113_v24 }
  0x47   : > { %v3530_v54 = vadd.f32 %v3476_v45, %v2912_v44  ;;  %v2298_v27 = vadd.f32 %v2244_v34, %v1679_v7  ;;  %21157 = vst [vmem:[#allocation63_spill] sm:$0xff] %v16145_v1  ;;  %v804_v0 = vadd.f32 %v750_v63, %v455_v36  ;;  %v2249_v2 = vmul.f32 %v16122_v57, %v15670_v12  ;;  %v16158_v45 = vld [vmem:[%s15658_s20 + $0x16a] sm:$0xff]  ;;  %v16161_v44 = vld [vmem:[%s15658_s20 + $0x15a] sm:$0xff] }
  0x48   : > { %v16149_v38 = vadd.f32 %v5305_v25, %v4741_v46  ;;  %v5331_v31 = vmul.f32 %v16125_v60, %v15700_v26  ;;  %v4099_v4 = vmul.f32 %v16128_v58, %v15682_v18  ;;  %v2867_v24 = vmul.f32 %v16135_v59, %v15676_v16  ;;  %21158 = vst [vmem:[#allocation64_spill] sm:$0xff] %v16158_v45  ;;  %v11974_v46 = vld [vmem:[%s15658_s20 + $0x180] sm:$0xff] }
  0x49   : > { %v4149_v7 = vadd.f32 %v4095_v32, %v3530_v54  ;;  %v2916_v34 = vadd.f32 %v2862_v39, %v2298_v27  ;;  %v1684_v36 = vadd.f32 %v1630_v28, %v804_v0  ;;  %v422_v25 = vmul.f32 %v15737_v50, %v15661_v9  ;;  %v16178_v28 = vld [vmem:[%s15658_s20 + $0x181] sm:$0xff] }
  0x4a   : > { %5895 = vperm.xlu1 %15107, %v16149_v38   ;;  %v4717_v63 = vmul.f32 %v16145_v1, %v15685_v19  ;;  %v717_v59 = vmul.f32 %v15742_v53, %v15664_v10  ;;  %v1597_v32 = vmul.f32 %v15753_v61, %v15667_v11  ;;  %v3485_v0 = vmul.f32 %v16158_v45, %v15679_v17 }
  0x4b   : > { %v4767_v27 = vadd.f32 %v4713_v29, %v4149_v7  ;;  %v3534_v39 = vadd.f32 %v3480_v48, %v2916_v34  ;;  %v2303_v54 = vadd.f32 %v2249_v2, %v1684_v36  ;;  %v5335_v50 = vmul.f32 %v16161_v44, %v15700_v26  ;;  %21159 = vst [vmem:[#allocation65_spill] sm:$0xff] %v16178_v28  ;;  %v344_v2 = vld [vmem:[%s20796_s3 + $0x1c] sm:$0xf]  ;;  %v12148_v29 = vld [vmem:[%s15658_s20 + $0x182] sm:$0xff] }
  0x4c   : > { %v771_v57 = vadd.f32 %v717_v59, %v422_v25  ;;  %v2216_v1 = vmul.f32 %v15756_v62, %v15670_v12  ;;  %v4104_v61 = vmul.f32 %v11974_v46, %v15682_v18  ;;  %v2834_v59 = vmul.f32 %v15765_v5, %v15676_v16  ;;  %13729 = vmatprep.subr.msk.mxu0 %vm1009_vm0, %v344_v2 }
  0x4d   : > { %v16182_v58 = vadd.f32 %v5331_v31, %v4767_v27  ;;  %v4153_v60 = vadd.f32 %v4099_v4, %v3534_v39  ;;  %v2921_v8 = vadd.f32 %v2867_v24, %v2303_v54  ;;  %v4722_v24 = vmul.f32 %v16178_v28, %v15685_v19  ;;  %13730 = vmatpush3.msk.msra.mxu0 %vm1009_vm0, %v344_v2 }
  0x4e   : > { %15108 = vset.pattern.permute.xlu1 %v21128_v23  ;;  %v1651_v48 = vadd.f32 %v1597_v32, %v771_v57  ;;  %v3452_v34 = vmul.f32 %v15773_v20, %v15679_v17  ;;  %v425_v57 = vmul.f32 %v15756_v62, %v15661_v9  ;;  %v720_v36 = vmul.f32 %v15765_v5, %v15664_v10 }
  0x4f   : > { %21160 = vst [vmem:[#allocation66_spill] sm:$0xff] %v16182_v58  ;;  %6025 = vperm.xlu0 %15101, %v16182_v58   ;;  %6269 = vperm.xlu1 %15108, %v16149_v38   ;;  %v4771_v31 = vadd.f32 %v4717_v63, %v4153_v60  ;;  %v3539_v4 = vadd.f32 %v3485_v0, %v2921_v8  ;;  %v20883_v46 = vmov 3  }
  0x50   : > { %v2270_v7 = vadd.f32 %v2216_v1, %v1651_v48  ;;  %v5340_v8 = vmul.f32 %v12148_v29, %v15700_v26  ;;  %v4071_v1 = vmul.f32 %v15682_v18, %v15787_v35  ;;  %v4689_v27 = vmul.f32 %v15685_v19, %v15790_v37  ;;  %v360_v48 = vld [vmem:[%s15658_s20 + $0x28] sm:$0x3] }
  0x51   : > { %v16203_v25 = vadd.f32 %v5335_v50, %v4771_v31  ;;  %v4158_v60 = vadd.f32 %v4104_v61, %v3539_v4  ;;  %v774_v39 = vadd.f32 %v720_v36, %v425_v57  ;;  %v1600_v54 = vmul.f32 %v15773_v20, %v15667_v11  ;;  %v655_v20 = vld [vmem:[%s15658_s20 + $0x29] sm:$0x3]  ;;  %v664_v57 = vld [vmem:[%s15658_s20 + $0x71] sm:$0x3] }
  0x52   : > { %v2888_v63 = vadd.f32 %v2834_v59, %v2270_v7  ;;  %v5307_v61 = vmul.f32 %v15700_v26, %v15800_v42  ;;  %v2219_v29 = vmul.f32 %v15670_v12, %v15787_v35  ;;  %v418_v31 = vmul.f32 %v15661_v9, %v360_v48  ;;  %v1535_v35 = vld [vmem:[%s15658_s20 + $0x2a] sm:$0x3] }
  0x53   : > { %21161 = vst [vmem:[#allocation67_spill] sm:$0xff] %v16203_v25  ;;  %6045 = vperm.xlu0 %15101, %v16203_v25   ;;  %15109 = vset.pattern.permute.xlu1 %v20883_v46  ;;  %v4776_v62 = vadd.f32 %v4722_v24, %v4158_v60  ;;  %v1654_v2 = vadd.f32 %v1600_v54, %v774_v39  ;;  %v1544_v39 = vld [vmem:[%s15658_s20 + $0x72] sm:$0x3] }
  0x54   : > { %6913 = vperm.xlu1 %15109, %v15838_v40   ;;  %v3506_v32 = vadd.f32 %v3452_v34, %v2888_v63  ;;  %v713_v4 = vmul.f32 %v15664_v10, %v655_v20  ;;  %v2837_v7 = vmul.f32 %v15676_v16, %v15790_v37  ;;  %v369_v34 = vld [vmem:[%s15658_s20 + $0x70] sm:$0x3]  ;;  %v426_v36 = vmul.f32 %v15768_v13, %v15661_v9 }
  0x55   : > { %v16216_v0 = vadd.f32 %v5340_v8, %v4776_v62  ;;  %v2273_v24 = vadd.f32 %v2219_v29, %v1654_v2  ;;  %v721_v60 = vmul.f32 %v15780_v30, %v15664_v10  ;;  %v3455_v8 = vmul.f32 %v15679_v17, %v15800_v42  ;;  %v11763_v29 = vld [vmem:[%s15658_s20 + $0x41] sm:$0x3] }
  0x56   : > { %v4125_v50 = vadd.f32 %v4071_v1, %v3506_v32  ;;  %v767_v63 = vadd.f32 %v713_v4, %v418_v31  ;;  %v1593_v1 = vmul.f32 %v15667_v11, %v1535_v35  ;;  %v11676_v32 = vld [vmem:[%s15658_s20 + $0x40] sm:$0x3]  ;;  %v722_v13 = vmul.f32 %v15664_v10, %v664_v57  ;;  %v11685_v31 = vld [vmem:[%s15658_s20 + $0x88] sm:$0x3] }
  0x57   : > { %21162 = vst [vmem:[#allocation68_spill] sm:$0xff] %v16216_v0  ;;  %6070 = vperm.xlu0 %15101, %v16216_v0   ;;  %v2891_v62 = vadd.f32 %v2837_v7, %v2273_v24  ;;  %v775_v54 = vadd.f32 %v721_v60, %v426_v36  ;;  %v1601_v42 = vmul.f32 %v15797_v41, %v15667_v11  ;;  %v11850_v36 = vld [vmem:[%s15658_s20 + $0x42] sm:$0x3] }
  0x58   : > { %15110 = vset.pattern.permute.xlu1 %v21148_v15  ;;  %v4743_v40 = vadd.f32 %v4689_v27, %v4125_v50  ;;  %v427_v27 = vmul.f32 %v15661_v9, %v369_v34  ;;  %v1647_v50 = vadd.f32 %v1593_v1, %v767_v63  ;;  %v4074_v2 = vmul.f32 %v15807_v52, %v15682_v18  ;;  %v11772_v63 = vld [vmem:[%s15658_s20 + $0x89] sm:$0x3] }
  0x59   : > { %v1602_v20 = vmul.f32 %v15667_v11, %v1544_v39  ;;  %v429_v41 = vmul.f32 %v15810_v55, %v15661_v9  ;;  %v724_v4 = vmul.f32 %v15813_v56, %v15664_v10  ;;  %v1655_v24 = vadd.f32 %v1601_v42, %v775_v54  ;;  %v21164_v54 = vld [vmem:[#allocation48_spill] sm:$0xff] }
  0x5a   : > { %v16226_v59 = vadd.f32 %v5307_v61, %v4743_v40  ;;  %v2212_v61 = vmul.f32 %v11676_v32, %v15670_v12  ;;  %v3509_v40 = vadd.f32 %v3455_v8, %v2891_v62  ;;  %v776_v48 = vadd.f32 %v722_v13, %v427_v27 }
  0x5b   : > { %15169 = vset.pattern.permute.xlu0 %v21137_v21  ;;  %v2220_v52 = vmul.f32 %v15810_v55, %v15670_v12  ;;  %v2830_v35 = vmul.f32 %v11763_v29, %v15676_v16  ;;  %v4692_v57 = vmul.f32 %v15824_v14, %v15685_v19  ;;  %v2221_v8 = vmul.f32 %v11685_v31, %v15670_v12  ;;  %v11859_v29 = vld [vmem:[%s15658_s20 + $0x8a] sm:$0x3] }
  0x5c   : > { %21163 = vst [vmem:[#allocation69_spill] sm:$0xff] %v16226_v59  ;;  %5905 = vperm.xlu1 %15110, %v16226_v59   ;;  %6593 = vperm.xlu0 %15169, %v15899_v49   ;;  %v2266_v7 = vadd.f32 %v2212_v61, %v1647_v50  ;;  %v4128_v34 = vadd.f32 %v4074_v2, %v3509_v40  ;;  %v21165_v50 = vld [vmem:[#allocation9_spill] sm:$0xff] }
  0x5d   : > { %v1656_v60 = vadd.f32 %v1602_v20, %v776_v48  ;;  %v1604_v55 = vmul.f32 %v15854_v33, %v15667_v11  ;;  %v434_v1 = vmul.f32 %v15859_v3, %v15661_v9  ;;  %v729_v62 = vmul.f32 %v15869_v22, %v15664_v10  ;;  %v11937_v61 = vld [vmem:[%s15658_s20 + $0x58] sm:$0x3]  ;;  %v21166_v20 = vld [vmem:[#allocation10_spill] sm:$0xff] }
  0x5e   : > { %v2274_v32 = vadd.f32 %v2220_v52, %v1655_v24  ;;  %v2838_v27 = vmul.f32 %v15813_v56, %v15676_v16  ;;  %v2884_v13 = vadd.f32 %v2830_v35, %v2266_v7  ;;  %v3448_v39 = vmul.f32 %v11850_v36, %v15679_v17 }
  0x5f   : > { %v4746_v42 = vadd.f32 %v4692_v57, %v4128_v34  ;;  %v5310_v3 = vmul.f32 %v21165_v50, %v15700_v26  ;;  %v2275_v40 = vadd.f32 %v2221_v8, %v1656_v60  ;;  %v2839_v2 = vmul.f32 %v11772_v63, %v15676_v16  ;;  %v21168_v57 = vld [vmem:[#allocation22_spill] sm:$0xff] }
  0x60   : > { %15111 = vset.pattern.permute.xlu1 %v21137_v21  ;;  %6609 = vperm.xlu0 %15169, %v15932_v43   ;;  %v2223_v31 = vmul.f32 %v15670_v12, %v21166_v20  ;;  %v2892_v52 = vadd.f32 %v2838_v27, %v2274_v32  ;;  %v3456_v7 = vmul.f32 %v15854_v33, %v15679_v17  ;;  %v21169_v60 = vld [vmem:[#allocation26_spill] sm:$0xff]  ;;  %v21170_v32 = vld [vmem:[#allocation11_spill] sm:$0xff] }
  0x61   : > { %6597 = vperm.xlu1 %15111, %v16149_v38   ;;  %v3502_v35 = vadd.f32 %v3448_v39, %v2884_v13  ;;  %v4067_v34 = vmul.f32 %v11937_v61, %v15682_v18  ;;  %v438_v36 = vmul.f32 %v21168_v57, %v15661_v9  ;;  %v733_v8 = vmul.f32 %v21169_v60, %v15664_v10  ;;  %v21171_v39 = vld [vmem:[#allocation16_spill] sm:$0xff] }
  0x62   : > { %v16307_v63 = vadd.f32 %v5310_v3, %v4746_v42  ;;  %v2893_v33 = vadd.f32 %v2839_v2, %v2275_v40  ;;  %v2841_v27 = vmul.f32 %v15676_v16, %v21170_v32  ;;  %v2228_v50 = vmul.f32 %v15670_v12, %v21171_v39  ;;  %v21172_v2 = vld [vmem:[#allocation30_spill] sm:$0xff] }
  0x63   : > { %v3510_v61 = vadd.f32 %v3456_v7, %v2892_v52  ;;  %v4075_v42 = vmul.f32 %v15682_v18, %v21166_v20  ;;  %v787_v40 = vadd.f32 %v733_v8, %v438_v36  ;;  %v16332_v20 = vld [vmem:[%s15658_s20 + $0xa1] sm:$0x3]  ;;  %v21174_v52 = vld [vmem:[#allocation12_spill] sm:$0xff]  ;;  %v21175_v36 = vld [vmem:[#allocation17_spill] sm:$0xff] }
  0x64   : > { %6629 = vperm.xlu0 %15169, %v15976_v6   ;;  %v3459_v7 = vmul.f32 %v15679_v17, %v21174_v52  ;;  %v2846_v8 = vmul.f32 %v15676_v16, %v21175_v36 }
  0x65   : > { %15112 = vset.pattern.permute.xlu1 %v20883_v46  ;;  %v4129_v39 = vadd.f32 %v4075_v42, %v3510_v61  ;;  %v4694_v42 = vmul.f32 %v16332_v20, %v15685_v19 }
  0x66   : > { %6921 = vperm.xlu1 %15112, %v15899_v49   ;;  %v778_v49 = vadd.f32 %v724_v4, %v429_v41  ;;  %v783_v41 = vadd.f32 %v729_v62, %v434_v1  ;;  %v21167_v4 = vld [vmem:[#allocation18_spill] sm:$0xff] }
  0x67   : > { %v1609_v24 = vmul.f32 %v21167_v4, %v15667_v11  ;;  %v11946_v1 = vld [vmem:[%s15658_s20 + $0xa0] sm:$0x3]  ;;  %v16329_v4 = vld [vmem:[%s15658_s20 + $0x5a] sm:$0x3] }
  0x68   : > { %6645 = vperm.xlu0 %15169, %v16023_v51   ;;  %v1658_v48 = vadd.f32 %v1604_v55, %v778_v49  ;;  %v16310_v49 = vld [vmem:[%s15658_s20 + $0x59] sm:$0x3]  ;;  %v3457_v55 = vmul.f32 %v11859_v29, %v15679_v17  ;;  %v1613_v29 = vmul.f32 %v21172_v2, %v15667_v11  ;;  %21173 = vst [vmem:[#allocation9_spill] sm:$0xff] %v16329_v4  ;;  %v21178_v2 = vld [vmem:[#allocation31_spill] sm:$0xff]  ;;  %v21202_v51 = vld [vmem:[#allocation44_spill] sm:$0xff] }
  0x69   : > { %v1663_v13 = vadd.f32 %v1609_v24, %v783_v41  ;;  %v4685_v3 = vmul.f32 %v16310_v49, %v15685_v19  ;;  %v4076_v41 = vmul.f32 %v11946_v1, %v15682_v18  ;;  %v16419_v28 = vmul.f32 %v21202_v51, %v15685_v19 }
  0x6a   : > { %15113 = vset.pattern.permute.xlu1 %v21128_v23  ;;  %v2277_v62 = vadd.f32 %v2223_v31, %v1658_v48  ;;  %v4121_v48 = vadd.f32 %v4067_v34, %v3502_v35  ;;  %v3511_v31 = vadd.f32 %v3457_v55, %v2893_v33  ;;  %v4693_v35 = vmul.f32 %v15685_v19, %v21170_v32  ;;  %v16341_v34 = vld [vmem:[%s15658_s20 + $0xa2] sm:$0x3]  ;;  %v21177_v55 = vld [vmem:[#allocation24_spill] sm:$0xff] }
  0x6b   : > { %6281 = vperm.xlu1 %15113, %v15932_v43   ;;  %v2282_v57 = vadd.f32 %v2228_v50, %v1663_v13  ;;  %21176 = vst [vmem:[#allocation10_spill] sm:$0xff] %v16341_v34  ;;  %v1667_v33 = vadd.f32 %v1613_v29, %v787_v40  ;;  %v2232_v1 = vmul.f32 %v15670_v12, %v21177_v55  ;;  %v21180_v29 = vld [vmem:[#allocation13_spill] sm:$0xff] }
  0x6c   : > { %6665 = vperm.xlu0 %15169, %v21164_v54   ;;  %v2895_v24 = vadd.f32 %v2841_v27, %v2277_v62  ;;  %v443_v62 = vmul.f32 %v21178_v2, %v15661_v9  ;;  %v21179_v27 = vld [vmem:[#allocation33_spill] sm:$0xff]  ;;  %v4739_v13 = vadd.f32 %v4685_v3, %v4121_v48  ;;  %v5303_v50 = vmul.f32 %v16329_v4, %v15700_v26  ;;  %v21181_v2 = vld [vmem:[#allocation20_spill] sm:$0xff] }
  0x6d   : > { %v738_v46 = vmul.f32 %v21179_v27, %v15664_v10  ;;  %v4130_v61 = vadd.f32 %v4076_v41, %v3511_v31  ;;  %v4078_v36 = vmul.f32 %v21180_v29, %v15682_v18  ;;  %v2900_v55 = vadd.f32 %v2846_v8, %v2282_v57  ;;  %v21183_v29 = vld [vmem:[#allocation35_spill] sm:$0xff]  ;;  %v21191_v54 = vld [vmem:[#allocation37_spill] sm:$0xff]  ;;  %v21200_v4 = vld [vmem:[#allocation40_spill] sm:$0xff] }
  0x6e   : > { %v3513_v40 = vadd.f32 %v3459_v7, %v2895_v24  ;;  %v4747_v3 = vadd.f32 %v4693_v35, %v4129_v39  ;;  %v5311_v48 = vmul.f32 %v15700_v26, %v21174_v52  ;;  %v5312_v31 = vmul.f32 %v16341_v34, %v15700_v26  ;;  %v21185_v39 = vld [vmem:[#allocation15_spill] sm:$0xff] }
  0x6f   : > { %15114 = vset.pattern.permute.xlu1 %v21137_v21  ;;  %v2286_v41 = vadd.f32 %v2232_v1, %v1667_v33  ;;  %v792_v7 = vadd.f32 %v738_v46, %v443_v62  ;;  %v1618_v57 = vmul.f32 %v21183_v29, %v15667_v11  ;;  %v16369_v8 = vadd.f32 %v5303_v50, %v4739_v13  ;;  %v21186_v33 = vld [vmem:[#allocation19_spill] sm:$0xff]  ;;  %v21187_v46 = vld [vmem:[#allocation21_spill] sm:$0xff] }
  0x70   : > { %6605 = vperm.xlu1 %15114, %v16226_v59   ;;  %6681 = vperm.xlu0 %15169, %v16115_v47   ;;  %v4696_v35 = vmul.f32 %v21185_v39, %v15685_v19  ;;  %v4836_v52 = vrot.slane %v15742_v53, 1  ;;  %v4132_v47 = vadd.f32 %v4078_v36, %v3513_v40  ;;  %v5314_v1 = vmul.f32 %v21186_v33, %v15700_v26  ;;  %v21189_v13 = vld [vmem:[#allocation23_spill] sm:$0xff]  ;;  %v21192_v36 = vld [vmem:[#allocation36_spill] sm:$0xff]  ;;  %v21193_v33 = vld [vmem:[#allocation38_spill] sm:$0xff] }
  0x71   : > { %21184 = vst [vmem:[#allocation18_spill] sm:$0xff] %v16369_v8  ;;  %v4083_v62 = vmul.f32 %v21187_v46, %v15682_v18  ;;  %v21188_v29 = vmov 3   ;;  %v4701_v50 = vmul.f32 %v21189_v13, %v15685_v19  ;;  %v2237_v53 = vmul.f32 %v15670_v12, %v21191_v54  ;;  %v21195_v46 = vld [vmem:[#allocation27_spill] sm:$0xff]  ;;  %v21196_v54 = vld [vmem:[#allocation29_spill] sm:$0xff] }
  0x72   : > { %v5319_v13 = vmul.f32 %v21195_v46, %v15700_v26  ;;  %v16411_v46 = vmul.f32 %v15679_v17, %v21200_v4  ;;  %v373_v4 = vld [vmem:[%s15658_s20 + $0x90] sm:$0xff] }
  0x74   : > { %15115 = vset.pattern.permute.xlu1 %v21148_v15  ;;  %6701 = vperm.xlu0 %15169, %v16182_v58   ;;  %v3464_v58 = vmul.f32 %v15679_v17, %v21181_v2  ;;  %v4748_v2 = vadd.f32 %v4694_v42, %v4130_v61  ;;  %v21190_v61 = vld [vmem:[#allocation28_spill] sm:$0xff] }
  0x75   : > { %5920 = vperm.xlu1 %15115, %v16307_v63   ;;  %v3468_v42 = vmul.f32 %v15679_v17, %v21190_v61  ;;  %v4087_v61 = vmul.f32 %v21196_v54, %v15682_v18  ;;  %v21201_v54 = vld [vmem:[#allocation43_spill] sm:$0xff] }
  0x78   : > { %6717 = vperm.xlu0 %15169, %v16203_v25   ;;  %v21182_v25 = vld [vmem:[#allocation25_spill] sm:$0xff] }
  0x79   : > { %15116 = vset.pattern.permute.xlu1 %v21128_v23  ;;  %v2850_v24 = vmul.f32 %v15676_v16, %v21182_v25  ;;  %v3518_v25 = vadd.f32 %v3464_v58, %v2900_v55  ;;  %v1672_v58 = vadd.f32 %v1618_v57, %v792_v7  ;;  %v447_v55 = vmul.f32 %v21192_v36, %v15661_v9  ;;  %v21198_v36 = vld [vmem:[#allocation34_spill] sm:$0xff] }
  0x7a   : > { %6289 = vperm.xlu1 %15116, %v16307_v63   ;;  %v4750_v7 = vadd.f32 %v4696_v35, %v4132_v47  ;;  %v16405_v34 = vmul.f32 %v21198_v36, %v15700_v26  ;;  %v21203_v47 = vld [vmem:[#allocation8_spill] sm:$0xff] }
  0x7b   : > { %v2904_v40 = vadd.f32 %v2850_v24, %v2286_v41  ;;  %v21197_v41 = vld [vmem:[#allocation32_spill] sm:$0xff]  ;;  %v4137_v57 = vadd.f32 %v4083_v62, %v3518_v25  ;;  %v4837_v35 = vrot.slane %v21203_v47, 1  ;;  %v2291_v62 = vadd.f32 %v2237_v53, %v1672_v58  ;;  %v21207_v47 = vld [vmem:[#allocation51_spill] sm:$0xff]  ;;  %v345_v58 = vld [vmem:[%s20796_s3 + $0x20] sm:$0xf] }
  0x7c   : > { %6737 = vperm.xlu0 %15169, %v16216_v0   ;;  %v16379_v0 = vadd.f32 %v5311_v48, %v4747_v3  ;;  %v742_v3 = vmul.f32 %v21193_v33, %v15664_v10  ;;  %v16393_v48 = vadd.f32 %v5312_v31, %v4748_v2  ;;  %v16401_v24 = vmul.f32 %v21197_v41, %v15685_v19  ;;  %v21199_v31 = vld [vmem:[#allocation39_spill] sm:$0xff]  ;;  %v668_v33 = vld [vmem:[%s15658_s20 + $0x91] sm:$0xff] }
  0x7d   : > { %v2855_v2 = vmul.f32 %v15676_v16, %v21199_v31  ;;  %v3522_v25 = vadd.f32 %v3468_v42, %v2904_v40  ;;  %v21204_v31 = vld [vmem:[#allocation42_spill] sm:$0xff]  ;;  %v452_v45 = vmul.f32 %v21207_v47, %v15661_v9  ;;  %v21208_v42 = vld [vmem:[#allocation55_spill] sm:$0xff]  ;;  %v4839_v40 = vrot.slane %v16310_v49, 1  ;;  %13779 = vmatprep.subr.msk.mxu0 %vm1009_vm0, %v345_v58 }
  0x7e   : > { %15117 = vset.pattern.permute.xlu1 %v21188_v29  ;;  %21194 = vst [vmem:[#allocation22_spill] sm:$0xff] %v16393_v48  ;;  %v796_v36 = vadd.f32 %v742_v3, %v447_v55  ;;  %v747_v53 = vmul.f32 %v21208_v42, %v15664_v10  ;;  %v16441_v55 = vadd.f32 %v5314_v1, %v4750_v7  ;;  %v21211_v47 = vld [vmem:[#allocation47_spill] sm:$0xff]  ;;  %v4841_v1 = vrot.slane %v15765_v5, 1  ;;  %v12027_v7 = vld [vmem:[%s15658_s20 + $0x71] sm:$0x3] }
  0x7f   : > { %6933 = vperm.xlu1 %15117, %v16226_v59   ;;  %v16415_v59 = vmul.f32 %v21201_v54, %v15682_v18  ;;  %v21205_v54 = vld [vmem:[#allocation49_spill] sm:$0xff]  ;;  %v4755_v3 = vadd.f32 %v4701_v50, %v4137_v57  ;;  %v16450_v42 = vmul.f32 %v15679_v17, %v21211_v47  ;;  %v431_v49 = vmul.f32 %v15661_v9, %v373_v4 }
  0x80   : > { %6589 = vperm.xlu0 %15169, %v16369_v8   ;;  %v1622_v8 = vmul.f32 %v21204_v31, %v15667_v11  ;;  %v16431_v51 = vmul.f32 %v21205_v54, %v15700_v26  ;;  %v21209_v31 = vld [vmem:[#allocation45_spill] sm:$0xff]  ;;  %v726_v27 = vmul.f32 %v15664_v10, %v668_v33  ;;  %v4141_v50 = vadd.f32 %v4087_v61, %v3522_v25  ;;  %v21213_v61 = vld [vmem:[#allocation14_spill] sm:$0xff] }
  0x81   : > { %v2241_v54 = vmul.f32 %v15670_v12, %v21209_v31  ;;  %v2909_v57 = vadd.f32 %v2855_v2, %v2291_v62  ;;  %v801_v47 = vadd.f32 %v747_v53, %v452_v45  ;;  %v4840_v33 = vsel %vm569_vm1, %v4837_v35, %v4839_v40  ;;  %v21215_v2 = vld [vmem:[#allocation63_spill] sm:$0xff] }
  0x82   : > { %21206 = vst [vmem:[#allocation26_spill] sm:$0xff] %v16431_v51  ;;  %v1676_v31 = vadd.f32 %v1622_v8, %v796_v36  ;;  %v21212_v51 = vld [vmem:[#allocation60_spill] sm:$0xff]  ;;  %v4842_v5 = vrot.slane %v15780_v30, 1  ;;  %v21214_v8 = vld [vmem:[#allocation61_spill] sm:$0xff]  ;;  %v751_v25 = vmul.f32 %v21215_v2, %v15664_v10  ;;  %v4844_v62 = vrot.slane %v12027_v7, 1 }
  0x83   : > { %15118 = vset.pattern.permute.xlu1 %v21148_v15  ;;  %v1548_v15 = vld [vmem:[%s15658_s20 + $0x92] sm:$0xff]  ;;  %v1627_v4 = vmul.f32 %v21212_v51, %v15667_v11  ;;  %v4846_v45 = vrot.slane %v15790_v37, 1  ;;  %v12030_v36 = vld [vmem:[%s15658_s20 + $0x89] sm:$0x3]  ;;  %v780_v51 = vadd.f32 %v726_v27, %v431_v49  ;;  %v4847_v53 = vrot.slane %v15813_v56, 1 }
  0x84   : > { %5925 = vperm.xlu1 %15118, %v16379_v0   ;;  %6625 = vperm.xlu0 %15169, %v16393_v48   ;;  %v21210_v48 = vld [vmem:[#allocation46_spill] sm:$0xff]  ;;  %v4843_v30 = vsel %vm569_vm1, %v4841_v1, %v4842_v5  ;;  %v16476_v40 = vadd.f32 %v5319_v13, %v4755_v3  ;;  %v21217_v7 = vld [vmem:[#allocation53_spill] sm:$0xff]  ;;  %v11689_v27 = vld [vmem:[%s15658_s20 + $0xa8] sm:$0xff]  ;;  %v1631_v49 = vmul.f32 %v16161_v44, %v15667_v11  ;;  %v4849_v13 = vrot.slane %v12030_v36, 1 }
  0x85   : > { %v2859_v41 = vmul.f32 %v15676_v16, %v21210_v48  ;;  %v4838_v48 = vsel %vm569_vm1, %v4836_v52, %v4837_v35  ;;  %v456_v52 = vmul.f32 %v21214_v8, %v15661_v9  ;;  %v1606_v35 = vmul.f32 %v15667_v11, %v1548_v15 }
  0x86   : > { %13731 = vmatprep.mubr.msk.f32.mxu0 %vm944_vm2, %v4838_v48  ;;  %v2295_v8 = vadd.f32 %v2241_v54, %v1676_v31  ;;  %v2246_v37 = vmul.f32 %v15670_v12, %v21217_v7  ;;  %v1681_v15 = vadd.f32 %v1627_v4, %v801_v47  ;;  %v4845_v56 = vsel %vm569_vm1, %v4842_v5, %v4844_v62  ;;  %v11714_v54 = vld [vmem:[%s15658_s20 + $0x170] sm:$0xff] }
  0x87   : > { %13732 = vmatmul.mubr.msk.f32.vlgmr.msra.gmra.mrb[0].mxu0 %vm944_vm2, %v4840_v33  ;;  %v805_v3 = vadd.f32 %v751_v25, %v456_v52  ;;  %v4848_v1 = vsel %vm569_vm1, %v4846_v45, %v4847_v53  ;;  %v4851_v31 = vrot.slane %v15824_v14, 1  ;;  %v4852_v44 = vrot.slane %v21170_v32, 1  ;;  %v21218_v33 = vld [vmem:[#allocation52_spill] sm:$0xff]  ;;  %v21220_v52 = vld [vmem:[#allocation57_spill] sm:$0xff] }
  0x88   : > { %15119 = vset.pattern.permute.xlu1 %v21137_v21  ;;  %15191 = vset.pattern.permute.xlu0 %v21188_v29  ;;  %v4759_v48 = vadd.f32 %v16401_v24, %v4141_v50  ;;  %v1660_v47 = vadd.f32 %v1606_v35, %v780_v51  ;;  %v2225_v4 = vmul.f32 %v11689_v27, %v15670_v12  ;;  %v378_v50 = vld [vmem:[%s15658_s20 + $0xb8] sm:$0x3]  ;;  %v4854_v25 = vrot.slane %v16332_v20, 1  ;;  %v16538_v27 = vld [vmem:[%s15658_s20 + $0xc1] sm:$0xff] }
  0x89   : > { %6617 = vperm.xlu1 %15119, %v16307_v63   ;;  %6909 = vperm.xlu0 %15191, %v21213_v61   ;;  %v21216_v61 = vld [vmem:[#allocation50_spill] sm:$0xff]  ;;  %v16503_v5 = vmul.f32 %v21218_v33, %v15685_v19  ;;  %v3482_v32 = vmul.f32 %v15679_v17, %v21220_v52  ;;  %v2300_v24 = vadd.f32 %v2246_v37, %v1681_v15  ;;  %v16519_v45 = vld [vmem:[%s15658_s20 + $0x171] sm:$0xff]  ;;  %v4856_v51 = vrot.slane %v15869_v22, 1  ;;  %v1553_v15 = vld [vmem:[%s15658_s20 + $0xba] sm:$0x3] }
  0x8a   : > { %v16480_v2 = vmul.f32 %v21216_v61, %v15682_v18  ;;  %13734 = vmatprep.mubr.msk.f32.mxu0 %vm944_vm2, %v4843_v30  ;;  %13780 = vmatpush3.msk.msra.mxu0 %vm1009_vm0, %v345_v58  ;;  %v3527_v58 = vadd.f32 %v16411_v46, %v2909_v57  ;;  %v21219_v61 = vld [vmem:[#allocation54_spill] sm:$0xff]  ;;  %v2250_v46 = vmul.f32 %v11714_v54, %v15670_v12  ;;  %v673_v57 = vld [vmem:[%s15658_s20 + $0xb9] sm:$0x3]  ;;  %v4857_v35 = vrot.slane %v21185_v39, 1  ;;  %v11863_v22 = vld [vmem:[%s15658_s20 + $0xaa] sm:$0xff] }
  0x8b   : > { %v2864_v14 = vmul.f32 %v15676_v16, %v21219_v61  ;;  %13735 = vmatmul.mubr.msk.f32.gmra.mrb[2].mxu0 %vm944_vm2, %v4845_v56  ;;  %v1685_v62 = vadd.f32 %v1631_v49, %v805_v3  ;;  %v4853_v36 = vsel %vm569_vm1, %v4851_v31, %v4852_v44  ;;  %v12036_v30 = vld [vmem:[%s15658_s20 + $0xb9] sm:$0x3]  ;;  %v436_v39 = vmul.f32 %v15661_v9, %v378_v50  ;;  %v12039_v31 = vld [vmem:[%s15658_s20 + $0xd1] sm:$0x3]  ;;  %v11950_v61 = vld [vmem:[%s15658_s20 + $0xc0] sm:$0xff] }
  0x8c   : > { %13737 = vmatprep.mubr.msk.f32.mxu0 %vm944_vm2, %v4848_v1  ;;  %v4146_v20 = vadd.f32 %v16415_v59, %v3527_v58  ;;  %v731_v37 = vmul.f32 %v15664_v10, %v673_v57  ;;  %v2868_v59 = vmul.f32 %v16519_v45, %v15676_v16  ;;  %v4859_v49 = vrot.slane %v12036_v30, 1  ;;  %v21221_v58 = vld [vmem:[#allocation59_spill] sm:$0xff]  ;;  %v21223_v30 = vld [vmem:[#allocation62_spill] sm:$0xff] }
  0x8d   : > { %15120 = vset.pattern.permute.xlu1 %v21188_v29  ;;  %6925 = vperm.xlu0 %15191, %v16149_v38   ;;  %v2913_v38 = vadd.f32 %v2859_v41, %v2295_v8  ;;  %v4850_v41 = vsel %vm569_vm1, %v4847_v53, %v4849_v13  ;;  %v16527_v53 = vadd.f32 %v16405_v34, %v4759_v48  ;;  %v11888_v13 = vld [vmem:[%s15658_s20 + $0x172] sm:$0xff]  ;;  %v4861_v54 = vrot.slane %v16538_v27, 1  ;;  %v11975_v57 = vld [vmem:[%s15658_s20 + $0x188] sm:$0xff] }
  0x8e   : > { %6937 = vperm.xlu1 %15120, %v15932_v43   ;;  %v11776_v43 = vld [vmem:[%s15658_s20 + $0xa9] sm:$0xff]  ;;  %v2918_v34 = vadd.f32 %v2864_v14, %v2300_v24  ;;  %v2304_v56 = vadd.f32 %v2250_v46, %v1685_v62  ;;  %v4858_v3 = vsel %vm569_vm1, %v4856_v51, %v4857_v35  ;;  %v4862_v1 = vrot.slane %v21169_v60, 1  ;;  %v16564_v24 = vld [vmem:[%s15658_s20 + $0xe1] sm:$0xff] }
  0x8f   : > { %v2843_v8 = vmul.f32 %v11776_v43, %v15676_v16  ;;  %v3531_v7 = vadd.f32 %v16450_v42, %v2913_v38  ;;  %13738 = vmatmul.mubr.msk.f32.gmra.mrb[4].mxu0 %vm944_vm2, %v4850_v41  ;;  %v4855_v42 = vsel %vm569_vm1, %v4852_v44, %v4854_v25  ;;  %v4764_v48 = vadd.f32 %v16419_v28, %v4146_v20  ;;  %v11694_v43 = vld [vmem:[%s15658_s20 + $0xd0] sm:$0x3]  ;;  %v15238_v25 = vld [vmem:[%s15658_s20 + $0xd9] sm:$0xff] }
  0x90   : > { %13740 = vmatprep.mubr.msk.f32.mxu0 %vm944_vm2, %v4853_v36  ;;  %v785_v14 = vadd.f32 %v731_v37, %v436_v39  ;;  %v1611_v60 = vmul.f32 %v15667_v11, %v1553_v15  ;;  %v3536_v28 = vadd.f32 %v3482_v32, %v2918_v34  ;;  %v3486_v52 = vmul.f32 %v11888_v13, %v15679_v17  ;;  %v21222_v36 = vld [vmem:[#allocation56_spill] sm:$0xff]  ;;  %v16584_v34 = vld [vmem:[%s15658_s20 + $0xe9] sm:$0x3] }
  0x91   : > { %6945 = vperm.xlu0 %15191, %v16307_v63   ;;  %v2279_v63 = vadd.f32 %v2225_v4, %v1660_v47  ;;  %v4101_v47 = vmul.f32 %v21221_v58, %v15682_v18  ;;  %v3461_v4 = vmul.f32 %v11863_v22, %v15679_v17  ;;  %v4150_v38 = vadd.f32 %v16480_v2, %v3531_v7  ;;  %v21228_v58 = vld [vmem:[#allocation32_spill] sm:$0xff] }
  0x92   : > { %15121 = vset.pattern.permute.xlu1 %v21128_v23  ;;  %v4860_v46 = vsel %vm569_vm1, %v4857_v35, %v4859_v49  ;;  %v4864_v2 = vrot.slane %v12039_v31, 1  ;;  %v2922_v50 = vadd.f32 %v2868_v59, %v2304_v56  ;;  %v4863_v41 = vsel %vm569_vm1, %v4861_v54, %v4862_v1  ;;  %v11781_v49 = vld [vmem:[%s15658_s20 + $0xd1] sm:$0x3]  ;;  %v21227_v31 = vld [vmem:[#allocation33_spill] sm:$0xff] }
  0x93   : > { %6301 = vperm.xlu1 %15121, %v15976_v6   ;;  %v2897_v44 = vadd.f32 %v2843_v8, %v2279_v63  ;;  %13741 = vmatmul.mubr.msk.f32.gmra.mrb[6].mxu0 %vm944_vm2, %v4855_v42  ;;  %v4866_v32 = vrot.slane %v15238_v25, 1  ;;  %v4867_v62 = vrot.slane %v16564_v24, 1  ;;  %v5332_v51 = vmul.f32 %v21222_v36, %v15700_v26  ;;  %v21224_v8 = vld [vmem:[#allocation26_spill] sm:$0xff]  ;;  %v16624_v25 = vld [vmem:[%s15658_s20 + $0x18a] sm:$0xff] }
  0x94   : > { %13743 = vmatprep.mubr.msk.f32.mxu0 %vm944_vm2, %v4858_v3  ;;  %v4719_v20 = vmul.f32 %v21223_v30, %v15685_v19  ;;  %v4080_v63 = vmul.f32 %v11950_v61, %v15682_v18  ;;  %v16579_v7 = vadd.f32 %v21224_v8, %v4764_v48  ;;  %v4768_v22 = vadd.f32 %v16503_v5, %v4150_v38  ;;  %v16596_v3 = vld [vmem:[%s15658_s20 + $0x189] sm:$0xff] }
  0x95   : > { %6961 = vperm.xlu0 %15191, %v16441_v55   ;;  %v3515_v35 = vadd.f32 %v3461_v4, %v2897_v44  ;;  %v1665_v39 = vadd.f32 %v1611_v60, %v785_v14  ;;  %v2230_v37 = vmul.f32 %v11694_v43, %v15670_v12  ;;  %v21226_v59 = vmov 0   ;;  %v12045_v44 = vld [vmem:[%s15658_s20 + $0x101] sm:$0x3]  ;;  %v16605_v38 = vld [vmem:[%s15658_s20 + $0x109] sm:$0xff] }
  0x96   : > { %21225 = vst [vmem:[#allocation11_spill] sm:$0xff] %v16579_v7  ;;  %v4155_v15 = vadd.f32 %v4101_v47, %v3536_v28  ;;  %v4105_v42 = vmul.f32 %v11975_v57, %v15682_v18  ;;  %v4865_v5 = vsel %vm569_vm1, %v4862_v1, %v4864_v2  ;;  %v4869_v56 = vrot.slane %v16584_v34, 1  ;;  %v21230_v14 = vld [vmem:[#allocation64_spill] sm:$0xff]  ;;  %v16612_v28 = vld [vmem:[%s15658_s20 + $0xc2] sm:$0xff] }
  0x97   : > { %15122 = vset.pattern.permute.xlu1 %v21137_v21  ;;  %13744 = vmatmul.mubr.msk.f32.gmra.mrb[8].mxu0 %vm944_vm2, %v4860_v46  ;;  %v3540_v13 = vadd.f32 %v3486_v52, %v2922_v50  ;;  %v4868_v54 = vsel %vm569_vm1, %v4866_v32, %v4867_v62  ;;  %v4871_v48 = vrot.slane %v21227_v31, 1  ;;  %v4872_v47 = vrot.slane %v21228_v58, 1  ;;  %v11868_v2 = vld [vmem:[%s15658_s20 + $0xd2] sm:$0x3]  ;;  %v16636_v8 = vld [vmem:[%s15658_s20 + $0x129] sm:$0xff] }
  0x98   : > { %6621 = vperm.xlu1 %15122, %v16379_v0   ;;  %13746 = vmatprep.mubr.msk.f32.mxu0 %vm944_vm2, %v4863_v41  ;;  %v4134_v4 = vadd.f32 %v4080_v63, %v3515_v35  ;;  %v4698_v1 = vmul.f32 %v16538_v27, %v15685_v19  ;;  %v16607_v61 = vadd.f32 %v5332_v51, %v4768_v22  ;;  %v4874_v57 = vrot.slane %v12045_v44, 1  ;;  %v21231_v51 = vld [vmem:[#allocation38_spill] sm:$0xff]  ;;  %v16630_v35 = vld [vmem:[%s15658_s20 + $0x119] sm:$0x3] }
  0x99   : > { %6981 = vperm.xlu0 %15191, %v16476_v40   ;;  %v5337_v60 = vmul.f32 %v21230_v14, %v15700_v26  ;;  %v2284_v52 = vadd.f32 %v2230_v37, %v1665_v39  ;;  %v2848_v43 = vmul.f32 %v11781_v49, %v15676_v16  ;;  %v4773_v46 = vadd.f32 %v4719_v20, %v4155_v15  ;;  %v11955_v37 = vld [vmem:[%s15658_s20 + $0xe8] sm:$0x3]  ;;  %v377_v49 = vld [vmem:[%s15658_s20 + $0xb0] sm:$0xff] }
  0x9a   : > { %21229 = vst [vmem:[#allocation16_spill] sm:$0xff] %v16607_v61  ;;  %v4723_v27 = vmul.f32 %v16596_v3, %v15685_v19  ;;  %v4870_v50 = vsel %vm569_vm1, %v4867_v62, %v4869_v56  ;;  %v4159_v41 = vadd.f32 %v4105_v42, %v3540_v13  ;;  %v4873_v32 = vsel %vm569_vm1, %v4871_v48, %v4872_v47  ;;  %v21233_v48 = vld [vmem:[#allocation44_spill] sm:$0xff] }
  0x9b   : > { %13747 = vmatmul.mubr.msk.f32.gmra.mrb[10].mxu0 %vm944_vm2, %v4865_v5  ;;  %v4876_v36 = vrot.slane %v16605_v38, 1  ;;  %v4877_v20 = vrot.slane %v21231_v51, 1  ;;  %v4752_v62 = vadd.f32 %v4698_v1, %v4134_v4  ;;  %v5316_v63 = vmul.f32 %v16612_v28, %v15700_v26  ;;  %v672_v5 = vld [vmem:[%s15658_s20 + $0xb1] sm:$0xff] }
  0x9c   : > { %15123 = vset.pattern.permute.xlu1 %v21226_v59  ;;  %13749 = vmatprep.mubr.msk.f32.mxu0 %vm944_vm2, %v4868_v54  ;;  %v2902_v22 = vadd.f32 %v2848_v43, %v2284_v52  ;;  %v3466_v39 = vmul.f32 %v11868_v2, %v15679_v17  ;;  %v16641_v15 = vadd.f32 %v5337_v60, %v4773_v46  ;;  %v4879_v13 = vrot.slane %v16630_v35, 1  ;;  %v12051_v4 = vld [vmem:[%s15658_s20 + $0x131] sm:$0x3]  ;;  %v21234_v2 = vld [vmem:[#allocation55_spill] sm:$0xff] }
  0x9d   : > { %5940 = vperm.xlu1 %15123, %v16441_v55   ;;  %6997 = vperm.xlu0 %15191, %v16527_v53   ;;  %v5341_v42 = vmul.f32 %v16624_v25, %v15700_v26  ;;  %v4875_v56 = vsel %vm569_vm1, %v4872_v47, %v4874_v57  ;;  %v4777_v54 = vadd.f32 %v4723_v27, %v4159_v41  ;;  %v4881_v58 = vrot.slane %v21233_v48, 1  ;;  %v1552_v43 = vld [vmem:[%s15658_s20 + $0xb2] sm:$0xff] }
  0x9e   : > { %21232 = vst [vmem:[#allocation30_spill] sm:$0xff] %v16641_v15  ;;  %v4878_v31 = vsel %vm569_vm1, %v4876_v36, %v4877_v20  ;;  %v4882_v44 = vrot.slane %v16636_v8, 1  ;;  %v16656_v1 = vadd.f32 %v5316_v63, %v4752_v62  ;;  %v4085_v47 = vmul.f32 %v11955_v37, %v15682_v18  ;;  %v12054_v36 = vld [vmem:[%s15658_s20 + $0x149] sm:$0x3]  ;;  %v16676_v62 = vld [vmem:[%s15658_s20 + $0x151] sm:$0xff]  ;;  %v677_v63 = vld [vmem:[%s15658_s20 + $0xd9] sm:$0xff] }
  0x9f   : > { %13750 = vmatmul.mubr.msk.f32.gmra.mrb[12].mxu0 %vm944_vm2, %v4870_v50  ;;  %v3520_v14 = vadd.f32 %v3466_v39, %v2902_v22  ;;  %v435_v60 = vmul.f32 %v15661_v9, %v377_v49  ;;  %v730_v52 = vmul.f32 %v15664_v10, %v672_v5  ;;  %v4880_v46 = vsel %vm569_vm1, %v4877_v20, %v4879_v13  ;;  %v382_v20 = vld [vmem:[%s15658_s20 + $0xd8] sm:$0xff] }
  0xa0   : > { %13752 = vmatprep.mubr.msk.f32.mxu0 %vm944_vm2, %v4873_v32  ;;  %v4884_v27 = vrot.slane %v12051_v4, 1  ;;  %v4886_v50 = vrot.slane %v21234_v2, 1  ;;  %v4887_v57 = vrot.slane %v21218_v33, 1  ;;  %v16669_v41 = vadd.f32 %v5341_v42, %v4777_v54  ;;  %v16687_v42 = vld [vmem:[%s15658_s20 + $0xea] sm:$0x3] }
  0xa1   : > { %15124 = vset.pattern.permute.xlu1 %v21128_v23  ;;  %7017 = vperm.xlu0 %15191, %v16579_v7   ;;  %v4883_v32 = vsel %vm569_vm1, %v4881_v58, %v4882_v44  ;;  %v4703_v51 = vmul.f32 %v16584_v34, %v15685_v19  ;;  %v4139_v33 = vadd.f32 %v4085_v47, %v3520_v14  ;;  %v11693_v34 = vld [vmem:[%s15658_s20 + $0xc8] sm:$0xff]  ;;  %v4891_v54 = vrot.slane %v16676_v62, 1  ;;  %v16699_v58 = vld [vmem:[%s15658_s20 + $0x161] sm:$0x3]  ;;  %v11968_v7 = vld [vmem:[%s15658_s20 + $0x150] sm:$0xff] }
  0xa2   : > { %6305 = vperm.xlu1 %15124, %v16441_v55   ;;  %21235 = vst [vmem:[#allocation12_spill] sm:$0xff] %v16669_v41  ;;  %v784_v39 = vadd.f32 %v730_v52, %v435_v60  ;;  %v1610_v37 = vmul.f32 %v15667_v11, %v1552_v43  ;;  %v4885_v49 = vsel %vm569_vm1, %v4882_v44, %v4884_v27  ;;  %v1557_v14 = vld [vmem:[%s15658_s20 + $0xda] sm:$0xff]  ;;  %v4894_v2 = vrot.slane %v16699_v58, 1 }
  0xa3   : > { %13753 = vmatmul.mubr.msk.f32.gmra.mrb[14].mxu0 %vm944_vm2, %v4875_v56  ;;  %v4888_v5 = vsel %vm569_vm1, %v4886_v50, %v4887_v57  ;;  %v4889_v56 = vrot.slane %v12054_v36, 1  ;;  %v440_v4 = vmul.f32 %v15661_v9, %v382_v20  ;;  %v735_v47 = vmul.f32 %v15664_v10, %v677_v63 }
  0xa4   : > { %13755 = vmatprep.mubr.msk.f32.mxu0 %vm944_vm2, %v4878_v31  ;;  %v21236_v31 = vld [vmem:[#allocation63_spill] sm:$0xff]  ;;  %v4757_v44 = vadd.f32 %v4703_v51, %v4139_v33  ;;  %v5321_v60 = vmul.f32 %v16687_v42, %v15700_v26  ;;  %v1664_v52 = vadd.f32 %v1610_v37, %v784_v39  ;;  %v2229_v43 = vmul.f32 %v11693_v34, %v15670_v12 }
  0xa5   : > { %7033 = vperm.xlu0 %15191, %v16607_v61   ;;  %v4892_v48 = vrot.slane %v21236_v31, 1  ;;  %v4890_v27 = vsel %vm569_vm1, %v4887_v57, %v4889_v56  ;;  %v4896_v50 = vrot.slane %v21223_v30, 1  ;;  %v4897_v63 = vrot.slane %v16519_v45, 1  ;;  %v12060_v57 = vld [vmem:[%s15658_s20 + $0x179] sm:$0x3]  ;;  %v11698_v30 = vld [vmem:[%s15658_s20 + $0xf0] sm:$0xff] }
  0xa6   : > { %15125 = vset.pattern.permute.xlu1 %v21188_v29  ;;  %v16681_v22 = vpop.permute.xlu1 %5880  ;;  %v789_v33 = vadd.f32 %v735_v47, %v440_v4  ;;  %v1615_v39 = vmul.f32 %v15667_v11, %v1557_v14  ;;  %v16725_v37 = vadd.f32 %v5321_v60, %v4757_v44  ;;  %v4899_v56 = vrot.slane %v12060_v57, 1  ;;  %v386_v47 = vld [vmem:[%s15658_s20 + $0xf8] sm:$0xff]  ;;  %v21240_v60 = vld [vmem:[#allocation22_spill] sm:$0xff] }
  0xa7   : > { %6949 = vperm.xlu1 %15125, %v16379_v0   ;;  %13756 = vmatmul.mubr.msk.f32.gmra.mrb[16].mxu0 %vm944_vm2, %v4880_v46  ;;  %v11780_v46 = vld [vmem:[%s15658_s20 + $0xc9] sm:$0xff]  ;;  %v4893_v20 = vsel %vm569_vm1, %v4891_v54, %v4892_v48  ;;  %v21239_v54 = vld [vmem:[#allocation65_spill] sm:$0xff]  ;;  %v4902_v4 = vrot.slane %v16596_v3, 1  ;;  %v16751_v57 = vld [vmem:[%s15658_s20 + $0x1a1] sm:$0xff] }
  0xa8   : > { %13758 = vmatprep.mubr.msk.f32.mxu0 %vm944_vm2, %v4883_v32  ;;  %v21237_v32 = vld [vmem:[#allocation18_spill] sm:$0xff]  ;;  %21238 = vst [vmem:[#allocation17_spill] sm:$0xff] %v16725_v37  ;;  %v2847_v34 = vmul.f32 %v11780_v46, %v15676_v16  ;;  %v4901_v31 = vrot.slane %v21239_v54, 1  ;;  %v1669_v46 = vadd.f32 %v1615_v39, %v789_v33 }
  0xa9   : > { %7053 = vperm.xlu0 %15191, %v16641_v15   ;;  %v681_v14 = vld [vmem:[%s15658_s20 + $0xf9] sm:$0xff] }
  0xaa   : > { %v16694_v13 = vpop.permute.xlu0 %5875  ;;  %v1561_v44 = vld [vmem:[%s15658_s20 + $0xfa] sm:$0xff]  ;;  %v739_v33 = vmul.f32 %v15664_v10, %v681_v14  ;;  %v4903_v15 = vsel %vm569_vm1, %v4901_v31, %v4902_v4  ;;  %v11872_v14 = vld [vmem:[%s15658_s20 + $0xf2] sm:$0xff] }
  0xab   : > { %15126 = vset.pattern.permute.xlu1 %v21226_v59  ;;  %13759 = vmatmul.mubr.msk.f32.gmra.mrb[18].mxu0 %vm944_vm2, %v4885_v49  ;;  %v16716_v36 = vpop.permute.xlu1 %6257  ;;  %v11867_v49 = vld [vmem:[%s15658_s20 + $0xca] sm:$0xff]  ;;  %v1619_v39 = vmul.f32 %v15667_v11, %v1561_v44 }
  0xac   : > { %5950 = vperm.xlu1 %15126, %v16656_v1   ;;  %13761 = vmatprep.mubr.msk.f32.mxu0 %vm944_vm2, %v4888_v5  ;;  %v4895_v5 = vsel %vm569_vm1, %v4892_v48, %v4894_v2  ;;  %v12063_v48 = vld [vmem:[%s15658_s20 + $0x191] sm:$0x3]  ;;  %v3465_v3 = vmul.f32 %v11867_v49, %v15679_v17  ;;  %v4900_v49 = vsel %vm569_vm1, %v4897_v63, %v4899_v56  ;;  %v12068_v56 = vld [vmem:[%s15658_s20 + $0x1b9] sm:$0xff] }
  0xad   : > { %7069 = vperm.xlu0 %15191, %v16669_v41   ;;  %v11785_v2 = vld [vmem:[%s15658_s20 + $0xf1] sm:$0xff] }
  0xae   : > { %v16718_v51 = vpop.permute.xlu0 %5890 }
  0xaf   : > { %13762 = vmatmul.mubr.msk.f32.gmra.mrb[20].mxu0 %vm944_vm2, %v4890_v27  ;;  %v2234_v27 = vmul.f32 %v11698_v30, %v15670_v12  ;;  %v11954_v30 = vld [vmem:[%s15658_s20 + $0xe0] sm:$0xff] }
  0xb0   : > { %15127 = vset.pattern.permute.xlu1 %v21137_v21  ;;  %13764 = vmatprep.mubr.msk.f32.mxu0 %vm944_vm2, %v4893_v20  ;;  %v16748_v20 = vld [vmem:[%s15658_s20 + $0x199] sm:$0xff]  ;;  %v16753_v54 = vpop.permute.xlu1 %6581 }
  0xb1   : > { %6633 = vperm.xlu1 %15127, %v16441_v55   ;;  %6917 = vperm.xlu0 %15191, %v21237_v32   ;;  %v2283_v55 = vadd.f32 %v2229_v43, %v1664_v52  ;;  %v4898_v43 = vsel %vm569_vm1, %v4896_v50, %v4897_v63  ;;  %v444_v50 = vmul.f32 %v15661_v9, %v386_v47  ;;  %v4906_v44 = vrot.slane %v16748_v20, 1  ;;  %v12066_v32 = vld [vmem:[%s15658_s20 + $0x1a9] sm:$0x3]  ;;  %v12067_v63 = vld [vmem:[%s15658_s20 + $0x1b1] sm:$0xff] }
  0xb2   : > { %v16739_v52 = vpop.permute.xlu0 %5910  ;;  %v2288_v47 = vadd.f32 %v2234_v27, %v1669_v46  ;;  %v11789_v27 = vld [vmem:[%s15658_s20 + $0x111] sm:$0xff]  ;;  %v4909_v61 = vrot.slane %v12066_v32, 1 }
  0xb3   : > { %21241 = vst [vmem:[#allocation24_spill] sm:$0xff] %v16739_v52  ;;  %v2901_v41 = vadd.f32 %v2847_v34, %v2283_v55  ;;  %13765 = vmatmul.mubr.msk.f32.gmra.mrb[22].mxu0 %vm944_vm2, %v4895_v5  ;;  %v4904_v55 = vrot.slane %v12063_v48, 1  ;;  %v2852_v34 = vmul.f32 %v11785_v2, %v15676_v16  ;;  %v21243_v48 = vld [vmem:[#allocation41_spill] sm:$0xff]  ;;  %v2856_v32 = vmul.f32 %v11789_v27, %v15676_v16 }
  0xb4   : > { %13767 = vmatprep.mubr.msk.f32.mxu0 %vm944_vm2, %v4898_v43  ;;  %v793_v43 = vadd.f32 %v739_v33, %v444_v50  ;;  %v3470_v33 = vmul.f32 %v11872_v14, %v15679_v17  ;;  %v4702_v14 = vmul.f32 %v16564_v24, %v15685_v19  ;;  %v21246_v27 = vld [vmem:[#allocation69_spill] sm:$0xff] }
  0xb5   : > { %15128 = vset.pattern.permute.xlu1 %v21188_v29  ;;  %6953 = vperm.xlu0 %15191, %v21240_v60   ;;  %v4907_v60 = vrot.slane %v16751_v57, 1  ;;  %v3519_v2 = vadd.f32 %v3465_v3, %v2901_v41  ;;  %v4905_v50 = vsel %vm569_vm1, %v4902_v4, %v4904_v55  ;;  %v2906_v3 = vadd.f32 %v2852_v34, %v2288_v47  ;;  %v11876_v34 = vld [vmem:[%s15658_s20 + $0x112] sm:$0xff]  ;;  %v16800_v47 = vld [vmem:[%s15658_s20 + $0xe2] sm:$0xff] }
  0xb6   : > { %6957 = vperm.xlu1 %15128, %v15976_v6   ;;  %v11702_v6 = vld [vmem:[%s15658_s20 + $0x110] sm:$0xff]  ;;  %v1673_v46 = vadd.f32 %v1619_v39, %v793_v43  ;;  %v4912_v43 = vrot.slane %v12068_v56, 1 }
  0xb7   : > { %v16766_v5 = vpop.permute.xlu0 %5935  ;;  %v2238_v31 = vmul.f32 %v11702_v6, %v15670_v12  ;;  %13768 = vmatmul.mubr.msk.f32.gmra.mrb[24].mxu0 %vm944_vm2, %v4900_v49  ;;  %v16784_v6 = vpop.permute.xlu1 %6265  ;;  %v4908_v39 = vsel %vm569_vm1, %v4906_v44, %v4907_v60  ;;  %v4911_v49 = vrot.slane %v12067_v63, 1  ;;  %v4910_v44 = vsel %vm569_vm1, %v4907_v60, %v4909_v61 }
  0xb8   : > { %21242 = vst [vmem:[#allocation31_spill] sm:$0xff] %v16766_v5  ;;  %13770 = vmatprep.mubr.msk.f32.mxu0 %vm944_vm2, %v4903_v15  ;;  %v12069_v15 = vld [vmem:[%s15658_s20 + $0x1c1] sm:$0x3]  ;;  %v3524_v56 = vadd.f32 %v3470_v33, %v2906_v3  ;;  %v5320_v60 = vmul.f32 %v16800_v47, %v15700_v26  ;;  %v11963_v33 = vld [vmem:[%s15658_s20 + $0x128] sm:$0xff]  ;;  %v21248_v3 = vld [vmem:[#allocation9_spill] sm:$0xff] }
  0xb9   : > { %6989 = vperm.xlu0 %15191, %v16725_v37   ;;  %v4084_v37 = vmul.f32 %v11954_v30, %v15682_v18  ;;  %v11959_v30 = vld [vmem:[%s15658_s20 + $0x108] sm:$0xff]  ;;  %v21245_v5 = vld [vmem:[#allocation14_spill] sm:$0xff]  ;;  %v2292_v4 = vadd.f32 %v2238_v31, %v1673_v46  ;;  %v4914_v63 = vrot.slane %v12069_v15, 1  ;;  %v4707_v15 = vmul.f32 %v16605_v38, %v15685_v19 }
  0xba   : > { %15129 = vset.pattern.permute.xlu1 %v21128_v23  ;;  %v15239_v31 = vld [vmem:[%s15658_s20 + $0x4a] sm:$0xff] }
  0xbb   : > { %6317 = vperm.xlu1 %15129, %v21243_v48   ;;  %v16786_v41 = vpop.permute.xlu0 %5955  ;;  %v4138_v55 = vadd.f32 %v4084_v37, %v3519_v2  ;;  %13771 = vmatmul.mubr.msk.f32.gmra.mrb[26].mxu0 %vm944_vm2, %v4905_v50  ;;  %v4913_v37 = vsel %vm569_vm1, %v4911_v49, %v4912_v43  ;;  %v5454_v24 = vrot.slane %v15239_v31, 1  ;;  %v15240_v2 = vld [vmem:[%s15658_s20 + $0x52] sm:$0xff]  ;;  %v5457_v49 = vrot.slane %v21248_v3, 1  ;;  %v15241_v31 = vld [vmem:[%s15658_s20 + $0x62] sm:$0xff] }
  0xbc   : > { %21244 = vst [vmem:[#allocation13_spill] sm:$0xff] %v16786_v41  ;;  %13773 = vmatprep.mubr.msk.f32.mxu0 %vm944_vm2, %v4908_v39  ;;  %v5455_v46 = vrot.slane %v15240_v2, 1  ;;  %v3474_v39 = vmul.f32 %v11876_v34, %v15679_v17  ;;  %v16812_v41 = vpop.permute.xlu1 %6585  ;;  %v5459_v38 = vrot.slane %v15241_v31, 1  ;;  %v15242_v2 = vld [vmem:[%s15658_s20 + $0x6a] sm:$0xff]  ;;  %v12114_v3 = vld [vmem:[%s15658_s20 + $0x72] sm:$0x3] }
  0xbd   : > { %15202 = vset.pattern.permute.xlu0 %v21128_v23  ;;  %v4756_v61 = vadd.f32 %v4702_v14, %v4138_v55  ;;  %v346_v55 = vld [vmem:[%s20797_s4] sm:$0xf]  ;;  %v11707_v31 = vld [vmem:[%s15658_s20 + $0x138] sm:$0xff] }
  0xbe   : > { %6253 = vperm.xlu0 %15202, %v21245_v5   ;;  %v4089_v5 = vmul.f32 %v11959_v30, %v15682_v18  ;;  %v2910_v30 = vadd.f32 %v2856_v32, %v2292_v4  ;;  %v16823_v4 = vld [vmem:[%s15658_s20 + $0x10a] sm:$0xff]  ;;  %v4915_v32 = vsel %vm569_vm1, %v4912_v43, %v4914_v63  ;;  %v391_v14 = vld [vmem:[%s15658_s20 + $0x120] sm:$0xff]  ;;  %13829 = vmatprep.subr.msk.mxu0 %vm1009_vm0, %v346_v55 }
  0xbf   : > { %15130 = vset.pattern.permute.xlu1 %v21137_v21  ;;  %v16809_v50 = vpop.permute.xlu0 %5980  ;;  %13774 = vmatmul.mubr.msk.f32.gmra.mrb[28].mxu0 %vm944_vm2, %v4910_v44  ;;  %v5456_v44 = vsel %vm569_vm1, %v5454_v24, %v5455_v46  ;;  %v686_v43 = vld [vmem:[%s15658_s20 + $0x121] sm:$0xff]  ;;  %v16841_v52 = vadd.f32 %v5320_v60, %v4756_v61  ;;  %v449_v24 = vmul.f32 %v15661_v9, %v391_v14 }
  0xc0   : > { %6641 = vperm.xlu1 %15130, %v16656_v1   ;;  %21247 = vst [vmem:[#allocation20_spill] sm:$0xff] %v16809_v50  ;;  %13776 = vmatprep.mubr.msk.f32.mxu0 %vm944_vm2, %v4913_v37  ;;  %v4143_v34 = vadd.f32 %v4089_v5, %v3524_v56  ;;  %v1566_v63 = vld [vmem:[%s15658_s20 + $0x122] sm:$0xff]  ;;  %v3528_v37 = vadd.f32 %v3474_v39, %v2910_v30  ;;  %v5462_v39 = vrot.slane %v12114_v3, 1  ;;  %v11794_v3 = vld [vmem:[%s15658_s20 + $0x139] sm:$0xff] }
  0xc1   : > { %v4093_v50 = vmul.f32 %v11963_v33, %v15682_v18  ;;  %v4711_v5 = vmul.f32 %v16636_v8, %v15685_v19  ;;  %v5325_v56 = vmul.f32 %v16823_v4, %v15700_v26  ;;  %v5458_v30 = vsel %vm569_vm1, %v5455_v46, %v5457_v49  ;;  %v16855_v8 = vld [vmem:[%s15658_s20 + $0x8a] sm:$0x3]  ;;  %v15244_v46 = vld [vmem:[%s15658_s20 + $0x82] sm:$0xff] }
  0xc2   : > { %6277 = vperm.xlu0 %15202, %v21246_v27   ;;  %v5460_v27 = vrot.slane %v15242_v2, 1  ;;  %21250 = vst [vmem:[#allocation35_spill] sm:$0xff] %v16855_v8  ;;  %v744_v61 = vmul.f32 %v15664_v10, %v686_v43  ;;  %v1624_v60 = vmul.f32 %v15667_v11, %v1566_v63  ;;  %v15243_v2 = vld [vmem:[%s15658_s20 + $0x7a] sm:$0xff]  ;;  %v5465_v49 = vrot.slane %v15244_v46, 1  ;;  %v16869_v63 = vld [vmem:[%s15658_s20 + $0x12a] sm:$0xff] }
  0xc3   : > { %13777 = vmatmul.mubr.msk.f32.gmra.mrb[30].mxu0 %vm944_vm2, %v4915_v32  ;;  %v4761_v32 = vadd.f32 %v4707_v15, %v4143_v34  ;;  %v4147_v43 = vadd.f32 %v4093_v50, %v3528_v37  ;;  %v5467_v15 = vrot.slane %v16855_v8, 1  ;;  %v11881_v34 = vld [vmem:[%s15658_s20 + $0x13a] sm:$0xff]  ;;  %v2861_v37 = vmul.f32 %v11794_v3, %v15676_v16  ;;  %v15247_v3 = vld [vmem:[%s15658_s20 + $0xaa] sm:$0xff] }
  0xc4   : > { %15131 = vset.pattern.permute.xlu1 %v21226_v59  ;;  %13781 = vmatprep.mubr.msk.f32.mxu0 %vm944_vm2, %v5456_v44  ;;  %v5461_v14 = vsel %vm569_vm1, %v5459_v38, %v5460_v27  ;;  %v5464_v44 = vrot.slane %v15243_v2, 1  ;;  %v5463_v38 = vsel %vm569_vm1, %v5460_v27, %v5462_v39  ;;  %v15245_v2 = vld [vmem:[%s15658_s20 + $0x92] sm:$0xff]  ;;  %v5329_v8 = vmul.f32 %v16869_v63, %v15700_v26 }
  0xc5   : > { %5965 = vperm.xlu1 %15131, %v16476_v40   ;;  %v5469_v46 = vrot.slane %v15245_v2, 1  ;;  %v12123_v2 = vld [vmem:[%s15658_s20 + $0xba] sm:$0x3] }
  0xc6   : > { %6293 = vperm.xlu0 %15202, %v16379_v0   ;;  %v16850_v0 = vpop.permute.xlu0 %6000 }
  0xc7   : > { %21249 = vst [vmem:[#allocation25_spill] sm:$0xff] %v16850_v0  ;;  %v798_v0 = vadd.f32 %v744_v61, %v449_v24  ;;  %13782 = vmatmul.mubr.msk.f32.vlgmr.msra.gmra.mrb[0].mxu0 %vm944_vm2, %v5458_v30  ;;  %v16880_v24 = vadd.f32 %v5325_v56, %v4761_v32  ;;  %v15246_v61 = vld [vmem:[%s15658_s20 + $0x9a] sm:$0xff] }
  0xc8   : > { %13784 = vmatprep.mubr.msk.f32.mxu0 %vm944_vm2, %v5461_v14  ;;  %13830 = vmatpush3.msk.msra.mxu0 %vm1009_vm0, %v346_v55  ;;  %v5470_v30 = vrot.slane %v15246_v61, 1  ;;  %v4765_v55 = vadd.f32 %v4711_v5, %v4147_v43  ;;  %v21253_v32 = vld [vmem:[#allocation10_spill] sm:$0xff]  ;;  %v4098_v5 = vmul.f32 %v11968_v7, %v15682_v18  ;;  %v5474_v43 = vrot.slane %v15247_v3, 1  ;;  %v16914_v7 = vld [vmem:[%s15658_s20 + $0x152] sm:$0xff] }
  0xc9   : > { %15132 = vset.pattern.permute.xlu1 %v21128_v23  ;;  %v16860_v33 = vpop.permute.xlu1 %5895  ;;  %v1678_v50 = vadd.f32 %v1624_v60, %v798_v0  ;;  %v3479_v0 = vmul.f32 %v11881_v34, %v15679_v17  ;;  %v5468_v60 = vsel %vm569_vm1, %v5465_v49, %v5467_v15  ;;  %v5472_v14 = vrot.slane %v21253_v32, 1  ;;  %v15248_v34 = vld [vmem:[%s15658_s20 + $0xb2] sm:$0xff] }
  0xca   : > { %21251 = vst [vmem:[#allocation15_spill] sm:$0xff] %v16860_v33  ;;  %6325 = vperm.xlu1 %15132, %v16476_v40   ;;  %6313 = vperm.xlu0 %15202, %v16656_v1   ;;  %v2243_v33 = vmul.f32 %v11707_v31, %v15670_v12  ;;  %v5466_v31 = vsel %vm569_vm1, %v5464_v44, %v5465_v49 }
  0xcb   : > { %13785 = vmatmul.mubr.msk.f32.gmra.mrb[2].mxu0 %vm944_vm2, %v5463_v38  ;;  %v4716_v38 = vmul.f32 %v16676_v62, %v15685_v19  ;;  %v16909_v49 = vadd.f32 %v5329_v8, %v4765_v55  ;;  %v5477_v62 = vrot.slane %v12123_v2, 1  ;;  %v5334_v8 = vmul.f32 %v16914_v7, %v15700_v26 }
  0xcc   : > { %v2297_v56 = vadd.f32 %v2243_v33, %v1678_v50  ;;  %13787 = vmatprep.mubr.msk.f32.mxu0 %vm944_vm2, %v5466_v31  ;;  %v5471_v33 = vsel %vm569_vm1, %v5469_v46, %v5470_v30  ;;  %v5473_v46 = vsel %vm569_vm1, %v5470_v30, %v5472_v14  ;;  %v5479_v55 = vrot.slane %v16612_v28, 1 }
  0xcd   : > { %v5487_v2 = vrot.slane %v16687_v42, 1 }
  0xce   : > { %15133 = vset.pattern.permute.xlu1 %v21188_v29  ;;  %v16888_v27 = vpop.permute.xlu0 %6025  ;;  %6329 = vperm.xlu0 %15202, %v16841_v52   ;;  %v16893_v39 = vpop.permute.xlu1 %6269  ;;  %v2915_v44 = vadd.f32 %v2861_v37, %v2297_v56  ;;  %v15249_v56 = vld [vmem:[%s15658_s20 + $0xca] sm:$0xff] }
  0xcf   : > { %21252 = vst [vmem:[#allocation19_spill] sm:$0xff] %v16888_v27  ;;  %6969 = vperm.xlu1 %15133, %v16656_v1   ;;  %v5475_v1 = vrot.slane %v15248_v34, 1  ;;  %13788 = vmatmul.mubr.msk.f32.gmra.mrb[4].mxu0 %vm944_vm2, %v5468_v60  ;;  %v16927_v60 = vld [vmem:[%s15658_s20 + $0xd2] sm:$0x3]  ;;  %v12141_v27 = vld [vmem:[%s15658_s20 + $0x14a] sm:$0x3] }
  0xd0   : > { %v3533_v15 = vadd.f32 %v3479_v0, %v2915_v44  ;;  %13790 = vmatprep.mubr.msk.f32.mxu0 %vm944_vm2, %v5471_v33  ;;  %v5480_v0 = vrot.slane %v15249_v56, 1  ;;  %v5482_v44 = vrot.slane %v16927_v60, 1  ;;  %v15250_v33 = vld [vmem:[%s15658_s20 + $0xda] sm:$0xff] }
  0xd1   : > { %v5476_v61 = vsel %vm569_vm1, %v5474_v43, %v5475_v1  ;;  %v5478_v14 = vsel %vm569_vm1, %v5475_v1, %v5477_v62  ;;  %v5484_v3 = vrot.slane %v15250_v33, 1  ;;  %v5485_v43 = vrot.slane %v16800_v47, 1  ;;  %v15251_v47 = vld [vmem:[%s15658_s20 + $0xf2] sm:$0xff] }
  0xd2   : > { %v16904_v50 = vpop.permute.xlu0 %6045  ;;  %6349 = vperm.xlu0 %15202, %v16880_v24   ;;  %v4152_v37 = vadd.f32 %v4098_v5, %v3533_v15  ;;  %v5481_v5 = vsel %vm569_vm1, %v5479_v55, %v5480_v0  ;;  %v5489_v15 = vrot.slane %v15251_v47, 1 }
  0xd3   : > { %21254 = vst [vmem:[#allocation21_spill] sm:$0xff] %v16904_v50  ;;  %15134 = vset.pattern.permute.xlu1 %v21226_v59  ;;  %v16921_v31 = vpop.permute.xlu1 %6913  ;;  %13791 = vmatmul.mubr.msk.f32.gmra.mrb[6].mxu0 %vm944_vm2, %v5473_v46  ;;  %v15252_v46 = vld [vmem:[%s15658_s20 + $0xfa] sm:$0xff] }
  0xd4   : > { %5970 = vperm.xlu1 %15134, %v16841_v52   ;;  %v4770_v30 = vadd.f32 %v4716_v38, %v4152_v37  ;;  %13793 = vmatprep.mubr.msk.f32.mxu0 %vm944_vm2, %v5476_v61  ;;  %v5486_v38 = vsel %vm569_vm1, %v5484_v3, %v5485_v43  ;;  %v5490_v62 = vrot.slane %v15252_v46, 1  ;;  %v12132_v37 = vld [vmem:[%s15658_s20 + $0x102] sm:$0x3]  ;;  %v5488_v61 = vsel %vm569_vm1, %v5485_v43, %v5487_v2  ;;  %v21258_v43 = vld [vmem:[#allocation48_spill] sm:$0xff] }
  0xd5   : > { %v5492_v55 = vrot.slane %v12132_v37, 1 }
  0xd6   : > { %v16929_v32 = vpop.permute.xlu0 %6070  ;;  %6365 = vperm.xlu0 %15202, %v16909_v49   ;;  %v16937_v28 = vadd.f32 %v5334_v8, %v4770_v30  ;;  %v5491_v56 = vsel %vm569_vm1, %v5489_v15, %v5490_v62  ;;  %v15253_v30 = vld [vmem:[%s15658_s20 + $0x112] sm:$0xff] }
  0xd7   : > { %21255 = vst [vmem:[#allocation23_spill] sm:$0xff] %v16929_v32  ;;  %13794 = vmatmul.mubr.msk.f32.gmra.mrb[8].mxu0 %vm944_vm2, %v5478_v14  ;;  %v5495_v14 = vrot.slane %v15253_v30, 1  ;;  %v5493_v2 = vsel %vm569_vm1, %v5490_v62, %v5492_v55  ;;  %v15254_v30 = vld [vmem:[%s15658_s20 + $0x122] sm:$0xff]  ;;  %v12138_v32 = vld [vmem:[%s15658_s20 + $0x132] sm:$0x3] }
  0xd8   : > { %15135 = vset.pattern.permute.xlu1 %v21137_v21  ;;  %21256 = vst [vmem:[#allocation28_spill] sm:$0xff] %v16937_v28  ;;  %13796 = vmatprep.mubr.msk.f32.mxu0 %vm944_vm2, %v5481_v5  ;;  %v16973_v5 = vld [vmem:[%s15658_s20 + $0x141] sm:$0xff] }
  0xd9   : > { %6653 = vperm.xlu1 %15135, %v16476_v40   ;;  %v5483_v40 = vsel %vm569_vm1, %v5480_v0, %v5482_v44  ;;  %v5494_v0 = vrot.slane %v16823_v4, 1  ;;  %v16969_v44 = vld [vmem:[%s15658_s20 + $0x11a] sm:$0x3]  ;;  %21257 = vst [vmem:[#allocation37_spill] sm:$0xff] %v16973_v5  ;;  %v748_v3 = vmul.f32 %v15664_v10, %v16973_v5  ;;  %v12150_v5 = vld [vmem:[%s15658_s20 + $0x192] sm:$0x3] }
  0xda   : > { %6385 = vperm.xlu0 %15202, %v16937_v28  }
  0xdb   : > { %v16944_v34 = vpop.permute.xlu1 %5905  ;;  %v16946_v1 = vpop.permute.xlu0 %6593  ;;  %13797 = vmatmul.mubr.msk.f32.gmra.mrb[10].mxu0 %vm944_vm2, %v5483_v40  ;;  %v1570_v40 = vld [vmem:[%s15658_s20 + $0x142] sm:$0xff]  ;;  %v5496_v37 = vsel %vm569_vm1, %v5494_v0, %v5495_v14  ;;  %v11798_v0 = vld [vmem:[%s15658_s20 + $0x159] sm:$0xff] }
  0xdc   : > { %13799 = vmatprep.mubr.msk.f32.mxu0 %vm944_vm2, %v5486_v38  ;;  %v5497_v38 = vrot.slane %v16969_v44, 1  ;;  %v1628_v15 = vmul.f32 %v15667_v11, %v1570_v40 }
  0xdd   : > { %15136 = vset.pattern.permute.xlu1 %v21188_v29 }
  0xde   : > { %6973 = vperm.xlu1 %15136, %v21243_v48   ;;  %v395_v48 = vld [vmem:[%s15658_s20 + $0x140] sm:$0xff] }
  0xdf   : > { %v16958_v8 = vpop.permute.xlu0 %6609  ;;  %v453_v33 = vmul.f32 %v15661_v9, %v395_v48  ;;  %13800 = vmatmul.mubr.msk.f32.gmra.mrb[12].mxu0 %vm944_vm2, %v5488_v61  ;;  %v5499_v48 = vrot.slane %v15254_v30, 1  ;;  %v5500_v61 = vrot.slane %v16869_v63, 1  ;;  %v5498_v63 = vsel %vm569_vm1, %v5495_v14, %v5497_v38  ;;  %v15256_v30 = vld [vmem:[%s15658_s20 + $0x142] sm:$0xff] }
  0xe0   : > { %v16961_v42 = vpop.permute.xlu1 %6597  ;;  %13802 = vmatprep.mubr.msk.f32.mxu0 %vm944_vm2, %v5491_v56  ;;  %v11711_v56 = vld [vmem:[%s15658_s20 + $0x158] sm:$0xff]  ;;  %v4720_v38 = vmul.f32 %v16519_v45, %v15685_v19 }
  0xe1   : > { %v802_v47 = vadd.f32 %v748_v3, %v453_v33  ;;  %v2247_v62 = vmul.f32 %v11711_v56, %v15670_v12  ;;  %v5502_v33 = vrot.slane %v12138_v32, 1  ;;  %v5501_v40 = vsel %vm569_vm1, %v5499_v48, %v5500_v61  ;;  %v17017_v32 = vld [vmem:[%s15658_s20 + $0x170] sm:$0xff] }
  0xe2   : > { %15137 = vset.pattern.permute.xlu1 %v21128_v23  ;;  %v5505_v56 = vrot.slane %v15256_v30, 1  ;;  %v17031_v30 = vld [vmem:[%s15658_s20 + $0x162] sm:$0x3] }
  0xe3   : > { %6337 = vperm.xlu1 %15137, %v21258_v43   ;;  %v16980_v4 = vpop.permute.xlu0 %6629  ;;  %v1682_v50 = vadd.f32 %v1628_v15, %v802_v47  ;;  %13803 = vmatmul.mubr.msk.f32.gmra.mrb[14].mxu0 %vm944_vm2, %v5493_v2  ;;  %v15255_v47 = vld [vmem:[%s15658_s20 + $0x13a] sm:$0xff]  ;;  %v5503_v48 = vsel %vm569_vm1, %v5500_v61, %v5502_v33  ;;  %21262 = vst [vmem:[#allocation34_spill] sm:$0xff] %v17031_v30 }
  0xe4   : > { %21259 = vst [vmem:[#allocation36_spill] sm:$0xff] %v16980_v4  ;;  %13805 = vmatprep.mubr.msk.f32.mxu0 %vm944_vm2, %v5496_v37  ;;  %v5504_v15 = vrot.slane %v15255_v47, 1  ;;  %v11885_v2 = vld [vmem:[%s15658_s20 + $0x15a] sm:$0xff] }
  0xe5   : > { %v16988_v46 = vpop.permute.xlu1 %6921  ;;  %v2301_v3 = vadd.f32 %v2247_v62, %v1682_v50  ;;  %v3483_v37 = vmul.f32 %v11885_v2, %v15679_v17  ;;  %v5507_v62 = vrot.slane %v12141_v27, 1  ;;  %v11977_v4 = vld [vmem:[%s15658_s20 + $0x198] sm:$0xff] }
  0xe7   : > { %15138 = vset.pattern.permute.xlu1 %v21137_v21  ;;  %v16997_v55 = vpop.permute.xlu0 %6645  ;;  %13806 = vmatmul.mubr.msk.f32.gmra.mrb[16].mxu0 %vm944_vm2, %v5498_v63  ;;  %v5506_v63 = vsel %vm569_vm1, %v5504_v15, %v5505_v56  ;;  %v5512_v15 = vrot.slane %v17031_v30, 1  ;;  %v15264_v30 = vld [vmem:[%s15658_s20 + $0xd1] sm:$0x3] }
  0xe8   : > { %21260 = vst [vmem:[#allocation27_spill] sm:$0xff] %v16997_v55  ;;  %6657 = vperm.xlu1 %15138, %v16841_v52   ;;  %v2865_v55 = vmul.f32 %v11798_v0, %v15676_v16  ;;  %13808 = vmatprep.mubr.msk.f32.mxu0 %vm944_vm2, %v5501_v40  ;;  %v4102_v0 = vmul.f32 %v17017_v32, %v15682_v18  ;;  %v17034_v40 = vld [vmem:[%s15658_s20 + $0x172] sm:$0xff] }
  0xe9   : > { %21263 = vst [vmem:[#allocation39_spill] sm:$0xff] %v17034_v40  ;;  %v5338_v2 = vmul.f32 %v17034_v40, %v15700_v26 }
  0xea   : > { %v17010_v28 = vpop.permute.xlu1 %6281  ;;  %v2919_v50 = vadd.f32 %v2865_v55, %v2301_v3  ;;  %v5509_v55 = vrot.slane %v16914_v7, 1  ;;  %v15257_v3 = vld [vmem:[%s15658_s20 + $0x15a] sm:$0xff]  ;;  %v5508_v7 = vsel %vm569_vm1, %v5505_v56, %v5507_v62 }
  0xeb   : > { %v17013_v14 = vpop.permute.xlu0 %6665  ;;  %v5510_v47 = vrot.slane %v15257_v3, 1  ;;  %13809 = vmatmul.mubr.msk.f32.gmra.mrb[18].mxu0 %vm944_vm2, %v5503_v48  ;;  %v5515_v48 = vrot.slane %v17034_v40, 1  ;;  %v15265_v40 = vld [vmem:[%s15658_s20 + $0x29] sm:$0x3] }
  0xec   : > { %21261 = vst [vmem:[#allocation29_spill] sm:$0xff] %v17013_v14  ;;  %15139 = vset.pattern.permute.xlu1 %v21226_v59  ;;  %v3537_v45 = vadd.f32 %v3483_v37, %v2919_v50  ;;  %13811 = vmatprep.mubr.msk.f32.mxu0 %vm944_vm2, %v5506_v63  ;;  %v15258_v50 = vld [vmem:[%s15658_s20 + $0x16a] sm:$0xff]  ;;  %v5520_v14 = vrot.slane %v16624_v25, 1 }
  0xed   : > { %5985 = vperm.xlu1 %15139, %v16527_v53   ;;  %v5511_v37 = vsel %vm569_vm1, %v5509_v55, %v5510_v47  ;;  %v5514_v3 = vrot.slane %v15258_v50, 1  ;;  %v5513_v55 = vsel %vm569_vm1, %v5510_v47, %v5512_v15  ;;  %v5522_v15 = vrot.slane %v12150_v5, 1 }
  0xee   : > { %v4156_v33 = vadd.f32 %v4102_v0, %v3537_v45  ;;  %v12147_v0 = vld [vmem:[%s15658_s20 + $0x17a] sm:$0x3] }
  0xef   : > { %v17036_v61 = vpop.permute.xlu1 %6605  ;;  %v17038_v27 = vpop.permute.xlu0 %6681  ;;  %13812 = vmatmul.mubr.msk.f32.gmra.mrb[20].mxu0 %vm944_vm2, %v5508_v7  ;;  %v5517_v50 = vrot.slane %v12147_v0, 1  ;;  %v17068_v7 = vld [vmem:[%s15658_s20 + $0x19a] sm:$0xff]  ;;  %v5523_v5 = vsel %vm569_vm1, %v5520_v14, %v5522_v15 }
  0xf0   : > { %21264 = vst [vmem:[#allocation40_spill] sm:$0xff] %v17036_v61  ;;  %21265 = vst [vmem:[#allocation43_spill] sm:$0xff] %v17038_v27  ;;  %v4774_v45 = vadd.f32 %v4720_v38, %v4156_v33  ;;  %13814 = vmatprep.mubr.msk.f32.mxu0 %vm944_vm2, %v5511_v37  ;;  %v5516_v27 = vsel %vm569_vm1, %v5514_v3, %v5515_v48  ;;  %v15259_v38 = vld [vmem:[%s15658_s20 + $0x182] sm:$0xff]  ;;  %v5524_v0 = vrot.slane %v17068_v7, 1 }
  0xf1   : > { %15140 = vset.pattern.permute.xlu1 %v21128_v23  ;;  %v5519_v33 = vrot.slane %v15259_v38, 1  ;;  %v5518_v25 = vsel %vm569_vm1, %v5515_v48, %v5517_v50  ;;  %v12153_v38 = vld [vmem:[%s15658_s20 + $0x1aa] sm:$0x3] }
  0xf2   : > { %6341 = vperm.xlu1 %15140, %v16527_v53   ;;  %v17055_v62 = vadd.f32 %v5338_v2, %v4774_v45  ;;  %v17071_v2 = vld [vmem:[%s15658_s20 + $0x1a2] sm:$0xff] }
  0xf3   : > { %v17052_v56 = vpop.permute.xlu0 %6701  ;;  %21269 = vst [vmem:[#allocation51_spill] sm:$0xff] %v17071_v2  ;;  %13815 = vmatmul.mubr.msk.f32.gmra.mrb[22].mxu0 %vm944_vm2, %v5513_v55  ;;  %v5521_v3 = vsel %vm569_vm1, %v5519_v33, %v5520_v14  ;;  %v5525_v45 = vrot.slane %v17071_v2, 1 }
  0xf4   : > { %21266 = vst [vmem:[#allocation8_spill] sm:$0xff] %v17052_v56  ;;  %21267 = vst [vmem:[#allocation42_spill] sm:$0xff] %v17055_v62  ;;  %v17057_v63 = vpop.permute.xlu1 %5920  ;;  %6401 = vperm.xlu0 %15202, %v17055_v62   ;;  %13817 = vmatprep.mubr.msk.f32.mxu0 %vm944_vm2, %v5516_v27  ;;  %v12155_v56 = vld [vmem:[%s15658_s20 + $0x1ba] sm:$0xff]  ;;  %v5527_v27 = vrot.slane %v12153_v38, 1  ;;  %v17113_v38 = vld [vmem:[%s15658_s20 + $0x169] sm:$0xff] }
  0xf5   : > { %21268 = vst [vmem:[#allocation49_spill] sm:$0xff] %v17057_v63  ;;  %v5526_v48 = vsel %vm569_vm1, %v5524_v0, %v5525_v45  ;;  %v5530_v33 = vrot.slane %v12155_v56, 1  ;;  %v400_v0 = vld [vmem:[%s15658_s20 + $0x168] sm:$0xff]  ;;  %21277 = vst [vmem:[#allocation52_spill] sm:$0xff] %v17113_v38  ;;  %v21287_v63 = vld [vmem:[#allocation58_spill] sm:$0xff] }
  0xf6   : > { %15141 = vset.pattern.permute.xlu1 %v21188_v29  ;;  %v5528_v14 = vsel %vm569_vm1, %v5525_v45, %v5527_v27  ;;  %v753_v45 = vmul.f32 %v15664_v10, %v17113_v38  ;;  %v21283_v38 = vld [vmem:[#allocation4_spill] sm:$0xff] }
  0xf7   : > { %6985 = vperm.xlu1 %15141, %v16841_v52   ;;  %v17074_v47 = vpop.permute.xlu0 %6717  ;;  %v12154_v52 = vld [vmem:[%s15658_s20 + $0x1b2] sm:$0xff]  ;;  %13818 = vmatmul.mubr.msk.f32.gmra.mrb[24].mxu0 %vm944_vm2, %v5518_v25 }
  0xf8   : > { %21270 = vst [vmem:[#allocation45_spill] sm:$0xff] %v17074_v47  ;;  %13820 = vmatprep.mubr.msk.f32.mxu0 %vm944_vm2, %v5521_v3  ;;  %v5529_v50 = vrot.slane %v12154_v52, 1  ;;  %v12156_v47 = vld [vmem:[%s15658_s20 + $0x1c2] sm:$0x3]  ;;  %v1575_v52 = vld [vmem:[%s15658_s20 + $0x16a] sm:$0xff] }
  0xf9   : > { %v17079_v37 = vpop.permute.xlu1 %6289  ;;  %v5532_v25 = vrot.slane %v12156_v47, 1 }
  0xfa   : > { %21271 = vst [vmem:[#allocation46_spill] sm:$0xff] %v17079_v37  ;;  %v5531_v15 = vsel %vm569_vm1, %v5529_v50, %v5530_v33  ;;  %v21278_v50 = vld [vmem:[#allocation2_spill] sm:$0xff] }
  0xfb   : > { %15142 = vset.pattern.permute.xlu1 %v21226_v59  ;;  %v17088_v55 = vpop.permute.xlu0 %6737  ;;  %13821 = vmatmul.mubr.msk.f32.gmra.mrb[26].mxu0 %vm944_vm2, %v5523_v5  ;;  %v5533_v47 = vsel %vm569_vm1, %v5530_v33, %v5532_v25  ;;  %v336_v5 = vld [vmem:[%s20795_s2] sm:$0xf]  ;;  %v17131_v25 = vld [vmem:[%s15658_s20 + $0x58] sm:$0x3] }
  0xfc   : > { %21272 = vst [vmem:[#allocation47_spill] sm:$0xff] %v17088_v55  ;;  %5995 = vperm.xlu1 %15142, %v16880_v24   ;;  %13823 = vmatprep.mubr.msk.f32.mxu0 %vm944_vm2, %v5526_v48  ;;  %v1633_v48 = vmul.f32 %v15667_v11, %v1575_v52  ;;  %v11716_v33 = vld [vmem:[%s15658_s20 + $0x180] sm:$0xff]  ;;  %21279 = vst [vmem:[#allocation54_spill] sm:$0xff] %v17131_v25  ;;  %v21282_v52 = vld [vmem:[#allocation3_spill] sm:$0xff] }
  0xfd   : > { %v17147_v55 = vrot.slane %v336_v5, %v21282_v52 }
  0xfe   : > { %v17096_v62 = vpop.permute.xlu1 %6933 }
  0xff   : > { %21273 = vst [vmem:[#allocation60_spill] sm:$0xff] %v17096_v62  ;;  %v17098_v2 = vpop.permute.xlu0 %6589  ;;  %13824 = vmatmul.mubr.msk.f32.gmra.mrb[28].mxu0 %vm944_vm2, %v5528_v14  ;;  %v7114_v14 = vsub.s32 3, %v21278_v50  ;;  %v15261_v50 = vld [vmem:[%s15658_s20 + $0x89] sm:$0x3] }
 0x100   : > { %21274 = vst [vmem:[#allocation61_spill] sm:$0xff] %v17098_v2  ;;  %15143 = vset.pattern.permute.xlu1 %v21137_v21  ;;  %13826 = vmatprep.mubr.msk.f32.mxu0 %vm944_vm2, %v5531_v15  ;;  %v17134_v15 = vld [vmem:[%s15658_s20 + $0x59] sm:$0x3]  ;;  %v20923_v2 = vmov 0.0  }
 0x101   : > { %6669 = vperm.xlu1 %15143, %v16527_v53   ;;  %v458_v53 = vmul.f32 %v15661_v9, %v400_v0  ;;  %v17171_v61 = vrot.slane %v336_v5, %v7114_v14 }
 0x103   : > { %v17106_v56 = vpop.permute.xlu1 %5925  ;;  %v17108_v3 = vpop.permute.xlu0 %6625  ;;  %v807_v27 = vadd.f32 %v753_v45, %v458_v53  ;;  %13827 = vmatmul.mubr.msk.f32.gmra.mrb[30].mxu0 %vm944_vm2, %v5533_v47  ;;  %v2252_v53 = vmul.f32 %v11716_v33, %v15670_v12  ;;  %v424_v47 = vmul.f32 %v15661_v9, %v17131_v25  ;;  %v719_v45 = vmul.f32 %v15664_v10, %v17134_v15  ;;  %v15260_v25 = vld [vmem:[%s15658_s20 + $0x71] sm:$0x3] }
 0x104   : > { %21275 = vst [vmem:[#allocation50_spill] sm:$0xff] %v17106_v56  ;;  %21276 = vst [vmem:[#allocation53_spill] sm:$0xff] %v17108_v3  ;;  %13831 = vmatprep.mubr.f32.mxu0 %v20923_v2  ;;  %v17150_v56 = vrot.slane %v336_v5, %v21283_v38 }
 0x105   : > { %15144 = vset.pattern.permute.xlu1 %v21188_v29  ;;  %v773_v2 = vadd.f32 %v719_v45, %v424_v47  ;;  %v11682_v47 = vld [vmem:[%s15658_s20 + $0x70] sm:$0x3] }
 0x106   : > { %6993 = vperm.xlu1 %15144, %v21258_v43   ;;  %v1687_v43 = vadd.f32 %v1633_v48, %v807_v27  ;;  %v17156_v27 = vld [vmem:[%s15658_s20 + $0x181] sm:$0xff]  ;;  %v1541_v48 = vld [vmem:[%s15658_s20 + $0x5a] sm:$0x3] }
 0x107   : > { %21285 = vst [vmem:[#allocation56_spill] sm:$0xff] %v17156_v27  ;;  %v2870_v52 = vmul.f32 %v17156_v27, %v15676_v16  ;;  %v1599_v38 = vmul.f32 %v15667_v11, %v1541_v48  ;;  %v15262_v48 = vld [vmem:[%s15658_s20 + $0x19] sm:$0xff] }
 0x108   : > { %v17136_v0 = vpop.permute.xlu1 %6617  ;;  %v17138_v3 = vpop.permute.xlu0 %6909  ;;  %v2306_v33 = vadd.f32 %v2252_v53, %v1687_v43  ;;  %v21288_v43 = vmov 0.0   ;;  %v11890_v53 = vld [vmem:[%s15658_s20 + $0x182] sm:$0xff]  ;;  %v864_v27 = vrot.slane %v15262_v48, 1 }
 0x109   : > { %21280 = vst [vmem:[#allocation57_spill] sm:$0xff] %v17136_v0  ;;  %21281 = vst [vmem:[#allocation59_spill] sm:$0xff] %v17138_v3  ;;  %v21284_v3 = vld [vmem:[#allocation5_spill] sm:$0xff]  ;;  %v17169_v0 = vmul.f32 %v15261_v50, %v15685_v19  ;;  %13832 = vmatmul.mubr.f32.vlgmr.msra.gmra.mrb[0].mxu0 %v21288_v43  ;;  %v3488_v50 = vmul.f32 %v11890_v53, %v15679_v17  ;;  %v338_v43 = vld [vmem:[%s20796_s3 + $0x4] sm:$0xf]  ;;  %v1653_v48 = vadd.f32 %v1599_v38, %v773_v2 }
 0x10a   : > { %v17153_v62 = vrot.slane %v336_v5, %v21284_v3  ;;  %15145 = vset.pattern.permute.xlu1 %v21128_v23  ;;  %v17165_v3 = vmul.f32 %v15260_v25, %v15685_v19  ;;  %v15263_v25 = vld [vmem:[%s15658_s20 + $0x21] sm:$0xff]  ;;  %v2924_v37 = vadd.f32 %v2870_v52, %v2306_v33  ;;  %v17184_v5 = vmul.f32 %v15264_v30, %v15685_v19  ;;  %v11769_v38 = vld [vmem:[%s15658_s20 + $0x71] sm:$0x3] }
 0x10b   : > { %6353 = vperm.xlu1 %15145, %v21287_v63   ;;  %v4725_v33 = vmul.f32 %v16748_v20, %v15685_v19  ;;  %13379 = vmatprep.subr.msk.mxu1 %vm1009_vm0, %v338_v43  ;;  %v4107_v53 = vmul.f32 %v11977_v4, %v15682_v18  ;;  %v17205_v2 = vmul.f32 %v16699_v58, %v15685_v19 }
 0x10c   : > { %21286 = vst [vmem:[#allocation62_spill] sm:$0xff] %v17165_v3  ;;  %v17177_v45 = vpop.permute.xlu0 %6925  ;;  %v865_v3 = vrot.slane %v15263_v25, 1  ;;  %v2218_v25 = vmul.f32 %v11682_v47, %v15670_v12  ;;  %v3542_v52 = vadd.f32 %v3488_v50, %v2924_v37  ;;  %13380 = vmatpush3.msk.msra.mxu1 %vm1009_vm0, %v338_v43  ;;  %v6464_v37 = vmul.f32 %v17150_v56, %v16716_v36  ;;  %v658_v50 = vld [vmem:[%s15658_s20 + $0x41] sm:$0x3] }
 0x10d   : > { %21289 = vst [vmem:[#allocation26_spill] sm:$0xff] %v17177_v45  ;;  %v17186_v14 = vpop.permute.xlu1 %6937  ;;  %v867_v45 = vrot.slane %v15265_v40, 1  ;;  %v17201_v40 = vmul.f32 %v16630_v35, %v15685_v19  ;;  %v15266_v35 = vld [vmem:[%s15658_s20 + $0x31] sm:$0xff]  ;;  %v17224_v43 = vmul.f32 %v16751_v57, %v15685_v19  ;;  %v872_v36 = vrot.slane %v658_v50, 1 }
 0x10e   : > { %21290 = vst [vmem:[#allocation33_spill] sm:$0xff] %v17186_v14  ;;  %v866_v30 = vsel %vm569_vm1, %v864_v27, %v865_v3  ;;  %v869_v58 = vrot.slane %v15266_v35, 1  ;;  %v15267_v27 = vld [vmem:[%s15658_s20 + $0x39] sm:$0xff]  ;;  %v4161_v14 = vadd.f32 %v4107_v53, %v3542_v52  ;;  %v716_v52 = vmul.f32 %v15664_v10, %v658_v50  ;;  %v21297_v19 = vld [vmem:[#allocation24_spill] sm:$0xff] }
 0x10f   : > { %15146 = vset.pattern.permute.xlu1 %v21137_v21  ;;  %v868_v20 = vsel %vm569_vm1, %v865_v3, %v867_v45  ;;  %13381 = vmatprep.mubr.msk.f32.mxu1 %vm944_vm2, %v866_v30  ;;  %v870_v47 = vrot.slane %v15267_v27, 1  ;;  %v6136_v3 = vmul.f32 %v17147_v55, %v16681_v22  ;;  %v2272_v45 = vadd.f32 %v2218_v25, %v1653_v48  ;;  %v17231_v35 = vld [vmem:[%s15658_s20 + $0x40] sm:$0x3]  ;;  %v11856_v27 = vld [vmem:[%s15658_s20 + $0x72] sm:$0x3] }
 0x110   : > { %6677 = vperm.xlu1 %15146, %v16880_v24   ;;  %v17214_v4 = vpop.permute.xlu0 %6945  ;;  %13382 = vmatmul.mubr.msk.f32.vlgmr.msra.gmra.mrb[0].mxu1 %vm944_vm2, %v868_v20  ;;  %21292 = vst [vmem:[#allocation64_spill] sm:$0xff] %v17231_v35  ;;  %v4779_v53 = vadd.f32 %v4725_v33, %v4161_v14  ;;  %v2836_v22 = vmul.f32 %v11769_v38, %v15676_v16  ;;  %v15268_v38 = vld [vmem:[%s15658_s20 + $0x49] sm:$0xff] }
 0x111   : > { %21291 = vst [vmem:[#allocation32_spill] sm:$0xff] %v17214_v4  ;;  %v871_v30 = vsel %vm569_vm1, %v869_v58, %v870_v47  ;;  %v6138_v57 = vmul.f32 %v17147_v55, %v16718_v51  ;;  %v6466_v20 = vmul.f32 %v17150_v56, %v16784_v6  ;;  %v421_v48 = vmul.f32 %v15661_v9, %v17231_v35 }
 0x112   : > { %v17227_v4 = vpop.permute.xlu1 %6301  ;;  %13384 = vmatprep.mubr.msk.f32.mxu1 %vm944_vm2, %v871_v30  ;;  %v873_v25 = vsel %vm569_vm1, %v870_v47, %v872_v36  ;;  %v17245_v14 = vmul.f32 %v17147_v55, %v16694_v13  ;;  %v6518_v33 = vadd.f32 %v6464_v37, %v6136_v3  ;;  %v5343_v6 = vmul.f32 %v17068_v7, %v15700_v26  ;;  %v21295_v47 = vld [vmem:[#allocation11_spill] sm:$0xff]  ;;  %v15269_v7 = vld [vmem:[%s15658_s20 + $0x51] sm:$0xff] }
 0x113   : > { %v874_v58 = vrot.slane %v15268_v38, 1  ;;  %v17256_v50 = vmul.f32 %v17153_v62, %v16753_v54  ;;  %v6792_v13 = vmul.f32 %v17153_v62, %v16812_v41  ;;  %v17261_v37 = vadd.f32 %v716_v52, %v421_v48  ;;  %v11943_v3 = vld [vmem:[%s15658_s20 + $0x88] sm:$0x3] }
 0x114   : > { %15147 = vset.pattern.permute.xlu1 %v21226_v59  ;;  %v17248_v51 = vpop.permute.xlu0 %6961  ;;  %13385 = vmatmul.mubr.msk.f32.gmra.mrb[2].mxu1 %vm944_vm2, %v873_v25  ;;  %v17265_v36 = vadd.f32 %v5343_v6, %v4779_v53  ;;  %v875_v30 = vrot.slane %v15269_v7, 1  ;;  %v877_v54 = vrot.slane %v17134_v15, 1  ;;  %v2890_v38 = vadd.f32 %v2836_v22, %v2272_v45  ;;  %v21298_v41 = vld [vmem:[#allocation31_spill] sm:$0xff]  ;;  %v17283_v6 = vld [vmem:[%s15658_s20 + $0xa0] sm:$0x3] }
 0x115   : > { %21293 = vst [vmem:[#allocation38_spill] sm:$0xff] %v17248_v51  ;;  %21294 = vst [vmem:[#allocation44_spill] sm:$0xff] %v17256_v50  ;;  %6010 = vperm.xlu1 %15147, %v21295_v47   ;;  %v17271_v35 = vmul.f32 %v17147_v55, %v21297_v19  ;;  %v17275_v52 = vmul.f32 %v17147_v55, %v21298_v41  ;;  %v17277_v48 = vadd.f32 %v6466_v20, %v6138_v57  ;;  %v17294_v20 = vld [vmem:[%s15658_s20 + $0xa1] sm:$0x3]  ;;  %v11883_v50 = vld [vmem:[%s15658_s20 + $0x14a] sm:$0x3] }
 0x116   : > { %21296 = vst [vmem:[#allocation55_spill] sm:$0xff] %v17265_v36  ;;  %v3454_v53 = vmul.f32 %v11856_v27, %v15679_v17  ;;  %21301 = vst [vmem:[#allocation41_spill] sm:$0xff] %v17283_v6  ;;  %v6467_v15 = vmul.f32 %v17150_v56, %v16893_v39  ;;  %6421 = vperm.xlu0 %15202, %v17265_v36   ;;  %v876_v19 = vsel %vm569_vm1, %v874_v58, %v875_v30  ;;  %v1550_v27 = vld [vmem:[%s15658_s20 + $0xa2] sm:$0x3] }
 0x117   : > { %21299 = vst [vmem:[#allocation63_spill] sm:$0xff] %v17275_v52  ;;  %v17279_v25 = vpop.permute.xlu1 %6621  ;;  %v878_v22 = vsel %vm569_vm1, %v875_v30, %v877_v54  ;;  %v4073_v57 = vmul.f32 %v11943_v3, %v15682_v18  ;;  %v6846_v7 = vadd.f32 %v6792_v13, %v6518_v33  ;;  %v7120_v39 = vmul.f32 %v17171_v61, %v16921_v31  ;;  %v15270_v58 = vld [vmem:[%s15658_s20 + $0x61] sm:$0xff]  ;;  %v15271_v3 = vld [vmem:[%s15658_s20 + $0x69] sm:$0xff]  ;;  %v15272_v13 = vld [vmem:[%s15658_s20 + $0x71] sm:$0x3] }
 0x118   : > { %21300 = vst [vmem:[#allocation65_spill] sm:$0xff] %v17279_v25  ;;  %v17287_v45 = vpop.permute.xlu0 %6981  ;;  %13387 = vmatprep.mubr.msk.f32.mxu1 %vm944_vm2, %v876_v19  ;;  %v3508_v41 = vadd.f32 %v3454_v53, %v2890_v38  ;;  %v879_v36 = vrot.slane %v15270_v58, 1  ;;  %v21303_v30 = vld [vmem:[#allocation15_spill] sm:$0xff]  ;;  %v880_v33 = vrot.slane %v15271_v3, 1  ;;  %v882_v31 = vrot.slane %v15272_v13, 1 }
 0x119   : > { %21302 = vst [vmem:[#allocation14_spill] sm:$0xff] %v17287_v45  ;;  %15148 = vset.pattern.permute.xlu1 %v21128_v23  ;;  %v6139_v54 = vmul.f32 %v17147_v55, %v21303_v30  ;;  %13388 = vmatmul.mubr.msk.f32.gmra.mrb[4].mxu1 %vm944_vm2, %v878_v22  ;;  %v433_v19 = vmul.f32 %v15661_v9, %v17283_v6  ;;  %v11691_v38 = vld [vmem:[%s15658_s20 + $0xb8] sm:$0x3]  ;;  %v21304_v58 = vld [vmem:[#allocation35_spill] sm:$0xff] }
 0x11a   : > { %6361 = vperm.xlu1 %15148, %v21295_v47   ;;  %v4127_v53 = vadd.f32 %v4073_v57, %v3508_v41  ;;  %v5309_v45 = vmul.f32 %v21304_v58, %v15700_v26  ;;  %v728_v30 = vmul.f32 %v15664_v10, %v17294_v20  ;;  %v1608_v22 = vmul.f32 %v15667_v11, %v1550_v27  ;;  %v11778_v3 = vld [vmem:[%s15658_s20 + $0xb9] sm:$0x3]  ;;  %v17328_v58 = vld [vmem:[%s15658_s20 + $0x89] sm:$0x3] }
 0x11b   : > { %v17317_v51 = vadd.f32 %v6467_v15, %v6139_v54  ;;  %v6794_v13 = vmul.f32 %v17153_v62, %v16946_v1  ;;  %v881_v57 = vsel %vm569_vm1, %v879_v36, %v880_v33  ;;  %v883_v41 = vsel %vm569_vm1, %v880_v33, %v882_v31  ;;  %21307 = vst [vmem:[#allocation10_spill] sm:$0xff] %v17328_v58  ;;  %v17331_v27 = vld [vmem:[%s15658_s20 + $0xe8] sm:$0x3]  ;;  %v1559_v36 = vld [vmem:[%s15658_s20 + $0xea] sm:$0x3] }
 0x11c   : > { %v17321_v25 = vpop.permute.xlu1 %5940  ;;  %v17323_v6 = vpop.permute.xlu0 %6997  ;;  %21308 = vst [vmem:[#allocation48_spill] sm:$0xff] %v17331_v27  ;;  %v17333_v15 = vadd.f32 %v7120_v39, %v6846_v7  ;;  %v4745_v54 = vadd.f32 %v17169_v0, %v4127_v53  ;;  %13390 = vmatprep.mubr.msk.f32.mxu1 %vm944_vm2, %v881_v57  ;;  %v782_v1 = vadd.f32 %v728_v30, %v433_v19  ;;  %v11865_v7 = vld [vmem:[%s15658_s20 + $0xba] sm:$0x3]  ;;  %v15274_v19 = vld [vmem:[%s15658_s20 + $0x81] sm:$0xff] }
 0x11d   : > { %21305 = vst [vmem:[#allocation69_spill] sm:$0xff] %v17321_v25  ;;  %21306 = vst [vmem:[#allocation9_spill] sm:$0xff] %v17323_v6  ;;  %v2227_v6 = vmul.f32 %v11691_v38, %v15670_v12  ;;  %v17339_v25 = vld [vmem:[%s15658_s20 + $0xe9] sm:$0x3]  ;;  %v17344_v33 = vmul.f32 %v17147_v55, %v16944_v34  ;;  %13391 = vmatmul.mubr.msk.f32.gmra.mrb[6].mxu1 %vm944_vm2, %v883_v41  ;;  %v2845_v0 = vmul.f32 %v11778_v3, %v15676_v16  ;;  %v15273_v39 = vld [vmem:[%s15658_s20 + $0x79] sm:$0xff] }
 0x11e   : > { %15149 = vset.pattern.permute.xlu1 %v21188_v29  ;;  %v884_v31 = vrot.slane %v15273_v39, 1  ;;  %v885_v38 = vrot.slane %v15274_v19, 1  ;;  %v17353_v53 = vadd.f32 %v5309_v45, %v4745_v54  ;;  %v1662_v30 = vadd.f32 %v1608_v22, %v782_v1  ;;  %v11700_v41 = vld [vmem:[%s15658_s20 + $0x100] sm:$0x3]  ;;  %v11952_v39 = vld [vmem:[%s15658_s20 + $0xd0] sm:$0x3] }
 0x11f   : > { %21309 = vst [vmem:[#allocation3_spill] sm:$0xff] %v17344_v33  ;;  %7005 = vperm.xlu1 %15149, %v16880_v24   ;;  %v887_v34 = vrot.slane %v17328_v58, 1  ;;  %v442_v57 = vmul.f32 %v15661_v9, %v17331_v27  ;;  %v17360_v3 = vadd.f32 %v6794_v13, %v17277_v48  ;;  %v737_v45 = vmul.f32 %v15664_v10, %v17339_v25  ;;  %v17377_v19 = vld [vmem:[%s15658_s20 + $0x130] sm:$0x3] }
 0x120   : > { %21310 = vst [vmem:[#allocation4_spill] sm:$0xff] %v17353_v53  ;;  %v17362_v33 = vpop.permute.xlu0 %7017  ;;  %v886_v24 = vsel %vm569_vm1, %v884_v31, %v885_v38  ;;  %v1617_v22 = vmul.f32 %v15667_v11, %v1559_v36  ;;  %6285 = vperm.xlu0 %15202, %v17353_v53   ;;  %v2281_v1 = vadd.f32 %v2227_v6, %v1662_v30  ;;  %v11787_v31 = vld [vmem:[%s15658_s20 + $0x101] sm:$0x3]  ;;  %21313 = vst [vmem:[#allocation11_spill] sm:$0xff] %v17377_v19  ;;  %v17388_v53 = vld [vmem:[%s15658_s20 + $0x131] sm:$0x3] }
 0x121   : > { %21311 = vst [vmem:[#allocation5_spill] sm:$0xff] %v17362_v33  ;;  %v17369_v54 = vpop.permute.xlu1 %6305  ;;  %v3463_v48 = vmul.f32 %v11865_v7, %v15679_v17  ;;  %13393 = vmatprep.mubr.msk.f32.mxu1 %vm944_vm2, %v886_v24  ;;  %v888_v13 = vsel %vm569_vm1, %v885_v38, %v887_v34  ;;  %v17381_v33 = vmul.f32 %v17153_v62, %v16958_v8  ;;  %v11874_v30 = vld [vmem:[%s15658_s20 + $0x102] sm:$0x3]  ;;  %v15275_v7 = vld [vmem:[%s15658_s20 + $0x91] sm:$0xff]  ;;  %v892_v58 = vrot.slane %v17294_v20, 1 }
 0x122   : > { %21312 = vst [vmem:[#allocation58_spill] sm:$0xff] %v17369_v54  ;;  %13394 = vmatmul.mubr.msk.f32.gmra.mrb[8].mxu1 %vm944_vm2, %v888_v13  ;;  %v791_v36 = vadd.f32 %v737_v45, %v442_v57  ;;  %v2236_v6 = vmul.f32 %v11700_v41, %v15670_v12  ;;  %v889_v24 = vrot.slane %v15275_v7, 1  ;;  %v17392_v38 = vmul.f32 %v17153_v62, %v16961_v42  ;;  %v1568_v41 = vld [vmem:[%s15658_s20 + $0x132] sm:$0x3]  ;;  %v15276_v42 = vld [vmem:[%s15658_s20 + $0x99] sm:$0xff] }
 0x123   : > { %v6470_v8 = vmul.f32 %v17150_v56, %v17010_v28  ;;  %15150 = vset.pattern.permute.xlu1 %v21226_v59  ;;  %v2899_v34 = vadd.f32 %v2845_v0, %v2281_v1  ;;  %v4082_v57 = vmul.f32 %v11952_v39, %v15682_v18  ;;  %v2854_v7 = vmul.f32 %v11787_v31, %v15676_v16  ;;  %v11709_v54 = vld [vmem:[%s15658_s20 + $0x148] sm:$0x3]  ;;  %v11961_v1 = vld [vmem:[%s15658_s20 + $0x118] sm:$0x3] }
 0x124   : > { %6015 = vperm.xlu1 %15150, %v16909_v49   ;;  %v17400_v45 = vpop.permute.xlu0 %7033  ;;  %v1671_v13 = vadd.f32 %v1617_v22, %v791_v36  ;;  %v890_v27 = vrot.slane %v15276_v42, 1  ;;  %v3472_v0 = vmul.f32 %v11874_v30, %v15679_v17  ;;  %v451_v39 = vmul.f32 %v15661_v9, %v17377_v19 }
 0x125   : > { %21314 = vst [vmem:[#allocation24_spill] sm:$0xff] %v17400_v45  ;;  %v3517_v28 = vadd.f32 %v3463_v48, %v2899_v34  ;;  %v746_v45 = vmul.f32 %v15664_v10, %v17388_v53  ;;  %v1626_v48 = vmul.f32 %v15667_v11, %v1568_v41  ;;  %v11796_v34 = vld [vmem:[%s15658_s20 + $0x149] sm:$0x3]  ;;  %v5318_v30 = vmul.f32 %v16927_v60, %v15700_v26 }
 0x126   : > { %v17412_v22 = vpop.permute.xlu1 %6949  ;;  %v2290_v36 = vadd.f32 %v2236_v6, %v1671_v13  ;;  %v891_v31 = vsel %vm569_vm1, %v889_v24, %v890_v27  ;;  %v893_v20 = vsel %vm569_vm1, %v890_v27, %v892_v58  ;;  %v2245_v52 = vmul.f32 %v11709_v54, %v15670_v12  ;;  %v15277_v60 = vld [vmem:[%s15658_s20 + $0xa9] sm:$0xff] }
 0x127   : > { %v4136_v42 = vadd.f32 %v4082_v57, %v3517_v28  ;;  %13396 = vmatprep.mubr.msk.f32.mxu1 %vm944_vm2, %v891_v31  ;;  %v800_v19 = vadd.f32 %v746_v45, %v451_v39  ;;  %v7122_v6 = vmul.f32 %v17171_v61, %v16988_v46  ;;  %v4091_v24 = vmul.f32 %v11961_v1, %v15682_v18  ;;  %v11970_v28 = vld [vmem:[%s15658_s20 + $0x160] sm:$0x3]  ;;  %v15278_v1 = vld [vmem:[%s15658_s20 + $0xb1] sm:$0xff] }
 0x128   : > { %15151 = vset.pattern.permute.xlu1 %v21137_v21  ;;  %v17426_v58 = vpop.permute.xlu0 %7053  ;;  %v2908_v27 = vadd.f32 %v2854_v7, %v2290_v36  ;;  %13397 = vmatmul.mubr.msk.f32.gmra.mrb[10].mxu1 %vm944_vm2, %v893_v20  ;;  %v894_v57 = vrot.slane %v15277_v60, 1  ;;  %v6524_v54 = vadd.f32 %v6470_v8, %v17271_v35  ;;  %v2863_v45 = vmul.f32 %v11796_v34, %v15676_v16  ;;  %v15279_v36 = vld [vmem:[%s15658_s20 + $0xb9] sm:$0x3]  ;;  %v15280_v8 = vld [vmem:[%s15658_s20 + $0xc1] sm:$0xff]  ;;  %v17446_v34 = vld [vmem:[%s15658_s20 + $0x171] sm:$0xff] }
 0x129   : > { %21315 = vst [vmem:[#allocation31_spill] sm:$0xff] %v17426_v58  ;;  %6689 = vperm.xlu1 %15151, %v21295_v47   ;;  %v4754_v46 = vadd.f32 %v17184_v5, %v4136_v42  ;;  %v1680_v41 = vadd.f32 %v1626_v48, %v800_v19  ;;  %v3481_v7 = vmul.f32 %v11883_v50, %v15679_v17  ;;  %v895_v39 = vrot.slane %v15278_v1, 1  ;;  %v15281_v19 = vld [vmem:[%s15658_s20 + $0xc9] sm:$0xff] }
 0x12a   : > { %v3526_v13 = vadd.f32 %v3472_v0, %v2908_v27  ;;  %v897_v31 = vrot.slane %v15279_v36, 1  ;;  %v899_v5 = vrot.slane %v15280_v8, 1  ;;  %v900_v48 = vrot.slane %v15281_v19, 1  ;;  %v17449_v0 = vld [vmem:[%s15658_s20 + $0xd1] sm:$0x3]  ;;  %v17462_v1 = vld [vmem:[%s15658_s20 + $0x188] sm:$0xff] }
 0x12b   : > { %v17439_v20 = vpop.permute.xlu1 %5950  ;;  %v17441_v35 = vadd.f32 %v5318_v30, %v4754_v46  ;;  %v2299_v47 = vadd.f32 %v2245_v52, %v1680_v41  ;;  %21317 = vst [vmem:[#allocation35_spill] sm:$0xff] %v17449_v0  ;;  %v5327_v27 = vmul.f32 %v16969_v44, %v15700_v26  ;;  %v896_v60 = vsel %vm569_vm1, %v894_v57, %v895_v39  ;;  %v17484_v36 = vld [vmem:[%s15658_s20 + $0x189] sm:$0xff]  ;;  %v1538_v8 = vld [vmem:[%s15658_s20 + $0x42] sm:$0x3] }
 0x12c   : > { %v17451_v50 = vpop.permute.xlu0 %7069  ;;  %v4145_v42 = vadd.f32 %v4091_v24, %v3526_v13  ;;  %v898_v30 = vsel %vm569_vm1, %v895_v39, %v897_v31  ;;  %v4100_v46 = vmul.f32 %v11970_v28, %v15682_v18  ;;  %v901_v41 = vsel %vm569_vm1, %v899_v5, %v900_v48  ;;  %21319 = vst [vmem:[#allocation71_spill] sm:$0xff] %v17462_v1  ;;  %v21320_v28 = vld [vmem:[#allocation36_spill] sm:$0xff]  ;;  %v21321_v39 = vld [vmem:[#allocation39_spill] sm:$0xff]  ;;  %v15282_v5 = vld [vmem:[%s15658_s20 + $0xd9] sm:$0xff] }
 0x12d   : > { %21316 = vst [vmem:[#allocation15_spill] sm:$0xff] %v17441_v35  ;;  %21318 = vst [vmem:[#allocation70_spill] sm:$0xff] %v17451_v50  ;;  %15152 = vset.pattern.permute.xlu1 %v21188_v29  ;;  %6321 = vperm.xlu0 %15202, %v17441_v35   ;;  %v2917_v52 = vadd.f32 %v2863_v45, %v2299_v47  ;;  %v459_v24 = vmul.f32 %v17017_v32, %v15661_v9  ;;  %v902_v45 = vrot.slane %v17449_v0, 1  ;;  %v11940_v0 = vld [vmem:[%s15658_s20 + $0x70] sm:$0x3] }
 0x12e   : > { %7009 = vperm.xlu1 %15152, %v21287_v63   ;;  %v4763_v44 = vadd.f32 %v17201_v40, %v4145_v42  ;;  %13399 = vmatprep.mubr.msk.f32.mxu1 %vm944_vm2, %v896_v60  ;;  %v754_v57 = vmul.f32 %v15664_v10, %v17446_v34  ;;  %v17474_v13 = vadd.f32 %v17392_v38, %v17317_v51  ;;  %v904_v19 = vrot.slane %v15282_v5, 1 }
 0x12f   : > { %v17478_v63 = vmul.f32 %v17153_v62, %v21320_v28  ;;  %v3535_v40 = vadd.f32 %v3481_v7, %v2917_v52  ;;  %13400 = vmatmul.mubr.msk.f32.gmra.mrb[12].mxu1 %vm944_vm2, %v898_v30  ;;  %v1634_v32 = vmul.f32 %v21321_v39, %v15667_v11  ;;  %v2253_v7 = vmul.f32 %v17462_v1, %v15670_v12  ;;  %v17596_v1 = vld [vmem:[%s15658_s20 + $0x149] sm:$0x3] }
 0x130   : > { %v17486_v31 = vpop.permute.xlu1 %6633  ;;  %v17488_v47 = vpop.permute.xlu0 %6917  ;;  %v17491_v51 = vadd.f32 %v5327_v27, %v4763_v44  ;;  %13402 = vmatprep.mubr.msk.f32.mxu1 %vm944_vm2, %v901_v41  ;;  %v808_v38 = vadd.f32 %v754_v57, %v459_v24  ;;  %v17498_v42 = vadd.f32 %v7122_v6, %v17360_v3  ;;  %v17501_v60 = vadd.f32 %v17381_v33, %v6524_v54  ;;  %v21324_v27 = vld [vmem:[#allocation34_spill] sm:$0xff]  ;;  %v11891_v41 = vld [vmem:[%s15658_s20 + $0x18a] sm:$0xff] }
 0x131   : > { %21322 = vst [vmem:[#allocation36_spill] sm:$0xff] %v17488_v47  ;;  %v4154_v30 = vadd.f32 %v4100_v46, %v3535_v40  ;;  %v5336_v52 = vmul.f32 %v21324_v27, %v15700_v26  ;;  %v2871_v3 = vmul.f32 %v17484_v36, %v15676_v16  ;;  %v903_v6 = vsel %vm569_vm1, %v900_v48, %v902_v45  ;;  %v15283_v24 = vld [vmem:[%s15658_s20 + $0xe1] sm:$0xff]  ;;  %v11679_v48 = vld [vmem:[%s15658_s20 + $0x58] sm:$0x3] }
 0x132   : > { %21323 = vst [vmem:[#allocation39_spill] sm:$0xff] %v17491_v51  ;;  %15153 = vset.pattern.permute.xlu1 %v21128_v23  ;;  %6357 = vperm.xlu0 %15202, %v17491_v51   ;;  %v1688_v44 = vadd.f32 %v1634_v32, %v808_v38  ;;  %v905_v33 = vrot.slane %v15283_v24, 1  ;;  %v17513_v54 = vld [vmem:[%s15658_s20 + $0x101] sm:$0x3]  ;;  %v1596_v57 = vmul.f32 %v15667_v11, %v1538_v8  ;;  %v907_v39 = vrot.slane %v17339_v25, 1  ;;  %v15284_v32 = vld [vmem:[%s15658_s20 + $0xf1] sm:$0xff] }
 0x133   : > { %21325 = vst [vmem:[#allocation34_spill] sm:$0xff] %v17513_v54  ;;  %v21326_v46 = vld [vmem:[#allocation66_spill] sm:$0xff]  ;;  %v4772_v28 = vadd.f32 %v17205_v2, %v4154_v30  ;;  %13403 = vmatmul.mubr.msk.f32.gmra.mrb[14].mxu1 %vm944_vm2, %v903_v6  ;;  %v909_v38 = vrot.slane %v15284_v32, 1  ;;  %v3489_v27 = vmul.f32 %v11891_v41, %v15679_v17  ;;  %v21330_v41 = vld [vmem:[#allocation49_spill] sm:$0xff] }
 0x134   : > { %6373 = vperm.xlu1 %15153, %v21326_v46   ;;  %v11978_v40 = vld [vmem:[%s15658_s20 + $0x1a0] sm:$0xff]  ;;  %v17522_v5 = vpop.permute.xlu0 %6953  ;;  %v2307_v45 = vadd.f32 %v2253_v7, %v1688_v44  ;;  %v906_v24 = vsel %vm569_vm1, %v904_v19, %v905_v33  ;;  %v908_v6 = vsel %vm569_vm1, %v905_v33, %v907_v39  ;;  %v912_v7 = vrot.slane %v17513_v54, 1  ;;  %v15286_v33 = vld [vmem:[%s15658_s20 + $0x109] sm:$0xff] }
 0x135   : > { %21327 = vst [vmem:[#allocation66_spill] sm:$0xff] %v17522_v5  ;;  %v15285_v47 = vld [vmem:[%s15658_s20 + $0xf9] sm:$0xff]  ;;  %v17530_v30 = vpop.permute.xlu1 %6957  ;;  %v17532_v25 = vadd.f32 %v5336_v52, %v4772_v28  ;;  %13405 = vmatprep.mubr.msk.f32.mxu1 %vm944_vm2, %v906_v24  ;;  %v6144_v19 = vmul.f32 %v17147_v55, %v21330_v41  ;;  %v1650_v52 = vadd.f32 %v1596_v57, %v17261_v37  ;;  %v914_v39 = vrot.slane %v15286_v33, 1  ;;  %v15287_v24 = vld [vmem:[%s15658_s20 + $0x111] sm:$0xff] }
 0x136   : > { %v910_v8 = vrot.slane %v15285_v47, 1  ;;  %v21328_v51 = vld [vmem:[#allocation46_spill] sm:$0xff]  ;;  %v2925_v44 = vadd.f32 %v2871_v3, %v2307_v45  ;;  %v4108_v47 = vmul.f32 %v11978_v40, %v15682_v18  ;;  %v2215_v28 = vmul.f32 %v11679_v48, %v15670_v12  ;;  %v21332_v45 = vld [vmem:[#allocation40_spill] sm:$0xff] }
 0x137   : > { %v6472_v2 = vmul.f32 %v17150_v56, %v21328_v51  ;;  %21329 = vst [vmem:[#allocation46_spill] sm:$0xff] %v17532_v25  ;;  %v17542_v51 = vld [vmem:[%s15658_s20 + $0x119] sm:$0x3]  ;;  %6393 = vperm.xlu0 %15202, %v17532_v25   ;;  %v915_v5 = vrot.slane %v15287_v24, 1  ;;  %v17553_v40 = vmul.f32 %v17153_v62, %v21332_v45  ;;  %13406 = vmatmul.mubr.msk.f32.gmra.mrb[16].mxu1 %vm944_vm2, %v908_v6  ;;  %v21335_v33 = vld [vmem:[#allocation2_spill] sm:$0xff]  ;;  %v21336_v24 = vld [vmem:[#allocation51_spill] sm:$0xff] }
 0x138   : > { %v911_v32 = vsel %vm569_vm1, %v909_v38, %v910_v8  ;;  %21331 = vst [vmem:[#allocation49_spill] sm:$0xff] %v17542_v51  ;;  %15154 = vset.pattern.permute.xlu1 %v21137_v21  ;;  %v21333_v38 = vld [vmem:[#allocation57_spill] sm:$0xff]  ;;  %v17558_v37 = vpop.permute.xlu0 %6989  ;;  %v3543_v57 = vadd.f32 %v3489_v27, %v2925_v44  ;;  %vm7282_vm3 = vcmp.ge.s32.totalorder %v21335_v33, 1  ;;  %v5344_v3 = vmul.f32 %v21336_v24, %v15700_v26  ;;  %v15288_v44 = vld [vmem:[%s15658_s20 + $0x121] sm:$0xff] }
 0x139   : > { %v6800_v41 = vmul.f32 %v17153_v62, %v21333_v38  ;;  %6693 = vperm.xlu1 %15154, %v16909_v49   ;;  %21334 = vst [vmem:[#allocation40_spill] sm:$0xff] %v17558_v37  ;;  %v6526_v48 = vadd.f32 %v6472_v2, %v6144_v19  ;;  %13408 = vmatprep.mubr.msk.f32.mxu1 %vm944_vm2, %v911_v32  ;;  %v917_v38 = vrot.slane %v17542_v51, 1  ;;  %v919_v6 = vrot.slane %v15288_v44, 1  ;;  %v15289_v2 = vld [vmem:[%s15658_s20 + $0x129] sm:$0xff]  ;;  %v21338_v24 = vld [vmem:[#allocation50_spill] sm:$0xff] }
 0x13a   : > { %v913_v45 = vsel %vm569_vm1, %v910_v8, %v912_v7  ;;  %v17567_v25 = vpop.permute.xlu1 %6317  ;;  %v4162_v50 = vadd.f32 %v4108_v47, %v3543_v57  ;;  %v916_v27 = vsel %vm569_vm1, %v914_v39, %v915_v5  ;;  %v920_v19 = vrot.slane %v15289_v2, 1  ;;  %v21337_v37 = vld [vmem:[#allocation60_spill] sm:$0xff]  ;;  %v21339_v8 = vld [vmem:[#allocation59_spill] sm:$0xff]  ;;  %v11766_v47 = vld [vmem:[%s15658_s20 + $0x59] sm:$0x3] }
 0x13b   : > { %v17574_v35 = vmul.f32 %v17171_v61, %v21337_v37  ;;  %v17578_v32 = vmul.f32 %v17147_v55, %v21338_v24  ;;  %v7119_v7 = vmul.f32 %v17171_v61, %v21339_v8  ;;  %v2269_v58 = vadd.f32 %v2215_v28, %v1650_v52  ;;  %15213 = vset.pattern.permute.xlu0 %v21226_v59  ;;  %v21340_v57 = vld [vmem:[#allocation26_spill] sm:$0xff]  ;;  %v21341_v24 = vld [vmem:[#allocation16_spill] sm:$0xff]  ;;  %v21342_v8 = vld [vmem:[#allocation37_spill] sm:$0xff] }
 0x13c   : > { %v6854_v39 = vadd.f32 %v6800_v41, %v6526_v48  ;;  %v7123_v44 = vmul.f32 %v17171_v61, %v21340_v57  ;;  %v4780_v37 = vadd.f32 %v17224_v43, %v4162_v50  ;;  %13409 = vmatmul.mubr.msk.f32.gmra.mrb[18].mxu1 %vm944_vm2, %v913_v45  ;;  %v922_v2 = vrot.slane %v17388_v53, 1  ;;  %v15290_v41 = vld [vmem:[%s15658_s20 + $0x139] sm:$0xff] }
 0x13d   : > { %15155 = vset.pattern.permute.xlu1 %v21226_v59  ;;  %v6254_v52 = vpop.permute.xlu0 %6253  ;;  %13411 = vmatprep.mubr.msk.f32.mxu1 %vm944_vm2, %v916_v27  ;;  %v918_v28 = vsel %vm569_vm1, %v915_v5, %v917_v38  ;;  %v924_v48 = vrot.slane %v15290_v41, 1  ;;  %v925_v57 = vrot.slane %v21342_v8, 1  ;;  %v2833_v43 = vmul.f32 %v11766_v47, %v15676_v16  ;;  %v11853_v50 = vld [vmem:[%s15658_s20 + $0x5a] sm:$0x3]  ;;  %v21345_v5 = vld [vmem:[#allocation32_spill] sm:$0xff] }
 0x13e   : > { %6030 = vperm.xlu1 %15155, %v21341_v24   ;;  %v21343_v45 = vld [vmem:[#allocation33_spill] sm:$0xff]  ;;  %v6463_v26 = vmul.f32 %v17150_v56, %v6254_v52  ;;  %v17603_v51 = vadd.f32 %v5344_v3, %v4780_v37  ;;  %v921_v27 = vsel %vm569_vm1, %v919_v6, %v920_v19  ;;  %v7128_v38 = vmul.f32 %v17171_v61, %v21345_v5  ;;  %v21347_v37 = vld [vmem:[#allocation44_spill] sm:$0xff] }
 0x13f   : > { %v7126_v53 = vmul.f32 %v17171_v61, %v21343_v45  ;;  %v6475_v41 = vmul.f32 %v17150_v56, %v17227_v4  ;;  %v17610_v8 = vpop.permute.xlu1 %6641  ;;  %v2887_v54 = vadd.f32 %v2833_v43, %v2269_v58  ;;  %v3451_v47 = vmul.f32 %v11853_v50, %v15679_v17  ;;  %v17635_v50 = vld [vmem:[%s15658_s20 + $0x161] sm:$0x3] }
 0x140   : > { %21344 = vst [vmem:[#allocation57_spill] sm:$0xff] %v17603_v51  ;;  %v17615_v45 = vadd.f32 %v7123_v44, %v17474_v13  ;;  %v6517_v3 = vadd.f32 %v6463_v26, %v17245_v14  ;;  %6090 = vperm.xlu0 %15213, %v17603_v51   ;;  %13412 = vmatmul.mubr.msk.f32.gmra.mrb[20].mxu1 %vm944_vm2, %v918_v28  ;;  %v927_v4 = vrot.slane %v17596_v1, 1  ;;  %v17623_v58 = vmax.f32 %v17333_v15, 0.0  ;;  %v15292_v15 = vld [vmem:[%s15658_s20 + $0x159] sm:$0xff] }
 0x141   : > { %v923_v6 = vsel %vm569_vm1, %v920_v19, %v922_v2  ;;  %v6278_v13 = vpop.permute.xlu0 %6277  ;;  %13414 = vmatprep.mubr.msk.f32.mxu1 %vm944_vm2, %v921_v27  ;;  %v926_v26 = vsel %vm569_vm1, %v924_v48, %v925_v57  ;;  %v3505_v14 = vadd.f32 %v3451_v47, %v2887_v54  ;;  %v4070_v44 = vmul.f32 %v11940_v0, %v15682_v18  ;;  %v15291_v2 = vld [vmem:[%s15658_s20 + $0x151] sm:$0xff]  ;;  %v21348_v54 = vld [vmem:[#allocation63_spill] sm:$0xff] }
 0x142   : > { %21346 = vst [vmem:[#allocation51_spill] sm:$0xff] %v17623_v58  ;;  %15156 = vset.pattern.permute.xlu1 %v21128_v23  ;;  %v6845_v52 = vadd.f32 %v21347_v37, %v6517_v3  ;;  %v6469_v19 = vmul.f32 %v17150_v56, %v6278_v13  ;;  %v929_v28 = vrot.slane %v15291_v2, 1  ;;  %v930_v43 = vrot.slane %v15292_v15, 1  ;;  %v21349_v47 = vld [vmem:[#allocation3_spill] sm:$0xff] }
 0x143   : > { %6377 = vperm.xlu1 %15156, %v21341_v24   ;;  %v17638_v5 = vadd.f32 %v7126_v53, %v17501_v60  ;;  %v17640_v27 = vadd.f32 %v7128_v38, %v6854_v39  ;;  %v6529_v48 = vadd.f32 %v6475_v41, %v21348_v54  ;;  %v4124_v0 = vadd.f32 %v4070_v44, %v3505_v14  ;;  %v21352_v60 = vld [vmem:[#allocation18_spill] sm:$0xff]  ;;  %v21353_v41 = vld [vmem:[#allocation52_spill] sm:$0xff]  ;;  %v21356_v54 = vld [vmem:[#allocation69_spill] sm:$0xff] }
 0x144   : > { %v6523_v3 = vadd.f32 %v6469_v19, %v21349_v47  ;;  %v17644_v37 = vpop.permute.xlu1 %5965  ;;  %v7173_v51 = vadd.f32 %v7119_v7, %v6845_v52  ;;  %v21350_v13 = vmax.f32 %v17498_v42, 0.0  ;;  %13415 = vmatmul.mubr.msk.f32.gmra.mrb[22].mxu1 %vm944_vm2, %v923_v6  ;;  %5885 = vperm.xlu0 %15213, %v21352_v60   ;;  %v928_v39 = vsel %vm569_vm1, %v925_v57, %v927_v4  ;;  %v21354_v14 = vld [vmem:[#allocation62_spill] sm:$0xff]  ;;  %v17667_v4 = vld [vmem:[%s15658_s20 + $0x179] sm:$0x3] }
 0x145   : > { %v6294_v53 = vpop.permute.xlu0 %6293  ;;  %13417 = vmatprep.mubr.msk.f32.mxu1 %vm944_vm2, %v926_v26  ;;  %v932_v38 = vrot.slane %v17635_v50, 1  ;;  %v934_v7 = vrot.slane %v21353_v41, 1  ;;  %v935_v42 = vrot.slane %v17446_v34, 1  ;;  %v17660_v44 = vadd.f32 %v21354_v14, %v4124_v0  ;;  %v21355_v26 = vld [vmem:[#allocation65_spill] sm:$0xff]  ;;  %v21357_v47 = vld [vmem:[#allocation58_spill] sm:$0xff] }
 0x146   : > { %v17650_v2 = vsel %vm7282_vm3, %v21350_v13, 0.0  ;;  %v6851_v52 = vadd.f32 %v17553_v40, %v6523_v3  ;;  %v6473_v6 = vmul.f32 %v17150_v56, %v6294_v53  ;;  %v7227_v19 = vmax.f32 %v7173_v51, 0.0  ;;  %v21359_v53 = vld [vmem:[#allocation22_spill] sm:$0xff] }
 0x147   : > { %21351 = vst [vmem:[#allocation60_spill] sm:$0xff] %v17650_v2  ;;  %15157 = vset.pattern.permute.xlu1 %v21188_v29  ;;  %v931_v57 = vsel %vm569_vm1, %v929_v28, %v930_v43  ;;  %v6801_v15 = vmul.f32 %v17153_v62, %v21355_v26  ;;  %v6148_v34 = vmul.f32 %v17147_v55, %v21356_v54  ;;  %v21362_v54 = vld [vmem:[#allocation28_spill] sm:$0xff] }
 0x148   : > { %v6476_v0 = vmul.f32 %v17150_v56, %v21357_v47  ;;  %v6857_v40 = vadd.f32 %v17478_v63, %v6529_v48  ;;  %7021 = vperm.xlu1 %15157, %v16909_v49   ;;  %v6150_v51 = vmul.f32 %v17147_v55, %v17439_v20  ;;  %v7179_v28 = vadd.f32 %v17574_v35, %v6851_v52 }
 0x149   : > { %v6527_v3 = vadd.f32 %v6473_v6, %v17578_v32  ;;  %v17683_v13 = vsel %vm7282_vm3, %v7227_v19, 0.0  ;;  %13418 = vmatmul.mubr.msk.f32.gmra.mrb[24].mxu1 %vm944_vm2, %v928_v39  ;;  %5930 = vperm.xlu0 %15213, %v21359_v53   ;;  %v7131_v63 = vmul.f32 %v17171_v61, %v17530_v30  ;;  %v17689_v49 = vpop.permute.xlu1 %6325  ;;  %v6314_v20 = vpop.permute.xlu0 %6313  ;;  %v933_v35 = vsel %vm569_vm1, %v930_v43, %v932_v38  ;;  %v21360_v30 = vld [vmem:[#allocation56_spill] sm:$0xff]  ;;  %v11877_v53 = vld [vmem:[%s15658_s20 + $0x11a] sm:$0x3] }
 0x14a   : > { %21358 = vst [vmem:[#allocation50_spill] sm:$0xff] %v17683_v13  ;;  %13834 = vmatprep.mubr.msk.f32.mxu0 %vm944_vm2, %v17683_v13  ;;  %13420 = vmatprep.mubr.msk.f32.mxu1 %vm944_vm2, %v931_v57  ;;  %v936_v32 = vsel %vm569_vm1, %v934_v7, %v935_v42  ;;  %v937_v48 = vrot.slane %v17667_v4, 1  ;;  %v7233_v39 = vmax.f32 %v7179_v28, 0.0  ;;  %v6478_v41 = vmul.f32 %v17150_v56, %v6314_v20  ;;  %v17703_v6 = vld [vmem:[%s15658_s20 + $0x191] sm:$0x3] }
 0x14b   : > { %13835 = vmatmul.mubr.msk.f32.gmra.mrb[2].mxu0 %vm944_vm2, %v17623_v58  ;;  %v939_v14 = vrot.slane %v21360_v30, 1  ;;  %v940_v52 = vrot.slane %v17484_v36, 1  ;;  %v17706_v19 = vmax.f32 %v17615_v45, 0.0  ;;  %v6530_v43 = vadd.f32 %v6476_v0, %v6148_v34 }
 0x14c   : > { %v7129_v38 = vmul.f32 %v17171_v61, %v17412_v22  ;;  %v6804_v7 = vmul.f32 %v17153_v62, %v17486_v31  ;;  %15158 = vset.pattern.permute.xlu1 %v21226_v59  ;;  %13837 = vmatprep.mubr.msk.f32.mxu0 %vm944_vm2, %v17650_v2  ;;  %v7236_v57 = vmax.f32 %v17640_v27, 0.0  ;;  %v6806_v36 = vmul.f32 %v17153_v62, %v17610_v8  ;;  %v337_v8 = vld [vmem:[%s20796_s3] sm:$0xf] }
 0x14d   : > { %21361 = vst [vmem:[#allocation59_spill] sm:$0xff] %v17706_v19  ;;  %v6855_v26 = vadd.f32 %v6801_v15, %v6527_v3  ;;  %v6532_v45 = vadd.f32 %v6478_v41, %v6150_v51  ;;  %6040 = vperm.xlu1 %15158, %v21362_v54   ;;  %13421 = vmatmul.mubr.msk.f32.gmra.mrb[26].mxu1 %vm944_vm2, %v933_v35  ;;  %v17722_v31 = vsel %vm7282_vm3, %v7233_v39, 0.0  ;;  %v942_v34 = vrot.slane %v17703_v6, 1  ;;  %v21364_v15 = vld [vmem:[#allocation17_spill] sm:$0xff]  ;;  %v21366_v35 = vld [vmem:[#allocation38_spill] sm:$0xff] }
 0x14e   : > { %v7185_v22 = vadd.f32 %v7131_v63, %v6857_v40  ;;  %21363 = vst [vmem:[#allocation26_spill] sm:$0xff] %v17722_v31  ;;  %13423 = vmatprep.mubr.msk.f32.mxu1 %vm944_vm2, %v936_v32  ;;  %v938_v27 = vsel %vm569_vm1, %v935_v42, %v937_v48  ;;  %5975 = vperm.xlu0 %15213, %v21364_v15   ;;  %v6970_v0 = vpop.permute.xlu1 %6969  ;;  %v15293_v51 = vld [vmem:[%s15658_s20 + $0x18] sm:$0xff]  ;;  %v15294_v42 = vld [vmem:[%s15658_s20 + $0x20] sm:$0xff]  ;;  %v17742_v20 = vmax.f32 %v17638_v5, 0.0  ;;  %v17750_v41 = vsel %vm7282_vm3, %v7236_v57, 0.0 }
 0x14f   : > { %v6860_v47 = vadd.f32 %v6806_v36, %v6532_v45  ;;  %13838 = vmatmul.mubr.msk.f32.gmra.mrb[4].mxu0 %vm944_vm2, %v17706_v19  ;;  %v941_v40 = vsel %vm569_vm1, %v939_v14, %v940_v52  ;;  %13429 = vmatprep.subr.msk.mxu1 %vm1009_vm0, %v337_v8  ;;  %v570_v28 = vrot.slane %v15293_v51, 1  ;;  %v571_v3 = vrot.slane %v15294_v42, 1  ;;  %21367 = vst [vmem:[#allocation37_spill] sm:$0xff] %v17750_v41  ;;  %v15295_v14 = vld [vmem:[%s15658_s20 + $0x28] sm:$0x3]  ;;  %v15297_v45 = vld [vmem:[%s15658_s20 + $0x38] sm:$0xff] }
 0x150   : > { %v7134_v63 = vmul.f32 %v17171_v61, %v6970_v0  ;;  %13840 = vmatprep.mubr.msk.f32.mxu0 %vm944_vm2, %v17722_v31  ;;  %13430 = vmatpush3.msk.msra.mxu1 %vm1009_vm0, %v337_v8  ;;  %21365 = vst [vmem:[#allocation16_spill] sm:$0xff] %v17742_v20  ;;  %v7132_v32 = vmul.f32 %v17171_v61, %v21366_v35  ;;  %v7239_v30 = vmax.f32 %v7185_v22, 0.0  ;;  %v573_v36 = vrot.slane %v15295_v14, 1  ;;  %v21371_v51 = vld [vmem:[#allocation64_spill] sm:$0xff]  ;;  %v15298_v42 = vld [vmem:[%s15658_s20 + $0x48] sm:$0xff] }
 0x151   : > { %v6858_v48 = vadd.f32 %v6804_v7, %v6530_v43  ;;  %v7183_v39 = vadd.f32 %v7129_v38, %v6855_v26  ;;  %15159 = vset.pattern.permute.xlu1 %v21137_v21  ;;  %13424 = vmatmul.mubr.msk.f32.gmra.mrb[28].mxu1 %vm944_vm2, %v938_v27  ;;  %v943_v5 = vsel %vm569_vm1, %v940_v52, %v942_v34  ;;  %v15296_v7 = vld [vmem:[%s15658_s20 + $0x30] sm:$0xff]  ;;  %v576_v57 = vrot.slane %v15297_v45, 1 }
 0x152   : > { %6705 = vperm.xlu1 %15159, %v21341_v24   ;;  %13426 = vmatprep.mubr.msk.f32.mxu1 %vm944_vm2, %v941_v40  ;;  %v7188_v43 = vadd.f32 %v7134_v63, %v6860_v47  ;;  %v572_v38 = vsel %vm569_vm1, %v570_v28, %v571_v3  ;;  %v575_v26 = vrot.slane %v15296_v7, 1  ;;  %v21368_v24 = vld [vmem:[#allocation13_spill] sm:$0xff]  ;;  %v6479_v34 = vmul.f32 %v17150_v56, %v17567_v25  ;;  %v15299_v35 = vld [vmem:[%s15658_s20 + $0x50] sm:$0xff]  ;;  %v21375_v7 = vld [vmem:[#allocation54_spill] sm:$0xff] }
 0x153   : > { %13841 = vmatmul.mubr.msk.f32.gmra.mrb[6].mxu0 %vm944_vm2, %v17742_v20  ;;  %v17761_v27 = vpop.permute.xlu1 %5970  ;;  %v6151_v52 = vmul.f32 %v17147_v55, %v21368_v24  ;;  %v7186_v22 = vadd.f32 %v7132_v32, %v6858_v48  ;;  %v17769_v8 = vmax.f32 %v7183_v39, 0.0  ;;  %v6481_v47 = vmul.f32 %v17150_v56, %v17689_v49 }
 0x154   : > { %13843 = vmatprep.mubr.msk.f32.mxu0 %vm944_vm2, %v17750_v41  ;;  %v17777_v0 = vsel %vm7282_vm3, %v7239_v30, 0.0  ;;  %v574_v40 = vsel %vm569_vm1, %v571_v3, %v573_v36  ;;  %v578_v28 = vrot.slane %v21371_v51, 1  ;;  %v7242_v25 = vmax.f32 %v7188_v43, 0.0  ;;  %v21372_v3 = vld [vmem:[#allocation27_spill] sm:$0xff]  ;;  %v21378_v51 = vld [vmem:[#allocation10_spill] sm:$0xff]  ;;  %v21390_v41 = vld [vmem:[#allocation20_spill] sm:$0xff] }
 0x155   : > { %21369 = vst [vmem:[#allocation33_spill] sm:$0xff] %v17769_v8  ;;  %13427 = vmatmul.mubr.msk.f32.gmra.mrb[30].mxu1 %vm944_vm2, %v943_v5  ;;  %21370 = vst [vmem:[#allocation32_spill] sm:$0xff] %v17777_v0  ;;  %v577_v49 = vsel %vm569_vm1, %v575_v26, %v576_v57  ;;  %v580_v63 = vrot.slane %v15298_v42, 1  ;;  %v581_v32 = vrot.slane %v15299_v35, 1  ;;  %v6153_v48 = vmul.f32 %v17147_v55, %v17644_v37 }
 0x156   : > { %15160 = vset.pattern.permute.xlu1 %v21188_v29  ;;  %13431 = vmatprep.mubr.msk.f32.mxu1 %vm944_vm2, %v572_v38  ;;  %v6807_v39 = vmul.f32 %v17153_v62, %v21372_v3  ;;  %v17796_v5 = vmax.f32 %v7186_v22, 0.0  ;;  %v6533_v14 = vadd.f32 %v6479_v34, %v6151_v52  ;;  %v579_v38 = vsel %vm569_vm1, %v576_v57, %v578_v28  ;;  %v15300_v52 = vld [vmem:[%s15658_s20 + $0x60] sm:$0xff]  ;;  %v15301_v34 = vld [vmem:[%s15658_s20 + $0x68] sm:$0xff] }
 0x157   : > { %7029 = vperm.xlu1 %15160, %v21326_v46   ;;  %13844 = vmatmul.mubr.msk.f32.gmra.mrb[8].mxu0 %vm944_vm2, %v17769_v8  ;;  %v21373_v46 = vld [vmem:[#allocation14_spill] sm:$0xff]  ;;  %v6535_v43 = vadd.f32 %v6481_v47, %v6153_v48  ;;  %v583_v26 = vrot.slane %v21375_v7, 1  ;;  %v17808_v45 = vsel %vm7282_vm3, %v7242_v25, 0.0  ;;  %v582_v24 = vsel %vm569_vm1, %v580_v63, %v581_v32  ;;  %v21377_v57 = vld [vmem:[#allocation67_spill] sm:$0xff]  ;;  %v15318_v8 = vld [vmem:[%s15658_s20 + $0xf8] sm:$0xff] }
 0x158   : > { %13846 = vmatprep.mubr.msk.f32.mxu0 %vm944_vm2, %v17777_v0  ;;  %v7137_v30 = vmul.f32 %v17171_v61, %v21373_v46  ;;  %21374 = vst [vmem:[#allocation44_spill] sm:$0xff] %v17796_v5  ;;  %v6654_v36 = vpop.permute.xlu1 %6653  ;;  %21376 = vst [vmem:[#allocation63_spill] sm:$0xff] %v17808_v45  ;;  %v585_v22 = vrot.slane %v15300_v52, 1  ;;  %v586_v47 = vrot.slane %v15301_v34, 1  ;;  %v725_v28 = vmul.f32 %v15664_v10, %v21378_v51  ;;  %v372_v25 = vld [vmem:[%s15658_s20 + $0x88] sm:$0x3] }
 0x159   : > { %13432 = vmatmul.mubr.msk.f32.vlgmr.msra.gmra.mrb[0].mxu1 %vm944_vm2, %v574_v40  ;;  %v6809_v37 = vmul.f32 %v17153_v62, %v6654_v36  ;;  %v584_v63 = vsel %vm569_vm1, %v581_v32, %v583_v26  ;;  %v6861_v35 = vadd.f32 %v6807_v39, %v6533_v14  ;;  %v430_v46 = vmul.f32 %v15661_v9, %v372_v25  ;;  %v15302_v36 = vld [vmem:[%s15658_s20 + $0x70] sm:$0x3]  ;;  %v17830_v52 = vld [vmem:[%s15658_s20 + $0x8a] sm:$0x3] }
 0x15a   : > { %13434 = vmatprep.mubr.msk.f32.mxu1 %vm944_vm2, %v577_v49  ;;  %v587_v3 = vsel %vm569_vm1, %v585_v22, %v586_v47  ;;  %v1605_v26 = vmul.f32 %v15667_v11, %v17830_v52  ;;  %v17932_v20 = vmul.f32 %v17147_v55, %v21390_v41 }
 0x15b   : > { %15161 = vset.pattern.permute.xlu1 %v21128_v23  ;;  %13847 = vmatmul.mubr.msk.f32.gmra.mrb[10].mxu0 %vm944_vm2, %v17796_v5  ;;  %v6863_v40 = vadd.f32 %v6809_v37, %v6535_v43  ;;  %v588_v43 = vrot.slane %v15302_v36, 1  ;;  %v15303_v37 = vld [vmem:[%s15658_s20 + $0x78] sm:$0xff]  ;;  %v779_v14 = vadd.f32 %v725_v28, %v430_v46  ;;  %v593_v28 = vrot.slane %v372_v25, 1  ;;  %v17888_v5 = vld [vmem:[%s15658_s20 + $0xd2] sm:$0x3] }
 0x15c   : > { %6389 = vperm.xlu1 %15161, %v21377_v57   ;;  %13849 = vmatprep.mubr.msk.f32.mxu0 %vm944_vm2, %v17808_v45  ;;  %v15306_v36 = vld [vmem:[%s15658_s20 + $0x98] sm:$0xff] }
 0x15d   : > { %13435 = vmatmul.mubr.msk.f32.gmra.mrb[2].mxu1 %vm944_vm2, %v579_v38  ;;  %v7191_v49 = vadd.f32 %v7137_v30, %v6863_v40  ;;  %v6974_v42 = vpop.permute.xlu1 %6973  ;;  %v590_v38 = vrot.slane %v15303_v37, 1  ;;  %v15304_v30 = vld [vmem:[%s15658_s20 + $0x80] sm:$0xff]  ;;  %v1659_v40 = vadd.f32 %v1605_v26, %v779_v14  ;;  %v21382_v14 = vld [vmem:[#allocation41_spill] sm:$0xff] }
 0x15e   : > { %13437 = vmatprep.mubr.msk.f32.mxu1 %vm944_vm2, %v582_v24  ;;  %v7135_v48 = vmul.f32 %v17171_v61, %v6974_v42  ;;  %v591_v7 = vrot.slane %v15304_v30, 1  ;;  %v11688_v24 = vld [vmem:[%s15658_s20 + $0xa0] sm:$0x3]  ;;  %v11862_v37 = vld [vmem:[%s15658_s20 + $0xa2] sm:$0x3]  ;;  %v598_v26 = vrot.slane %v21382_v14, 1 }
 0x15f   : > { %v7245_v32 = vmax.f32 %v7191_v49, 0.0  ;;  %v2224_v51 = vmul.f32 %v11688_v24, %v15670_v12  ;;  %v589_v49 = vsel %vm569_vm1, %v586_v47, %v588_v43  ;;  %v596_v47 = vrot.slane %v15306_v36, 1  ;;  %v21381_v43 = vld [vmem:[#allocation30_spill] sm:$0xff]  ;;  %v11949_v24 = vld [vmem:[%s15658_s20 + $0xb8] sm:$0x3] }
 0x160   : > { %15162 = vset.pattern.permute.xlu1 %v21137_v21  ;;  %v7189_v39 = vadd.f32 %v7135_v48, %v6861_v35  ;;  %v592_v42 = vsel %vm569_vm1, %v590_v38, %v591_v7  ;;  %v11775_v48 = vld [vmem:[%s15658_s20 + $0xa1] sm:$0x3]  ;;  %v3460_v30 = vmul.f32 %v11862_v37, %v15679_v17  ;;  %v381_v14 = vld [vmem:[%s15658_s20 + $0xd0] sm:$0x3] }
 0x161   : > { %6713 = vperm.xlu1 %15162, %v21362_v54   ;;  %13438 = vmatmul.mubr.msk.f32.gmra.mrb[4].mxu1 %vm944_vm2, %v584_v63  ;;  %v15305_v63 = vld [vmem:[%s15658_s20 + $0x90] sm:$0xff]  ;;  %v2278_v46 = vadd.f32 %v2224_v51, %v1659_v40  ;;  %v2842_v25 = vmul.f32 %v11775_v48, %v15676_v16  ;;  %v15307_v51 = vld [vmem:[%s15658_s20 + $0xa8] sm:$0xff]  ;;  %v599_v37 = vsel %vm569_vm1, %v596_v47, %v598_v26 }
 0x162   : > { %13440 = vmatprep.mubr.msk.f32.mxu1 %vm944_vm2, %v587_v3  ;;  %v17838_v22 = vmax.f32 %v7189_v39, 0.0  ;;  %v17840_v34 = vpop.permute.xlu1 %6337  ;;  %v595_v35 = vrot.slane %v15305_v63, 1  ;;  %v17852_v3 = vsel %vm7282_vm3, %v7245_v32, 0.0  ;;  %v594_v39 = vsel %vm569_vm1, %v591_v7, %v593_v28  ;;  %v15308_v48 = vld [vmem:[%s15658_s20 + $0xb0] sm:$0xff]  ;;  %v21384_v28 = vld [vmem:[#allocation35_spill] sm:$0xff] }
 0x163   : > { %21380 = vst [vmem:[#allocation18_spill] sm:$0xff] %v17852_v3  ;;  %v2896_v38 = vadd.f32 %v2842_v25, %v2278_v46  ;;  %v600_v63 = vrot.slane %v15307_v51, 1  ;;  %v4079_v46 = vmul.f32 %v11949_v24, %v15682_v18  ;;  %v21383_v25 = vld [vmem:[#allocation6_spill] sm:$0xff]  ;;  %v6330_v51 = vpop.permute.xlu0 %6329 }
 0x164   : > { %21379 = vst [vmem:[#allocation3_spill] sm:$0xff] %v17838_v22  ;;  %13850 = vmatmul.mubr.msk.f32.gmra.mrb[12].mxu0 %vm944_vm2, %v17838_v22  ;;  %v597_v40 = vsel %vm569_vm1, %v595_v35, %v596_v47  ;;  %v734_v35 = vmul.f32 %v15664_v10, %v21384_v28  ;;  %v15312_v22 = vld [vmem:[%s15658_s20 + $0xc8] sm:$0xff]  ;;  %v1614_v47 = vmul.f32 %v15667_v11, %v17888_v5 }
 0x165   : > { %15163 = vset.pattern.permute.xlu1 %v21226_v59  ;;  %13852 = vmatprep.mubr.msk.f32.mxu0 %vm944_vm2, %v17852_v3  ;;  %v3514_v36 = vadd.f32 %v3460_v30, %v2896_v38  ;;  %v15310_v38 = vld [vmem:[%s15658_s20 + $0xb8] sm:$0x3]  ;;  %v15311_v3 = vld [vmem:[%s15658_s20 + $0xc0] sm:$0xff]  ;;  %v606_v28 = vrot.slane %v15312_v22, 1  ;;  %v6154_v22 = vmul.f32 %v17147_v55, %v17761_v27  ;;  %v15315_v27 = vld [vmem:[%s15658_s20 + $0x131] sm:$0x3] }
 0x166   : > { %6055 = vperm.xlu1 %15163, %v21381_v43   ;;  %13441 = vmatmul.mubr.msk.f32.gmra.mrb[6].mxu1 %vm944_vm2, %v589_v49  ;;  %v601_v49 = vrot.slane %v15308_v48, 1  ;;  %v603_v30 = vrot.slane %v15310_v38, 1  ;;  %v605_v45 = vrot.slane %v15311_v3, 1  ;;  %v6482_v3 = vmul.f32 %v17150_v56, %v6330_v51  ;;  %v15314_v38 = vld [vmem:[%s15658_s20 + $0xe0] sm:$0xff] }
 0x167   : > { %v6658_v32 = vpop.permute.xlu1 %6657  ;;  %13443 = vmatprep.mubr.msk.f32.mxu1 %vm944_vm2, %v592_v42  ;;  %v15309_v42 = vld [vmem:[%s15658_s20 + $0xb9] sm:$0x3]  ;;  %v4133_v24 = vadd.f32 %v4079_v46, %v3514_v36  ;;  %v608_v36 = vrot.slane %v381_v14, 1  ;;  %v17909_v51 = vmul.f32 %v15315_v27, %v21383_v25  ;;  %v387_v27 = vld [vmem:[%s15658_s20 + $0x100] sm:$0x3] }
 0x168   : > { %v4697_v7 = vmul.f32 %v15309_v42, %v21383_v25  ;;  %v602_v42 = vsel %vm569_vm1, %v600_v63, %v601_v49  ;;  %v604_v63 = vsel %vm569_vm1, %v601_v49, %v603_v30  ;;  %v607_v46 = vsel %vm569_vm1, %v605_v45, %v606_v28  ;;  %v21386_v30 = vld [vmem:[#allocation48_spill] sm:$0xff] }
 0x169   : > { %v6810_v45 = vmul.f32 %v17153_v62, %v6658_v32  ;;  %v21389_v32 = vld [vmem:[#allocation42_spill] sm:$0xff]  ;;  %v618_v41 = vrot.slane %v387_v27, 1 }
 0x16a   : > { %15164 = vset.pattern.permute.xlu1 %v21128_v23  ;;  %13444 = vmatmul.mubr.msk.f32.gmra.mrb[8].mxu1 %vm944_vm2, %v594_v39  ;;  %v439_v39 = vmul.f32 %v15661_v9, %v381_v14  ;;  %v613_v14 = vrot.slane %v21386_v30, 1  ;;  %v15317_v30 = vld [vmem:[%s15658_s20 + $0xf0] sm:$0xff] }
 0x16b   : > { %6397 = vperm.xlu1 %15164, %v21381_v43   ;;  %13446 = vmatprep.mubr.msk.f32.mxu1 %vm944_vm2, %v597_v40  ;;  %v17894_v40 = vadd.f32 %v4697_v7, %v4133_v24  ;;  %v611_v24 = vrot.slane %v15314_v38, 1  ;;  %v609_v38 = vsel %vm569_vm1, %v606_v28, %v608_v36  ;;  %v615_v0 = vrot.slane %v15317_v30, 1  ;;  %v17945_v30 = vld [vmem:[%s15658_s20 + $0x102] sm:$0x3] }
 0x16c   : > { %v17881_v48 = vpop.permute.xlu1 %5985  ;;  %v788_v26 = vadd.f32 %v734_v35, %v439_v39  ;;  %v15313_v35 = vld [vmem:[%s15658_s20 + $0xd8] sm:$0xff]  ;;  %v749_v28 = vmul.f32 %v15664_v10, %v17596_v1 }
 0x16d   : > { %21385 = vst [vmem:[#allocation52_spill] sm:$0xff] %v17894_v40  ;;  %v610_v7 = vrot.slane %v15313_v35, 1  ;;  %v11712_v40 = vld [vmem:[%s15658_s20 + $0x160] sm:$0x3] }
 0x16e   : > { %13447 = vmatmul.mubr.msk.f32.gmra.mrb[10].mxu1 %vm944_vm2, %v599_v37  ;;  %v17903_v37 = vadd.f32 %v1614_v47, %v788_v26  ;;  %v21388_v26 = vld [vmem:[#allocation49_spill] sm:$0xff] }
 0x16f   : > { %15165 = vset.pattern.permute.xlu1 %v21188_v29  ;;  %13449 = vmatprep.mubr.msk.f32.mxu1 %vm944_vm2, %v602_v42  ;;  %v21387_v42 = vld [vmem:[#allocation34_spill] sm:$0xff]  ;;  %v743_v35 = vmul.f32 %v15664_v10, %v21388_v26  ;;  %v21391_v26 = vld [vmem:[#allocation29_spill] sm:$0xff] }
 0x170   : > { %7041 = vperm.xlu1 %15165, %v21362_v54   ;;  %v15316_v54 = vld [vmem:[%s15658_s20 + $0x179] sm:$0x3]  ;;  %v740_v47 = vmul.f32 %v15664_v10, %v21387_v42  ;;  %v616_v42 = vrot.slane %v15318_v8, 1  ;;  %v614_v8 = vsel %vm569_vm1, %v611_v24, %v613_v14  ;;  %v15319_v14 = vld [vmem:[%s15658_s20 + $0x108] sm:$0xff] }
 0x171   : > { %v6342_v39 = vpop.permute.xlu1 %6341  ;;  %v17913_v49 = vmul.f32 %v15316_v54, %v21383_v25  ;;  %v6536_v54 = vadd.f32 %v6482_v3, %v6154_v22  ;;  %v445_v22 = vmul.f32 %v15661_v9, %v387_v27  ;;  %v390_v3 = vld [vmem:[%s15658_s20 + $0x118] sm:$0x3]  ;;  %v15320_v27 = vld [vmem:[%s15658_s20 + $0x110] sm:$0xff] }
 0x172   : > { %13450 = vmatmul.mubr.msk.f32.gmra.mrb[12].mxu1 %vm944_vm2, %v604_v63  ;;  %v612_v63 = vsel %vm569_vm1, %v610_v7, %v611_v24  ;;  %v448_v31 = vmul.f32 %v15661_v9, %v390_v3  ;;  %v617_v24 = vsel %vm569_vm1, %v615_v0, %v616_v42  ;;  %v621_v19 = vrot.slane %v15320_v27, 1 }
 0x173   : > { %13452 = vmatprep.mubr.msk.f32.mxu1 %vm944_vm2, %v607_v46  ;;  %v17936_v46 = vmul.f32 %v17153_v62, %v21391_v26  ;;  %v6864_v36 = vadd.f32 %v6810_v45, %v6536_v54  ;;  %v11703_v26 = vld [vmem:[%s15658_s20 + $0x118] sm:$0x3]  ;;  %v794_v2 = vadd.f32 %v740_v47, %v445_v22  ;;  %v1620_v45 = vmul.f32 %v15667_v11, %v17945_v30 }
 0x174   : > { %15166 = vset.pattern.permute.xlu1 %v21226_v59  ;;  %v2239_v54 = vmul.f32 %v11703_v26, %v15670_v12  ;;  %v17958_v58 = vadd.f32 %v743_v35, %v448_v31  ;;  %v21392_v47 = vld [vmem:[#allocation9_spill] sm:$0xff]  ;;  %v6157_v31 = vmul.f32 %v17147_v55, %v17881_v48  ;;  %v6485_v35 = vmul.f32 %v17150_v56, %v6342_v39 }
 0x175   : > { %6060 = vperm.xlu1 %15166, %v21389_v32   ;;  %v1674_v26 = vadd.f32 %v1620_v45, %v794_v2  ;;  %v11790_v2 = vld [vmem:[%s15658_s20 + $0x119] sm:$0x3] }
 0x176   : > { %v6986_v7 = vpop.permute.xlu1 %6985  ;;  %13453 = vmatmul.mubr.msk.f32.gmra.mrb[14].mxu1 %vm944_vm2, %v609_v38  ;;  %v620_v38 = vrot.slane %v15319_v14, 1  ;;  %v6484_v14 = vmul.f32 %v17150_v56, %v17840_v34  ;;  %v619_v34 = vsel %vm569_vm1, %v616_v42, %v618_v41  ;;  %v2248_v42 = vmul.f32 %v11712_v40, %v15670_v12  ;;  %v15324_v40 = vld [vmem:[%s15658_s20 + $0x140] sm:$0xff] }
 0x177   : > { %v7138_v1 = vmul.f32 %v17171_v61, %v6986_v7  ;;  %13455 = vmatprep.mubr.msk.f32.mxu1 %vm944_vm2, %v612_v63  ;;  %v17961_v7 = vld [vmem:[%s15658_s20 + $0x148] sm:$0x3]  ;;  %v17965_v63 = vmul.f32 %v17171_v61, %v21392_v47  ;;  %v2293_v27 = vadd.f32 %v2239_v54, %v1674_v26  ;;  %v15321_v47 = vld [vmem:[%s15658_s20 + $0x120] sm:$0xff]  ;;  %v3475_v41 = vmul.f32 %v11877_v53, %v15679_v17  ;;  %v15323_v26 = vld [vmem:[%s15658_s20 + $0x138] sm:$0xff] }
 0x178   : > { %v454_v0 = vmul.f32 %v15661_v9, %v17961_v7  ;;  %v622_v39 = vsel %vm569_vm1, %v620_v38, %v621_v19 }
 0x179   : > { %15167 = vset.pattern.permute.xlu1 %v21137_v21  ;;  %v7192_v22 = vadd.f32 %v7138_v1, %v6864_v36  ;;  %v623_v36 = vrot.slane %v390_v3, 1  ;;  %v15322_v3 = vld [vmem:[%s15658_s20 + $0x128] sm:$0xff] }
 0x17a   : > { %6725 = vperm.xlu1 %15167, %v21381_v43   ;;  %13456 = vmatmul.mubr.msk.f32.gmra.mrb[16].mxu1 %vm944_vm2, %v614_v8  ;;  %v17977_v43 = vld [vmem:[%s15658_s20 + $0x14a] sm:$0x3]  ;;  %v803_v48 = vadd.f32 %v749_v28, %v454_v0  ;;  %v625_v8 = vrot.slane %v15321_v47, 1  ;;  %v626_v13 = vrot.slane %v15322_v3, 1  ;;  %v2857_v28 = vmul.f32 %v11790_v2, %v15676_v16  ;;  %v11964_v3 = vld [vmem:[%s15658_s20 + $0x130] sm:$0x3] }
 0x17b   : > { %21393 = vst [vmem:[#allocation62_spill] sm:$0xff] %v17977_v43  ;;  %v17980_v1 = vmax.f32 %v7192_v22, 0.0  ;;  %v17982_v45 = vpop.permute.xlu1 %5995  ;;  %13458 = vmatprep.mubr.msk.f32.mxu1 %vm944_vm2, %v617_v24  ;;  %v1629_v22 = vmul.f32 %v15667_v11, %v17977_v43  ;;  %v624_v54 = vsel %vm569_vm1, %v621_v19, %v623_v36  ;;  %v21395_v24 = vld [vmem:[#allocation11_spill] sm:$0xff]  ;;  %v630_v0 = vrot.slane %v15323_v26, 1 }
 0x17c   : > { %v628_v38 = vrot.slane %v21395_v24, 1  ;;  %v631_v2 = vrot.slane %v15324_v40, 1  ;;  %v2911_v43 = vadd.f32 %v2857_v28, %v2293_v27  ;;  %v4094_v53 = vmul.f32 %v11964_v3, %v15682_v18 }
 0x17d   : > { %21394 = vst [vmem:[#allocation65_spill] sm:$0xff] %v17980_v1  ;;  %13853 = vmatmul.mubr.msk.f32.gmra.mrb[14].mxu0 %vm944_vm2, %v17980_v1  ;;  %v1683_v47 = vadd.f32 %v1629_v22, %v803_v48  ;;  %v11799_v1 = vld [vmem:[%s15658_s20 + $0x161] sm:$0x3]  ;;  %v6539_v19 = vadd.f32 %v6485_v35, %v6157_v31  ;;  %v627_v24 = vsel %vm569_vm1, %v625_v8, %v626_v13 }
 0x17e   : > { %15168 = vset.pattern.permute.xlu1 %v21188_v29  ;;  %13459 = vmatmul.mubr.msk.f32.gmra.mrb[18].mxu1 %vm944_vm2, %v619_v34  ;;  %v6538_v34 = vadd.f32 %v6484_v14, %v17932_v20  ;;  %v11886_v48 = vld [vmem:[%s15658_s20 + $0x162] sm:$0x3]  ;;  %v3529_v27 = vadd.f32 %v3475_v41, %v2911_v43  ;;  %v752_v20 = vmul.f32 %v15664_v10, %v17635_v50  ;;  %v399_v43 = vld [vmem:[%s15658_s20 + $0x160] sm:$0x3]  ;;  %v18027_v41 = vld [vmem:[%s15658_s20 + $0x150] sm:$0xff] }
 0x17f   : > { %7045 = vperm.xlu1 %15168, %v21377_v57   ;;  %13461 = vmatprep.mubr.msk.f32.mxu1 %vm944_vm2, %v622_v39  ;;  %v2866_v57 = vmul.f32 %v11799_v1, %v15676_v16  ;;  %v2302_v26 = vadd.f32 %v2248_v42, %v1683_v47  ;;  %v633_v39 = vrot.slane %v17961_v7, 1  ;;  %v3484_v28 = vmul.f32 %v11886_v48, %v15679_v17  ;;  %v21396_v1 = vld [vmem:[#allocation68_spill] sm:$0xff]  ;;  %v11973_v42 = vld [vmem:[%s15658_s20 + $0x178] sm:$0x3] }
 0x180   : > { %v6670_v36 = vpop.permute.xlu1 %6669  ;;  %v629_v14 = vsel %vm569_vm1, %v626_v13, %v628_v38  ;;  %v632_v7 = vsel %vm569_vm1, %v630_v0, %v631_v2  ;;  %v4148_v8 = vadd.f32 %v4094_v53, %v3529_v27  ;;  %v20983_v50 = vrot.slane %v18027_v41, 1  ;;  %v15327_v13 = vld [vmem:[%s15658_s20 + $0x132] sm:$0x3]  ;;  %v21397_v38 = vld [vmem:[#allocation7_spill] sm:$0xff] }
 0x181   : > { %v6813_v22 = vmul.f32 %v17153_v62, %v6670_v36  ;;  %v2920_v31 = vadd.f32 %v2866_v57, %v2302_v26  ;;  %v5330_v3 = vmul.f32 %v15327_v13, %v21397_v38  ;;  %v634_v0 = vsel %vm569_vm1, %v631_v2, %v633_v39  ;;  %v18039_v26 = vld [vmem:[%s15658_s20 + $0xe8] sm:$0x3]  ;;  %v15329_v2 = vld [vmem:[%s15658_s20 + $0x170] sm:$0xff] }
 0x182   : > { %13462 = vmatmul.mubr.msk.f32.gmra.mrb[20].mxu1 %vm944_vm2, %v624_v54  ;;  %v15326_v54 = vld [vmem:[%s15658_s20 + $0x158] sm:$0xff]  ;;  %v457_v53 = vmul.f32 %v15661_v9, %v399_v43  ;;  %v4766_v36 = vadd.f32 %v17909_v51, %v4148_v8  ;;  %v638_v48 = vrot.slane %v399_v43, 1  ;;  %v18065_v8 = vld [vmem:[%s15658_s20 + $0x180] sm:$0xff] }
 0x183   : > { %15170 = vset.pattern.permute.xlu1 %v21128_v23  ;;  %v6867_v35 = vadd.f32 %v6813_v22, %v6539_v19  ;;  %13464 = vmatprep.mubr.msk.f32.mxu1 %vm944_vm2, %v627_v24  ;;  %v636_v47 = vrot.slane %v15326_v54, 1  ;;  %v3538_v40 = vadd.f32 %v3484_v28, %v2920_v31  ;;  %v6866_v19 = vadd.f32 %v17936_v46, %v6538_v34  ;;  %v15328_v22 = vld [vmem:[%s15658_s20 + $0x168] sm:$0xff] }
 0x184   : > { %6409 = vperm.xlu1 %15170, %v21396_v1   ;;  %v640_v27 = vrot.slane %v15328_v22, 1  ;;  %v4103_v28 = vmul.f32 %v11973_v42, %v15682_v18  ;;  %v18047_v51 = vadd.f32 %v752_v20, %v457_v53  ;;  %v641_v34 = vrot.slane %v15329_v2, 1  ;;  %v15330_v42 = vld [vmem:[%s15658_s20 + $0x17a] sm:$0x3]  ;;  %v11784_v22 = vld [vmem:[%s15658_s20 + $0xe9] sm:$0x3] }
 0x185   : > { %v6994_v57 = vpop.permute.xlu1 %6993  ;;  %v7195_v46 = vadd.f32 %v17965_v63, %v6867_v35  ;;  %v18050_v39 = vadd.f32 %v5330_v3, %v4766_v36  ;;  %v755_v63 = vmul.f32 %v15664_v10, %v17667_v4  ;;  %v637_v35 = vsel %vm569_vm1, %v20983_v50, %v636_v47  ;;  %v21399_v2 = vld [vmem:[#allocation12_spill] sm:$0xff] }
 0x186   : > { %v7140_v24 = vmul.f32 %v17171_v61, %v6994_v57  ;;  %13465 = vmatmul.mubr.msk.f32.gmra.mrb[22].mxu1 %vm944_vm2, %v629_v14  ;;  %v402_v14 = vld [vmem:[%s15658_s20 + $0x178] sm:$0x3]  ;;  %v4157_v43 = vadd.f32 %v4103_v28, %v3538_v40  ;;  %v758_v20 = vmul.f32 %v15664_v10, %v17703_v6  ;;  %v5339_v54 = vmul.f32 %v15330_v42, %v21397_v38  ;;  %v405_v57 = vld [vmem:[%s15658_s20 + $0x190] sm:$0x3]  ;;  %v21398_v28 = vld [vmem:[#allocation71_spill] sm:$0xff] }
 0x187   : > { %13467 = vmatprep.mubr.msk.f32.mxu1 %vm944_vm2, %v632_v7  ;;  %v2233_v7 = vmul.f32 %v18039_v26, %v15670_v12  ;;  %6020 = vperm.xlu0 %15213, %v18050_v39   ;;  %v639_v3 = vsel %vm569_vm1, %v636_v47, %v638_v48  ;;  %v460_v6 = vmul.f32 %v15661_v9, %v402_v14  ;;  %v643_v40 = vrot.slane %v402_v14, 1  ;;  %v339_v14 = vld [vmem:[%s20796_s3 + $0x8] sm:$0xf]  ;;  %v15395_v50 = vld [vmem:[%s15658_s20 + $0xd0] sm:$0x3] }
 0x188   : > { %15171 = vset.pattern.permute.xlu1 %v21137_v21  ;;  %v7194_v31 = vadd.f32 %v7140_v24, %v6866_v19  ;;  %v18075_v19 = vmax.f32 %v7195_v46, 0.0  ;;  %v642_v53 = vsel %vm569_vm1, %v640_v27, %v641_v34  ;;  %v4775_v36 = vadd.f32 %v17913_v49, %v4157_v43  ;;  %13479 = vmatprep.subr.msk.mxu1 %vm1009_vm0, %v339_v14 }
 0x189   : > { %6729 = vperm.xlu1 %15171, %v21389_v32   ;;  %v463_v24 = vmul.f32 %v15661_v9, %v405_v57  ;;  %v645_v48 = vrot.slane %v18065_v8, 1  ;;  %v646_v46 = vrot.slane %v21398_v28, 1  ;;  %v2287_v49 = vadd.f32 %v2233_v7, %v17903_v37  ;;  %13480 = vmatpush3.msk.msra.mxu1 %vm1009_vm0, %v339_v14 }
 0x18a   : > { %v7248_v4 = vmax.f32 %v7194_v31, 0.0  ;;  %v18069_v13 = vpop.permute.xlu1 %6353  ;;  %13468 = vmatmul.mubr.msk.f32.gmra.mrb[24].mxu1 %vm944_vm2, %v634_v0  ;;  %v18087_v0 = vadd.f32 %v755_v63, %v460_v6  ;;  %v18095_v27 = vadd.f32 %v5339_v54, %v4775_v36  ;;  %v11871_v31 = vld [vmem:[%s15658_s20 + $0xea] sm:$0x3]  ;;  %v644_v37 = vsel %vm569_vm1, %v641_v34, %v643_v40  ;;  %v11958_v54 = vld [vmem:[%s15658_s20 + $0x100] sm:$0x3]  ;;  %v15332_v6 = vld [vmem:[%s15658_s20 + $0x22] sm:$0xff] }
 0x18b   : > { %13470 = vmatprep.mubr.msk.f32.mxu1 %vm944_vm2, %v637_v35  ;;  %v18104_v63 = vadd.f32 %v758_v20, %v463_v24  ;;  %v2851_v35 = vmul.f32 %v11784_v22, %v15676_v16  ;;  %v648_v7 = vrot.slane %v405_v57, 1  ;;  %v3469_v42 = vmul.f32 %v11871_v31, %v15679_v17  ;;  %v15331_v20 = vld [vmem:[%s15658_s20 + $0x1a] sm:$0xff]  ;;  %v15334_v22 = vld [vmem:[%s15658_s20 + $0x2a] sm:$0x3]  ;;  %v15335_v31 = vld [vmem:[%s15658_s20 + $0x32] sm:$0xff] }
 0x18c   : > { %v18085_v47 = vsel %vm7282_vm3, %v7248_v4, 0.0  ;;  %6065 = vperm.xlu0 %15213, %v18095_v27   ;;  %v647_v4 = vsel %vm569_vm1, %v645_v48, %v646_v46  ;;  %v1745_v36 = vrot.slane %v15332_v6, 1  ;;  %v4088_v40 = vmul.f32 %v11958_v54, %v15682_v18  ;;  %v15333_v57 = vld [vmem:[%s15658_s20 + $0x101] sm:$0x3] }
 0x18d   : > { %15172 = vset.pattern.permute.xlu1 %v21226_v59  ;;  %13855 = vmatprep.mubr.msk.f32.mxu0 %vm944_vm2, %v18085_v47  ;;  %v2905_v34 = vadd.f32 %v2851_v35, %v2287_v49  ;;  %v649_v24 = vsel %vm569_vm1, %v646_v46, %v648_v7  ;;  %v1747_v48 = vrot.slane %v15334_v22, 1  ;;  %v1749_v35 = vrot.slane %v15335_v31, 1  ;;  %v6350_v46 = vpop.permute.xlu0 %6349  ;;  %v21400_v31 = vld [vmem:[#allocation55_spill] sm:$0xff] }
 0x18e   : > { %6075 = vperm.xlu1 %15172, %v21399_v2   ;;  %13856 = vmatmul.mubr.msk.f32.gmra.mrb[16].mxu0 %vm944_vm2, %v18075_v19 }
 0x18f   : > { %13471 = vmatmul.mubr.msk.f32.gmra.mrb[26].mxu1 %vm944_vm2, %v639_v3  ;;  %v6678_v43 = vpop.permute.xlu1 %6677  ;;  %v1744_v3 = vrot.slane %v15331_v20, 1  ;;  %v3523_v28 = vadd.f32 %v3469_v42, %v2905_v34  ;;  %v1748_v7 = vsel %vm569_vm1, %v1745_v36, %v1747_v48  ;;  %v15337_v42 = vld [vmem:[%s15658_s20 + $0x42] sm:$0x3]  ;;  %v15338_v34 = vld [vmem:[%s15658_s20 + $0x4a] sm:$0xff] }
 0x190   : > { %13473 = vmatprep.mubr.msk.f32.mxu1 %vm944_vm2, %v642_v53  ;;  %v4706_v53 = vmul.f32 %v15333_v57, %v21383_v25  ;;  %15216 = vset.pattern.permute.xlu0 %v21137_v21  ;;  %v1752_v20 = vrot.slane %v15337_v42, 1  ;;  %v15339_v57 = vld [vmem:[%s15658_s20 + $0x52] sm:$0xff] }
 0x191   : > { %v1746_v14 = vsel %vm569_vm1, %v1744_v3, %v1745_v36  ;;  %6661 = vperm.xlu0 %15216, %v21364_v15   ;;  %v1755_v22 = vrot.slane %v15339_v57, 1  ;;  %v6487_v36 = vmul.f32 %v17150_v56, %v6350_v46 }
 0x192   : > { %15173 = vset.pattern.permute.xlu1 %v21128_v23 }
 0x193   : > { %6413 = vperm.xlu1 %15173, %v21399_v2   ;;  %13474 = vmatmul.mubr.msk.f32.gmra.mrb[28].mxu1 %vm944_vm2, %v644_v37  ;;  %v15336_v37 = vld [vmem:[%s15658_s20 + $0x3a] sm:$0xff] }
 0x194   : > { %13476 = vmatprep.mubr.msk.f32.mxu1 %vm944_vm2, %v647_v4  ;;  %v18127_v49 = vpop.permute.xlu1 %6010  ;;  %v1750_v54 = vrot.slane %v15336_v37, 1  ;;  %v4142_v4 = vadd.f32 %v4088_v40, %v3523_v28  ;;  %v1754_v40 = vrot.slane %v15338_v34, 1  ;;  %v15340_v28 = vld [vmem:[%s15658_s20 + $0x5a] sm:$0x3]  ;;  %v15343_v34 = vld [vmem:[%s15658_s20 + $0x72] sm:$0x3] }
 0x195   : > { %6697 = vperm.xlu0 %15216, %v18050_v39  }
 0x196   : > { %v18139_v3 = vadd.f32 %v4706_v53, %v4142_v4  ;;  %v1751_v6 = vsel %vm569_vm1, %v1749_v35, %v1750_v54  ;;  %v6815_v53 = vmul.f32 %v17153_v62, %v6678_v43  ;;  %v1753_v48 = vsel %vm569_vm1, %v1750_v54, %v1752_v20  ;;  %v15341_v35 = vld [vmem:[%s15658_s20 + $0x62] sm:$0xff]  ;;  %v15342_v4 = vld [vmem:[%s15658_s20 + $0x6a] sm:$0xff] }
 0x197   : > { %15174 = vset.pattern.permute.xlu1 %v21188_v29  ;;  %13477 = vmatmul.mubr.msk.f32.gmra.mrb[30].mxu1 %vm944_vm2, %v649_v24  ;;  %v1759_v37 = vrot.slane %v15341_v35, 1  ;;  %v1760_v46 = vrot.slane %v15342_v4, 1  ;;  %v15346_v4 = vld [vmem:[%s15658_s20 + $0x92] sm:$0xff] }
 0x198   : > { %7057 = vperm.xlu1 %15174, %v21389_v32   ;;  %13481 = vmatprep.mubr.msk.f32.mxu1 %vm944_vm2, %v1746_v14  ;;  %v6159_v32 = vmul.f32 %v17147_v55, %v17982_v45  ;;  %v1757_v14 = vrot.slane %v15340_v28, 1  ;;  %v1756_v45 = vsel %vm569_vm1, %v1754_v40, %v1755_v22  ;;  %v1762_v40 = vrot.slane %v15343_v34, 1 }
 0x199   : > { %v6362_v24 = vpop.permute.xlu1 %6361  ;;  %6733 = vperm.xlu0 %15216, %v18095_v27  }
 0x19a   : > { %v6541_v43 = vadd.f32 %v6487_v36, %v6159_v32  ;;  %v1758_v20 = vsel %vm569_vm1, %v1755_v22, %v1757_v14  ;;  %v15344_v32 = vld [vmem:[%s15658_s20 + $0x7a] sm:$0xff]  ;;  %v6490_v14 = vmul.f32 %v17150_v56, %v6362_v24 }
 0x19b   : > { %13482 = vmatmul.mubr.msk.f32.vlgmr.msra.gmra.mrb[0].mxu1 %vm944_vm2, %v1748_v7  ;;  %v1764_v36 = vrot.slane %v15344_v32, 1  ;;  %v21402_v24 = vld [vmem:[#allocation25_spill] sm:$0xff] }
 0x19c   : > { %15175 = vset.pattern.permute.xlu1 %v21226_v59  ;;  %13484 = vmatprep.mubr.msk.f32.mxu1 %vm944_vm2, %v1751_v6  ;;  %v6869_v54 = vadd.f32 %v6815_v53, %v6541_v43  ;;  %v1761_v6 = vsel %vm569_vm1, %v1759_v37, %v1760_v46  ;;  %v15345_v53 = vld [vmem:[%s15658_s20 + $0x82] sm:$0xff]  ;;  %v1769_v43 = vrot.slane %v15346_v4, 1 }
 0x19d   : > { %6085 = vperm.xlu1 %15175, %v21400_v31   ;;  %15219 = vset.pattern.permute.xlu0 %v21188_v29  ;;  %v21404_v4 = vld [vmem:[#allocation43_spill] sm:$0xff] }
 0x19e   : > { %v7006_v7 = vpop.permute.xlu1 %7005  ;;  %7025 = vperm.xlu0 %15219, %v18050_v39  }
 0x19f   : > { %13485 = vmatmul.mubr.msk.f32.gmra.mrb[2].mxu1 %vm944_vm2, %v1753_v48  ;;  %v7143_v42 = vmul.f32 %v17171_v61, %v7006_v7  ;;  %v1765_v48 = vrot.slane %v15345_v53, 1  ;;  %v15347_v7 = vld [vmem:[%s15658_s20 + $0x9a] sm:$0xff] }
 0x1a0   : > { %13487 = vmatprep.mubr.msk.f32.mxu1 %vm944_vm2, %v1756_v45  ;;  %v1763_v45 = vsel %vm569_vm1, %v1760_v46, %v1762_v40  ;;  %v6160_v46 = vmul.f32 %v17147_v55, %v21402_v24 }
 0x1a1   : > { %15176 = vset.pattern.permute.xlu1 %v21137_v21  ;;  %v7197_v57 = vadd.f32 %v7143_v42, %v6869_v54  ;;  %v1766_v37 = vsel %vm569_vm1, %v1764_v36, %v1765_v48  ;;  %v1770_v54 = vrot.slane %v15347_v7, 1  ;;  %v6162_v42 = vmul.f32 %v17147_v55, %v18127_v49  ;;  %v15349_v36 = vld [vmem:[%s15658_s20 + $0xaa] sm:$0xff] }
 0x1a2   : > { %6741 = vperm.xlu1 %15176, %v21399_v2   ;;  %v1767_v2 = vrot.slane %v17830_v52, 1  ;;  %7061 = vperm.xlu0 %15219, %v18095_v27   ;;  %v6488_v52 = vmul.f32 %v17150_v56, %v18069_v13  ;;  %v1774_v53 = vrot.slane %v15349_v36, 1  ;;  %v1782_v36 = vrot.slane %v17888_v5, 1 }
 0x1a3   : > { %13488 = vmatmul.mubr.msk.f32.gmra.mrb[4].mxu1 %vm944_vm2, %v1758_v20  ;;  %v7251_v22 = vmax.f32 %v7197_v57, 0.0  ;;  %v18172_v28 = vpop.permute.xlu1 %6015  ;;  %v21403_v20 = vld [vmem:[#allocation5_spill] sm:$0xff]  ;;  %v6544_v34 = vadd.f32 %v6490_v14, %v6162_v42  ;;  %v15348_v57 = vld [vmem:[%s15658_s20 + $0xa2] sm:$0x3]  ;;  %v6816_v14 = vmul.f32 %v17153_v62, %v21404_v4 }
 0x1a4   : > { %13490 = vmatprep.mubr.msk.f32.mxu1 %vm944_vm2, %v1761_v6  ;;  %v7146_v6 = vmul.f32 %v17171_v61, %v21403_v20  ;;  %v1768_v13 = vsel %vm569_vm1, %v1765_v48, %v1767_v2  ;;  %v1772_v32 = vrot.slane %v15348_v57, 1  ;;  %v21405_v2 = vld [vmem:[#allocation57_spill] sm:$0xff] }
 0x1a5   : > { %v18181_v35 = vsel %vm7282_vm3, %v7251_v22, 0.0  ;;  %v15350_v22 = vld [vmem:[%s15658_s20 + $0xb2] sm:$0xff] }
 0x1a6   : > { %15177 = vset.pattern.permute.xlu1 %v21188_v29  ;;  %21401 = vst [vmem:[#allocation69_spill] sm:$0xff] %v18181_v35  ;;  %13858 = vmatprep.mubr.msk.f32.mxu0 %vm944_vm2, %v18181_v35  ;;  %v1773_v24 = vsel %vm569_vm1, %v1770_v54, %v1772_v32  ;;  %v15398_v35 = vld [vmem:[%s15658_s20 + $0xf0] sm:$0xff] }
 0x1a7   : > { %7065 = vperm.xlu1 %15177, %v21396_v1   ;;  %13491 = vmatmul.mubr.msk.f32.gmra.mrb[6].mxu1 %vm944_vm2, %v1763_v45  ;;  %v1771_v1 = vsel %vm569_vm1, %v1769_v43, %v1770_v54  ;;  %v1775_v45 = vrot.slane %v15350_v22, 1  ;;  %v15351_v43 = vld [vmem:[%s15658_s20 + $0xba] sm:$0x3] }
 0x1a8   : > { %v6690_v40 = vpop.permute.xlu1 %6689  ;;  %13493 = vmatprep.mubr.msk.f32.mxu1 %vm944_vm2, %v1766_v37  ;;  %15224 = vset.pattern.permute.xlu0 %v21128_v23  ;;  %v6542_v37 = vadd.f32 %v6488_v52, %v6160_v46  ;;  %v1777_v7 = vrot.slane %v15351_v43, 1  ;;  %v15354_v22 = vld [vmem:[%s15658_s20 + $0xda] sm:$0xff] }
 0x1a9   : > { %v6818_v49 = vmul.f32 %v17153_v62, %v6690_v40  ;;  %v1776_v40 = vsel %vm569_vm1, %v1774_v53, %v1775_v45  ;;  %v1784_v4 = vrot.slane %v15354_v22, 1 }
 0x1aa   : > { %v6870_v46 = vadd.f32 %v6816_v14, %v6542_v37  ;;  %v1778_v54 = vsel %vm569_vm1, %v1775_v45, %v1777_v7  ;;  %v15355_v14 = vld [vmem:[%s15658_s20 + $0xe2] sm:$0xff]  ;;  %v18233_v45 = vld [vmem:[%s15658_s20 + $0x130] sm:$0x3] }
 0x1ab   : > { %15178 = vset.pattern.permute.xlu1 %v21128_v23  ;;  %v6872_v48 = vadd.f32 %v6818_v49, %v6544_v34  ;;  %13494 = vmatmul.mubr.msk.f32.gmra.mrb[8].mxu1 %vm944_vm2, %v1768_v13  ;;  %v15352_v34 = vld [vmem:[%s15658_s20 + $0xc2] sm:$0xff]  ;;  %v15353_v49 = vld [vmem:[%s15658_s20 + $0xca] sm:$0xff]  ;;  %v1785_v37 = vrot.slane %v15355_v14, 1  ;;  %v2242_v5 = vmul.f32 %v18233_v45, %v15670_v12 }
 0x1ac   : > { %6425 = vperm.xlu1 %15178, %v21405_v2   ;;  %13496 = vmatprep.mubr.msk.f32.mxu1 %vm944_vm2, %v1771_v1  ;;  %v1779_v57 = vrot.slane %v15352_v34, 1  ;;  %v1780_v13 = vrot.slane %v15353_v49, 1  ;;  %v11967_v14 = vld [vmem:[%s15658_s20 + $0x148] sm:$0x3] }
 0x1ad   : > { %v7200_v42 = vadd.f32 %v7146_v6, %v6872_v48  ;;  %v7010_v20 = vpop.permute.xlu1 %7009  ;;  %v18223_v6 = vld [vmem:[%s15658_s20 + $0x11a] sm:$0x3]  ;;  %v1786_v34 = vsel %vm569_vm1, %v1784_v4, %v1785_v37 }
 0x1ae   : > { %v7144_v52 = vmul.f32 %v17171_v61, %v7010_v20  ;;  %v1623_v53 = vmul.f32 %v15667_v11, %v18223_v6  ;;  %v1781_v7 = vsel %vm569_vm1, %v1779_v57, %v1780_v13  ;;  %v15357_v57 = vld [vmem:[%s15658_s20 + $0xf2] sm:$0xff] }
 0x1af   : > { %13497 = vmatmul.mubr.msk.f32.gmra.mrb[10].mxu1 %vm944_vm2, %v1773_v24  ;;  %v7254_v32 = vmax.f32 %v7200_v42, 0.0  ;;  %v11793_v42 = vld [vmem:[%s15658_s20 + $0x131] sm:$0x3]  ;;  %v1789_v49 = vrot.slane %v15357_v57, 1 }
 0x1b0   : > { %15179 = vset.pattern.permute.xlu1 %v21137_v21  ;;  %v7198_v1 = vadd.f32 %v7144_v52, %v6870_v46  ;;  %13499 = vmatprep.mubr.msk.f32.mxu1 %vm944_vm2, %v1776_v40  ;;  %v1677_v24 = vadd.f32 %v1623_v53, %v17958_v58  ;;  %v1783_v40 = vsel %vm569_vm1, %v1780_v13, %v1782_v36  ;;  %v15356_v58 = vld [vmem:[%s15658_s20 + $0xea] sm:$0x3]  ;;  %v11880_v13 = vld [vmem:[%s15658_s20 + $0x132] sm:$0x3] }
 0x1b1   : > { %6749 = vperm.xlu1 %15179, %v21400_v31   ;;  %v18250_v20 = vsel %vm7282_vm3, %v7254_v32, 0.0  ;;  %v1787_v46 = vrot.slane %v15356_v58, 1  ;;  %v2860_v52 = vmul.f32 %v11793_v42, %v15676_v16  ;;  %v3478_v36 = vmul.f32 %v11880_v13, %v15679_v17  ;;  %v15359_v42 = vld [vmem:[%s15658_s20 + $0x149] sm:$0x3]  ;;  %v15361_v57 = vld [vmem:[%s15658_s20 + $0x112] sm:$0xff] }
 0x1b2   : > { %v18235_v48 = vmax.f32 %v7198_v1, 0.0  ;;  %21407 = vst [vmem:[#allocation56_spill] sm:$0xff] %v18250_v20  ;;  %v2296_v1 = vadd.f32 %v2242_v5, %v1677_v24  ;;  %v1792_v24 = vrot.slane %v17945_v30, 1  ;;  %v4097_v5 = vmul.f32 %v11967_v14, %v15682_v18  ;;  %v15360_v58 = vld [vmem:[%s15658_s20 + $0x10a] sm:$0xff]  ;;  %v15362_v13 = vld [vmem:[%s15658_s20 + $0x122] sm:$0xff] }
 0x1b3   : > { %v18237_v43 = vpop.permute.xlu1 %6373  ;;  %13500 = vmatmul.mubr.msk.f32.gmra.mrb[12].mxu1 %vm944_vm2, %v1778_v54  ;;  %v15358_v54 = vld [vmem:[%s15658_s20 + $0xfa] sm:$0xff]  ;;  %v1788_v4 = vsel %vm569_vm1, %v1785_v37, %v1787_v46  ;;  %v6366_v46 = vpop.permute.xlu0 %6365 }
 0x1b4   : > { %21406 = vst [vmem:[#allocation58_spill] sm:$0xff] %v18235_v48  ;;  %13859 = vmatmul.mubr.msk.f32.gmra.mrb[18].mxu0 %vm944_vm2, %v18235_v48  ;;  %13502 = vmatprep.mubr.msk.f32.mxu1 %vm944_vm2, %v1781_v7  ;;  %v1790_v32 = vrot.slane %v15358_v54, 1  ;;  %v2914_v22 = vadd.f32 %v2860_v52, %v2296_v1  ;;  %v4715_v7 = vmul.f32 %v15359_v42, %v21383_v25  ;;  %v1794_v52 = vrot.slane %v15360_v58, 1 }
 0x1b5   : > { %6753 = vperm.xlu1 %15179, %v21405_v2   ;;  %13861 = vmatprep.mubr.msk.f32.mxu0 %vm944_vm2, %v18250_v20  ;;  %v1795_v54 = vrot.slane %v15361_v57, 1  ;;  %v15397_v20 = vld [vmem:[%s15658_s20 + $0xe0] sm:$0xff] }
 0x1b6   : > { %v3532_v1 = vadd.f32 %v3478_v36, %v2914_v22  ;;  %v1793_v30 = vsel %vm569_vm1, %v1790_v32, %v1792_v24  ;;  %v1799_v36 = vrot.slane %v15362_v13, 1  ;;  %v15363_v22 = vld [vmem:[%s15658_s20 + $0x12a] sm:$0xff]  ;;  %v21408_v13 = vld [vmem:[#allocation62_spill] sm:$0xff] }
 0x1b7   : > { %13503 = vmatmul.mubr.msk.f32.gmra.mrb[14].mxu1 %vm944_vm2, %v1783_v40  ;;  %v1791_v40 = vsel %vm569_vm1, %v1789_v49, %v1790_v32  ;;  %v1796_v49 = vsel %vm569_vm1, %v1794_v52, %v1795_v54  ;;  %v1800_v14 = vrot.slane %v15363_v22, 1  ;;  %v15366_v52 = vld [vmem:[%s15658_s20 + $0x13a] sm:$0xff] }
 0x1b8   : > { %v6694_v53 = vpop.permute.xlu1 %6693  ;;  %13505 = vmatprep.mubr.msk.f32.mxu1 %vm944_vm2, %v1786_v34  ;;  %v4151_v34 = vadd.f32 %v4097_v5, %v3532_v1  ;;  %v15365_v5 = vld [vmem:[%s15658_s20 + $0x132] sm:$0x3]  ;;  %v1804_v57 = vrot.slane %v15366_v52, 1  ;;  %v15367_v1 = vld [vmem:[%s15658_s20 + $0x142] sm:$0xff] }
 0x1b9   : > { %15180 = vset.pattern.permute.xlu1 %v21188_v29 }
 0x1ba   : > { %7077 = vperm.xlu1 %15180, %v21400_v31   ;;  %v1797_v31 = vrot.slane %v18223_v6, 1  ;;  %v18286_v42 = vadd.f32 %v4715_v7, %v4151_v34  ;;  %v6491_v6 = vmul.f32 %v17150_v56, %v6366_v46  ;;  %v6163_v7 = vmul.f32 %v17147_v55, %v18172_v28  ;;  %v15368_v28 = vld [vmem:[%s15658_s20 + $0x181] sm:$0xff] }
 0x1bb   : > { %13506 = vmatmul.mubr.msk.f32.gmra.mrb[16].mxu1 %vm944_vm2, %v1788_v4  ;;  %v15364_v4 = vld [vmem:[%s15658_s20 + $0x72] sm:$0x3]  ;;  %v1805_v34 = vrot.slane %v15367_v1, 1  ;;  %v461_v46 = vmul.f32 %v15661_v9, %v18065_v8 }
 0x1bc   : > { %13508 = vmatprep.mubr.msk.f32.mxu1 %vm944_vm2, %v1791_v40  ;;  %v5306_v32 = vmul.f32 %v15364_v4, %v21397_v38  ;;  %v1798_v24 = vsel %vm569_vm1, %v1795_v54, %v1797_v31  ;;  %v1802_v40 = vrot.slane %v15365_v5, 1  ;;  %v6819_v54 = vmul.f32 %v17153_v62, %v6694_v53  ;;  %v15370_v4 = vld [vmem:[%s15658_s20 + $0x15a] sm:$0xff]  ;;  %v1574_v5 = vld [vmem:[%s15658_s20 + $0x162] sm:$0x3] }
 0x1bd   : > { %v18277_v37 = vpop.permute.xlu1 %6030  ;;  %v756_v31 = vmul.f32 %v15368_v28, %v15664_v10  ;;  %v1810_v53 = vrot.slane %v15370_v4, 1  ;;  %v1578_v4 = vld [vmem:[%s15658_s20 + $0x182] sm:$0xff] }
 0x1be   : > { %15181 = vset.pattern.permute.xlu1 %v21128_v23 }
 0x1bf   : > { %6261 = vperm.xlu1 %15181, %v21352_v60   ;;  %13509 = vmatmul.mubr.msk.f32.gmra.mrb[18].mxu1 %vm944_vm2, %v1793_v30  ;;  %v1801_v60 = vsel %vm569_vm1, %v1799_v36, %v1800_v14  ;;  %v18305_v30 = vadd.f32 %v5306_v32, %v17660_v44  ;;  %v1807_v44 = vrot.slane %v21408_v13, 1  ;;  %v15369_v36 = vld [vmem:[%s15658_s20 + $0x152] sm:$0xff]  ;;  %v6545_v32 = vadd.f32 %v6491_v6, %v6163_v7 }
 0x1c0   : > { %13511 = vmatprep.mubr.msk.f32.mxu1 %vm944_vm2, %v1796_v49  ;;  %v1803_v49 = vsel %vm569_vm1, %v1800_v14, %v1802_v40  ;;  %v1809_v22 = vrot.slane %v15369_v36, 1  ;;  %v1632_v14 = vmul.f32 %v15667_v11, %v1574_v5  ;;  %v810_v6 = vadd.f32 %v756_v31, %v461_v46  ;;  %v18335_v36 = vld [vmem:[%s15658_s20 + $0x17a] sm:$0x3]  ;;  %v18339_v31 = vld [vmem:[%s15658_s20 + $0x18a] sm:$0xff] }
 0x1c1   : > { %v6873_v8 = vadd.f32 %v6819_v54, %v6545_v32  ;;  %v1808_v40 = vsel %vm569_vm1, %v1805_v34, %v1807_v44  ;;  %v15371_v54 = vld [vmem:[%s15658_s20 + $0x16a] sm:$0xff]  ;;  %v1636_v46 = vmul.f32 %v15667_v11, %v1578_v4  ;;  %v1580_v44 = vld [vmem:[%s15658_s20 + $0x192] sm:$0x3] }
 0x1c2   : > { %v18298_v58 = vpop.permute.xlu1 %6377  ;;  %v1811_v7 = vsel %vm569_vm1, %v1809_v22, %v1810_v53  ;;  %v18330_v1 = vadd.f32 %v1632_v14, %v18047_v51  ;;  %v1814_v28 = vrot.slane %v15371_v54, 1  ;;  %v1638_v32 = vmul.f32 %v15667_v11, %v1580_v44 }
 0x1c3   : > { %15182 = vset.pattern.permute.xlu1 %v21188_v29  ;;  %13512 = vmatmul.mubr.msk.f32.gmra.mrb[20].mxu1 %vm944_vm2, %v1798_v24  ;;  %v1820_v14 = vrot.slane %v18339_v31, 1 }
 0x1c4   : > { %7081 = vperm.xlu1 %15182, %v21405_v2   ;;  %13514 = vmatprep.mubr.msk.f32.mxu1 %vm944_vm2, %v1801_v60  ;;  %v1806_v2 = vsel %vm569_vm1, %v1804_v57, %v1805_v34  ;;  %v1812_v60 = vrot.slane %v1574_v5, 1  ;;  %v347_v34 = vld [vmem:[%s20797_s4 + $0x4] sm:$0xf]  ;;  %v1817_v5 = vrot.slane %v18335_v36, 1 }
 0x1c5   : > { %13879 = vmatprep.subr.msk.mxu0 %vm1009_vm0, %v347_v34 }
 0x1c6   : > { %13880 = vmatpush3.msk.msra.mxu0 %vm1009_vm0, %v347_v34  ;;  %v15374_v34 = vld [vmem:[%s15658_s20 + $0x38] sm:$0xff] }
 0x1c7   : > { %v7022_v52 = vpop.permute.xlu1 %7021  ;;  %13515 = vmatmul.mubr.msk.f32.gmra.mrb[22].mxu1 %vm944_vm2, %v1803_v49  ;;  %v15372_v49 = vld [vmem:[%s15658_s20 + $0x172] sm:$0xff] }
 0x1c8   : > { %v7147_v24 = vmul.f32 %v17171_v61, %v7022_v52  ;;  %15183 = vset.pattern.permute.xlu1 %v21226_v59  ;;  %13517 = vmatprep.mubr.msk.f32.mxu1 %vm944_vm2, %v1806_v2  ;;  %v1815_v13 = vrot.slane %v15372_v49, 1  ;;  %v1813_v2 = vsel %vm569_vm1, %v1810_v53, %v1812_v60  ;;  %v18357_v52 = vadd.f32 %v1636_v46, %v810_v6  ;;  %v340_v53 = vld [vmem:[%s20796_s3 + $0xc] sm:$0xf] }
 0x1c9   : > { %5900 = vperm.xlu1 %15183, %v18305_v30   ;;  %v6493_v60 = vmul.f32 %v17150_v56, %v18237_v43  ;;  %13529 = vmatprep.subr.msk.mxu1 %vm1009_vm0, %v340_v53  ;;  %v1822_v49 = vrot.slane %v1580_v44, 1 }
 0x1ca   : > { %v7201_v57 = vadd.f32 %v7147_v24, %v6873_v8  ;;  %v1816_v8 = vsel %vm569_vm1, %v1814_v28, %v1815_v13  ;;  %v1819_v24 = vrot.slane %v1578_v4, 1  ;;  %v1818_v28 = vsel %vm569_vm1, %v1815_v13, %v1817_v5  ;;  %13530 = vmatpush3.msk.msra.mxu1 %vm1009_vm0, %v340_v53  ;;  %v15373_v4 = vld [vmem:[%s15658_s20 + $0x30] sm:$0xff] }
 0x1cb   : > { %13518 = vmatmul.mubr.msk.f32.gmra.mrb[24].mxu1 %vm944_vm2, %v1808_v40  ;;  %v18365_v40 = vadd.f32 %v1638_v32, %v18104_v63  ;;  %v6166_v63 = vmul.f32 %v17147_v55, %v18277_v37  ;;  %v2363_v46 = vrot.slane %v15373_v4, 1  ;;  %v2364_v37 = vrot.slane %v15374_v34, 1  ;;  %v21411_v32 = vld [vmem:[#allocation8_spill] sm:$0xff] }
 0x1cc   : > { %v18346_v22 = vmax.f32 %v7201_v57, 0.0  ;;  %v18348_v51 = vpop.permute.xlu1 %6040  ;;  %13520 = vmatprep.mubr.msk.f32.mxu1 %vm944_vm2, %v1811_v7  ;;  %v21410_v7 = vld [vmem:[#allocation19_spill] sm:$0xff]  ;;  %v6494_v57 = vmul.f32 %v17150_v56, %v18298_v58  ;;  %v1821_v58 = vsel %vm569_vm1, %v1819_v24, %v1820_v14  ;;  %v21412_v5 = vld [vmem:[#allocation24_spill] sm:$0xff]  ;;  %v1823_v24 = vsel %vm569_vm1, %v1820_v14, %v1822_v49 }
 0x1cd   : > { %15184 = vset.pattern.permute.xlu1 %v21128_v23  ;;  %v6165_v6 = vmul.f32 %v17147_v55, %v21410_v7  ;;  %v15375_v7 = vld [vmem:[%s15658_s20 + $0x40] sm:$0x3]  ;;  %v2365_v34 = vsel %vm569_vm1, %v2363_v46, %v2364_v37  ;;  %v15378_v46 = vld [vmem:[%s15658_s20 + $0x58] sm:$0x3] }
 0x1ce   : > { %21409 = vst [vmem:[#allocation28_spill] sm:$0xff] %v18346_v22  ;;  %6273 = vperm.xlu1 %15184, %v18305_v30   ;;  %13862 = vmatmul.mubr.msk.f32.gmra.mrb[20].mxu0 %vm944_vm2, %v18346_v22  ;;  %v6548_v44 = vadd.f32 %v6494_v57, %v6166_v63  ;;  %v15377_v57 = vld [vmem:[%s15658_s20 + $0x50] sm:$0xff]  ;;  %v2399_v22 = vrot.slane %v15397_v20, 1  ;;  %v15400_v20 = vld [vmem:[%s15658_s20 + $0x100] sm:$0x3] }
 0x1cf   : > { %13521 = vmatmul.mubr.msk.f32.gmra.mrb[26].mxu1 %vm944_vm2, %v1813_v2  ;;  %v6821_v2 = vmul.f32 %v17153_v62, %v21411_v32  ;;  %v6547_v13 = vadd.f32 %v6493_v60, %v6165_v6  ;;  %v15376_v6 = vld [vmem:[%s15658_s20 + $0x48] sm:$0xff]  ;;  %v2369_v63 = vrot.slane %v15377_v57, 1 }
 0x1d0   : > { %13523 = vmatprep.mubr.msk.f32.mxu1 %vm944_vm2, %v1816_v8  ;;  %v7150_v8 = vmul.f32 %v17171_v61, %v21412_v5  ;;  %v2368_v60 = vrot.slane %v15376_v6, 1 }
 0x1d1   : > { %v6706_v54 = vpop.permute.xlu1 %6705 }
 0x1d2   : > { %v6822_v43 = vmul.f32 %v17153_v62, %v6706_v54  ;;  %15185 = vset.pattern.permute.xlu1 %v21137_v21  ;;  %v2366_v54 = vrot.slane %v15375_v7, 1  ;;  %v2370_v5 = vsel %vm569_vm1, %v2368_v60, %v2369_v63  ;;  %v15380_v7 = vld [vmem:[%s15658_s20 + $0x68] sm:$0xff]  ;;  %v15382_v60 = vld [vmem:[%s15658_s20 + $0x78] sm:$0xff] }
 0x1d3   : > { %6601 = vperm.xlu1 %15185, %v18305_v30   ;;  %13524 = vmatmul.mubr.msk.f32.gmra.mrb[28].mxu1 %vm944_vm2, %v1818_v28  ;;  %v6875_v28 = vadd.f32 %v6821_v2, %v6547_v13  ;;  %v15379_v2 = vld [vmem:[%s15658_s20 + $0x60] sm:$0xff] }
 0x1d4   : > { %v6876_v53 = vadd.f32 %v6822_v43, %v6548_v44  ;;  %13526 = vmatprep.mubr.msk.f32.mxu1 %vm944_vm2, %v1821_v58  ;;  %v21413_v43 = vld [vmem:[#allocation4_spill] sm:$0xff]  ;;  %v2367_v58 = vsel %vm569_vm1, %v2364_v37, %v2366_v54  ;;  %v2371_v44 = vrot.slane %v15378_v46, 1  ;;  %v2373_v13 = vrot.slane %v15379_v2, 1  ;;  %v15386_v2 = vld [vmem:[%s15658_s20 + $0x98] sm:$0xff] }
 0x1d6   : > { %v7030_v4 = vpop.permute.xlu1 %7029  ;;  %v7204_v14 = vadd.f32 %v7150_v8, %v6876_v53  ;;  %v2372_v53 = vsel %vm569_vm1, %v2369_v63, %v2371_v44  ;;  %v15385_v44 = vld [vmem:[%s15658_s20 + $0x90] sm:$0xff] }
 0x1d7   : > { %v7149_v32 = vmul.f32 %v17171_v61, %v7030_v4  ;;  %15186 = vset.pattern.permute.xlu1 %v21226_v59  ;;  %13527 = vmatmul.mubr.msk.f32.gmra.mrb[30].mxu1 %vm944_vm2, %v1823_v24  ;;  %v2374_v4 = vrot.slane %v15380_v7, 1  ;;  %v15381_v24 = vld [vmem:[%s15658_s20 + $0x70] sm:$0x3] }
 0x1d8   : > { %5915 = vperm.xlu1 %15186, %v21413_v43   ;;  %13531 = vmatprep.mubr.msk.f32.mxu1 %vm944_vm2, %v2365_v34  ;;  %v18415_v8 = vmax.f32 %v7204_v14, 0.0  ;;  %v2376_v54 = vrot.slane %v15381_v24, 1 }
 0x1d9   : > { %v7203_v49 = vadd.f32 %v7149_v32, %v6875_v28  ;;  %v2375_v34 = vsel %vm569_vm1, %v2373_v13, %v2374_v4  ;;  %v2378_v28 = vrot.slane %v15382_v60, 1  ;;  %v2384_v13 = vrot.slane %v15386_v2, 1  ;;  %v15389_v60 = vld [vmem:[%s15658_s20 + $0xb0] sm:$0xff] }
 0x1da   : > { %21414 = vst [vmem:[#allocation17_spill] sm:$0xff] %v18415_v8  ;;  %v2377_v63 = vsel %vm569_vm1, %v2374_v4, %v2376_v54  ;;  %v15387_v4 = vld [vmem:[%s15658_s20 + $0xa0] sm:$0x3]  ;;  %v15388_v54 = vld [vmem:[%s15658_s20 + $0xa8] sm:$0xff]  ;;  %v6168_v2 = vmul.f32 %v17147_v55, %v18348_v51  ;;  %v21417_v51 = vld [vmem:[#allocation52_spill] sm:$0xff] }
 0x1db   : > { %v7257_v6 = vmax.f32 %v7203_v49, 0.0  ;;  %v18411_v57 = vpop.permute.xlu1 %6389  ;;  %13532 = vmatmul.mubr.msk.f32.vlgmr.msra.gmra.mrb[0].mxu1 %vm944_vm2, %v2367_v58  ;;  %v15384_v58 = vld [vmem:[%s15658_s20 + $0x88] sm:$0x3] }
 0x1dc   : > { %15187 = vset.pattern.permute.xlu1 %v21188_v29  ;;  %13534 = vmatprep.mubr.msk.f32.mxu1 %vm944_vm2, %v2370_v5  ;;  %v2381_v46 = vrot.slane %v15384_v58, 1  ;;  %v2383_v5 = vrot.slane %v15385_v44, 1  ;;  %v18453_v58 = vld [vmem:[%s15658_s20 + $0x178] sm:$0x3] }
 0x1dd   : > { %6929 = vperm.xlu1 %15187, %v18305_v30   ;;  %v18420_v37 = vsel %vm7282_vm3, %v7257_v6, 0.0  ;;  %v15383_v30 = vld [vmem:[%s15658_s20 + $0x80] sm:$0xff]  ;;  %v2386_v6 = vrot.slane %v15387_v4, 1 }
 0x1de   : > { %21415 = vst [vmem:[#allocation38_spill] sm:$0xff] %v18420_v37  ;;  %13864 = vmatprep.mubr.msk.f32.mxu0 %vm944_vm2, %v18420_v37  ;;  %v2379_v32 = vrot.slane %v15383_v30, 1  ;;  %v2385_v24 = vsel %vm569_vm1, %v2383_v5, %v2384_v13  ;;  %v6386_v30 = vpop.permute.xlu0 %6385 }
 0x1df   : > { %13865 = vmatmul.mubr.msk.f32.gmra.mrb[22].mxu0 %vm944_vm2, %v18415_v8  ;;  %13535 = vmatmul.mubr.msk.f32.gmra.mrb[2].mxu1 %vm944_vm2, %v2372_v53  ;;  %v6496_v4 = vmul.f32 %v17150_v56, %v6386_v30  ;;  %v15396_v8 = vld [vmem:[%s15658_s20 + $0xd8] sm:$0xff] }
 0x1e0   : > { %v6714_v14 = vpop.permute.xlu1 %6713  ;;  %13537 = vmatprep.mubr.msk.f32.mxu1 %vm944_vm2, %v2375_v34  ;;  %v2380_v49 = vsel %vm569_vm1, %v2378_v28, %v2379_v32  ;;  %v2382_v53 = vsel %vm569_vm1, %v2379_v32, %v2381_v46  ;;  %v2388_v34 = vrot.slane %v15388_v54, 1  ;;  %v2389_v28 = vrot.slane %v15389_v60, 1  ;;  %v15391_v46 = vld [vmem:[%s15658_s20 + $0xb8] sm:$0x3] }
 0x1e1   : > { %15188 = vset.pattern.permute.xlu1 %v21137_v21  ;;  %v2387_v32 = vsel %vm569_vm1, %v2384_v13, %v2386_v6  ;;  %v2391_v5 = vrot.slane %v15391_v46, 1  ;;  %v6824_v13 = vmul.f32 %v17153_v62, %v6714_v14  ;;  %v6550_v30 = vadd.f32 %v6496_v4, %v6168_v2  ;;  %v18480_v14 = vld [vmem:[%s15658_s20 + $0x190] sm:$0x3]  ;;  %v11889_v4 = vld [vmem:[%s15658_s20 + $0x17a] sm:$0x3] }
 0x1e2   : > { %6613 = vperm.xlu1 %15188, %v21413_v43   ;;  %v2390_v60 = vsel %vm569_vm1, %v2388_v34, %v2389_v28  ;;  %v2398_v37 = vrot.slane %v15396_v8, 1 }
 0x1e3   : > { %13538 = vmatmul.mubr.msk.f32.gmra.mrb[4].mxu1 %vm944_vm2, %v2377_v63  ;;  %v21416_v63 = vld [vmem:[#allocation22_spill] sm:$0xff] }
 0x1e4   : > { %13540 = vmatprep.mubr.msk.f32.mxu1 %vm944_vm2, %v2380_v49  ;;  %v15390_v49 = vld [vmem:[%s15658_s20 + $0xba] sm:$0x3] }
 0x1e5   : > { %v18442_v7 = vpop.permute.xlu1 %6055  ;;  %v5315_v44 = vmul.f32 %v15390_v49, %v21397_v38 }
 0x1e6   : > { %15189 = vset.pattern.permute.xlu1 %v21128_v23  ;;  %v6171_v8 = vmul.f32 %v17147_v55, %v18442_v7 }
 0x1e7   : > { %6297 = vperm.xlu1 %15189, %v21416_v63   ;;  %13541 = vmatmul.mubr.msk.f32.gmra.mrb[6].mxu1 %vm944_vm2, %v2382_v53  ;;  %v2251_v53 = vmul.f32 %v18453_v58, %v15670_v12  ;;  %v18472_v6 = vadd.f32 %v5315_v44, %v21417_v51  ;;  %v1635_v63 = vmul.f32 %v15667_v11, %v18335_v36  ;;  %v15394_v51 = vld [vmem:[%s15658_s20 + $0xc8] sm:$0xff] }
 0x1e8   : > { %13543 = vmatprep.mubr.msk.f32.mxu1 %vm944_vm2, %v2385_v24  ;;  %v2392_v24 = vsel %vm569_vm1, %v2389_v28, %v2391_v5  ;;  %v2396_v28 = vrot.slane %v15395_v50, 1  ;;  %v18488_v5 = vld [vmem:[%s15658_s20 + $0x179] sm:$0x3]  ;;  %v2254_v50 = vmul.f32 %v18480_v14, %v15670_v12 }
 0x1e9   : > { %v2305_v34 = vadd.f32 %v2251_v53, %v18330_v1  ;;  %v6878_v1 = vadd.f32 %v6824_v13, %v6550_v30  ;;  %v2869_v36 = vmul.f32 %v18488_v5, %v15676_v16  ;;  %v11976_v53 = vld [vmem:[%s15658_s20 + $0x190] sm:$0x3] }
 0x1ea   : > { %v6398_v54 = vpop.permute.xlu1 %6397 }
 0x1eb   : > { %15190 = vset.pattern.permute.xlu1 %v21188_v29  ;;  %13544 = vmatmul.mubr.msk.f32.gmra.mrb[8].mxu1 %vm944_vm2, %v2387_v32  ;;  %v15393_v32 = vld [vmem:[%s15658_s20 + $0xc0] sm:$0xff] }
 0x1ec   : > { %6941 = vperm.xlu1 %15190, %v21413_v43   ;;  %13546 = vmatprep.mubr.msk.f32.mxu1 %vm944_vm2, %v2390_v60  ;;  %v15392_v43 = vld [vmem:[%s15658_s20 + $0x191] sm:$0x3]  ;;  %v2393_v46 = vrot.slane %v15393_v32, 1  ;;  %v2394_v60 = vrot.slane %v15394_v51, 1  ;;  %v2923_v32 = vadd.f32 %v2869_v36, %v2305_v34  ;;  %v4106_v51 = vmul.f32 %v11976_v53, %v15682_v18  ;;  %v15399_v34 = vld [vmem:[%s15658_s20 + $0xf8] sm:$0xff]  ;;  %v15401_v53 = vld [vmem:[%s15658_s20 + $0x108] sm:$0xff] }
 0x1ed   : > { %v4724_v49 = vmul.f32 %v15392_v43, %v21383_v25  ;;  %v3487_v43 = vmul.f32 %v11889_v4, %v15679_v17 }
 0x1ee   : > { %v2395_v13 = vsel %vm569_vm1, %v2393_v46, %v2394_v60  ;;  %v2397_v30 = vsel %vm569_vm1, %v2394_v60, %v2396_v28  ;;  %v2401_v46 = vrot.slane %v18039_v26, 1  ;;  %v2403_v60 = vrot.slane %v15398_v35, 1 }
 0x1ef   : > { %v7042_v44 = vpop.permute.xlu1 %7041  ;;  %13547 = vmatmul.mubr.msk.f32.gmra.mrb[10].mxu1 %vm944_vm2, %v2392_v24  ;;  %v1689_v24 = vadd.f32 %v1635_v63, %v18087_v0  ;;  %v6499_v28 = vmul.f32 %v17150_v56, %v6398_v54  ;;  %v3541_v0 = vadd.f32 %v3487_v43, %v2923_v32  ;;  %v2404_v63 = vrot.slane %v15399_v34, 1 }
 0x1f0   : > { %v7152_v2 = vmul.f32 %v17171_v61, %v7042_v44  ;;  %15192 = vset.pattern.permute.xlu1 %v21226_v59  ;;  %13549 = vmatprep.mubr.msk.f32.mxu1 %vm944_vm2, %v2395_v13  ;;  %v2400_v26 = vsel %vm569_vm1, %v2398_v37, %v2399_v22  ;;  %v2402_v35 = vsel %vm569_vm1, %v2399_v22, %v2401_v46  ;;  %v2406_v54 = vrot.slane %v15400_v20, 1  ;;  %v21418_v37 = vld [vmem:[#allocation21_spill] sm:$0xff] }
 0x1f1   : > { %5945 = vperm.xlu1 %15192, %v18472_v6   ;;  %v4160_v4 = vadd.f32 %v4106_v51, %v3541_v0  ;;  %v2405_v7 = vsel %vm569_vm1, %v2403_v60, %v2404_v63  ;;  %v2408_v13 = vrot.slane %v15401_v53, 1  ;;  %v6169_v22 = vmul.f32 %v17147_v55, %v21418_v37  ;;  %v21419_v51 = vld [vmem:[#allocation31_spill] sm:$0xff]  ;;  %v18542_v0 = vld [vmem:[%s15658_s20 + $0x191] sm:$0x3] }
 0x1f2   : > { %v7206_v44 = vadd.f32 %v7152_v2, %v6878_v1  ;;  %v2308_v43 = vadd.f32 %v2254_v50, %v1689_v24  ;;  %v7155_v46 = vmul.f32 %v17171_v61, %v21419_v51  ;;  %v6553_v60 = vadd.f32 %v6499_v28, %v6171_v8  ;;  %v15403_v24 = vld [vmem:[%s15658_s20 + $0x118] sm:$0x3] }
 0x1f3   : > { %13550 = vmatmul.mubr.msk.f32.gmra.mrb[12].mxu1 %vm944_vm2, %v2397_v30  ;;  %v6497_v30 = vmul.f32 %v17150_v56, %v18411_v57  ;;  %v11892_v57 = vld [vmem:[%s15658_s20 + $0x192] sm:$0x3]  ;;  %v2407_v50 = vsel %vm569_vm1, %v2404_v63, %v2406_v54  ;;  %v2872_v20 = vmul.f32 %v18542_v0, %v15676_v16  ;;  %v21420_v63 = vld [vmem:[#allocation45_spill] sm:$0xff] }
 0x1f4   : > { %v7260_v1 = vmax.f32 %v7206_v44, 0.0  ;;  %v18511_v2 = vpop.permute.xlu1 %6060  ;;  %13552 = vmatprep.mubr.msk.f32.mxu1 %vm944_vm2, %v2400_v26  ;;  %v15402_v44 = vld [vmem:[%s15658_s20 + $0x110] sm:$0xff]  ;;  %v2411_v26 = vrot.slane %v15403_v24, 1  ;;  %v3490_v28 = vmul.f32 %v11892_v57, %v15679_v17  ;;  %v6825_v54 = vmul.f32 %v17153_v62, %v21420_v63 }
 0x1f5   : > { %15193 = vset.pattern.permute.xlu1 %v21128_v23  ;;  %v2409_v32 = vrot.slane %v15402_v44, 1  ;;  %v6551_v44 = vadd.f32 %v6497_v30, %v6169_v22  ;;  %v2926_v51 = vadd.f32 %v2872_v20, %v2308_v43 }
 0x1f6   : > { %6309 = vperm.xlu1 %15193, %v18472_v6   ;;  %v18524_v36 = vsel %vm7282_vm3, %v7260_v1, 0.0  ;;  %v18538_v1 = vadd.f32 %v4724_v49, %v4160_v4  ;;  %v11979_v49 = vld [vmem:[%s15658_s20 + $0x1a8] sm:$0x3]  ;;  %v15404_v4 = vld [vmem:[%s15658_s20 + $0x120] sm:$0xff] }
 0x1f7   : > { %13867 = vmatprep.mubr.msk.f32.mxu0 %vm944_vm2, %v18524_v36  ;;  %13553 = vmatmul.mubr.msk.f32.gmra.mrb[14].mxu1 %vm944_vm2, %v2402_v35  ;;  %v2410_v35 = vsel %vm569_vm1, %v2408_v13, %v2409_v32  ;;  %v2413_v53 = vrot.slane %v15404_v4, 1  ;;  %v4109_v57 = vmul.f32 %v11979_v49, %v15682_v18  ;;  %v15406_v13 = vld [vmem:[%s15658_s20 + $0x1a9] sm:$0x3]  ;;  %v3544_v22 = vadd.f32 %v3490_v28, %v2926_v51  ;;  %v15409_v28 = vld [vmem:[%s15658_s20 + $0x140] sm:$0xff] }
 0x1f8   : > { %13555 = vmatprep.mubr.msk.f32.mxu1 %vm944_vm2, %v2405_v7  ;;  %v15405_v7 = vld [vmem:[%s15658_s20 + $0x128] sm:$0xff]  ;;  %v4727_v4 = vmul.f32 %v15406_v13, %v21383_v25  ;;  %v6879_v49 = vadd.f32 %v6825_v54, %v6551_v44 }
 0x1f9   : > { %v6726_v34 = vpop.permute.xlu1 %6725  ;;  %v2414_v37 = vrot.slane %v15405_v7, 1  ;;  %v2412_v7 = vsel %vm569_vm1, %v2409_v32, %v2411_v26  ;;  %v15410_v51 = vld [vmem:[%s15658_s20 + $0x148] sm:$0x3] }
 0x1fa   : > { %v6827_v8 = vmul.f32 %v17153_v62, %v6726_v34  ;;  %15194 = vset.pattern.permute.xlu1 %v21137_v21  ;;  %v2416_v34 = vrot.slane %v18233_v45, 1  ;;  %v4163_v45 = vadd.f32 %v4109_v57, %v3544_v22  ;;  %v2421_v57 = vrot.slane %v15410_v51, 1  ;;  %v18581_v22 = vld [vmem:[%s15658_s20 + $0x189] sm:$0xff] }
 0x1fb   : > { %6637 = vperm.xlu1 %15194, %v18472_v6   ;;  %13556 = vmatmul.mubr.msk.f32.gmra.mrb[16].mxu1 %vm944_vm2, %v2407_v50  ;;  %v2415_v20 = vsel %vm569_vm1, %v2413_v53, %v2414_v37  ;;  %v15407_v50 = vld [vmem:[%s15658_s20 + $0x1aa] sm:$0x3]  ;;  %v2419_v53 = vrot.slane %v15409_v28, 1  ;;  %v1637_v28 = vmul.f32 %v15667_v11, %v18339_v31  ;;  %v2431_v31 = vrot.slane %v18453_v58, 1 }
 0x1fc   : > { %v6881_v24 = vadd.f32 %v6827_v8, %v6553_v60  ;;  %13558 = vmatprep.mubr.msk.f32.mxu1 %vm944_vm2, %v2410_v35  ;;  %v5345_v8 = vmul.f32 %v15407_v50, %v21397_v38  ;;  %v21421_v35 = vld [vmem:[#allocation15_spill] sm:$0xff]  ;;  %v2417_v32 = vsel %vm569_vm1, %v2414_v37, %v2416_v34  ;;  %v4781_v44 = vadd.f32 %v4727_v4, %v4163_v45 }
 0x1fd   : > { %v757_v37 = vmul.f32 %v18581_v22, %v15664_v10  ;;  %v21422_v45 = vrot.slane %v18027_v41, 1  ;;  %v15415_v50 = vld [vmem:[%s15658_s20 + $0x168] sm:$0xff] }
 0x1fe   : > { %v7209_v30 = vadd.f32 %v7155_v46, %v6881_v24  ;;  %v7046_v43 = vpop.permute.xlu1 %7045  ;;  %v15408_v46 = vld [vmem:[%s15658_s20 + $0x138] sm:$0xff] }
 0x1ff   : > { %v7153_v60 = vmul.f32 %v17171_v61, %v7046_v43  ;;  %15195 = vset.pattern.permute.xlu1 %v21226_v59  ;;  %13559 = vmatmul.mubr.msk.f32.gmra.mrb[18].mxu1 %vm944_vm2, %v2412_v7  ;;  %v2418_v26 = vrot.slane %v15408_v46, 1  ;;  %v15411_v24 = vld [vmem:[%s15658_s20 + $0x158] sm:$0xff]  ;;  %v18594_v43 = vadd.f32 %v5345_v8, %v4781_v44  ;;  %v2428_v8 = vrot.slane %v15415_v50, 1 }
 0x200   : > { %5960 = vperm.xlu1 %15195, %v21421_v35   ;;  %v7263_v63 = vmax.f32 %v7209_v30, 0.0  ;;  %13561 = vmatprep.mubr.msk.f32.mxu1 %vm944_vm2, %v2415_v20  ;;  %v2424_v13 = vrot.slane %v15411_v24, 1  ;;  %v18590_v30 = vld [vmem:[%s15658_s20 + $0x188] sm:$0xff]  ;;  %v11720_v24 = vld [vmem:[%s15658_s20 + $0x1a0] sm:$0xff] }
 0x201   : > { %v7207_v54 = vadd.f32 %v7153_v60, %v6879_v49  ;;  %v462_v4 = vmul.f32 %v18590_v30, %v15661_v9  ;;  %v2420_v20 = vsel %vm569_vm1, %v2418_v26, %v2419_v53  ;;  %v2422_v9 = vsel %vm569_vm1, %v2419_v53, %v2421_v57  ;;  %v15414_v49 = vld [vmem:[%s15658_s20 + $0x160] sm:$0x3]  ;;  %6429 = vperm.xlu0 %15224, %v18594_v43   ;;  %v11719_v57 = vld [vmem:[%s15658_s20 + $0x198] sm:$0xff] }
 0x202   : > { %v18604_v10 = vsel %vm7282_vm3, %v7263_v63, 0.0  ;;  %v2426_v60 = vrot.slane %v15414_v49, 1  ;;  %v2434_v51 = vrot.slane %v18590_v30, 1  ;;  %v2438_v49 = vrot.slane %v11719_v57, 1 }
 0x203   : > { %v18585_v34 = vmax.f32 %v7207_v54, 0.0  ;;  %v18587_v7 = vpop.permute.xlu1 %6409  ;;  %13562 = vmatmul.mubr.msk.f32.gmra.mrb[20].mxu1 %vm944_vm2, %v2417_v32  ;;  %v15416_v32 = vld [vmem:[%s15658_s20 + $0x170] sm:$0xff]  ;;  %v811_v26 = vadd.f32 %v757_v37, %v462_v4  ;;  %v15417_v54 = vld [vmem:[%s15658_s20 + $0x180] sm:$0xff]  ;;  %v2436_v4 = vrot.slane %v18480_v14, 1  ;;  %v2439_v14 = vrot.slane %v11720_v24, 1 }
 0x204   : > { %15196 = vset.pattern.permute.xlu1 %v21188_v29  ;;  %v2429_v46 = vrot.slane %v15416_v32, 1  ;;  %13564 = vmatprep.mubr.msk.f32.mxu1 %vm944_vm2, %v2420_v20  ;;  %v2427_v41 = vsel %vm569_vm1, %v2424_v13, %v2426_v60  ;;  %v2433_v44 = vrot.slane %v15417_v54, 1  ;;  %v2255_v20 = vmul.f32 %v11719_v57, %v15670_v12  ;;  %v11721_v60 = vld [vmem:[%s15658_s20 + $0x1a8] sm:$0x3]  ;;  %v15418_v32 = vld [vmem:[%s15658_s20 + $0x102] sm:$0x3] }
 0x205   : > { %6965 = vperm.xlu1 %15196, %v18472_v6   ;;  %13868 = vmatmul.mubr.msk.f32.gmra.mrb[24].mxu0 %vm944_vm2, %v18585_v34  ;;  %v2425_v6 = vsel %vm569_vm1, %v21422_v45, %v2424_v13  ;;  %v1691_v11 = vadd.f32 %v1637_v28, %v811_v26  ;;  %v6402_v13 = vpop.permute.xlu0 %6401  ;;  %v2257_v50 = vmul.f32 %v11721_v60, %v15670_v12  ;;  %v2441_v26 = vrot.slane %v11721_v60, 1  ;;  %v15420_v54 = vld [vmem:[%s15658_s20 + $0x39] sm:$0xff]  ;;  %v15423_v60 = vld [vmem:[%s15658_s20 + $0x51] sm:$0xff] }
 0x206   : > { %13870 = vmatprep.mubr.msk.f32.mxu0 %vm944_vm2, %v18604_v10  ;;  %15227 = vset.pattern.permute.xlu0 %v21188_v29  ;;  %v2430_v63 = vsel %vm569_vm1, %v2428_v8, %v2429_v46  ;;  %v2432_v58 = vsel %vm569_vm1, %v2429_v46, %v2431_v31  ;;  %v2435_v30 = vsel %vm569_vm1, %v2433_v44, %v2434_v51  ;;  %v2982_v44 = vrot.slane %v15420_v54, 1 }
 0x207   : > { %13565 = vmatmul.mubr.msk.f32.gmra.mrb[22].mxu1 %vm944_vm2, %v2422_v9  ;;  %7085 = vperm.xlu0 %15227, %v18594_v43   ;;  %v2256_v9 = vmul.f32 %v11720_v24, %v15670_v12  ;;  %v18645_v45 = vadd.f32 %v2255_v20, %v18357_v52  ;;  %v6500_v8 = vmul.f32 %v17150_v56, %v6402_v13  ;;  %v341_v12 = vld [vmem:[%s20796_s3 + $0x10] sm:$0xf] }
 0x208   : > { %v6730_v53 = vpop.permute.xlu1 %6729  ;;  %13567 = vmatprep.mubr.msk.f32.mxu1 %vm944_vm2, %v2425_v6  ;;  %v5324_v46 = vmul.f32 %v15418_v32, %v21397_v38  ;;  %v18658_v52 = vadd.f32 %v2257_v50, %v18365_v40  ;;  %v6172_v28 = vmul.f32 %v17147_v55, %v18511_v2  ;;  %13579 = vmatprep.subr.msk.mxu1 %vm1009_vm0, %v341_v12  ;;  %v15424_v50 = vld [vmem:[%s15658_s20 + $0x59] sm:$0x3] }
 0x209   : > { %15197 = vset.pattern.permute.xlu1 %v21137_v21  ;;  %v18647_v6 = vadd.f32 %v2256_v9, %v1691_v11  ;;  %v15419_v11 = vld [vmem:[%s15658_s20 + $0x31] sm:$0xff]  ;;  %13580 = vmatpush3.msk.msra.mxu1 %vm1009_vm0, %v341_v12  ;;  %v6828_v40 = vmul.f32 %v17153_v62, %v6730_v53  ;;  %v15426_v12 = vld [vmem:[%s15658_s20 + $0x69] sm:$0xff] }
 0x20a   : > { %6649 = vperm.xlu1 %15197, %v21421_v35   ;;  %v2981_v31 = vrot.slane %v15419_v11, 1  ;;  %v18675_v2 = vadd.f32 %v5324_v46, %v18139_v3  ;;  %v6554_v57 = vadd.f32 %v6500_v8, %v6172_v28  ;;  %v15421_v3 = vld [vmem:[%s15658_s20 + $0x41] sm:$0x3]  ;;  %v2989_v8 = vrot.slane %v15424_v50, 1 }
 0x20b   : > { %13568 = vmatmul.mubr.msk.f32.gmra.mrb[24].mxu1 %vm944_vm2, %v2427_v41  ;;  %15230 = vset.pattern.permute.xlu0 %v21226_v59  ;;  %v2984_v20 = vrot.slane %v15421_v3, 1  ;;  %v2992_v28 = vrot.slane %v15426_v12, 1  ;;  %v21423_v3 = vld [vmem:[#allocation23_spill] sm:$0xff] }
 0x20c   : > { %13570 = vmatprep.mubr.msk.f32.mxu1 %vm944_vm2, %v2430_v63  ;;  %v2440_v63 = vsel %vm569_vm1, %v2438_v49, %v2439_v14  ;;  %v2983_v24 = vsel %vm569_vm1, %v2981_v31, %v2982_v44  ;;  %v6882_v53 = vadd.f32 %v6828_v40, %v6554_v57  ;;  %v15427_v31 = vld [vmem:[%s15658_s20 + $0x71] sm:$0x3] }
 0x20d   : > { %v18633_v37 = vpop.permute.xlu1 %6075  ;;  %v2994_v54 = vrot.slane %v15427_v31, 1 }
 0x20e   : > { %15198 = vset.pattern.permute.xlu1 %v21128_v23 }
 0x20f   : > { %6333 = vperm.xlu1 %15198, %v21364_v15   ;;  %13571 = vmatmul.mubr.msk.f32.gmra.mrb[26].mxu1 %vm944_vm2, %v2432_v58  ;;  %v2437_v15 = vsel %vm569_vm1, %v2434_v51, %v2436_v4  ;;  %v2442_v51 = vsel %vm569_vm1, %v2439_v14, %v2441_v26  ;;  %v2985_v58 = vsel %vm569_vm1, %v2982_v44, %v2984_v20  ;;  %v2987_v14 = vrot.slane %v15423_v60, 1 }
 0x210   : > { %13573 = vmatprep.mubr.msk.f32.mxu1 %vm944_vm2, %v2435_v30  ;;  %v15422_v30 = vld [vmem:[%s15658_s20 + $0x49] sm:$0xff]  ;;  %v6174_v20 = vmul.f32 %v17147_v55, %v21423_v3 }
 0x211   : > { %v2986_v49 = vrot.slane %v15422_v30, 1  ;;  %v2990_v11 = vsel %vm569_vm1, %v2987_v14, %v2989_v8  ;;  %v2995_v30 = vsel %vm569_vm1, %v2992_v28, %v2994_v54  ;;  %v15432_v8 = vld [vmem:[%s15658_s20 + $0x99] sm:$0xff] }
 0x212   : > { %v6414_v41 = vpop.permute.xlu1 %6413 }
 0x213   : > { %15199 = vset.pattern.permute.xlu1 %v21188_v29  ;;  %13574 = vmatmul.mubr.msk.f32.gmra.mrb[28].mxu1 %vm944_vm2, %v2437_v15  ;;  %v15425_v15 = vld [vmem:[%s15658_s20 + $0x61] sm:$0xff] }
 0x214   : > { %6977 = vperm.xlu1 %15199, %v21421_v35   ;;  %13576 = vmatprep.mubr.msk.f32.mxu1 %vm944_vm2, %v2440_v63  ;;  %v18681_v35 = vpop.permute.xlu0 %6421  ;;  %v2991_v26 = vrot.slane %v15425_v15, 1  ;;  %v2988_v63 = vsel %vm569_vm1, %v2986_v49, %v2987_v14  ;;  %v15430_v49 = vld [vmem:[%s15658_s20 + $0x89] sm:$0x3]  ;;  %v15431_v14 = vld [vmem:[%s15658_s20 + $0x91] sm:$0xff]  ;;  %v3002_v15 = vrot.slane %v15432_v8, 1 }
 0x215   : > { %v3001_v50 = vrot.slane %v15431_v14, 1 }
 0x216   : > { %v2993_v40 = vsel %vm569_vm1, %v2991_v26, %v2992_v28 }
 0x217   : > { %v7058_v13 = vpop.permute.xlu1 %7057  ;;  %13577 = vmatmul.mubr.msk.f32.gmra.mrb[30].mxu1 %vm944_vm2, %v2442_v51  ;;  %v15428_v51 = vld [vmem:[%s15658_s20 + $0x79] sm:$0xff] }
 0x218   : > { %v7156_v4 = vmul.f32 %v17171_v61, %v7058_v13  ;;  %15200 = vset.pattern.permute.xlu1 %v21226_v59  ;;  %13581 = vmatprep.mubr.msk.f32.mxu1 %vm944_vm2, %v2983_v24  ;;  %v18703_v44 = vpop.permute.xlu0 %6285  ;;  %v2996_v57 = vrot.slane %v15428_v51, 1  ;;  %v15429_v24 = vld [vmem:[%s15658_s20 + $0x81] sm:$0xff] }
 0x219   : > { %5990 = vperm.xlu1 %15200, %v18675_v2   ;;  %v2997_v13 = vrot.slane %v15429_v24, 1  ;;  %v15433_v51 = vld [vmem:[%s15658_s20 + $0xa1] sm:$0x3] }
 0x21a   : > { %v7210_v9 = vadd.f32 %v7156_v4, %v6882_v53  ;;  %v6502_v53 = vmul.f32 %v17150_v56, %v18587_v7  ;;  %v6503_v4 = vmul.f32 %v17150_v56, %v6414_v41  ;;  %v2999_v7 = vrot.slane %v15430_v49, 1  ;;  %v21426_v49 = vld [vmem:[#allocation39_spill] sm:$0xff] }
 0x21b   : > { %13582 = vmatmul.mubr.msk.f32.vlgmr.msra.gmra.mrb[0].mxu1 %vm944_vm2, %v2985_v58  ;;  %v2998_v41 = vsel %vm569_vm1, %v2996_v57, %v2997_v13  ;;  %v3004_v57 = vrot.slane %v15433_v51, 1  ;;  %v15439_v51 = vld [vmem:[%s15658_s20 + $0xd1] sm:$0x3] }
 0x21c   : > { %v18692_v32 = vmax.f32 %v7210_v9, 0.0  ;;  %v18694_v46 = vpop.permute.xlu1 %6085  ;;  %13584 = vmatprep.mubr.msk.f32.mxu1 %vm944_vm2, %v2988_v63  ;;  %v6175_v9 = vmul.f32 %v17147_v55, %v18633_v37  ;;  %v21424_v37 = vld [vmem:[#allocation47_spill] sm:$0xff]  ;;  %v6556_v12 = vadd.f32 %v6502_v53, %v6174_v20  ;;  %v18731_v63 = vpop.permute.xlu0 %6321  ;;  %v3003_v53 = vsel %vm569_vm1, %v3001_v50, %v3002_v15  ;;  %v15435_v20 = vld [vmem:[%s15658_s20 + $0xb1] sm:$0xff] }
 0x21d   : > { %15201 = vset.pattern.permute.xlu1 %v21128_v23  ;;  %v6830_v26 = vmul.f32 %v17153_v62, %v21424_v37  ;;  %v15437_v37 = vld [vmem:[%s15658_s20 + $0xc1] sm:$0xff] }
 0x21e   : > { %6345 = vperm.xlu1 %15201, %v18675_v2   ;;  %13871 = vmatmul.mubr.msk.f32.gmra.mrb[26].mxu0 %vm944_vm2, %v18692_v32  ;;  %v6557_v28 = vadd.f32 %v6503_v4, %v6175_v9  ;;  %v15434_v4 = vld [vmem:[%s15658_s20 + $0xa9] sm:$0xff]  ;;  %v3007_v9 = vrot.slane %v15435_v20, 1 }
 0x21f   : > { %13585 = vmatmul.mubr.msk.f32.gmra.mrb[2].mxu1 %vm944_vm2, %v2990_v11  ;;  %v21425_v11 = vld [vmem:[#allocation70_spill] sm:$0xff]  ;;  %v3006_v3 = vrot.slane %v15434_v4, 1 }
 0x220   : > { %13587 = vmatprep.mubr.msk.f32.mxu1 %vm944_vm2, %v2993_v40  ;;  %v7159_v31 = vmul.f32 %v17171_v61, %v21425_v11  ;;  %v3000_v40 = vsel %vm569_vm1, %v2997_v13, %v2999_v7  ;;  %v18749_v50 = vpop.permute.xlu0 %6357 }
 0x221   : > { %v6742_v58 = vpop.permute.xlu1 %6741  ;;  %v3008_v8 = vsel %vm569_vm1, %v3006_v3, %v3007_v9  ;;  %v15441_v3 = vld [vmem:[%s15658_s20 + $0xe1] sm:$0xff] }
 0x222   : > { %v6831_v60 = vmul.f32 %v17153_v62, %v6742_v58  ;;  %15203 = vset.pattern.permute.xlu1 %v21137_v21  ;;  %v6884_v58 = vadd.f32 %v6830_v26, %v6556_v12  ;;  %v3011_v26 = vrot.slane %v15437_v37, 1  ;;  %v15438_v12 = vld [vmem:[%s15658_s20 + $0xc9] sm:$0xff] }
 0x223   : > { %6673 = vperm.xlu1 %15203, %v18675_v2   ;;  %13588 = vmatmul.mubr.msk.f32.gmra.mrb[4].mxu1 %vm944_vm2, %v2995_v30 }
 0x224   : > { %v6885_v54 = vadd.f32 %v6831_v60, %v6557_v28  ;;  %13590 = vmatprep.mubr.msk.f32.mxu1 %vm944_vm2, %v2998_v41  ;;  %v3005_v60 = vsel %vm569_vm1, %v3002_v15, %v3004_v57  ;;  %v15436_v41 = vld [vmem:[%s15658_s20 + $0xb9] sm:$0x3]  ;;  %v3012_v28 = vrot.slane %v15438_v12, 1  ;;  %v3014_v57 = vrot.slane %v15439_v51, 1  ;;  %v18775_v20 = vpop.permute.xlu0 %6393 }
 0x225   : > { %v3009_v14 = vrot.slane %v15436_v41, 1  ;;  %v15442_v41 = vld [vmem:[%s15658_s20 + $0xe9] sm:$0x3] }
 0x226   : > { %v7066_v24 = vpop.permute.xlu1 %7065  ;;  %v7213_v13 = vadd.f32 %v7159_v31, %v6885_v54 }
 0x227   : > { %v7158_v30 = vmul.f32 %v17171_v61, %v7066_v24  ;;  %15204 = vset.pattern.permute.xlu1 %v21226_v59  ;;  %13591 = vmatmul.mubr.msk.f32.gmra.mrb[6].mxu1 %vm944_vm2, %v3000_v40  ;;  %v3010_v40 = vsel %vm569_vm1, %v3007_v9, %v3009_v14  ;;  %v3013_v24 = vsel %vm569_vm1, %v3011_v26, %v3012_v28  ;;  %v3019_v14 = vrot.slane %v15442_v41, 1  ;;  %v15444_v26 = vld [vmem:[%s15658_s20 + $0xf9] sm:$0xff] }
 0x228   : > { %6005 = vperm.xlu1 %15204, %v21426_v49   ;;  %13593 = vmatprep.mubr.msk.f32.mxu1 %vm944_vm2, %v3003_v53  ;;  %v18758_v15 = vmax.f32 %v7213_v13, 0.0  ;;  %v15440_v53 = vld [vmem:[%s15658_s20 + $0xd9] sm:$0xff]  ;;  %v6505_v13 = vmul.f32 %v17150_v56, %v18681_v35  ;;  %v3022_v12 = vrot.slane %v15444_v26, 1  ;;  %v15445_v35 = vld [vmem:[%s15658_s20 + $0x101] sm:$0x3] }
 0x229   : > { %v7212_v7 = vadd.f32 %v7158_v30, %v6884_v58  ;;  %v3016_v4 = vrot.slane %v15440_v53, 1  ;;  %v3015_v58 = vsel %vm569_vm1, %v3012_v28, %v3014_v57  ;;  %v15446_v57 = vld [vmem:[%s15658_s20 + $0x109] sm:$0xff]  ;;  %v15447_v53 = vld [vmem:[%s15658_s20 + $0x111] sm:$0xff]  ;;  %v15449_v41 = vld [vmem:[%s15658_s20 + $0x119] sm:$0x3] }
 0x22b   : > { %v7266_v11 = vmax.f32 %v7212_v7, 0.0  ;;  %v18754_v31 = vpop.permute.xlu1 %6425  ;;  %13594 = vmatmul.mubr.msk.f32.gmra.mrb[8].mxu1 %vm944_vm2, %v3005_v60  ;;  %v6177_v7 = vmul.f32 %v17147_v55, %v18694_v46 }
 0x22c   : > { %15205 = vset.pattern.permute.xlu1 %v21188_v29  ;;  %13596 = vmatprep.mubr.msk.f32.mxu1 %vm944_vm2, %v3008_v8  ;;  %v15443_v8 = vld [vmem:[%s15658_s20 + $0xf1] sm:$0xff] }
 0x22d   : > { %7001 = vperm.xlu1 %15205, %v18675_v2   ;;  %v18763_v54 = vsel %vm7282_vm3, %v7266_v11, 0.0  ;;  %v3017_v2 = vrot.slane %v15441_v3, 1  ;;  %v3021_v37 = vrot.slane %v15443_v8, 1  ;;  %v3024_v11 = vrot.slane %v15445_v35, 1  ;;  %v15451_v35 = vld [vmem:[%s15658_s20 + $0x129] sm:$0xff] }
 0x22e   : > { %13873 = vmatprep.mubr.msk.f32.mxu0 %vm944_vm2, %v18763_v54  ;;  %v6559_v3 = vadd.f32 %v6505_v13, %v6177_v7  ;;  %v15450_v13 = vld [vmem:[%s15658_s20 + $0x121] sm:$0xff] }
 0x22f   : > { %13874 = vmatmul.mubr.msk.f32.gmra.mrb[28].mxu0 %vm944_vm2, %v18758_v15  ;;  %13597 = vmatmul.mubr.msk.f32.gmra.mrb[10].mxu1 %vm944_vm2, %v3010_v40  ;;  %v3018_v30 = vsel %vm569_vm1, %v3016_v4, %v3017_v2  ;;  %v6091_v40 = vpop.permute.xlu0 %6090  ;;  %v3020_v46 = vsel %vm569_vm1, %v3017_v2, %v3019_v14  ;;  %v3023_v51 = vsel %vm569_vm1, %v3021_v37, %v3022_v12  ;;  %v3027_v4 = vrot.slane %v15447_v53, 1 }
 0x230   : > { %v6750_v9 = vpop.permute.xlu1 %6749  ;;  %13599 = vmatprep.mubr.msk.f32.mxu1 %vm944_vm2, %v3013_v24  ;;  %v3026_v24 = vrot.slane %v15446_v57, 1  ;;  %v3025_v2 = vsel %vm569_vm1, %v3022_v12, %v3024_v11  ;;  %v3029_v14 = vrot.slane %v15449_v41, 1  ;;  %v3031_v7 = vrot.slane %v15450_v13, 1  ;;  %v21427_v41 = vld [vmem:[#allocation61_spill] sm:$0xff] }
 0x231   : > { %15206 = vset.pattern.permute.xlu1 %v21137_v21  ;;  %v6833_v28 = vmul.f32 %v17153_v62, %v6750_v9  ;;  %v6506_v53 = vmul.f32 %v17150_v56, %v18754_v31  ;;  %v21429_v31 = vld [vmem:[#allocation36_spill] sm:$0xff]  ;;  %v15453_v13 = vld [vmem:[%s15658_s20 + $0x139] sm:$0xff] }
 0x232   : > { %6685 = vperm.xlu1 %15206, %v21426_v49   ;;  %v3030_v11 = vsel %vm569_vm1, %v3027_v4, %v3029_v14 }
 0x233   : > { %13600 = vmatmul.mubr.msk.f32.gmra.mrb[12].mxu1 %vm944_vm2, %v3015_v58  ;;  %v15448_v58 = vld [vmem:[%s15658_s20 + $0x14a] sm:$0x3]  ;;  %v6887_v8 = vadd.f32 %v6833_v28, %v6559_v3  ;;  %v5886_v26 = vpop.permute.xlu0 %5885  ;;  %v6178_v3 = vmul.f32 %v17147_v55, %v6091_v40  ;;  %v7121_v40 = vmul.f32 %v17171_v61, %v21429_v31 }
 0x234   : > { %v6754_v60 = vpop.permute.xlu1 %6753  ;;  %13602 = vmatprep.mubr.msk.f32.mxu1 %vm944_vm2, %v3018_v30  ;;  %v5333_v30 = vmul.f32 %v15448_v58, %v21397_v38  ;;  %v6137_v12 = vmul.f32 %v17147_v55, %v5886_v26 }
 0x236   : > { %15207 = vset.pattern.permute.xlu1 %v21128_v23  ;;  %v18815_v28 = vadd.f32 %v5333_v30, %v18286_v42  ;;  %v6793_v42 = vmul.f32 %v17153_v62, %v21427_v41  ;;  %v6834_v30 = vmul.f32 %v17153_v62, %v6754_v60  ;;  %v15458_v41 = vld [vmem:[%s15658_s20 + $0x161] sm:$0x3] }
 0x237   : > { %6369 = vperm.xlu1 %15207, %v18050_v39   ;;  %13603 = vmatmul.mubr.msk.f32.gmra.mrb[14].mxu1 %vm944_vm2, %v3020_v46  ;;  %v3028_v39 = vsel %vm569_vm1, %v3026_v24, %v3027_v4  ;;  %v3032_v46 = vrot.slane %v15451_v35, 1  ;;  %v15454_v35 = vld [vmem:[%s15658_s20 + $0x141] sm:$0xff] }
 0x238   : > { %13605 = vmatprep.mubr.msk.f32.mxu1 %vm944_vm2, %v3023_v51  ;;  %v15452_v51 = vld [vmem:[%s15658_s20 + $0x131] sm:$0x3] }
 0x239   : > { %v7078_v9 = vpop.permute.xlu1 %7077  ;;  %v3034_v24 = vrot.slane %v15452_v51, 1 }
 0x23a   : > { %v7161_v37 = vmul.f32 %v17171_v61, %v7078_v9 }
 0x23b   : > { %15208 = vset.pattern.permute.xlu1 %v21188_v29  ;;  %13606 = vmatmul.mubr.msk.f32.gmra.mrb[16].mxu1 %vm944_vm2, %v3025_v2  ;;  %v3033_v2 = vsel %vm569_vm1, %v3031_v7, %v3032_v46  ;;  %v3035_v60 = vsel %vm569_vm1, %v3032_v46, %v3034_v24  ;;  %v3036_v7 = vrot.slane %v15453_v13, 1  ;;  %v15456_v46 = vld [vmem:[%s15658_s20 + $0x151] sm:$0xff] }
 0x23c   : > { %v7215_v57 = vadd.f32 %v7161_v37, %v6887_v8  ;;  %7013 = vperm.xlu1 %15208, %v21426_v49   ;;  %13608 = vmatprep.mubr.msk.f32.mxu1 %vm944_vm2, %v3028_v39  ;;  %v6560_v8 = vadd.f32 %v6506_v53, %v6178_v3  ;;  %v18841_v37 = vadd.s32 16, %v21335_v33  ;;  %v3041_v24 = vrot.slane %v15456_v46, 1  ;;  %v15457_v53 = vld [vmem:[%s15658_s20 + $0x159] sm:$0xff] }
 0x23d   : > { %v3042_v3 = vrot.slane %v15457_v53, 1  ;;  %v15466_v33 = vld [vmem:[%s15658_s20 + $0x52] sm:$0xff] }
 0x23e   : > { %v7269_v9 = vmax.f32 %v7215_v57, 0.0  ;;  %v6262_v49 = vpop.permute.xlu1 %6261  ;;  %v3037_v57 = vrot.slane %v15454_v35, 1  ;;  %v6888_v51 = vadd.f32 %v6834_v30, %v6560_v8  ;;  %v15460_v8 = vld [vmem:[%s15658_s20 + $0x171] sm:$0xff]  ;;  %vm7293_vm4 = vcmp.lt.s32.totalorder %v18841_v37, 17 }
 0x23f   : > { %v6465_v58 = vmul.f32 %v17150_v56, %v6262_v49  ;;  %13609 = vmatmul.mubr.msk.f32.gmra.mrb[18].mxu1 %vm944_vm2, %v3030_v11  ;;  %v3043_v31 = vsel %vm569_vm1, %v3041_v24, %v3042_v3  ;;  %v15461_v24 = vld [vmem:[%s15658_s20 + $0x181] sm:$0xff] }
 0x240   : > { %v18830_v4 = vsel %vm7282_vm3, %v7269_v9, 0.0  ;;  %15209 = vset.pattern.permute.xlu1 %v21226_v59  ;;  %13611 = vmatprep.mubr.msk.f32.mxu1 %vm944_vm2, %v3033_v2  ;;  %v3051_v53 = vrot.slane %v15461_v24, 1 }
 0x241   : > { %21428 = vst [vmem:[#allocation13_spill] sm:$0xff] %v18830_v4  ;;  %v6519_v14 = vadd.f32 %v6465_v58, %v6137_v12  ;;  %6035 = vperm.xlu1 %15209, %v18815_v28   ;;  %13876 = vmatprep.mubr.msk.f32.mxu0 %vm944_vm2, %v18830_v4  ;;  %v15455_v12 = vld [vmem:[%s15658_s20 + $0x149] sm:$0x3]  ;;  %v3038_v58 = vsel %vm569_vm1, %v3036_v7, %v3037_v57 }
 0x242   : > { %v3039_v11 = vrot.slane %v15455_v12, 1 }
 0x243   : > { %v6847_v26 = vadd.f32 %v6793_v42, %v6519_v14  ;;  %v7082_v39 = vpop.permute.xlu1 %7081  ;;  %13612 = vmatmul.mubr.msk.f32.gmra.mrb[20].mxu1 %vm944_vm2, %v3035_v60  ;;  %v3044_v42 = vrot.slane %v15458_v41, 1  ;;  %v15459_v14 = vld [vmem:[%s15658_s20 + $0x169] sm:$0xff] }
 0x244   : > { %v7162_v9 = vmul.f32 %v17171_v61, %v7082_v39  ;;  %v3040_v2 = vsel %vm569_vm1, %v3037_v57, %v3039_v11  ;;  %13614 = vmatprep.mubr.msk.f32.mxu1 %vm944_vm2, %v3038_v58  ;;  %v3046_v60 = vrot.slane %v15459_v14, 1  ;;  %v21430_v39 = vmov 0.0   ;;  %v21433_v57 = vld [vmem:[#allocation50_spill] sm:$0xff]  ;;  %v21437_v14 = vld [vmem:[#allocation59_spill] sm:$0xff] }
 0x245   : > { %v7175_v49 = vadd.f32 %v7121_v40, %v6847_v26  ;;  %15210 = vset.pattern.permute.xlu1 %v21128_v23  ;;  %v3047_v40 = vrot.slane %v15460_v8, 1  ;;  %v18861_v13 = vrot.slane %v21430_v39, 1  ;;  %v7731_v12 = vrot.slane %v21433_v57, 1  ;;  %v21445_v39 = vld [vmem:[#allocation16_spill] sm:$0xff] }
 0x246   : > { %v7216_v30 = vadd.f32 %v7162_v9, %v6888_v51  ;;  %6381 = vperm.xlu1 %15210, %v18815_v28   ;;  %v3045_v11 = vsel %vm569_vm1, %v3042_v3, %v3044_v42  ;;  %v3049_v51 = vrot.slane %v18488_v5, 1  ;;  %v21435_v5 = vld [vmem:[#allocation51_spill] sm:$0xff]  ;;  %v3054_v42 = vrot.slane %v18542_v0, 1 }
 0x247   : > { %v7229_v26 = vmax.f32 %v7175_v49, 0.0  ;;  %21431 = vst [vmem:[#allocation64_spill] sm:$0xff] %v18861_v13  ;;  %13615 = vmatmul.mubr.msk.f32.gmra.mrb[22].mxu1 %vm944_vm2, %v3040_v2  ;;  %v3048_v46 = vsel %vm569_vm1, %v3046_v60, %v3047_v40  ;;  %v3052_v49 = vrot.slane %v18581_v22, 1  ;;  %v7732_v3 = vrot.slane %v21435_v5, 1  ;;  %v11806_v22 = vld [vmem:[%s15658_s20 + $0x199] sm:$0xff] }
 0x248   : > { %v18864_v7 = vmax.f32 %v7216_v30, 0.0  ;;  %v18866_v35 = vpop.permute.xlu1 %5900  ;;  %13617 = vmatprep.mubr.msk.f32.mxu1 %vm944_vm2, %v3043_v31  ;;  %v3050_v41 = vsel %vm569_vm1, %v3047_v40, %v3049_v51  ;;  %v11807_v30 = vld [vmem:[%s15658_s20 + $0x1a1] sm:$0xff]  ;;  %v342_v40 = vld [vmem:[%s20796_s3 + $0x14] sm:$0xf]  ;;  %v15474_v5 = vld [vmem:[%s15658_s20 + $0x1b9] sm:$0xff] }
 0x249   : > { %v18878_v9 = vsel %vm7293_vm4, %v7229_v26, 0.0  ;;  %v18897_v31 = vsel %vm569_vm1, %v7731_v12, %v7732_v3  ;;  %v3053_v8 = vsel %vm569_vm1, %v3051_v53, %v3052_v49  ;;  %v3056_v26 = vrot.slane %v11806_v22, 1  ;;  %v21438_v12 = vld [vmem:[#allocation46_spill] sm:$0xff]  ;;  %v21439_v51 = vld [vmem:[#allocation60_spill] sm:$0xff]  ;;  %13629 = vmatprep.subr.msk.mxu1 %vm1009_vm0, %v342_v40 }
 0x24a   : > { %21432 = vst [vmem:[#allocation27_spill] sm:$0xff] %v18864_v7  ;;  %15211 = vset.pattern.permute.xlu1 %v21137_v21  ;;  %13877 = vmatmul.mubr.msk.f32.gmra.mrb[30].mxu0 %vm944_vm2, %v18864_v7  ;;  %21434 = vst [vmem:[#allocation14_spill] sm:$0xff] %v18878_v9  ;;  %v7734_v2 = vrot.slane %v18878_v9, 1  ;;  %v3057_v0 = vrot.slane %v11807_v30, 1  ;;  %v3055_v53 = vsel %vm569_vm1, %v3052_v49, %v3054_v42  ;;  %v15463_v42 = vld [vmem:[%s15658_s20 + $0x3a] sm:$0xff] }
 0x24b   : > { %6709 = vperm.xlu1 %15211, %v18815_v28   ;;  %13881 = vmatprep.mubr.msk.f32.mxu0 %vm944_vm2, %v18861_v13  ;;  %21436 = vst [vmem:[#allocation54_spill] sm:$0xff] %v18897_v31  ;;  %v4729_v57 = vmul.f32 %v15474_v5, %v21383_v25  ;;  %v19000_v5 = vld [vmem:[%s15658_s20 + $0x1b8] sm:$0xff] }
 0x24c   : > { %13618 = vmatmul.mubr.msk.f32.gmra.mrb[24].mxu1 %vm944_vm2, %v3045_v11  ;;  %v18902_v11 = vld [vmem:[%s15658_s20 + $0x1a9] sm:$0x3]  ;;  %v18914_v24 = vsel %vm569_vm1, %v7732_v3, %v7734_v2  ;;  %v3058_v3 = vsel %vm569_vm1, %v3056_v26, %v3057_v0  ;;  %v15462_v2 = vld [vmem:[%s15658_s20 + $0x32] sm:$0xff]  ;;  %v15464_v26 = vld [vmem:[%s15658_s20 + $0x42] sm:$0x3] }
 0x24d   : > { %v6274_v58 = vpop.permute.xlu1 %6273  ;;  %13620 = vmatprep.mubr.msk.f32.mxu1 %vm944_vm2, %v3048_v46  ;;  %v7736_v46 = vrot.slane %v21439_v51, 1  ;;  %21440 = vst [vmem:[#allocation67_spill] sm:$0xff] %v18914_v24  ;;  %v3059_v60 = vrot.slane %v18902_v11, 1  ;;  %13630 = vmatpush3.msk.msra.mxu1 %vm1009_vm0, %v342_v40  ;;  %v3599_v49 = vrot.slane %v15462_v2, 1  ;;  %v3602_v40 = vrot.slane %v15464_v26, 1  ;;  %v15468_v26 = vld [vmem:[%s15658_s20 + $0x62] sm:$0xff] }
 0x24e   : > { %13882 = vmatmul.mubr.msk.f32.vlgmr.msra.gmra.mrb[0].mxu0 %vm944_vm2, %v18861_v13  ;;  %v3605_v51 = vrot.slane %v15466_v33, 1 }
 0x24f   : > { %15212 = vset.pattern.permute.xlu1 %v21226_v59  ;;  %13884 = vmatprep.mubr.msk.f32.mxu0 %vm944_vm2, %v18897_v31  ;;  %v21441_v31 = vrot.slane %v21437_v14, 1 }
 0x250   : > { %6050 = vperm.xlu1 %15212, %v21438_v12   ;;  %13621 = vmatmul.mubr.msk.f32.gmra.mrb[26].mxu1 %vm944_vm2, %v3050_v41 }
 0x251   : > { %13623 = vmatprep.mubr.msk.f32.mxu1 %vm944_vm2, %v3053_v8  ;;  %v18925_v41 = vsel %vm569_vm1, %v7736_v46, %v21441_v31  ;;  %v3600_v8 = vrot.slane %v15463_v42, 1  ;;  %v3060_v31 = vsel %vm569_vm1, %v3057_v0, %v3059_v60  ;;  %v6468_v46 = vmul.f32 %v17150_v56, %v6274_v58  ;;  %v15465_v42 = vld [vmem:[%s15658_s20 + $0x4a] sm:$0xff] }
 0x252   : > { %v6602_v13 = vpop.permute.xlu1 %6601  ;;  %13885 = vmatmul.mubr.msk.f32.gmra.mrb[2].mxu0 %vm944_vm2, %v18914_v24  ;;  %21442 = vst [vmem:[#allocation10_spill] sm:$0xff] %v18925_v41  ;;  %v348_v24 = vld [vmem:[%s20797_s4 + $0x8] sm:$0xf]  ;;  %v6140_v60 = vmul.f32 %v17147_v55, %v18866_v35  ;;  %v2874_v35 = vmul.f32 %v11807_v30, %v15676_v16 }
 0x253   : > { %13887 = vmatprep.mubr.msk.f32.mxu0 %vm944_vm2, %v18925_v41  ;;  %13929 = vmatprep.subr.msk.mxu0 %vm1009_vm0, %v348_v24  ;;  %v3601_v2 = vsel %vm569_vm1, %v3599_v49, %v3600_v8  ;;  %v3604_v41 = vrot.slane %v15465_v42, 1  ;;  %v6796_v0 = vmul.f32 %v17153_v62, %v6602_v13  ;;  %v3603_v33 = vsel %vm569_vm1, %v3600_v8, %v3602_v40  ;;  %v18968_v8 = vld [vmem:[%s15658_s20 + $0x1b0] sm:$0xff] }
 0x254   : > { %15214 = vset.pattern.permute.xlu1 %v21188_v29  ;;  %13624 = vmatmul.mubr.msk.f32.gmra.mrb[28].mxu1 %vm944_vm2, %v3055_v53  ;;  %v6522_v58 = vadd.f32 %v6468_v46, %v6140_v60  ;;  %v3609_v40 = vrot.slane %v15468_v26, 1  ;;  %v15470_v42 = vld [vmem:[%s15658_s20 + $0x72] sm:$0x3] }
 0x255   : > { %7037 = vperm.xlu1 %15214, %v18815_v28   ;;  %13626 = vmatprep.mubr.msk.f32.mxu1 %vm944_vm2, %v3058_v3  ;;  %v2873_v28 = vmul.f32 %v11806_v22, %v15676_v16  ;;  %v3606_v22 = vsel %vm569_vm1, %v3604_v41, %v3605_v51  ;;  %v15467_v3 = vld [vmem:[%s15658_s20 + $0x5a] sm:$0x3]  ;;  %v15469_v41 = vld [vmem:[%s15658_s20 + $0x6a] sm:$0xff] }
 0x256   : > { %13930 = vmatpush3.msk.msra.mxu0 %vm1009_vm0, %v348_v24  ;;  %v6850_v24 = vadd.f32 %v6796_v0, %v6522_v58  ;;  %v3607_v49 = vrot.slane %v15467_v3, 1  ;;  %v3610_v30 = vrot.slane %v15469_v41, 1  ;;  %v15473_v3 = vld [vmem:[%s15658_s20 + $0x1b1] sm:$0xff] }
 0x257   : > { %v18948_v9 = vpop.permute.xlu1 %5915  ;;  %v2927_v13 = vadd.f32 %v2873_v28, %v18645_v45  ;;  %v3612_v28 = vrot.slane %v15470_v42, 1  ;;  %v4728_v26 = vmul.f32 %v15473_v3, %v21383_v25 }
 0x258   : > { %13627 = vmatmul.mubr.msk.f32.gmra.mrb[30].mxu1 %vm944_vm2, %v3060_v31  ;;  %v18965_v31 = vld [vmem:[%s15658_s20 + $0x19a] sm:$0xff]  ;;  %v3608_v60 = vsel %vm569_vm1, %v3605_v51, %v3607_v49  ;;  %v3611_v0 = vsel %vm569_vm1, %v3609_v40, %v3610_v30  ;;  %v15475_v51 = vld [vmem:[%s15658_s20 + $0x192] sm:$0x3]  ;;  %v2928_v40 = vadd.f32 %v2874_v35, %v18647_v6 }
 0x259   : > { %15215 = vset.pattern.permute.xlu1 %v21137_v21  ;;  %13631 = vmatprep.mubr.msk.f32.mxu1 %vm944_vm2, %v3601_v2  ;;  %v3491_v46 = vmul.f32 %v18965_v31, %v15679_v17  ;;  %v4110_v2 = vmul.f32 %v18968_v8, %v15682_v18  ;;  %v5342_v49 = vmul.f32 %v15475_v51, %v21397_v38  ;;  %v21443_v51 = vld [vmem:[#allocation26_spill] sm:$0xff] }
 0x25a   : > { %6721 = vperm.xlu1 %15215, %v21438_v12   ;;  %v7741_v6 = vrot.slane %v21443_v51, 1 }
 0x25b   : > { %v3545_v42 = vadd.f32 %v3491_v46, %v2927_v13  ;;  %v15476_v13 = vld [vmem:[%s15658_s20 + $0x8a] sm:$0x3]  ;;  %v5931_v46 = vpop.permute.xlu0 %5930 }
 0x25c   : > { %v6930_v53 = vpop.permute.xlu1 %6929  ;;  %13632 = vmatmul.mubr.msk.f32.vlgmr.msra.gmra.mrb[0].mxu1 %vm944_vm2, %v3603_v33  ;;  %v15471_v33 = vld [vmem:[%s15658_s20 + $0x7a] sm:$0xff] }
 0x25d   : > { %v7124_v45 = vmul.f32 %v17171_v61, %v6930_v53  ;;  %13634 = vmatprep.mubr.msk.f32.mxu1 %vm944_vm2, %v3606_v22  ;;  %v3614_v58 = vrot.slane %v15471_v33, 1  ;;  %v15472_v53 = vld [vmem:[%s15658_s20 + $0x82] sm:$0xff]  ;;  %v4164_v3 = vadd.f32 %v4110_v2, %v3545_v42  ;;  %v4111_v2 = vmul.f32 %v19000_v5, %v15682_v18  ;;  %v15478_v42 = vld [vmem:[%s15658_s20 + $0x9a] sm:$0xff] }
 0x25e   : > { %15217 = vset.pattern.permute.xlu1 %v21128_v23  ;;  %v3615_v22 = vrot.slane %v15472_v53, 1 }
 0x25f   : > { %v7178_v41 = vadd.f32 %v7124_v45, %v6850_v24  ;;  %6405 = vperm.xlu1 %15217, %v18095_v27   ;;  %v3613_v27 = vsel %vm569_vm1, %v3610_v30, %v3612_v28  ;;  %v3617_v24 = vrot.slane %v15476_v13, 1  ;;  %v18997_v45 = vld [vmem:[%s15658_s20 + $0x1a2] sm:$0xff]  ;;  %v19013_v28 = vadd.f32 %v4728_v26, %v4164_v3 }
 0x260   : > { %13635 = vmatmul.mubr.msk.f32.gmra.mrb[2].mxu1 %vm944_vm2, %v3608_v60  ;;  %v3616_v35 = vsel %vm569_vm1, %v3614_v58, %v3615_v22  ;;  %v3492_v60 = vmul.f32 %v18997_v45, %v15679_v17  ;;  %v3620_v13 = vrot.slane %v15478_v42, 1  ;;  %v6471_v58 = vmul.f32 %v17150_v56, %v18703_v44 }
 0x261   : > { %v7232_v33 = vmax.f32 %v7178_v41, 0.0  ;;  %v6614_v53 = vpop.permute.xlu1 %6613  ;;  %13637 = vmatprep.mubr.msk.f32.mxu1 %vm944_vm2, %v3611_v0  ;;  %v15477_v0 = vld [vmem:[%s15658_s20 + $0x92] sm:$0xff]  ;;  %v6143_v26 = vmul.f32 %v17147_v55, %v18948_v9  ;;  %v6146_v3 = vmul.f32 %v17147_v55, %v5931_v46  ;;  %v3618_v44 = vsel %vm569_vm1, %v3615_v22, %v3617_v24  ;;  %v15480_v9 = vld [vmem:[%s15658_s20 + $0xa2] sm:$0x3] }
 0x262   : > { %v3619_v41 = vrot.slane %v15477_v0, 1  ;;  %v3546_v4 = vadd.f32 %v3492_v60, %v2928_v40  ;;  %v19027_v0 = vadd.f32 %v5342_v49, %v18538_v1  ;;  %v15479_v40 = vld [vmem:[%s15658_s20 + $0x1ba] sm:$0xff]  ;;  %v21448_v1 = vrot.slane %v21445_v39, 1 }
 0x263   : > { %v19010_v30 = vsel %vm7293_vm4, %v7232_v33, 0.0  ;;  %15218 = vset.pattern.permute.xlu1 %v21188_v29  ;;  %v5347_v60 = vmul.f32 %v15479_v40, %v21397_v38  ;;  %v6799_v24 = vmul.f32 %v17153_v62, %v6614_v53  ;;  %v6525_v53 = vadd.f32 %v6471_v58, %v6143_v26 }
 0x264   : > { %21444 = vst [vmem:[#allocation30_spill] sm:$0xff] %v19010_v30  ;;  %v7739_v51 = vrot.slane %v19010_v30, 1  ;;  %7049 = vperm.xlu1 %15218, %v21438_v12   ;;  %13638 = vmatmul.mubr.msk.f32.gmra.mrb[4].mxu1 %vm944_vm2, %v3613_v27  ;;  %v21446_v12 = vrot.slane %v21437_v14, 1  ;;  %v4165_v27 = vadd.f32 %v4111_v2, %v3546_v4  ;;  %v3622_v30 = vrot.slane %v15480_v9, 1  ;;  %v21451_v2 = vld [vmem:[#allocation66_spill] sm:$0xff]  ;;  %v15481_v9 = vld [vmem:[%s15658_s20 + $0xaa] sm:$0xff] }
 0x265   : > { %13640 = vmatprep.mubr.msk.f32.mxu1 %vm944_vm2, %v3616_v35  ;;  %v19045_v22 = vsel %vm569_vm1, %v7741_v6, %v21448_v1  ;;  %v3621_v49 = vsel %vm569_vm1, %v3619_v41, %v3620_v13  ;;  %v7130_v6 = vmul.f32 %v17171_v61, %v21451_v2  ;;  %v2875_v41 = vmul.f32 %v18902_v11, %v15676_v16  ;;  %v15484_v16 = vld [vmem:[%s15658_s20 + $0xc2] sm:$0xff] }
 0x266   : > { %v6298_v42 = vpop.permute.xlu1 %6297  ;;  %v19034_v33 = vsel %vm569_vm1, %v21446_v12, %v7739_v51  ;;  %21449 = vst [vmem:[#allocation6_spill] sm:$0xff] %v19045_v22  ;;  %v4783_v4 = vadd.f32 %v4729_v57, %v4165_v27  ;;  %v21450_v51 = vld [vmem:[#allocation53_spill] sm:$0xff]  ;;  %v3623_v57 = vsel %vm569_vm1, %v3620_v13, %v3622_v30  ;;  %v6853_v58 = vadd.f32 %v6799_v24, %v6525_v53 }
 0x267   : > { %21447 = vst [vmem:[#allocation41_spill] sm:$0xff] %v19034_v33  ;;  %v6474_v46 = vmul.f32 %v17150_v56, %v6298_v42  ;;  %13888 = vmatmul.mubr.msk.f32.gmra.mrb[4].mxu0 %vm944_vm2, %v19034_v33  ;;  %v6802_v35 = vmul.f32 %v17153_v62, %v21450_v51  ;;  %v3629_v11 = vrot.slane %v15484_v16, 1 }
 0x268   : > { %15220 = vset.pattern.permute.xlu1 %v21226_v59  ;;  %13890 = vmatprep.mubr.msk.f32.mxu0 %vm944_vm2, %v19045_v22  ;;  %v19060_v12 = vadd.f32 %v5347_v60, %v4783_v4  ;;  %v15485_v60 = vld [vmem:[%s15658_s20 + $0xca] sm:$0xff]  ;;  %v15486_v4 = vld [vmem:[%s15658_s20 + $0xd2] sm:$0x3] }
 0x269   : > { %v6528_v42 = vadd.f32 %v6474_v46, %v6146_v3  ;;  %6080 = vperm.xlu1 %15220, %v19027_v0   ;;  %13641 = vmatmul.mubr.msk.f32.gmra.mrb[6].mxu1 %vm944_vm2, %v3618_v44  ;;  %v3624_v3 = vrot.slane %v15481_v9, 1  ;;  %v15482_v46 = vld [vmem:[%s15658_s20 + $0xb2] sm:$0xff]  ;;  %v15483_v44 = vld [vmem:[%s15658_s20 + $0xba] sm:$0x3]  ;;  %v3632_v24 = vrot.slane %v15486_v4, 1 }
 0x26a   : > { %13643 = vmatprep.mubr.msk.f32.mxu1 %vm944_vm2, %v3621_v49  ;;  %v3625_v1 = vrot.slane %v15482_v46, 1  ;;  %v3627_v51 = vrot.slane %v15483_v44, 1  ;;  %v3630_v49 = vrot.slane %v15485_v60, 1  ;;  %6105 = vperm.xlu0 %15230, %v19060_v12   ;;  %v2929_v46 = vadd.f32 %v2875_v41, %v18658_v52  ;;  %v19086_v44 = vld [vmem:[%s15658_s20 + $0x1aa] sm:$0x3] }
 0x26b   : > { %v6856_v27 = vadd.f32 %v6802_v35, %v6528_v42  ;;  %v6942_v40 = vpop.permute.xlu1 %6941  ;;  %v15487_v42 = vld [vmem:[%s15658_s20 + $0xda] sm:$0xff] }
 0x26c   : > { %v7127_v26 = vmul.f32 %v17171_v61, %v6942_v40  ;;  %v3626_v13 = vsel %vm569_vm1, %v3624_v3, %v3625_v1  ;;  %v3628_v2 = vsel %vm569_vm1, %v3625_v1, %v3627_v51  ;;  %v3634_v53 = vrot.slane %v15487_v42, 1  ;;  %v21453_v51 = vld [vmem:[#allocation33_spill] sm:$0xff]  ;;  %v19095_v52 = vld [vmem:[%s15658_s20 + $0x1c0] sm:$0x3] }
 0x26d   : > { %v7184_v30 = vadd.f32 %v7130_v6, %v6856_v27  ;;  %15221 = vset.pattern.permute.xlu1 %v21128_v23  ;;  %13644 = vmatmul.mubr.msk.f32.gmra.mrb[8].mxu1 %vm944_vm2, %v3623_v57  ;;  %v15488_v6 = vld [vmem:[%s15658_s20 + $0xe2] sm:$0xff]  ;;  %v3631_v57 = vsel %vm569_vm1, %v3629_v11, %v3630_v49  ;;  %v3633_v16 = vsel %vm569_vm1, %v3630_v49, %v3632_v24  ;;  %v15489_v11 = vld [vmem:[%s15658_s20 + $0xea] sm:$0x3]  ;;  %v15490_v24 = vld [vmem:[%s15658_s20 + $0xf2] sm:$0xff] }
 0x26e   : > { %v7181_v35 = vadd.f32 %v7127_v26, %v6853_v58  ;;  %6417 = vperm.xlu1 %15221, %v19027_v0   ;;  %13646 = vmatprep.mubr.msk.f32.mxu1 %vm944_vm2, %v3626_v13  ;;  %v3635_v27 = vrot.slane %v15488_v6, 1  ;;  %v21452_v58 = vld [vmem:[#allocation37_spill] sm:$0xff]  ;;  %v7747_v26 = vrot.slane %v21453_v51, 1  ;;  %v3637_v60 = vrot.slane %v15489_v11, 1 }
 0x26f   : > { %v7238_v40 = vmax.f32 %v7184_v30, 0.0  ;;  %15232 = vset.pattern.permute.xlu0 %v21137_v21  ;;  %v7746_v1 = vrot.slane %v21452_v58, 1  ;;  %v3493_v13 = vmul.f32 %v19086_v44, %v15679_v17  ;;  %v4112_v6 = vmul.f32 %v19095_v52, %v15682_v18 }
 0x270   : > { %v7235_v9 = vmax.f32 %v7181_v35, 0.0  ;;  %v19081_v3 = vpop.permute.xlu1 %5945  ;;  %6765 = vperm.xlu0 %15232, %v19060_v12   ;;  %v3636_v49 = vsel %vm569_vm1, %v3634_v53, %v3635_v27  ;;  %v3639_v35 = vrot.slane %v15490_v24, 1  ;;  %v21454_v17 = vrot.slane %v21445_v39, 1 }
 0x271   : > { %13647 = vmatmul.mubr.msk.f32.gmra.mrb[10].mxu1 %vm944_vm2, %v3628_v2  ;;  %v19104_v30 = vsel %vm7293_vm4, %v7238_v40, 0.0  ;;  %v15491_v2 = vld [vmem:[%s15658_s20 + $0xfa] sm:$0xff]  ;;  %v3547_v53 = vadd.f32 %v3493_v13, %v2929_v46  ;;  %v19124_v22 = vsel %vm569_vm1, %v7746_v1, %v7747_v26  ;;  %v3638_v18 = vsel %vm569_vm1, %v3635_v27, %v3637_v60  ;;  %v15494_v13 = vld [vmem:[%s15658_s20 + $0x1c2] sm:$0x3]  ;;  %v21458_v27 = vld [vmem:[#allocation44_spill] sm:$0xff] }
 0x272   : > { %v19099_v41 = vsel %vm7293_vm4, %v7235_v9, 0.0  ;;  %15222 = vset.pattern.permute.xlu1 %v21137_v21  ;;  %13649 = vmatprep.mubr.msk.f32.mxu1 %vm944_vm2, %v3631_v57  ;;  %v3640_v42 = vrot.slane %v15491_v2, 1  ;;  %v15492_v40 = vld [vmem:[%s15658_s20 + $0x1c1] sm:$0x3]  ;;  %21456 = vst [vmem:[#allocation48_spill] sm:$0xff] %v19124_v22  ;;  %v7749_v24 = vrot.slane %v19104_v30, 1 }
 0x273   : > { %v7744_v4 = vrot.slane %v19099_v41, 1  ;;  %6745 = vperm.xlu1 %15222, %v19027_v0   ;;  %v4730_v57 = vmul.f32 %v15492_v40, %v21383_v25  ;;  %v21457_v2 = vld [vmem:[#allocation32_spill] sm:$0xff]  ;;  %v15493_v25 = vld [vmem:[%s15658_s20 + $0x102] sm:$0x3]  ;;  %v4166_v1 = vadd.f32 %v4112_v6, %v3547_v53  ;;  %v21015_v60 = vrot.slane %v21458_v27, 1  ;;  %v19145_v6 = vpop.permute.xlu0 %5975 }
 0x274   : > { %v7751_v33 = vrot.slane %v21457_v2, 1  ;;  %15234 = vset.pattern.permute.xlu0 %v21226_v59  ;;  %v3642_v46 = vrot.slane %v15493_v25, 1  ;;  %v15495_v40 = vld [vmem:[%s15658_s20 + $0x10a] sm:$0xff]  ;;  %v19148_v25 = vsel %vm569_vm1, %v7747_v26, %v7749_v24  ;;  %v15497_v26 = vld [vmem:[%s15658_s20 + $0x11a] sm:$0x3] }
 0x275   : > { %v6310_v9 = vpop.permute.xlu1 %6309  ;;  %v19121_v11 = vsel %vm569_vm1, %v21454_v17, %v7744_v4  ;;  %13650 = vmatmul.mubr.msk.f32.gmra.mrb[12].mxu1 %vm944_vm2, %v3633_v16  ;;  %v5348_v4 = vmul.f32 %v15494_v13, %v21397_v38  ;;  %v3641_v16 = vsel %vm569_vm1, %v3639_v35, %v3640_v42  ;;  %v3644_v17 = vrot.slane %v15495_v40, 1  ;;  %21459 = vst [vmem:[#allocation34_spill] sm:$0xff] %v19148_v25 }
 0x276   : > { %21455 = vst [vmem:[#allocation35_spill] sm:$0xff] %v19121_v11  ;;  %13891 = vmatmul.mubr.msk.f32.gmra.mrb[6].mxu0 %vm944_vm2, %v19121_v11  ;;  %13652 = vmatprep.mubr.msk.f32.mxu1 %vm944_vm2, %v3636_v49  ;;  %v15496_v11 = vld [vmem:[%s15658_s20 + $0x112] sm:$0xff]  ;;  %v4784_v53 = vadd.f32 %v4730_v57, %v4166_v1  ;;  %v3643_v13 = vsel %vm569_vm1, %v3640_v42, %v3642_v46  ;;  %v3647_v24 = vrot.slane %v15497_v26, 1  ;;  %v15498_v1 = vld [vmem:[%s15658_s20 + $0x122] sm:$0xff] }
 0x277   : > { %15223 = vset.pattern.permute.xlu1 %v21226_v59  ;;  %13893 = vmatprep.mubr.msk.f32.mxu0 %vm944_vm2, %v19124_v22  ;;  %v3645_v49 = vrot.slane %v15496_v11, 1  ;;  %v19156_v11 = vsel %vm569_vm1, %v7751_v33, %v21015_v60  ;;  %v3649_v40 = vrot.slane %v15498_v1, 1  ;;  %v19172_v42 = vpop.permute.xlu0 %6020  ;;  %v15500_v46 = vld [vmem:[%s15658_s20 + $0x1b2] sm:$0xff] }
 0x278   : > { %6095 = vperm.xlu1 %15223, %v18594_v43   ;;  %21460 = vst [vmem:[#allocation49_spill] sm:$0xff] %v19156_v11  ;;  %v19160_v57 = vadd.f32 %v5348_v4, %v4784_v53  ;;  %v5346_v4 = vmul.f32 %v15500_v46, %v21397_v38  ;;  %v6149_v38 = vmul.f32 %v17147_v55, %v19081_v3  ;;  %v15504_v46 = vld [vmem:[%s15658_s20 + $0x14a] sm:$0x3] }
 0x279   : > { %13653 = vmatmul.mubr.msk.f32.gmra.mrb[14].mxu1 %vm944_vm2, %v3638_v18  ;;  %v3646_v18 = vsel %vm569_vm1, %v3644_v17, %v3645_v49  ;;  %v15501_v17 = vld [vmem:[%s15658_s20 + $0x132] sm:$0x3] }
 0x27a   : > { %v6638_v35 = vpop.permute.xlu1 %6637  ;;  %13894 = vmatmul.mubr.msk.f32.gmra.mrb[8].mxu0 %vm944_vm2, %v19148_v25  ;;  %13655 = vmatprep.mubr.msk.f32.mxu1 %vm944_vm2, %v3641_v16  ;;  %v15499_v25 = vld [vmem:[%s15658_s20 + $0x12a] sm:$0xff]  ;;  %v3648_v16 = vsel %vm569_vm1, %v3645_v49, %v3647_v24  ;;  %v3652_v53 = vrot.slane %v15501_v17, 1  ;;  %v15505_v17 = vld [vmem:[%s15658_s20 + $0x152] sm:$0xff] }
 0x27b   : > { %13896 = vmatprep.mubr.msk.f32.mxu0 %vm944_vm2, %v19156_v11  ;;  %v3650_v33 = vrot.slane %v15499_v25, 1  ;;  %6110 = vperm.xlu0 %15234, %v19160_v57   ;;  %v6477_v25 = vmul.f32 %v17150_v56, %v6310_v9  ;;  %v6805_v49 = vmul.f32 %v17153_v62, %v6638_v35 }
 0x27c   : > { %15225 = vset.pattern.permute.xlu1 %v21188_v29 }
 0x27d   : > { %7073 = vperm.xlu1 %15225, %v19027_v0   ;;  %13656 = vmatmul.mubr.msk.f32.gmra.mrb[16].mxu1 %vm944_vm2, %v3643_v13  ;;  %v3651_v1 = vsel %vm569_vm1, %v3649_v40, %v3650_v33  ;;  %v15502_v0 = vld [vmem:[%s15658_s20 + $0x13a] sm:$0xff]  ;;  %v15503_v13 = vld [vmem:[%s15658_s20 + $0x142] sm:$0xff]  ;;  %v3653_v9 = vsel %vm569_vm1, %v3650_v33, %v3652_v53  ;;  %v6531_v24 = vadd.f32 %v6477_v25, %v6149_v38  ;;  %v19199_v40 = vpop.permute.xlu0 %6065 }
 0x27e   : > { %13658 = vmatprep.mubr.msk.f32.mxu1 %vm944_vm2, %v3646_v18  ;;  %v3654_v60 = vrot.slane %v15502_v0, 1  ;;  %v3655_v11 = vrot.slane %v15503_v13, 1  ;;  %v19195_v18 = vadd.f32 %v5346_v4, %v19013_v28  ;;  %v15506_v0 = vld [vmem:[%s15658_s20 + $0x15a] sm:$0xff]  ;;  %v21461_v25 = vld [vmem:[#allocation3_spill] sm:$0xff] }
 0x27f   : > { %v19180_v26 = vpop.permute.xlu1 %5960  ;;  %15237 = vset.pattern.permute.xlu0 %v21188_v29  ;;  %v6859_v13 = vadd.f32 %v6805_v49, %v6531_v24  ;;  %v21018_v38 = vrot.slane %v21461_v25, 1 }
 0x280   : > { %7097 = vperm.xlu0 %15237, %v19160_v57   ;;  %v3656_v3 = vsel %vm569_vm1, %v3654_v60, %v3655_v11  ;;  %v15507_v60 = vld [vmem:[%s15658_s20 + $0x162] sm:$0x3] }
 0x281   : > { %15226 = vset.pattern.permute.xlu1 %v21137_v21  ;;  %13659 = vmatmul.mubr.msk.f32.gmra.mrb[18].mxu1 %vm944_vm2, %v3648_v16  ;;  %v3657_v16 = vrot.slane %v15504_v46, 1  ;;  %v3662_v4 = vrot.slane %v15507_v60, 1  ;;  %v15510_v60 = vld [vmem:[%s15658_s20 + $0x17a] sm:$0x3] }
 0x282   : > { %6757 = vperm.xlu1 %15226, %v18594_v43   ;;  %13661 = vmatprep.mubr.msk.f32.mxu1 %vm944_vm2, %v3651_v1  ;;  %v3659_v43 = vrot.slane %v15505_v17, 1  ;;  %v3660_v1 = vrot.slane %v15506_v0, 1  ;;  %v15508_v17 = vld [vmem:[%s15658_s20 + $0x16a] sm:$0xff]  ;;  %v15509_v0 = vld [vmem:[%s15658_s20 + $0x172] sm:$0xff] }
 0x283   : > { %v3658_v28 = vsel %vm569_vm1, %v3655_v11, %v3657_v16 }
 0x284   : > { %v6966_v35 = vpop.permute.xlu1 %6965  ;;  %v3661_v49 = vsel %vm569_vm1, %v3659_v43, %v3660_v1  ;;  %v3663_v11 = vsel %vm569_vm1, %v3660_v1, %v3662_v4  ;;  %v3664_v43 = vrot.slane %v15508_v17, 1  ;;  %v6480_v1 = vmul.f32 %v17150_v56, %v18731_v63  ;;  %v15512_v17 = vld [vmem:[%s15658_s20 + $0x18a] sm:$0xff] }
 0x285   : > { %v7133_v33 = vmul.f32 %v17171_v61, %v6966_v35  ;;  %13662 = vmatmul.mubr.msk.f32.gmra.mrb[20].mxu1 %vm944_vm2, %v3653_v9  ;;  %v21462_v9 = vld [vmem:[#allocation63_spill] sm:$0xff]  ;;  %v3667_v4 = vrot.slane %v15510_v60, 1  ;;  %v3670_v63 = vrot.slane %v15512_v17, 1  ;;  %v3675_v17 = vrot.slane %v18997_v45, 1 }
 0x286   : > { %15228 = vset.pattern.permute.xlu1 %v21226_v59  ;;  %13664 = vmatprep.mubr.msk.f32.mxu1 %vm944_vm2, %v3656_v3  ;;  %v7756_v46 = vrot.slane %v21462_v9, 1  ;;  %v6662_v59 = vpop.permute.xlu0 %6661 }
 0x287   : > { %v7187_v53 = vadd.f32 %v7133_v33, %v6859_v13  ;;  %6100 = vperm.xlu1 %15228, %v19195_v18   ;;  %v3665_v13 = vrot.slane %v15509_v0, 1  ;;  %v6152_v0 = vmul.f32 %v17147_v55, %v19180_v26 }
 0x288   : > { %v19224_v16 = vsel %vm569_vm1, %v7756_v46, %v21018_v38 }
 0x289   : > { %v7241_v24 = vmax.f32 %v7187_v53, 0.0  ;;  %v6650_v35 = vpop.permute.xlu1 %6649  ;;  %13665 = vmatmul.mubr.msk.f32.gmra.mrb[22].mxu1 %vm944_vm2, %v3658_v28  ;;  %21463 = vst [vmem:[#allocation42_spill] sm:$0xff] %v19224_v16  ;;  %v6155_v28 = vmul.f32 %v17147_v55, %v19145_v6  ;;  %v6811_v53 = vmul.f32 %v17153_v62, %v6662_v59  ;;  %v21464_v6 = vrot.slane %v21458_v27, 1 }
 0x28a   : > { %13667 = vmatprep.mubr.msk.f32.mxu1 %vm944_vm2, %v3661_v49  ;;  %v3666_v49 = vsel %vm569_vm1, %v3664_v43, %v3665_v13  ;;  %v3668_v59 = vsel %vm569_vm1, %v3665_v13, %v3667_v4  ;;  %v343_v43 = vld [vmem:[%s20796_s3 + $0x18] sm:$0xf]  ;;  %v19264_v13 = vld [vmem:[%s20797_s4 + $0xc] sm:$0xf]  ;;  %v6808_v4 = vmul.f32 %v17153_v62, %v6650_v35 }
 0x28b   : > { %v19219_v3 = vsel %vm7293_vm4, %v7241_v24, 0.0  ;;  %15229 = vset.pattern.permute.xlu1 %v21128_v23  ;;  %v15511_v24 = vld [vmem:[%s15658_s20 + $0x182] sm:$0xff]  ;;  %13679 = vmatprep.subr.msk.mxu1 %vm1009_vm0, %v343_v43 }
 0x28c   : > { %v7754_v33 = vrot.slane %v19219_v3, 1  ;;  %6433 = vperm.xlu1 %15229, %v19195_v18   ;;  %v3669_v46 = vrot.slane %v15511_v24, 1  ;;  %13979 = vmatprep.subr.msk.mxu0 %vm1009_vm0, %v19264_v13 }
 0x28d   : > { %13668 = vmatmul.mubr.msk.f32.gmra.mrb[24].mxu1 %vm944_vm2, %v3663_v11  ;;  %v15513_v11 = vld [vmem:[%s15658_s20 + $0x192] sm:$0x3] }
 0x28e   : > { %v6334_v38 = vpop.permute.xlu1 %6333  ;;  %v19246_v22 = vsel %vm569_vm1, %v21464_v6, %v7754_v33  ;;  %13670 = vmatprep.mubr.msk.f32.mxu1 %vm944_vm2, %v3666_v49  ;;  %v3672_v60 = vrot.slane %v15513_v11, 1  ;;  %v3671_v26 = vsel %vm569_vm1, %v3669_v46, %v3670_v63  ;;  %v3674_v33 = vrot.slane %v18965_v31, 1  ;;  %v21466_v31 = vld [vmem:[#allocation40_spill] sm:$0xff]  ;;  %13680 = vmatpush3.msk.msra.mxu1 %vm1009_vm0, %v343_v43  ;;  %v15514_v11 = vld [vmem:[%s15658_s20 + $0x48] sm:$0xff] }
 0x28f   : > { %21465 = vst [vmem:[#allocation20_spill] sm:$0xff] %v19246_v22  ;;  %v6483_v24 = vmul.f32 %v17150_v56, %v6334_v38  ;;  %13897 = vmatmul.mubr.msk.f32.gmra.mrb[10].mxu0 %vm944_vm2, %v19246_v22  ;;  %v7139_v45 = vmul.f32 %v17171_v61, %v21466_v31  ;;  %v6534_v49 = vadd.f32 %v6480_v1, %v6152_v0  ;;  %v3677_v46 = vrot.slane %v19086_v44, 1  ;;  %v15516_v0 = vld [vmem:[%s15658_s20 + $0x58] sm:$0x3] }
 0x290   : > { %13899 = vmatprep.mubr.msk.f32.mxu0 %vm944_vm2, %v19224_v16  ;;  %6437 = vperm.xlu1 %15229, %v19060_v12   ;;  %v3673_v35 = vsel %vm569_vm1, %v3670_v63, %v3672_v60  ;;  %v15515_v16 = vld [vmem:[%s15658_s20 + $0x50] sm:$0xff]  ;;  %v4221_v60 = vrot.slane %v15516_v0, 1 }
 0x291   : > { %v6537_v38 = vadd.f32 %v6483_v24, %v6155_v28  ;;  %13671 = vmatmul.mubr.msk.f32.gmra.mrb[26].mxu1 %vm944_vm2, %v3668_v59  ;;  %v3676_v59 = vsel %vm569_vm1, %v3674_v33, %v3675_v17  ;;  %v4218_v24 = vrot.slane %v15514_v11, 1  ;;  %v4219_v22 = vrot.slane %v15515_v16, 1 }
 0x292   : > { %13673 = vmatprep.mubr.msk.f32.mxu1 %vm944_vm2, %v3671_v26  ;;  %v6862_v31 = vadd.f32 %v6808_v4, %v6534_v49  ;;  %v15517_v4 = vld [vmem:[%s15658_s20 + $0x60] sm:$0xff] }
 0x293   : > { %v6865_v6 = vadd.f32 %v6811_v53, %v6537_v38  ;;  %v6978_v28 = vpop.permute.xlu1 %6977  ;;  %v3678_v53 = vsel %vm569_vm1, %v3675_v17, %v3677_v46  ;;  %v4220_v43 = vsel %vm569_vm1, %v4218_v24, %v4219_v22  ;;  %v4223_v38 = vrot.slane %v15517_v4, 1  ;;  %v21468_v24 = vld [vmem:[#allocation18_spill] sm:$0xff] }
 0x294   : > { %v7136_v1 = vmul.f32 %v17171_v61, %v6978_v28  ;;  %15231 = vset.pattern.permute.xlu1 %v21137_v21  ;;  %v4222_v28 = vsel %vm569_vm1, %v4219_v22, %v4221_v60  ;;  %v15520_v22 = vld [vmem:[%s15658_s20 + $0x78] sm:$0xff]  ;;  %v15521_v60 = vld [vmem:[%s15658_s20 + $0x80] sm:$0xff] }
 0x295   : > { %v7193_v63 = vadd.f32 %v7139_v45, %v6865_v6  ;;  %6761 = vperm.xlu1 %15231, %v19195_v18   ;;  %13674 = vmatmul.mubr.msk.f32.gmra.mrb[28].mxu1 %vm944_vm2, %v3673_v35  ;;  %v15518_v45 = vld [vmem:[%s15658_s20 + $0x68] sm:$0xff]  ;;  %v21467_v6 = vld [vmem:[#allocation65_spill] sm:$0xff]  ;;  %v4228_v0 = vrot.slane %v15520_v22, 1 }
 0x296   : > { %v7190_v44 = vadd.f32 %v7136_v1, %v6862_v31  ;;  %13676 = vmatprep.mubr.msk.f32.mxu1 %vm944_vm2, %v3676_v59  ;;  %v4224_v49 = vrot.slane %v15518_v45, 1  ;;  %v7762_v35 = vrot.slane %v21467_v6, 1  ;;  %v15519_v59 = vld [vmem:[%s15658_s20 + $0x70] sm:$0x3]  ;;  %v7761_v31 = vrot.slane %v21468_v24, 1 }
 0x297   : > { %v7247_v16 = vmax.f32 %v7193_v63, 0.0 }
 0x298   : > { %v7244_v26 = vmax.f32 %v7190_v44, 0.0  ;;  %v19290_v33 = vpop.permute.xlu1 %5990  ;;  %v4225_v1 = vsel %vm569_vm1, %v4223_v38, %v4224_v49  ;;  %v21469_v44 = vrot.slane %v21461_v25, 1  ;;  %v15522_v38 = vld [vmem:[%s15658_s20 + $0x88] sm:$0x3] }
 0x299   : > { %15233 = vset.pattern.permute.xlu1 %v21188_v29  ;;  %13677 = vmatmul.mubr.msk.f32.gmra.mrb[30].mxu1 %vm944_vm2, %v3678_v53  ;;  %v19299_v17 = vsel %vm7293_vm4, %v7247_v16, 0.0  ;;  %v4226_v29 = vrot.slane %v15519_v59, 1  ;;  %v4229_v16 = vrot.slane %v15521_v60, 1  ;;  %v4231_v45 = vrot.slane %v15522_v38, 1  ;;  %v15526_v60 = vld [vmem:[%s15658_s20 + $0xa8] sm:$0xff] }
 0x29a   : > { %v19303_v46 = vsel %vm7293_vm4, %v7244_v26, 0.0  ;;  %7089 = vperm.xlu1 %15233, %v19195_v18   ;;  %13681 = vmatprep.mubr.msk.f32.mxu1 %vm944_vm2, %v4220_v43  ;;  %v7764_v18 = vrot.slane %v19299_v17, 1  ;;  %v19324_v43 = vsel %vm569_vm1, %v7761_v31, %v7762_v35  ;;  %v7766_v26 = vrot.slane %v18085_v47, 1 }
 0x29b   : > { %v7759_v11 = vrot.slane %v19303_v46, 1  ;;  %21471 = vst [vmem:[#allocation9_spill] sm:$0xff] %v19324_v43  ;;  %v4227_v4 = vsel %vm569_vm1, %v4224_v49, %v4226_v29  ;;  %v4230_v49 = vsel %vm569_vm1, %v4228_v0, %v4229_v16  ;;  %v4232_v22 = vsel %vm569_vm1, %v4229_v16, %v4231_v45  ;;  %v15528_v16 = vld [vmem:[%s15658_s20 + $0xb8] sm:$0x3] }
 0x29c   : > { %v4241_v45 = vrot.slane %v15528_v16, 1 }
 0x29d   : > { %v6346_v63 = vpop.permute.xlu1 %6345  ;;  %v19315_v53 = vsel %vm569_vm1, %v21469_v44, %v7759_v11  ;;  %13682 = vmatmul.mubr.msk.f32.vlgmr.msra.gmra.mrb[0].mxu1 %vm944_vm2, %v4222_v28  ;;  %v15523_v28 = vld [vmem:[%s15658_s20 + $0x90] sm:$0xff]  ;;  %v15524_v11 = vld [vmem:[%s15658_s20 + $0x98] sm:$0xff]  ;;  %v21025_v44 = vrot.slane %v18075_v19, 1 }
 0x29e   : > { %21470 = vst [vmem:[#allocation29_spill] sm:$0xff] %v19315_v53  ;;  %13900 = vmatmul.mubr.msk.f32.gmra.mrb[12].mxu0 %vm944_vm2, %v19315_v53  ;;  %7093 = vperm.xlu1 %15233, %v19060_v12   ;;  %v4233_v59 = vrot.slane %v15523_v28, 1  ;;  %v4234_v31 = vrot.slane %v15524_v11, 1  ;;  %v19337_v12 = vsel %vm569_vm1, %v7762_v35, %v7764_v18  ;;  %v15525_v35 = vld [vmem:[%s15658_s20 + $0xa0] sm:$0x3]  ;;  %v6486_v28 = vmul.f32 %v17150_v56, %v6346_v63  ;;  %v6698_v63 = vpop.permute.xlu0 %6697  ;;  %v21485_v53 = vld [vmem:[#allocation17_spill] sm:$0xff] }
 0x29f   : > { %13902 = vmatprep.mubr.msk.f32.mxu0 %vm944_vm2, %v19324_v43  ;;  %13684 = vmatprep.mubr.msk.f32.mxu1 %vm944_vm2, %v4225_v1  ;;  %21472 = vst [vmem:[#allocation11_spill] sm:$0xff] %v19337_v12  ;;  %v19346_v1 = vsel %vm569_vm1, %v7766_v26, %v21025_v44  ;;  %v4236_v18 = vrot.slane %v15525_v35, 1  ;;  %v15527_v26 = vld [vmem:[%s15658_s20 + $0xb0] sm:$0xff]  ;;  %v15529_v35 = vld [vmem:[%s15658_s20 + $0xc0] sm:$0xff]  ;;  %v15542_v43 = vld [vmem:[%s15658_s20 + $0x128] sm:$0xff] }
 0x2a0   : > { %21473 = vst [vmem:[#allocation68_spill] sm:$0xff] %v19346_v1  ;;  %v4235_v0 = vsel %vm569_vm1, %v4233_v59, %v4234_v31  ;;  %v4239_v38 = vrot.slane %v15527_v26, 1 }
 0x2a1   : > { %13685 = vmatmul.mubr.msk.f32.gmra.mrb[2].mxu1 %vm944_vm2, %v4227_v4  ;;  %v4238_v4 = vrot.slane %v15526_v60, 1  ;;  %v4243_v60 = vrot.slane %v15529_v35, 1 }
 0x2a2   : > { %v6674_v29 = vpop.permute.xlu1 %6673  ;;  %13903 = vmatmul.mubr.msk.f32.gmra.mrb[14].mxu0 %vm944_vm2, %v19337_v12  ;;  %15235 = vset.pattern.permute.xlu1 %v21128_v23  ;;  %v4237_v23 = vsel %vm569_vm1, %v4234_v31, %v4236_v18  ;;  %v6158_v31 = vmul.f32 %v17147_v55, %v19290_v33  ;;  %v15533_v33 = vld [vmem:[%s15658_s20 + $0xe0] sm:$0xff] }
 0x2a3   : > { %13905 = vmatprep.mubr.msk.f32.mxu0 %vm944_vm2, %v19346_v1  ;;  %6441 = vperm.xlu1 %15235, %v19160_v57   ;;  %v4240_v59 = vsel %vm569_vm1, %v4238_v4, %v4239_v38  ;;  %v6814_v18 = vmul.f32 %v17153_v62, %v6674_v29 }
 0x2a4   : > { %13687 = vmatprep.mubr.msk.f32.mxu1 %vm944_vm2, %v4230_v49  ;;  %v15530_v49 = vld [vmem:[%s15658_s20 + $0xc8] sm:$0xff]  ;;  %v6540_v26 = vadd.f32 %v6486_v28, %v6158_v31  ;;  %v15535_v31 = vld [vmem:[%s15658_s20 + $0xf0] sm:$0xff] }
 0x2a5   : > { %13688 = vmatmul.mubr.msk.f32.gmra.mrb[4].mxu1 %vm944_vm2, %v4232_v22  ;;  %v4244_v22 = vrot.slane %v15530_v49, 1  ;;  %v4249_v49 = vrot.slane %v15533_v33, 1 }
 0x2a6   : > { %13690 = vmatprep.mubr.msk.f32.mxu1 %vm944_vm2, %v4235_v0  ;;  %v15531_v0 = vld [vmem:[%s15658_s20 + $0xd0] sm:$0x3]  ;;  %v6868_v44 = vadd.f32 %v6814_v18, %v6540_v26  ;;  %v19386_v26 = vpop.permute.xlu0 %6733 }
 0x2a7   : > { %v6006_v11 = vpop.permute.xlu1 %6005  ;;  %15236 = vset.pattern.permute.xlu1 %v21137_v21  ;;  %v4242_v21 = vsel %vm569_vm1, %v4239_v38, %v4241_v45  ;;  %v4246_v4 = vrot.slane %v15531_v0, 1  ;;  %v4245_v16 = vsel %vm569_vm1, %v4243_v60, %v4244_v22  ;;  %v15534_v45 = vld [vmem:[%s15658_s20 + $0xe8] sm:$0x3]  ;;  %v4253_v0 = vrot.slane %v15535_v31, 1 }
 0x2a8   : > { %6769 = vperm.xlu1 %15236, %v19160_v57   ;;  %v15532_v57 = vld [vmem:[%s15658_s20 + $0xd8] sm:$0xff]  ;;  %v4251_v28 = vrot.slane %v15534_v45, 1 }
 0x2a9   : > { %13691 = vmatmul.mubr.msk.f32.gmra.mrb[6].mxu1 %vm944_vm2, %v4237_v23  ;;  %v4248_v35 = vrot.slane %v15532_v57, 1  ;;  %v4247_v38 = vsel %vm569_vm1, %v4244_v22, %v4246_v4  ;;  %v15536_v57 = vld [vmem:[%s15658_s20 + $0xf8] sm:$0xff] }
 0x2aa   : > { %13693 = vmatprep.mubr.msk.f32.mxu1 %vm944_vm2, %v4240_v59  ;;  %v4254_v18 = vrot.slane %v15536_v57, 1  ;;  %v21474_v22 = vld [vmem:[#allocation69_spill] sm:$0xff]  ;;  %v15539_v57 = vld [vmem:[%s15658_s20 + $0x110] sm:$0xff]  ;;  %v7026_v1 = vpop.permute.xlu0 %7025 }
 0x2ab   : > { %v4250_v60 = vsel %vm569_vm1, %v4248_v35, %v4249_v49  ;;  %v7771_v4 = vrot.slane %v21474_v22, 1  ;;  %v15537_v35 = vld [vmem:[%s15658_s20 + $0x100] sm:$0x3] }
 0x2ac   : > { %v7002_v29 = vpop.permute.xlu1 %7001  ;;  %v4255_v45 = vsel %vm569_vm1, %v4253_v0, %v4254_v18  ;;  %v6161_v0 = vmul.f32 %v17147_v55, %v6006_v11 }
 0x2ad   : > { %v7142_v23 = vmul.f32 %v17171_v61, %v7002_v29  ;;  %13694 = vmatmul.mubr.msk.f32.gmra.mrb[8].mxu1 %vm944_vm2, %v4242_v21  ;;  %v4256_v29 = vrot.slane %v15537_v35, 1 }
 0x2ae   : > { %13696 = vmatprep.mubr.msk.f32.mxu1 %vm944_vm2, %v4245_v16  ;;  %v4259_v16 = vrot.slane %v15539_v57, 1 }
 0x2af   : > { %v7196_v59 = vadd.f32 %v7142_v23, %v6868_v44  ;;  %v4252_v44 = vsel %vm569_vm1, %v4249_v49, %v4251_v28  ;;  %v6820_v49 = vmul.f32 %v17153_v62, %v6698_v63  ;;  %v21475_v28 = vrot.slane %v18235_v48, 1  ;;  %v15540_v63 = vld [vmem:[%s15658_s20 + $0x118] sm:$0x3] }
 0x2b0   : > { %v4261_v12 = vrot.slane %v15540_v63, 1 }
 0x2b1   : > { %v7250_v33 = vmax.f32 %v7196_v59, 0.0  ;;  %v6686_v21 = vpop.permute.xlu1 %6685  ;;  %13697 = vmatmul.mubr.msk.f32.gmra.mrb[10].mxu1 %vm944_vm2, %v4247_v38  ;;  %v15538_v59 = vld [vmem:[%s15658_s20 + $0x108] sm:$0xff] }
 0x2b2   : > { %13699 = vmatprep.mubr.msk.f32.mxu1 %vm944_vm2, %v4250_v60  ;;  %v4258_v31 = vrot.slane %v15538_v59, 1  ;;  %v6164_v60 = vmul.f32 %v17147_v55, %v19172_v42  ;;  %v21477_v59 = vrot.slane %v18075_v19, 1  ;;  %v4257_v42 = vsel %vm569_vm1, %v4254_v18, %v4256_v29 }
 0x2b3   : > { %v19396_v23 = vsel %vm7293_vm4, %v7250_v33, 0.0  ;;  %v19408_v33 = vsel %vm569_vm1, %v7771_v4, %v21475_v28  ;;  %v6817_v18 = vmul.f32 %v17153_v62, %v6686_v21 }
 0x2b4   : > { %v7769_v38 = vrot.slane %v19396_v23, 1  ;;  %21476 = vst [vmem:[#allocation7_spill] sm:$0xff] %v19408_v33  ;;  %v4260_v11 = vsel %vm569_vm1, %v4258_v31, %v4259_v16 }
 0x2b5   : > { %13700 = vmatmul.mubr.msk.f32.gmra.mrb[12].mxu1 %vm944_vm2, %v4252_v44  ;;  %v15541_v44 = vld [vmem:[%s15658_s20 + $0x120] sm:$0xff] }
 0x2b6   : > { %v6370_v35 = vpop.permute.xlu1 %6369  ;;  %v19415_v57 = vsel %vm569_vm1, %v21477_v59, %v7769_v38  ;;  %13702 = vmatprep.mubr.msk.f32.mxu1 %vm944_vm2, %v4255_v45  ;;  %v4263_v28 = vrot.slane %v15541_v44, 1  ;;  %v4264_v38 = vrot.slane %v15542_v43, 1  ;;  %v6489_v45 = vmul.f32 %v17150_v56, %v18749_v50  ;;  %v15543_v43 = vld [vmem:[%s15658_s20 + $0x130] sm:$0x3] }
 0x2b7   : > { %21478 = vst [vmem:[#allocation71_spill] sm:$0xff] %v19415_v57  ;;  %v6492_v4 = vmul.f32 %v17150_v56, %v6370_v35  ;;  %13906 = vmatmul.mubr.msk.f32.gmra.mrb[16].mxu0 %vm944_vm2, %v19415_v57  ;;  %v7148_v35 = vmul.f32 %v17171_v61, %v7026_v1  ;;  %v4262_v59 = vsel %vm569_vm1, %v4259_v16, %v4261_v12  ;;  %v4266_v63 = vrot.slane %v15543_v43, 1  ;;  %v15544_v57 = vld [vmem:[%s15658_s20 + $0x138] sm:$0xff] }
 0x2b8   : > { %13908 = vmatprep.mubr.msk.f32.mxu0 %vm944_vm2, %v19408_v33  ;;  %v6543_v31 = vadd.f32 %v6489_v45, %v6161_v0  ;;  %v4265_v21 = vsel %vm569_vm1, %v4263_v28, %v4264_v38  ;;  %v4268_v33 = vrot.slane %v15544_v57, 1  ;;  %v15547_v45 = vld [vmem:[%s15658_s20 + $0x150] sm:$0xff] }
 0x2b9   : > { %v6546_v29 = vadd.f32 %v6492_v4, %v6164_v60  ;;  %13703 = vmatmul.mubr.msk.f32.gmra.mrb[14].mxu1 %vm944_vm2, %v4257_v42  ;;  %v15545_v60 = vld [vmem:[%s15658_s20 + $0x140] sm:$0xff]  ;;  %v4267_v16 = vsel %vm569_vm1, %v4264_v38, %v4266_v63 }
 0x2ba   : > { %13705 = vmatprep.mubr.msk.f32.mxu1 %vm944_vm2, %v4260_v11  ;;  %v4269_v1 = vrot.slane %v15545_v60, 1  ;;  %v6871_v4 = vadd.f32 %v6817_v18, %v6543_v31  ;;  %v15548_v18 = vld [vmem:[%s15658_s20 + $0x158] sm:$0xff] }
 0x2bb   : > { %v6874_v50 = vadd.f32 %v6820_v49, %v6546_v29  ;;  %v7014_v44 = vpop.permute.xlu1 %7013  ;;  %v15546_v49 = vld [vmem:[%s15658_s20 + $0x148] sm:$0x3]  ;;  %v4273_v29 = vrot.slane %v15547_v45, 1  ;;  %v4274_v31 = vrot.slane %v15548_v18, 1  ;;  %v21484_v18 = vld [vmem:[#allocation38_spill] sm:$0xff] }
 0x2bc   : > { %v7145_v0 = vmul.f32 %v17171_v61, %v7014_v44  ;;  %v4271_v11 = vrot.slane %v15546_v49, 1  ;;  %v4270_v57 = vsel %vm569_vm1, %v4268_v33, %v4269_v1  ;;  %v15549_v44 = vld [vmem:[%s15658_s20 + $0x160] sm:$0x3]  ;;  %v21480_v49 = vld [vmem:[#allocation56_spill] sm:$0xff] }
 0x2bd   : > { %v7202_v42 = vadd.f32 %v7148_v35, %v6874_v50  ;;  %13706 = vmatmul.mubr.msk.f32.gmra.mrb[16].mxu1 %vm944_vm2, %v4262_v59  ;;  %v21479_v59 = vld [vmem:[#allocation28_spill] sm:$0xff] }
 0x2be   : > { %v7199_v12 = vadd.f32 %v7145_v0, %v6871_v4  ;;  %13708 = vmatprep.mubr.msk.f32.mxu1 %vm944_vm2, %v4265_v21  ;;  %v7777_v50 = vrot.slane %v21479_v59, 1  ;;  %v4272_v33 = vsel %vm569_vm1, %v4269_v1, %v4271_v11  ;;  %v4276_v21 = vrot.slane %v15549_v44, 1  ;;  %v15550_v0 = vld [vmem:[%s15658_s20 + $0x168] sm:$0xff] }
 0x2bf   : > { %v7256_v28 = vmax.f32 %v7202_v42, 0.0  ;;  %v4275_v4 = vsel %vm569_vm1, %v4273_v29, %v4274_v31  ;;  %v4278_v42 = vrot.slane %v15550_v0, 1  ;;  %v21481_v1 = vrot.slane %v18235_v48, 1  ;;  %v15552_v0 = vld [vmem:[%s15658_s20 + $0x178] sm:$0x3] }
 0x2c0   : > { %v7253_v35 = vmax.f32 %v7199_v12, 0.0  ;;  %v6036_v43 = vpop.permute.xlu1 %6035  ;;  %v15551_v12 = vld [vmem:[%s15658_s20 + $0x170] sm:$0xff]  ;;  %v4277_v44 = vsel %vm569_vm1, %v4274_v31, %v4276_v21 }
 0x2c1   : > { %13709 = vmatmul.mubr.msk.f32.gmra.mrb[18].mxu1 %vm944_vm2, %v4267_v16  ;;  %v19451_v38 = vsel %vm7293_vm4, %v7256_v28, 0.0  ;;  %v4279_v16 = vrot.slane %v15551_v12, 1  ;;  %v7776_v28 = vrot.slane %v21480_v49, 1  ;;  %v4281_v12 = vrot.slane %v15552_v0, 1 }
 0x2c2   : > { %v19455_v63 = vsel %vm7293_vm4, %v7253_v35, 0.0  ;;  %13711 = vmatprep.mubr.msk.f32.mxu1 %vm944_vm2, %v4270_v57  ;;  %v7779_v45 = vrot.slane %v19451_v38, 1  ;;  %v7781_v35 = vrot.slane %v21484_v18, 1  ;;  %v7782_v18 = vrot.slane %v21485_v53, 1 }
 0x2c3   : > { %v7774_v60 = vrot.slane %v19455_v63, 1  ;;  %v19475_v29 = vsel %vm569_vm1, %v7776_v28, %v7777_v50 }
 0x2c4   : > { %21483 = vst [vmem:[#allocation55_spill] sm:$0xff] %v19475_v29  ;;  %v19494_v21 = vsel %vm569_vm1, %v7781_v35, %v7782_v18 }
 0x2c5   : > { %v6382_v57 = vpop.permute.xlu1 %6381  ;;  %v19469_v11 = vsel %vm569_vm1, %v21481_v1, %v7774_v60  ;;  %13712 = vmatmul.mubr.msk.f32.gmra.mrb[20].mxu1 %vm944_vm2, %v4272_v33  ;;  %v4280_v33 = vsel %vm569_vm1, %v4278_v42, %v4279_v16  ;;  %v15553_v60 = vld [vmem:[%s15658_s20 + $0x180] sm:$0xff]  ;;  %21487 = vst [vmem:[#allocation5_spill] sm:$0xff] %v19494_v21  ;;  %v4282_v42 = vsel %vm569_vm1, %v4279_v16, %v4281_v12 }
 0x2c6   : > { %21482 = vst [vmem:[#allocation12_spill] sm:$0xff] %v19469_v11  ;;  %13909 = vmatmul.mubr.msk.f32.gmra.mrb[18].mxu0 %vm944_vm2, %v19469_v11  ;;  %13714 = vmatprep.mubr.msk.f32.mxu1 %vm944_vm2, %v4275_v4  ;;  %v4283_v1 = vrot.slane %v15553_v60, 1  ;;  %v15554_v11 = vld [vmem:[%s15658_s20 + $0x188] sm:$0xff]  ;;  %v19488_v4 = vsel %vm569_vm1, %v7777_v50, %v7779_v45  ;;  %v15556_v45 = vld [vmem:[%s15658_s20 + $0x198] sm:$0xff]  ;;  %v15557_v60 = vld [vmem:[%s15658_s20 + $0x1a0] sm:$0xff]  ;;  %v6495_v16 = vmul.f32 %v17150_v56, %v6382_v57 }
 0x2c7   : > { %13911 = vmatprep.mubr.msk.f32.mxu0 %vm944_vm2, %v19475_v29  ;;  %v4284_v28 = vrot.slane %v15554_v11, 1  ;;  %21486 = vst [vmem:[#allocation25_spill] sm:$0xff] %v19488_v4  ;;  %v15555_v11 = vld [vmem:[%s15658_s20 + $0x190] sm:$0x3]  ;;  %v4289_v29 = vrot.slane %v15557_v60, 1 }
 0x2c8   : > { %v4286_v0 = vrot.slane %v15555_v11, 1 }
 0x2c9   : > { %13715 = vmatmul.mubr.msk.f32.gmra.mrb[22].mxu1 %vm944_vm2, %v4277_v44  ;;  %v4285_v50 = vsel %vm569_vm1, %v4283_v1, %v4284_v28  ;;  %v4288_v44 = vrot.slane %v15556_v45, 1  ;;  %v4294_v1 = vrot.slane %v19000_v5, 1  ;;  %v6167_v45 = vmul.f32 %v17147_v55, %v6036_v43 }
 0x2ca   : > { %v6710_v31 = vpop.permute.xlu1 %6709  ;;  %13912 = vmatmul.mubr.msk.f32.gmra.mrb[20].mxu0 %vm944_vm2, %v19488_v4  ;;  %13717 = vmatprep.mubr.msk.f32.mxu1 %vm944_vm2, %v4280_v33  ;;  %v4287_v35 = vsel %vm569_vm1, %v4284_v28, %v4286_v0  ;;  %v15558_v33 = vld [vmem:[%s15658_s20 + $0x1a8] sm:$0x3] }
 0x2cb   : > { %13914 = vmatprep.mubr.msk.f32.mxu0 %vm944_vm2, %v19494_v21  ;;  %v4291_v4 = vrot.slane %v15558_v33, 1  ;;  %v4290_v11 = vsel %vm569_vm1, %v4288_v44, %v4289_v29  ;;  %v4293_v21 = vrot.slane %v18968_v8, 1  ;;  %v6823_v60 = vmul.f32 %v17153_v62, %v6710_v31 }
 0x2cc   : > { %v6549_v57 = vadd.f32 %v6495_v16, %v6167_v45  ;;  %v6173_v45 = vmul.f32 %v17147_v55, %v19199_v40 }
 0x2cd   : > { %13718 = vmatmul.mubr.msk.f32.gmra.mrb[24].mxu1 %vm944_vm2, %v4282_v42  ;;  %v4292_v28 = vsel %vm569_vm1, %v4289_v29, %v4291_v4  ;;  %v4296_v42 = vrot.slane %v19095_v52, 1  ;;  %v4295_v0 = vsel %vm569_vm1, %v4293_v21, %v4294_v1  ;;  %v7787_v29 = vrot.slane %v18585_v34, 1 }
 0x2ce   : > { %13720 = vmatprep.mubr.msk.f32.mxu1 %vm944_vm2, %v4285_v50  ;;  %v6877_v44 = vadd.f32 %v6823_v60, %v6549_v57  ;;  %v7786_v21 = vrot.slane %v18524_v36, 1  ;;  %v6829_v60 = vmul.f32 %v17153_v62, %v19386_v26 }
 0x2cf   : > { %v6051_v12 = vpop.permute.xlu1 %6050  ;;  %v4297_v5 = vsel %vm569_vm1, %v4294_v1, %v4296_v42  ;;  %v7062_v1 = vpop.permute.xlu0 %7061 }
 0x2d0   : > { %v6170_v33 = vmul.f32 %v17147_v55, %v6051_v12  ;;  %v19543_v42 = vsel %vm569_vm1, %v7786_v21, %v7787_v29  ;;  %v6498_v12 = vmul.f32 %v17150_v56, %v18775_v20  ;;  %v7157_v57 = vmul.f32 %v17171_v61, %v7062_v1 }
 0x2d1   : > { %13721 = vmatmul.mubr.msk.f32.gmra.mrb[26].mxu1 %vm944_vm2, %v4287_v35  ;;  %v7791_v1 = vrot.slane %v18604_v10, 1 }
 0x2d2   : > { %13723 = vmatprep.mubr.msk.f32.mxu1 %vm944_vm2, %v4290_v11  ;;  %v6552_v26 = vadd.f32 %v6498_v12, %v6170_v33  ;;  %v7792_v33 = vrot.slane %v18692_v32, 1 }
 0x2d4   : > { %v7038_v50 = vpop.permute.xlu1 %7037  ;;  %v19570_v12 = vsel %vm569_vm1, %v7791_v1, %v7792_v33 }
 0x2d5   : > { %v7151_v8 = vmul.f32 %v17171_v61, %v7038_v50  ;;  %13724 = vmatmul.mubr.msk.f32.gmra.mrb[28].mxu1 %vm944_vm2, %v4292_v28  ;;  %21488 = vst [vmem:[#allocation43_spill] sm:$0xff] %v19570_v12 }
 0x2d6   : > { %13726 = vmatprep.mubr.msk.f32.mxu1 %vm944_vm2, %v4295_v0 }
 0x2d7   : > { %v7205_v43 = vadd.f32 %v7151_v8, %v6877_v44 }
 0x2d9   : > { %v7259_v31 = vmax.f32 %v7205_v43, 0.0  ;;  %v6722_v35 = vpop.permute.xlu1 %6721  ;;  %13727 = vmatmul.mubr.msk.f32.gmra.mrb[30].mxu1 %vm944_vm2, %v4297_v5 }
 0x2db   : > { %v19526_v52 = vsel %vm7293_vm4, %v7259_v31, 0.0 }
 0x2dc   : > { %v7784_v4 = vrot.slane %v19526_v52, 1 }
 0x2de   : > { %v6406_v16 = vpop.permute.xlu1 %6405  ;;  %v19533_v11 = vsel %vm569_vm1, %v7782_v18, %v7784_v4  ;;  %v6826_v18 = vmul.f32 %v17153_v62, %v6722_v35 }
 0x2df   : > { %v6501_v28 = vmul.f32 %v17150_v56, %v6406_v16  ;;  %13915 = vmatmul.mubr.msk.f32.gmra.mrb[22].mxu0 %vm944_vm2, %v19533_v11 }
 0x2e0   : > { %13917 = vmatprep.mubr.msk.f32.mxu0 %vm944_vm2, %v19543_v42  ;;  %v6880_v44 = vadd.f32 %v6826_v18, %v6552_v26  ;;  %v7796_v18 = vrot.slane %v18763_v54, 1 }
 0x2e1   : > { %v6555_v40 = vadd.f32 %v6501_v28, %v6173_v45 }
 0x2e3   : > { %v6883_v0 = vadd.f32 %v6829_v60, %v6555_v40  ;;  %v7050_v50 = vpop.permute.xlu1 %7049  ;;  %v7797_v40 = vrot.slane %v18758_v15, 1 }
 0x2e4   : > { %v7154_v8 = vmul.f32 %v17171_v61, %v7050_v50 }
 0x2e5   : > { %v7211_v5 = vadd.f32 %v7157_v57, %v6883_v0 }
 0x2e6   : > { %v7208_v43 = vadd.f32 %v7154_v8, %v6880_v44 }
 0x2e7   : > { %v7265_v31 = vmax.f32 %v7211_v5, 0.0 }
 0x2e8   : > { %v7262_v4 = vmax.f32 %v7208_v43, 0.0  ;;  %v6081_v21 = vpop.permute.xlu1 %6080  ;;  %v6430_v43 = vpop.permute.xlu0 %6429 }
 0x2e9   : > { %v19554_v20 = vsel %vm7293_vm4, %v7265_v31, 0.0  ;;  %v6176_v44 = vmul.f32 %v17147_v55, %v6081_v21  ;;  %v6507_v1 = vmul.f32 %v17150_v56, %v6430_v43 }
 0x2ea   : > { %v19558_v35 = vsel %vm7293_vm4, %v7262_v4, 0.0  ;;  %v7794_v45 = vrot.slane %v19554_v20, 1 }
 0x2eb   : > { %v7789_v16 = vrot.slane %v19558_v35, 1 }
 0x2ec   : > { %v19577_v57 = vsel %vm569_vm1, %v7792_v33, %v7794_v45 }
 0x2ed   : > { %v6418_v60 = vpop.permute.xlu1 %6417  ;;  %v19565_v28 = vsel %vm569_vm1, %v7787_v29, %v7789_v16  ;;  %21489 = vst [vmem:[#allocation57_spill] sm:$0xff] %v19577_v57  ;;  %v19582_v29 = vsel %vm569_vm1, %v7796_v18, %v7797_v40  ;;  %v7086_v18 = vpop.permute.xlu0 %7085 }
 0x2ee   : > { %13918 = vmatmul.mubr.msk.f32.gmra.mrb[24].mxu0 %vm944_vm2, %v19565_v28  ;;  %21490 = vst [vmem:[#allocation62_spill] sm:$0xff] %v19582_v29  ;;  %v6504_v0 = vmul.f32 %v17150_v56, %v6418_v60  ;;  %v7163_v21 = vmul.f32 %v17171_v61, %v7086_v18  ;;  %v21496_v18 = vld [vmem:[#allocation51_spill] sm:$0xff] }
 0x2ef   : > { %13920 = vmatprep.mubr.msk.f32.mxu0 %vm944_vm2, %v19570_v12 }
 0x2f0   : > { %v6558_v5 = vadd.f32 %v6504_v0, %v6176_v44  ;;  %v7802_v0 = vrot.slane %v18864_v7, 1 }
 0x2f2   : > { %v6746_v26 = vpop.permute.xlu1 %6745  ;;  %13921 = vmatmul.mubr.msk.f32.gmra.mrb[26].mxu0 %vm944_vm2, %v19577_v57 }
 0x2f3   : > { %13923 = vmatprep.mubr.msk.f32.mxu0 %vm944_vm2, %v19582_v29  ;;  %v6832_v8 = vmul.f32 %v17153_v62, %v6746_v26 }
 0x2f5   : > { %v6886_v4 = vadd.f32 %v6832_v8, %v6558_v5  ;;  %v21491_v8 = vld [vmem:[#allocation13_spill] sm:$0xff] }
 0x2f6   : > { %v7801_v5 = vrot.slane %v21491_v8, 1 }
 0x2f7   : > { %v6096_v50 = vpop.permute.xlu1 %6095 }
 0x2f8   : > { %v6179_v16 = vmul.f32 %v17147_v55, %v6096_v50 }
 0x2fa   : > { %v6561_v60 = vadd.f32 %v6507_v1, %v6179_v16  ;;  %v21495_v1 = vld [vmem:[#allocation50_spill] sm:$0xff] }
 0x2fc   : > { %v7074_v31 = vpop.permute.xlu1 %7073 }
 0x2fd   : > { %v7160_v33 = vmul.f32 %v17171_v61, %v7074_v31 }
 0x2ff   : > { %v7214_v45 = vadd.f32 %v7160_v33, %v6886_v4  ;;  %v21492_v33 = vmov 0.0  }
 0x300   : > { %v19617_v16 = vrot.slane %v21492_v33, 2 }
 0x301   : > { %v7268_v29 = vmax.f32 %v7214_v45, 0.0  ;;  %v6758_v57 = vpop.permute.xlu1 %6757  ;;  %v8136_v45 = vrot.slane %v21495_v1, 2 }
 0x302   : > { %v6835_v12 = vmul.f32 %v17153_v62, %v6758_v57  ;;  %v19607_v57 = vsel %vm569_vm1, %v7801_v5, %v7802_v0  ;;  %21493 = vst [vmem:[#allocation19_spill] sm:$0xff] %v19617_v16  ;;  %v8142_v5 = vrot.slane %v21437_v14, 2 }
 0x303   : > { %v19596_v26 = vsel %vm7293_vm4, %v7268_v29, 0.0 }
 0x304   : > { %v7799_v44 = vrot.slane %v19596_v26, 1  ;;  %v6889_v50 = vadd.f32 %v6835_v12, %v6561_v60  ;;  %v8137_v60 = vrot.slane %v21496_v18, 2 }
 0x306   : > { %v7217_v43 = vadd.f32 %v7163_v21, %v6889_v50  ;;  %v19602_v31 = vsel %vm569_vm1, %v7797_v40, %v7799_v44  ;;  %v21497_v21 = vld [vmem:[#allocation14_spill] sm:$0xff]  ;;  %v19632_v50 = vld [vmem:[%s20797_s4 + $0x10] sm:$0xf] }
 0x307   : > { %13924 = vmatmul.mubr.msk.f32.gmra.mrb[28].mxu0 %vm944_vm2, %v19602_v31  ;;  %v8139_v44 = vrot.slane %v21497_v21, 2 }
 0x308   : > { %v7271_v4 = vmax.f32 %v7217_v43, 0.0  ;;  %13926 = vmatprep.mubr.msk.f32.mxu0 %vm944_vm2, %v19607_v57  ;;  %v21499_v43 = vld [vmem:[#allocation60_spill] sm:$0xff] }
 0x30a   : > { %v19613_v29 = vsel %vm7293_vm4, %v7271_v4, 0.0  ;;  %v8141_v4 = vrot.slane %v21499_v43, 2 }
 0x30b   : > { %v7804_v12 = vrot.slane %v19613_v29, 1 }
 0x30d   : > { %v19620_v40 = vsel %vm569_vm1, %v7802_v0, %v7804_v12  ;;  %v19637_v0 = vsel %vm8130_vm5, %v8136_v45, %v8137_v60  ;;  %v21500_v12 = vld [vmem:[#allocation30_spill] sm:$0xff]  ;;  %v19654_v45 = vsel %vm8130_vm5, %v8141_v4, %v8142_v5  ;;  %v8151_v4 = vrot.slane %v21452_v58, 2 }
 0x30e   : > { %21494 = vst [vmem:[#allocation8_spill] sm:$0xff] %v19620_v40  ;;  %13927 = vmatmul.mubr.msk.f32.gmra.mrb[30].mxu0 %vm944_vm2, %v19620_v40  ;;  %21498 = vst [vmem:[#allocation24_spill] sm:$0xff] %v19637_v0  ;;  %v8144_v21 = vrot.slane %v21500_v12, 2  ;;  %v8149_v40 = vrot.slane %v19099_v41, 2  ;;  %v8154_v41 = vrot.slane %v19104_v30, 2 }
 0x30f   : > { %13931 = vmatprep.mubr.msk.f32.mxu0 %vm944_vm2, %v19617_v16  ;;  %21501 = vst [vmem:[#allocation4_spill] sm:$0xff] %v19654_v45 }
 0x310   : > { %v19662_v12 = vsel %vm8130_vm5, %v8142_v5, %v8144_v21  ;;  %v8157_v21 = vrot.slane %v21458_v27, 2 }
 0x312   : > { %13932 = vmatmul.mubr.msk.f32.vlgmr.msra.gmra.mrb[0].mxu0 %vm944_vm2, %v19617_v16  ;;  %v19649_v16 = vsel %vm8130_vm5, %v8137_v60, %v8139_v44  ;;  %v8152_v44 = vrot.slane %v21453_v51, 2 }
 0x313   : > { %13980 = vmatpush3.msk.msra.mxu0 %vm1009_vm0, %v19264_v13  ;;  %13934 = vmatprep.mubr.msk.f32.mxu0 %vm944_vm2, %v19637_v0  ;;  %v21502_v13 = vld [vmem:[#allocation26_spill] sm:$0xff]  ;;  %v8147_v0 = vrot.slane %v21445_v39, 2 }
 0x314   : > { %14029 = vmatprep.subr.msk.mxu0 %vm1009_vm0, %v19632_v50  ;;  %v8146_v33 = vrot.slane %v21502_v13, 2  ;;  %v19680_v5 = vsel %vm8130_vm5, %v8151_v4, %v8152_v44  ;;  %v8161_v4 = vrot.slane %v21462_v9, 2 }
 0x315   : > { %21504 = vst [vmem:[#allocation52_spill] sm:$0xff] %v19680_v5 }
 0x316   : > { %13935 = vmatmul.mubr.msk.f32.gmra.mrb[2].mxu0 %vm944_vm2, %v19649_v16  ;;  %v19667_v60 = vsel %vm8130_vm5, %v8146_v33, %v8147_v0  ;;  %v8156_v33 = vrot.slane %v21457_v2, 2 }
 0x317   : > { %13937 = vmatprep.mubr.msk.f32.mxu0 %vm944_vm2, %v19654_v45  ;;  %21503 = vst [vmem:[#allocation22_spill] sm:$0xff] %v19667_v60  ;;  %v19674_v45 = vsel %vm8130_vm5, %v8147_v0, %v8149_v40  ;;  %v19688_v40 = vsel %vm8130_vm5, %v8152_v44, %v8154_v41  ;;  %v8162_v0 = vrot.slane %v21461_v25, 2  ;;  %v8167_v41 = vrot.slane %v21467_v6, 2 }
 0x318   : > { %21505 = vst [vmem:[#allocation21_spill] sm:$0xff] %v19688_v40  ;;  %v19693_v30 = vsel %vm8130_vm5, %v8156_v33, %v8157_v21  ;;  %v8166_v33 = vrot.slane %v21468_v24, 2 }
 0x319   : > { %21506 = vst [vmem:[#allocation31_spill] sm:$0xff] %v19693_v30  ;;  %v19706_v44 = vsel %vm8130_vm5, %v8161_v4, %v8162_v0  ;;  %v8172_v4 = vrot.slane %v18075_v19, 2 }
 0x31a   : > { %13938 = vmatmul.mubr.msk.f32.gmra.mrb[4].mxu0 %vm944_vm2, %v19662_v12  ;;  %21507 = vst [vmem:[#allocation45_spill] sm:$0xff] %v19706_v44 }
 0x31b   : > { %13940 = vmatprep.mubr.msk.f32.mxu0 %vm944_vm2, %v19667_v60  ;;  %v8159_v60 = vrot.slane %v19219_v3, 2 }
 0x31d   : > { %v19701_v3 = vsel %vm8130_vm5, %v8157_v21, %v8159_v60  ;;  %v19719_v60 = vsel %vm8130_vm5, %v8166_v33, %v8167_v41  ;;  %v8171_v21 = vrot.slane %v18085_v47, 2  ;;  %v8176_v33 = vrot.slane %v21474_v22, 2 }
 0x31e   : > { %13941 = vmatmul.mubr.msk.f32.gmra.mrb[6].mxu0 %vm944_vm2, %v19674_v45  ;;  %21508 = vst [vmem:[#allocation15_spill] sm:$0xff] %v19719_v60 }
 0x31f   : > { %13943 = vmatprep.mubr.msk.f32.mxu0 %vm944_vm2, %v19680_v5  ;;  %v8164_v5 = vrot.slane %v19303_v46, 2  ;;  %v8169_v46 = vrot.slane %v19299_v17, 2  ;;  %v19732_v17 = vsel %vm8130_vm5, %v8171_v21, %v8172_v4  ;;  %v8181_v21 = vrot.slane %v21480_v49, 2 }
 0x320   : > { %21509 = vst [vmem:[#allocation23_spill] sm:$0xff] %v19732_v17 }
 0x322   : > { %13944 = vmatmul.mubr.msk.f32.gmra.mrb[8].mxu0 %vm944_vm2, %v19688_v40 }
 0x323   : > { %13946 = vmatprep.mubr.msk.f32.mxu0 %vm944_vm2, %v19693_v30  ;;  %v19713_v30 = vsel %vm8130_vm5, %v8162_v0, %v8164_v5  ;;  %v19727_v5 = vsel %vm8130_vm5, %v8167_v41, %v8169_v46  ;;  %v8177_v0 = vrot.slane %v18235_v48, 2  ;;  %v8182_v46 = vrot.slane %v21479_v59, 2 }
 0x325   : > { %v19745_v41 = vsel %vm8130_vm5, %v8176_v33, %v8177_v0 }
 0x326   : > { %13947 = vmatmul.mubr.msk.f32.gmra.mrb[10].mxu0 %vm944_vm2, %v19701_v3  ;;  %21511 = vst [vmem:[#allocation70_spill] sm:$0xff] %v19745_v41 }
 0x327   : > { %13949 = vmatprep.mubr.msk.f32.mxu0 %vm944_vm2, %v19706_v44  ;;  %v8174_v44 = vrot.slane %v19396_v23, 2 }
 0x329   : > { %v19740_v23 = vsel %vm8130_vm5, %v8172_v4, %v8174_v44  ;;  %v19758_v44 = vsel %vm8130_vm5, %v8181_v21, %v8182_v46  ;;  %v21513_v4 = vld [vmem:[#allocation38_spill] sm:$0xff]  ;;  %v8191_v21 = vrot.slane %v18524_v36, 2 }
 0x32a   : > { %13950 = vmatmul.mubr.msk.f32.gmra.mrb[12].mxu0 %vm944_vm2, %v19713_v30  ;;  %21510 = vst [vmem:[#allocation47_spill] sm:$0xff] %v19740_v23  ;;  %21512 = vst [vmem:[#allocation39_spill] sm:$0xff] %v19758_v44  ;;  %v8186_v33 = vrot.slane %v21513_v4, 2 }
 0x32b   : > { %13952 = vmatprep.mubr.msk.f32.mxu0 %vm944_vm2, %v19719_v60  ;;  %v8179_v60 = vrot.slane %v19455_v63, 2 }
 0x32d   : > { %v19753_v63 = vsel %vm8130_vm5, %v8177_v0, %v8179_v60  ;;  %v8192_v0 = vrot.slane %v18585_v34, 2 }
 0x32e   : > { %13953 = vmatmul.mubr.msk.f32.gmra.mrb[14].mxu0 %vm944_vm2, %v19727_v5 }
 0x32f   : > { %13955 = vmatprep.mubr.msk.f32.mxu0 %vm944_vm2, %v19732_v17  ;;  %v8184_v17 = vrot.slane %v19451_v38, 2 }
 0x331   : > { %v19766_v38 = vsel %vm8130_vm5, %v8182_v46, %v8184_v17  ;;  %v19784_v17 = vsel %vm8130_vm5, %v8191_v21, %v8192_v0  ;;  %v8197_v46 = vrot.slane %v18692_v32, 2  ;;  %v8202_v21 = vrot.slane %v18758_v15, 2 }
 0x332   : > { %13956 = vmatmul.mubr.msk.f32.gmra.mrb[16].mxu0 %vm944_vm2, %v19740_v23  ;;  %v8189_v23 = vrot.slane %v19526_v52, 2  ;;  %21516 = vst [vmem:[#allocation59_spill] sm:$0xff] %v19784_v17 }
 0x333   : > { %13958 = vmatprep.mubr.msk.f32.mxu0 %vm944_vm2, %v19745_v41  ;;  %v8187_v41 = vrot.slane %v21485_v53, 2 }
 0x335   : > { %v19771_v60 = vsel %vm8130_vm5, %v8186_v33, %v8187_v41  ;;  %v19779_v52 = vsel %vm8130_vm5, %v8187_v41, %v8189_v23  ;;  %v8196_v33 = vrot.slane %v18604_v10, 2  ;;  %v8201_v41 = vrot.slane %v18763_v54, 2 }
 0x336   : > { %13959 = vmatmul.mubr.msk.f32.gmra.mrb[18].mxu0 %vm944_vm2, %v19753_v63  ;;  %21514 = vst [vmem:[#allocation61_spill] sm:$0xff] %v19771_v60  ;;  %21515 = vst [vmem:[#allocation36_spill] sm:$0xff] %v19779_v52 }
 0x337   : > { %13961 = vmatprep.mubr.msk.f32.mxu0 %vm944_vm2, %v19758_v44  ;;  %v8194_v44 = vrot.slane %v19558_v35, 2  ;;  %v19797_v23 = vsel %vm8130_vm5, %v8196_v33, %v8197_v46  ;;  %v8206_v33 = vrot.slane %v21491_v8, 2 }
 0x338   : > { %21518 = vst [vmem:[#allocation16_spill] sm:$0xff] %v19797_v23 }
 0x339   : > { %v19792_v35 = vsel %vm8130_vm5, %v8192_v0, %v8194_v44  ;;  %v19810_v44 = vsel %vm8130_vm5, %v8201_v41, %v8202_v21  ;;  %v8207_v0 = vrot.slane %v18864_v7, 2 }
 0x33a   : > { %13962 = vmatmul.mubr.msk.f32.gmra.mrb[20].mxu0 %vm944_vm2, %v19766_v38  ;;  %21517 = vst [vmem:[#allocation46_spill] sm:$0xff] %v19792_v35  ;;  %21519 = vst [vmem:[#allocation53_spill] sm:$0xff] %v19810_v44 }
 0x33b   : > { %13964 = vmatprep.mubr.msk.f32.mxu0 %vm944_vm2, %v19771_v60  ;;  %v8199_v60 = vrot.slane %v19554_v20, 2 }
 0x33d   : > { %v19805_v20 = vsel %vm8130_vm5, %v8197_v46, %v8199_v60  ;;  %v19823_v60 = vsel %vm8130_vm5, %v8206_v33, %v8207_v0 }
 0x33e   : > { %13965 = vmatmul.mubr.msk.f32.gmra.mrb[22].mxu0 %vm944_vm2, %v19779_v52 }
 0x33f   : > { %13967 = vmatprep.mubr.msk.f32.mxu0 %vm944_vm2, %v19784_v17  ;;  %v8204_v17 = vrot.slane %v19596_v26, 2 }
 0x341   : > { %v19818_v26 = vsel %vm8130_vm5, %v8202_v21, %v8204_v17 }
 0x342   : > { %13968 = vmatmul.mubr.msk.f32.gmra.mrb[24].mxu0 %vm944_vm2, %v19792_v35 }
 0x343   : > { %13970 = vmatprep.mubr.msk.f32.mxu0 %vm944_vm2, %v19797_v23  ;;  %v8209_v23 = vrot.slane %v19613_v29, 2  ;;  %v19837_v29 = vld [vmem:[%s20797_s4 + $0x14] sm:$0xf] }
 0x345   : > { %v19828_v46 = vsel %vm8130_vm5, %v8207_v0, %v8209_v23 }
 0x346   : > { %13971 = vmatmul.mubr.msk.f32.gmra.mrb[26].mxu0 %vm944_vm2, %v19805_v20 }
 0x347   : > { %13973 = vmatprep.mubr.msk.f32.mxu0 %vm944_vm2, %v19810_v44 }
 0x34a   : > { %13974 = vmatmul.mubr.msk.f32.gmra.mrb[28].mxu0 %vm944_vm2, %v19818_v26 }
 0x34b   : > { %13976 = vmatprep.mubr.msk.f32.mxu0 %vm944_vm2, %v19823_v60 }
 0x34e   : > { %13977 = vmatmul.mubr.msk.f32.gmra.mrb[30].mxu0 %vm944_vm2, %v19828_v46 }
 0x34f   : > { %13981 = vmatprep.mubr.msk.f32.mxu0 %vm944_vm2, %v21495_v1  ;;  %v6101_v1 = vpop.permute.xlu1 %6100 }
 0x350   : > { %v6180_v0 = vmul.f32 %v17147_v55, %v6101_v1 }
 0x352   : > { %13982 = vmatmul.mubr.msk.f32.vlgmr.msra.gmra.mrb[0].mxu0 %vm944_vm2, %v21496_v18 }
 0x353   : > { %14030 = vmatpush3.msk.msra.mxu0 %vm1009_vm0, %v19632_v50  ;;  %13984 = vmatprep.mubr.msk.f32.mxu0 %vm944_vm2, %v21499_v43  ;;  %v6434_v18 = vpop.permute.xlu1 %6433 }
 0x354   : > { %14079 = vmatprep.subr.msk.mxu0 %vm1009_vm0, %v19837_v29  ;;  %v6508_v33 = vmul.f32 %v17150_v56, %v6434_v18 }
 0x356   : > { %13985 = vmatmul.mubr.msk.f32.gmra.mrb[2].mxu0 %vm944_vm2, %v21437_v14 }
 0x357   : > { %13987 = vmatprep.mubr.msk.f32.mxu0 %vm944_vm2, %v21502_v13  ;;  %v6438_v17 = vpop.permute.xlu1 %6437 }
 0x358   : > { %v6509_v1 = vmul.f32 %v17150_v56, %v6438_v17 }
 0x35a   : > { %13988 = vmatmul.mubr.msk.f32.gmra.mrb[4].mxu0 %vm944_vm2, %v21445_v39 }
 0x35b   : > { %13990 = vmatprep.mubr.msk.f32.mxu0 %vm944_vm2, %v21452_v58 }
 0x35e   : > { %13991 = vmatmul.mubr.msk.f32.gmra.mrb[6].mxu0 %vm944_vm2, %v21453_v51 }
 0x35f   : > { %13993 = vmatprep.mubr.msk.f32.mxu0 %vm944_vm2, %v21457_v2 }
 0x362   : > { %13994 = vmatmul.mubr.msk.f32.gmra.mrb[8].mxu0 %vm944_vm2, %v21458_v27 }
 0x363   : > { %13996 = vmatprep.mubr.msk.f32.mxu0 %vm944_vm2, %v21462_v9 }
 0x366   : > { %13997 = vmatmul.mubr.msk.f32.gmra.mrb[10].mxu0 %vm944_vm2, %v21461_v25 }
 0x367   : > { %13999 = vmatprep.mubr.msk.f32.mxu0 %vm944_vm2, %v21468_v24 }
 0x36a   : > { %14000 = vmatmul.mubr.msk.f32.gmra.mrb[12].mxu0 %vm944_vm2, %v21467_v6 }
 0x36b   : > { %14002 = vmatprep.mubr.msk.f32.mxu0 %vm944_vm2, %v18085_v47 }
 0x36e   : > { %14003 = vmatmul.mubr.msk.f32.gmra.mrb[14].mxu0 %vm944_vm2, %v18075_v19 }
 0x36f   : > { %14005 = vmatprep.mubr.msk.f32.mxu0 %vm944_vm2, %v21474_v22 }
 0x370   : > { %v19875_v50 = vpop.f32.mrb[0].mxu1 }
 0x371   : > { %21520 = vst [vmem:[#allocation66_spill] sm:$0xff] %v19875_v50  ;;  %v19877_v23 = vpop.f32.mrb[1].mxu1  ;;  %v6762_v50 = vpop.permute.xlu1 %6761 }
 0x372   : > { %21521 = vst [vmem:[#allocation37_spill] sm:$0xff] %v19877_v23  ;;  %14006 = vmatmul.mubr.msk.f32.gmra.mrb[16].mxu0 %vm944_vm2, %v18235_v48  ;;  %v6106_v48 = vpop.permute.xlu0 %6105 }
 0x373   : > { %14008 = vmatprep.mubr.msk.f32.mxu0 %vm944_vm2, %v21480_v49  ;;  %v6562_v49 = vadd.f32 %v6508_v33, %v6180_v0  ;;  %v6181_v18 = vmul.f32 %v17147_v55, %v6106_v48 }
 0x374   : > { %v19883_v41 = vpop.f32.mrb[2].mxu1 }
 0x375   : > { %21522 = vst [vmem:[#allocation33_spill] sm:$0xff] %v19883_v41  ;;  %v19885_v21 = vpop.f32.mrb[3].mxu1  ;;  %v6836_v41 = vmul.f32 %v17153_v62, %v6762_v50  ;;  %v6563_v33 = vadd.f32 %v6509_v1, %v6181_v18 }
 0x376   : > { %21523 = vst [vmem:[#allocation32_spill] sm:$0xff] %v19885_v21  ;;  %14009 = vmatmul.mubr.msk.f32.gmra.mrb[18].mxu0 %vm944_vm2, %v21479_v59  ;;  %v6766_v50 = vpop.permute.xlu0 %6765 }
 0x377   : > { %14011 = vmatprep.mubr.msk.f32.mxu0 %vm944_vm2, %v21513_v4  ;;  %v7090_v4 = vpop.permute.xlu1 %7089  ;;  %v6890_v59 = vadd.f32 %v6836_v41, %v6562_v49  ;;  %v6837_v17 = vmul.f32 %v17153_v62, %v6766_v50 }
 0x378   : > { %v19893_v23 = vpop.f32.mrb[4].mxu1  ;;  %v7164_v0 = vmul.f32 %v17171_v61, %v7090_v4 }
 0x379   : > { %21524 = vst [vmem:[#allocation44_spill] sm:$0xff] %v19893_v23  ;;  %v19895_v22 = vpop.f32.mrb[5].mxu1  ;;  %v6891_v41 = vadd.f32 %v6837_v17, %v6563_v33 }
 0x37a   : > { %21525 = vst [vmem:[#allocation3_spill] sm:$0xff] %v19895_v22  ;;  %14012 = vmatmul.mubr.msk.f32.gmra.mrb[20].mxu0 %vm944_vm2, %v21485_v53 }
 0x37b   : > { %14014 = vmatprep.mubr.msk.f32.mxu0 %vm944_vm2, %v18524_v36  ;;  %v7094_v49 = vpop.permute.xlu1 %7093 }
 0x37c   : > { %v19904_v21 = vpop.f32.mrb[6].mxu1  ;;  %v7165_v4 = vmul.f32 %v17171_v61, %v7094_v49 }
 0x37d   : > { %21526 = vst [vmem:[#allocation63_spill] sm:$0xff] %v19904_v21  ;;  %v19906_v23 = vpop.f32.mrb[7].mxu1  ;;  %v7218_v21 = vadd.f32 %v7164_v0, %v6890_v59 }
 0x37e   : > { %21527 = vst [vmem:[#allocation40_spill] sm:$0xff] %v19906_v23  ;;  %14015 = vmatmul.mubr.msk.f32.gmra.mrb[22].mxu0 %vm944_vm2, %v18585_v34  ;;  %v7219_v59 = vadd.f32 %v7165_v4, %v6891_v41  ;;  %v21537_v4 = vld [vmem:[#allocation54_spill] sm:$0xff] }
 0x37f   : > { %14017 = vmatprep.mubr.msk.f32.mxu0 %vm944_vm2, %v18604_v10  ;;  %v7272_v18 = vmax.f32 %v7218_v21, 0.0 }
 0x380   : > { %v19914_v22 = vpop.f32.mrb[8].mxu1  ;;  %v19943_v21 = vmax.f32 %v7219_v59, 0.0  ;;  %v21540_v59 = vld [vmem:[#allocation67_spill] sm:$0xff] }
 0x381   : > { %21528 = vst [vmem:[#allocation65_spill] sm:$0xff] %v19914_v22  ;;  %v19916_v48 = vpop.f32.mrb[9].mxu1  ;;  %v19939_v17 = vsel %vm7282_vm3, %v7272_v18, 0.0  ;;  %v19958_v18 = vld [vmem:[%s20797_s4 + $0x18] sm:$0xf] }
 0x382   : > { %21529 = vst [vmem:[#allocation18_spill] sm:$0xff] %v19916_v48  ;;  %14018 = vmatmul.mubr.msk.f32.gmra.mrb[24].mxu0 %vm944_vm2, %v18692_v32  ;;  %v21553_v48 = vld [vmem:[#allocation49_spill] sm:$0xff] }
 0x383   : > { %14020 = vmatprep.mubr.msk.f32.mxu0 %vm944_vm2, %v18763_v54 }
 0x384   : > { %v19923_v23 = vpop.f32.mrb[10].mxu1 }
 0x385   : > { %21530 = vst [vmem:[#allocation17_spill] sm:$0xff] %v19923_v23  ;;  %v19925_v1 = vpop.f32.mrb[11].mxu1 }
 0x386   : > { %21531 = vst [vmem:[#allocation13_spill] sm:$0xff] %v19925_v1  ;;  %14021 = vmatmul.mubr.msk.f32.gmra.mrb[26].mxu0 %vm944_vm2, %v18758_v15 }
 0x387   : > { %14023 = vmatprep.mubr.msk.f32.mxu0 %vm944_vm2, %v21491_v8 }
 0x388   : > { %v19931_v0 = vpop.f32.mrb[12].mxu1 }
 0x389   : > { %21532 = vst [vmem:[#allocation50_spill] sm:$0xff] %v19931_v0  ;;  %v19933_v50 = vpop.f32.mrb[13].mxu1  ;;  %v21549_v0 = vld [vmem:[#allocation48_spill] sm:$0xff] }
 0x38a   : > { %21533 = vst [vmem:[#allocation51_spill] sm:$0xff] %v19933_v50  ;;  %14024 = vmatmul.mubr.msk.f32.gmra.mrb[28].mxu0 %vm944_vm2, %v18864_v7  ;;  %v21573_v7 = vld [vmem:[#allocation5_spill] sm:$0xff] }
 0x38b   : > { %14026 = vmatprep.mubr.msk.f32.mxu0 %vm944_vm2, %v19939_v17 }
 0x38c   : > { %v19945_v49 = vpop.f32.mrb[14].mxu1 }
 0x38d   : > { %21535 = vst [vmem:[#allocation14_spill] sm:$0xff] %v19945_v49  ;;  %v19947_v1 = vpop.f32.mrb[15].mxu1  ;;  %v21544_v49 = vld [vmem:[#allocation41_spill] sm:$0xff] }
 0x38e   : > { %21536 = vst [vmem:[#allocation60_spill] sm:$0xff] %v19947_v1  ;;  %14027 = vmatmul.mubr.msk.f32.gmra.mrb[30].mxu0 %vm944_vm2, %v19943_v21  ;;  %v21541_v1 = vld [vmem:[#allocation10_spill] sm:$0xff] }
 0x38f   : > { %14031 = vmatprep.mubr.msk.f32.mxu0 %vm944_vm2, %v21537_v4 }
 0x390   : > { %v19953_v41 = vpop.f32.mrb[16].mxu1 }
 0x391   : > { %21538 = vst [vmem:[#allocation30_spill] sm:$0xff] %v19953_v41  ;;  %v19960_v33 = vpop.f32.mrb[17].mxu1 }
 0x392   : > { %21539 = vst [vmem:[#allocation26_spill] sm:$0xff] %v19960_v33  ;;  %14032 = vmatmul.mubr.msk.f32.vlgmr.msra.gmra.mrb[0].mxu0 %vm944_vm2, %v21540_v59  ;;  %v21545_v33 = vld [vmem:[#allocation6_spill] sm:$0xff] }
 0x393   : > { %14080 = vmatpush3.msk.msra.mxu0 %vm1009_vm0, %v19837_v29  ;;  %14034 = vmatprep.mubr.msk.f32.mxu0 %vm944_vm2, %v21541_v1  ;;  %v21548_v29 = vld [vmem:[#allocation35_spill] sm:$0xff]  ;;  %v21572_v1 = vld [vmem:[#allocation25_spill] sm:$0xff] }
 0x394   : > { %14129 = vmatprep.subr.msk.mxu0 %vm1009_vm0, %v19958_v18  ;;  %v19970_v4 = vpop.f32.mrb[18].mxu1 }
 0x395   : > { %21542 = vst [vmem:[#allocation2_spill] sm:$0xff] %v19970_v4  ;;  %v19972_v41 = vpop.f32.mrb[19].mxu1 }
 0x396   : > { %21543 = vst [vmem:[#allocation72_spill] sm:$0xff] %v19972_v41  ;;  %14035 = vmatmul.mubr.msk.f32.gmra.mrb[2].mxu0 %vm944_vm2, %v21544_v49  ;;  %v21552_v41 = vld [vmem:[#allocation34_spill] sm:$0xff]  ;;  %v21571_v49 = vld [vmem:[#allocation55_spill] sm:$0xff] }
 0x397   : > { %14037 = vmatprep.mubr.msk.f32.mxu0 %vm944_vm2, %v21545_v33  ;;  %v21568_v33 = vld [vmem:[#allocation71_spill] sm:$0xff] }
 0x398   : > { %v19978_v59 = vpop.f32.mrb[20].mxu1 }
 0x399   : > { %21546 = vst [vmem:[#allocation73_spill] sm:$0xff] %v19978_v59  ;;  %v19980_v50 = vpop.f32.mrb[21].mxu1 }
 0x39a   : > { %21547 = vst [vmem:[#allocation74_spill] sm:$0xff] %v19980_v50  ;;  %14038 = vmatmul.mubr.msk.f32.gmra.mrb[4].mxu0 %vm944_vm2, %v21548_v29  ;;  %v21556_v50 = vld [vmem:[#allocation20_spill] sm:$0xff]  ;;  %v21557_v29 = vld [vmem:[#allocation42_spill] sm:$0xff] }
 0x39b   : > { %14040 = vmatprep.mubr.msk.f32.mxu0 %vm944_vm2, %v21549_v0 }
 0x39c   : > { %v19986_v23 = vpop.f32.mrb[22].mxu1 }
 0x39d   : > { %21550 = vst [vmem:[#allocation75_spill] sm:$0xff] %v19986_v23  ;;  %v19988_v4 = vpop.f32.mrb[23].mxu1 }
 0x39e   : > { %21551 = vst [vmem:[#allocation76_spill] sm:$0xff] %v19988_v4  ;;  %14041 = vmatmul.mubr.msk.f32.gmra.mrb[6].mxu0 %vm944_vm2, %v21552_v41  ;;  %v21560_v4 = vld [vmem:[#allocation29_spill] sm:$0xff] }
 0x39f   : > { %14043 = vmatprep.mubr.msk.f32.mxu0 %vm944_vm2, %v21553_v48  ;;  %v21561_v41 = vld [vmem:[#allocation9_spill] sm:$0xff] }
 0x3a0   : > { %v19994_v22 = vpop.f32.mrb[24].mxu1 }
 0x3a1   : > { %21554 = vst [vmem:[#allocation77_spill] sm:$0xff] %v19994_v22  ;;  %v19996_v59 = vpop.f32.mrb[25].mxu1 }
 0x3a2   : > { %21555 = vst [vmem:[#allocation78_spill] sm:$0xff] %v19996_v59  ;;  %14044 = vmatmul.mubr.msk.f32.gmra.mrb[8].mxu0 %vm944_vm2, %v21556_v50  ;;  %v21564_v59 = vld [vmem:[#allocation11_spill] sm:$0xff]  ;;  %v21565_v50 = vld [vmem:[#allocation68_spill] sm:$0xff] }
 0x3a3   : > { %14046 = vmatprep.mubr.msk.f32.mxu0 %vm944_vm2, %v21557_v29 }
 0x3a4   : > { %v20002_v0 = vpop.f32.mrb[26].mxu1 }
 0x3a5   : > { %21558 = vst [vmem:[#allocation79_spill] sm:$0xff] %v20002_v0  ;;  %v20004_v23 = vpop.f32.mrb[27].mxu1  ;;  %v6442_v0 = vpop.permute.xlu1 %6441 }
 0x3a6   : > { %21559 = vst [vmem:[#allocation80_spill] sm:$0xff] %v20004_v23  ;;  %14047 = vmatmul.mubr.msk.f32.gmra.mrb[10].mxu0 %vm944_vm2, %v21560_v4  ;;  %v6111_v4 = vpop.permute.xlu0 %6110 }
 0x3a7   : > { %14049 = vmatprep.mubr.msk.f32.mxu0 %vm944_vm2, %v21561_v41  ;;  %v21569_v41 = vld [vmem:[#allocation7_spill] sm:$0xff] }
 0x3a8   : > { %v20010_v48 = vpop.f32.mrb[28].mxu1 }
 0x3a9   : > { %21562 = vst [vmem:[#allocation81_spill] sm:$0xff] %v20010_v48  ;;  %v20012_v22 = vpop.f32.mrb[29].mxu1  ;;  %v6182_v48 = vmul.f32 %v17147_v55, %v6111_v4  ;;  %v8803_v4 = vrot.slane %v19943_v21, 1 }
 0x3aa   : > { %21563 = vst [vmem:[#allocation82_spill] sm:$0xff] %v20012_v22  ;;  %14050 = vmatmul.mubr.msk.f32.gmra.mrb[12].mxu0 %vm944_vm2, %v21564_v59  ;;  %v6510_v22 = vmul.f32 %v17150_v56, %v6442_v0  ;;  %v21570_v59 = vld [vmem:[#allocation12_spill] sm:$0xff] }
 0x3ab   : > { %14052 = vmatprep.mubr.msk.f32.mxu0 %vm944_vm2, %v21565_v50  ;;  %v6770_v50 = vpop.permute.xlu1 %6769 }
 0x3ac   : > { %v20018_v29 = vpop.f32.mrb[30].mxu1 }
 0x3ad   : > { %21566 = vst [vmem:[#allocation83_spill] sm:$0xff] %v20018_v29  ;;  %v20020_v23 = vpop.f32.mrb[31].mxu1  ;;  %v6564_v29 = vadd.f32 %v6510_v22, %v6182_v48  ;;  %v21575_v48 = vld [vmem:[#allocation57_spill] sm:$0xff] }
 0x3ae   : > { %21567 = vst [vmem:[#allocation84_spill] sm:$0xff] %v20020_v23  ;;  %14053 = vmatmul.mubr.msk.f32.gmra.mrb[14].mxu0 %vm944_vm2, %v21568_v33  ;;  %v6838_v23 = vmul.f32 %v17153_v62, %v6770_v50  ;;  %v7098_v33 = vpop.permute.xlu0 %7097  ;;  %v21574_v62 = vld [vmem:[#allocation43_spill] sm:$0xff]  ;;  %v8802_v50 = vrot.slane %v19939_v17, 1 }
 0x3af   : > { %14055 = vmatprep.mubr.msk.f32.mxu0 %vm944_vm2, %v21569_v41  ;;  %v7166_v55 = vmul.f32 %v17171_v61, %v7098_v33 }
 0x3b0   : > { %v6892_v56 = vadd.f32 %v6838_v23, %v6564_v29  ;;  %v21576_v23 = vld [vmem:[#allocation62_spill] sm:$0xff]  ;;  %v21577_v29 = vld [vmem:[#allocation8_spill] sm:$0xff] }
 0x3b2   : > { %14056 = vmatmul.mubr.msk.f32.gmra.mrb[16].mxu0 %vm944_vm2, %v21570_v59  ;;  %v7220_v0 = vadd.f32 %v7166_v55, %v6892_v56  ;;  %v20061_v56 = vsel %vm569_vm1, %v8802_v50, %v8803_v4  ;;  %v21578_v55 = vld [vmem:[#allocation24_spill] sm:$0xff]  ;;  %v21580_v50 = vld [vmem:[#allocation22_spill] sm:$0xff] }
 0x3b3   : > { %14058 = vmatprep.mubr.msk.f32.mxu0 %vm944_vm2, %v21571_v49 }
 0x3b4   : > { %v7274_v22 = vmax.f32 %v7220_v0, 0.0  ;;  %v353_v0 = vld [vmem:[%s20797_s4 + $0x1c] sm:$0xf] }
 0x3b6   : > { %14059 = vmatmul.mubr.msk.f32.gmra.mrb[18].mxu0 %vm944_vm2, %v21572_v1  ;;  %v7350_v61 = vsel %vm7293_vm4, %v7274_v22, 0.0  ;;  %v21579_v22 = vld [vmem:[#allocation4_spill] sm:$0xff] }
 0x3b7   : > { %14061 = vmatprep.mubr.msk.f32.mxu0 %vm944_vm2, %v21573_v7  ;;  %v8805_v33 = vrot.slane %v7350_v61, 1 }
 0x3b9   : > { %v20066_v37 = vsel %vm569_vm1, %v8803_v4, %v8805_v33  ;;  %v21581_v4 = vld [vmem:[#allocation52_spill] sm:$0xff]  ;;  %v21584_v33 = vld [vmem:[#allocation15_spill] sm:$0xff] }
 0x3ba   : > { %14062 = vmatmul.mubr.msk.f32.gmra.mrb[20].mxu0 %vm944_vm2, %v19533_v11 }
 0x3bb   : > { %14064 = vmatprep.mubr.msk.f32.mxu0 %vm944_vm2, %v19543_v42 }
 0x3be   : > { %14065 = vmatmul.mubr.msk.f32.gmra.mrb[22].mxu0 %vm944_vm2, %v19565_v28 }
 0x3bf   : > { %14067 = vmatprep.mubr.msk.f32.mxu0 %vm944_vm2, %v21574_v62 }
 0x3c2   : > { %14068 = vmatmul.mubr.msk.f32.gmra.mrb[24].mxu0 %vm944_vm2, %v21575_v48 }
 0x3c3   : > { %14070 = vmatprep.mubr.msk.f32.mxu0 %vm944_vm2, %v21576_v23 }
 0x3c6   : > { %14071 = vmatmul.mubr.msk.f32.gmra.mrb[26].mxu0 %vm944_vm2, %v19602_v31 }
 0x3c7   : > { %14073 = vmatprep.mubr.msk.f32.mxu0 %vm944_vm2, %v19607_v57 }
 0x3ca   : > { %14074 = vmatmul.mubr.msk.f32.gmra.mrb[28].mxu0 %vm944_vm2, %v21577_v29 }
 0x3cb   : > { %14076 = vmatprep.mubr.msk.f32.mxu0 %vm944_vm2, %v20061_v56 }
 0x3ce   : > { %14077 = vmatmul.mubr.msk.f32.gmra.mrb[30].mxu0 %vm944_vm2, %v20066_v37 }
 0x3cf   : > { %14081 = vmatprep.mubr.msk.f32.mxu0 %vm944_vm2, %v21578_v55  ;;  %v21585_v55 = vld [vmem:[#allocation23_spill] sm:$0xff] }
 0x3d2   : > { %14082 = vmatmul.mubr.msk.f32.vlgmr.msra.gmra.mrb[0].mxu0 %vm944_vm2, %v19649_v16  ;;  %v21582_v16 = vld [vmem:[#allocation31_spill] sm:$0xff] }
 0x3d3   : > { %14130 = vmatpush3.msk.msra.mxu0 %vm1009_vm0, %v19958_v18  ;;  %14084 = vmatprep.mubr.msk.f32.mxu0 %vm944_vm2, %v21579_v22  ;;  %v21583_v18 = vld [vmem:[#allocation45_spill] sm:$0xff] }
 0x3d4   : > { %14179 = vmatprep.subr.msk.mxu0 %vm1009_vm0, %v353_v0 }
 0x3d6   : > { %14085 = vmatmul.mubr.msk.f32.gmra.mrb[2].mxu0 %vm944_vm2, %v19662_v12 }
 0x3d7   : > { %14087 = vmatprep.mubr.msk.f32.mxu0 %vm944_vm2, %v21580_v50 }
 0x3da   : > { %14088 = vmatmul.mubr.msk.f32.gmra.mrb[4].mxu0 %vm944_vm2, %v19674_v45 }
 0x3db   : > { %14090 = vmatprep.mubr.msk.f32.mxu0 %vm944_vm2, %v21581_v4 }
 0x3de   : > { %14091 = vmatmul.mubr.msk.f32.gmra.mrb[6].mxu0 %vm944_vm2, %v19688_v40  ;;  %v21586_v40 = vld [vmem:[#allocation47_spill] sm:$0xff] }
 0x3df   : > { %14093 = vmatprep.mubr.msk.f32.mxu0 %vm944_vm2, %v21582_v16  ;;  %v21587_v16 = vld [vmem:[#allocation70_spill] sm:$0xff] }
 0x3e2   : > { %14094 = vmatmul.mubr.msk.f32.gmra.mrb[8].mxu0 %vm944_vm2, %v19701_v3 }
 0x3e3   : > { %14096 = vmatprep.mubr.msk.f32.mxu0 %vm944_vm2, %v21583_v18  ;;  %v21588_v18 = vld [vmem:[#allocation39_spill] sm:$0xff] }
 0x3e6   : > { %14097 = vmatmul.mubr.msk.f32.gmra.mrb[10].mxu0 %vm944_vm2, %v19713_v30 }
 0x3e7   : > { %14099 = vmatprep.mubr.msk.f32.mxu0 %vm944_vm2, %v21584_v33  ;;  %v21589_v33 = vld [vmem:[#allocation61_spill] sm:$0xff] }
 0x3ea   : > { %14100 = vmatmul.mubr.msk.f32.gmra.mrb[12].mxu0 %vm944_vm2, %v19727_v5 }
 0x3eb   : > { %14102 = vmatprep.mubr.msk.f32.mxu0 %vm944_vm2, %v21585_v55  ;;  %v21590_v55 = vld [vmem:[#allocation59_spill] sm:$0xff] }
 0x3ee   : > { %14103 = vmatmul.mubr.msk.f32.gmra.mrb[14].mxu0 %vm944_vm2, %v21586_v40 }
 0x3ef   : > { %14105 = vmatprep.mubr.msk.f32.mxu0 %vm944_vm2, %v21587_v16  ;;  %v21591_v16 = vld [vmem:[#allocation16_spill] sm:$0xff] }
 0x3f2   : > { %14106 = vmatmul.mubr.msk.f32.gmra.mrb[16].mxu0 %vm944_vm2, %v19753_v63 }
 0x3f3   : > { %14108 = vmatprep.mubr.msk.f32.mxu0 %vm944_vm2, %v21588_v18 }
 0x3f6   : > { %14109 = vmatmul.mubr.msk.f32.gmra.mrb[18].mxu0 %vm944_vm2, %v19766_v38 }
 0x3f7   : > { %14111 = vmatprep.mubr.msk.f32.mxu0 %vm944_vm2, %v21589_v33  ;;  %v9071_v33 = vrot.slane %v19939_v17, 2 }
 0x3fa   : > { %14112 = vmatmul.mubr.msk.f32.gmra.mrb[20].mxu0 %vm944_vm2, %v19779_v52  ;;  %v9072_v52 = vrot.slane %v19943_v21, 2 }
 0x3fb   : > { %14114 = vmatprep.mubr.msk.f32.mxu0 %vm944_vm2, %v21590_v55 }
 0x3fe   : > { %14115 = vmatmul.mubr.msk.f32.gmra.mrb[22].mxu0 %vm944_vm2, %v19792_v35  ;;  %v9074_v35 = vrot.slane %v7350_v61, 2  ;;  %v354_v61 = vld [vmem:[%s20797_s4 + $0x20] sm:$0xf] }
 0x3ff   : > { %14117 = vmatprep.mubr.msk.f32.mxu0 %vm944_vm2, %v21591_v16  ;;  %v20139_v16 = vsel %vm8130_vm5, %v9071_v33, %v9072_v52 }
 0x402   : > { %14118 = vmatmul.mubr.msk.f32.gmra.mrb[24].mxu0 %vm944_vm2, %v19805_v20 }
 0x403   : > { %14120 = vmatprep.mubr.msk.f32.mxu0 %vm944_vm2, %v19810_v44  ;;  %v20144_v44 = vsel %vm8130_vm5, %v9072_v52, %v9074_v35  ;;  %v21613_v52 = vld [vmem:[#allocation64_spill] sm:$0xff]  ;;  %v21614_v35 = vld [vmem:[#allocation21_spill] sm:$0xff] }
 0x406   : > { %14121 = vmatmul.mubr.msk.f32.gmra.mrb[26].mxu0 %vm944_vm2, %v19818_v26 }
 0x407   : > { %14123 = vmatprep.mubr.msk.f32.mxu0 %vm944_vm2, %v19823_v60 }
 0x40a   : > { %14124 = vmatmul.mubr.msk.f32.gmra.mrb[28].mxu0 %vm944_vm2, %v19828_v46 }
 0x40b   : > { %14126 = vmatprep.mubr.msk.f32.mxu0 %vm944_vm2, %v20139_v16 }
 0x40e   : > { %14127 = vmatmul.mubr.msk.f32.gmra.mrb[30].mxu0 %vm944_vm2, %v20144_v44 }
 0x40f   : > { %14131 = vmatprep.mubr.msk.f32.mxu0 %vm944_vm2, %v21499_v43  ;;  %v21611_v43 = vld [vmem:[#allocation68_spill] sm:$0xff] }
 0x412   : > { %14132 = vmatmul.mubr.msk.f32.vlgmr.msra.gmra.mrb[0].mxu0 %vm944_vm2, %v21437_v14  ;;  %v21593_v14 = vld [vmem:[#allocation58_spill] sm:$0xff] }
 0x413   : > { %14180 = vmatpush3.msk.msra.mxu0 %vm1009_vm0, %v353_v0  ;;  %14134 = vmatprep.mubr.msk.f32.mxu0 %vm944_vm2, %v21502_v13  ;;  %v21612_v13 = vld [vmem:[#allocation71_spill] sm:$0xff]  ;;  %v21619_v0 = vld [vmem:[#allocation70_spill] sm:$0xff] }
 0x414   : > { %14229 = vmatprep.subr.msk.mxu0 %vm1009_vm0, %v354_v61 }
 0x416   : > { %14135 = vmatmul.mubr.msk.f32.gmra.mrb[2].mxu0 %vm944_vm2, %v21445_v39  ;;  %v21592_v39 = vld [vmem:[#allocation69_spill] sm:$0xff] }
 0x417   : > { %14137 = vmatprep.mubr.msk.f32.mxu0 %vm944_vm2, %v21452_v58  ;;  %v21594_v58 = vld [vmem:[#allocation56_spill] sm:$0xff] }
 0x41a   : > { %14138 = vmatmul.mubr.msk.f32.gmra.mrb[4].mxu0 %vm944_vm2, %v21453_v51  ;;  %v21595_v51 = vld [vmem:[#allocation28_spill] sm:$0xff] }
 0x41b   : > { %14140 = vmatprep.mubr.msk.f32.mxu0 %vm944_vm2, %v21457_v2  ;;  %v21596_v2 = vld [vmem:[#allocation38_spill] sm:$0xff] }
 0x41e   : > { %14141 = vmatmul.mubr.msk.f32.gmra.mrb[6].mxu0 %vm944_vm2, %v21458_v27  ;;  %v21604_v27 = vld [vmem:[#allocation34_spill] sm:$0xff] }
 0x41f   : > { %14143 = vmatprep.mubr.msk.f32.mxu0 %vm944_vm2, %v21462_v9  ;;  %v21606_v9 = vld [vmem:[#allocation20_spill] sm:$0xff] }
 0x422   : > { %14144 = vmatmul.mubr.msk.f32.gmra.mrb[8].mxu0 %vm944_vm2, %v21461_v25  ;;  %v21605_v25 = vld [vmem:[#allocation49_spill] sm:$0xff] }
 0x423   : > { %14146 = vmatprep.mubr.msk.f32.mxu0 %vm944_vm2, %v21468_v24  ;;  %v21608_v24 = vld [vmem:[#allocation29_spill] sm:$0xff] }
 0x426   : > { %14147 = vmatmul.mubr.msk.f32.gmra.mrb[10].mxu0 %vm944_vm2, %v21467_v6  ;;  %v21607_v6 = vld [vmem:[#allocation42_spill] sm:$0xff] }
 0x427   : > { %14149 = vmatprep.mubr.msk.f32.mxu0 %vm944_vm2, %v18085_v47  ;;  %v21598_v47 = vmov 0.0  }
 0x42a   : > { %14150 = vmatmul.mubr.msk.f32.gmra.mrb[12].mxu0 %vm944_vm2, %v18075_v19  ;;  %v21597_v19 = vld [vmem:[#allocation27_spill] sm:$0xff] }
 0x42b   : > { %14152 = vmatprep.mubr.msk.f32.mxu0 %vm944_vm2, %v21592_v39 }
 0x42e   : > { %14153 = vmatmul.mubr.msk.f32.gmra.mrb[14].mxu0 %vm944_vm2, %v21593_v14 }
 0x42f   : > { %14155 = vmatprep.mubr.msk.f32.mxu0 %vm944_vm2, %v21594_v58  ;;  %v21630_v58 = vld [vmem:[#allocation44_spill] sm:$0xff] }
 0x432   : > { %14156 = vmatmul.mubr.msk.f32.gmra.mrb[16].mxu0 %vm944_vm2, %v21595_v51 }
 0x433   : > { %14158 = vmatprep.mubr.msk.f32.mxu0 %vm944_vm2, %v21596_v2 }
 0x436   : > { %14159 = vmatmul.mubr.msk.f32.gmra.mrb[18].mxu0 %vm944_vm2, %v21485_v53  ;;  %v21609_v53 = vld [vmem:[#allocation9_spill] sm:$0xff] }
 0x437   : > { %14161 = vmatprep.mubr.msk.f32.mxu0 %vm944_vm2, %v18524_v36  ;;  %v10145_v36 = vld [vmem:[%s20798_s5] sm:$0xf] }
 0x438   : > { %14279 = vmatprep.subr.msk.mxu1 %vm1009_vm0, %v10145_v36 }
 0x439   : > { %14280 = vmatpush3.msk.msra.mxu1 %vm1009_vm0, %v10145_v36 }
 0x43a   : > { %14162 = vmatmul.mubr.msk.f32.gmra.mrb[20].mxu0 %vm944_vm2, %v18585_v34  ;;  %v21599_v34 = vld [vmem:[#allocation10_spill] sm:$0xff] }
 0x43b   : > { %14164 = vmatprep.mubr.msk.f32.mxu0 %vm944_vm2, %v18604_v10  ;;  %v21600_v10 = vld [vmem:[#allocation41_spill] sm:$0xff] }
 0x43e   : > { %14165 = vmatmul.mubr.msk.f32.gmra.mrb[22].mxu0 %vm944_vm2, %v18692_v32  ;;  %v21601_v32 = vld [vmem:[#allocation6_spill] sm:$0xff] }
 0x43f   : > { %14167 = vmatprep.mubr.msk.f32.mxu0 %vm944_vm2, %v18763_v54  ;;  %v21603_v54 = vld [vmem:[#allocation48_spill] sm:$0xff] }
 0x442   : > { %14168 = vmatmul.mubr.msk.f32.gmra.mrb[24].mxu0 %vm944_vm2, %v18758_v15  ;;  %v21602_v15 = vld [vmem:[#allocation35_spill] sm:$0xff] }
 0x443   : > { %14170 = vmatprep.mubr.msk.f32.mxu0 %vm944_vm2, %v21491_v8  ;;  %v21610_v8 = vld [vmem:[#allocation11_spill] sm:$0xff] }
 0x446   : > { %14171 = vmatmul.mubr.msk.f32.gmra.mrb[26].mxu0 %vm944_vm2, %v21597_v19  ;;  %v21631_v19 = vld [vmem:[#allocation3_spill] sm:$0xff] }
 0x447   : > { %14173 = vmatprep.mubr.msk.f32.mxu0 %vm944_vm2, %v19939_v17  ;;  %v21615_v17 = vld [vmem:[#allocation31_spill] sm:$0xff] }
 0x44a   : > { %14174 = vmatmul.mubr.msk.f32.gmra.mrb[28].mxu0 %vm944_vm2, %v19943_v21  ;;  %v21616_v21 = vld [vmem:[#allocation45_spill] sm:$0xff] }
 0x44b   : > { %14176 = vmatprep.mubr.f32.mxu0 %v21598_v47 }
 0x44e   : > { %14177 = vmatmul.mubr.f32.gmra.mrb[30].mxu0 %v21598_v47 }
 0x44f   : > { %14181 = vmatprep.mubr.msk.f32.mxu0 %vm944_vm2, %v21599_v34 }
 0x452   : > { %14182 = vmatmul.mubr.msk.f32.vlgmr.msra.gmra.mrb[0].mxu0 %vm944_vm2, %v21600_v10 }
 0x453   : > { %14230 = vmatpush3.msk.msra.mxu0 %vm1009_vm0, %v354_v61  ;;  %14184 = vmatprep.mubr.msk.f32.mxu0 %vm944_vm2, %v21601_v32  ;;  %v21629_v61 = vld [vmem:[#allocation32_spill] sm:$0xff] }
 0x456   : > { %14185 = vmatmul.mubr.msk.f32.gmra.mrb[2].mxu0 %vm944_vm2, %v21602_v15 }
 0x457   : > { %14187 = vmatprep.mubr.msk.f32.mxu0 %vm944_vm2, %v21603_v54 }
 0x45a   : > { %14188 = vmatmul.mubr.msk.f32.gmra.mrb[4].mxu0 %vm944_vm2, %v21604_v27 }
 0x45b   : > { %14190 = vmatprep.mubr.msk.f32.mxu0 %vm944_vm2, %v21605_v25 }
 0x45e   : > { %14191 = vmatmul.mubr.msk.f32.gmra.mrb[6].mxu0 %vm944_vm2, %v21606_v9 }
 0x45f   : > { %14193 = vmatprep.mubr.msk.f32.mxu0 %vm944_vm2, %v21607_v6 }
 0x462   : > { %14194 = vmatmul.mubr.msk.f32.gmra.mrb[8].mxu0 %vm944_vm2, %v21608_v24 }
 0x463   : > { %14196 = vmatprep.mubr.msk.f32.mxu0 %vm944_vm2, %v21609_v53 }
 0x466   : > { %14197 = vmatmul.mubr.msk.f32.gmra.mrb[10].mxu0 %vm944_vm2, %v21610_v8 }
 0x467   : > { %14199 = vmatprep.mubr.msk.f32.mxu0 %vm944_vm2, %v21611_v43 }
 0x46a   : > { %14200 = vmatmul.mubr.msk.f32.gmra.mrb[12].mxu0 %vm944_vm2, %v21612_v13 }
 0x46b   : > { %14202 = vmatprep.mubr.msk.f32.mxu0 %vm944_vm2, %v21569_v41 }
 0x46e   : > { %14203 = vmatmul.mubr.msk.f32.gmra.mrb[14].mxu0 %vm944_vm2, %v21570_v59 }
 0x46f   : > { %14205 = vmatprep.mubr.msk.f32.mxu0 %vm944_vm2, %v21571_v49 }
 0x472   : > { %14206 = vmatmul.mubr.msk.f32.gmra.mrb[16].mxu0 %vm944_vm2, %v21572_v1 }
 0x473   : > { %14208 = vmatprep.mubr.msk.f32.mxu0 %vm944_vm2, %v21573_v7 }
 0x476   : > { %14209 = vmatmul.mubr.msk.f32.gmra.mrb[18].mxu0 %vm944_vm2, %v19533_v11 }
 0x477   : > { %14211 = vmatprep.mubr.msk.f32.mxu0 %vm944_vm2, %v19543_v42 }
 0x47a   : > { %14212 = vmatmul.mubr.msk.f32.gmra.mrb[20].mxu0 %vm944_vm2, %v19565_v28 }
 0x47b   : > { %14214 = vmatprep.mubr.msk.f32.mxu0 %vm944_vm2, %v21574_v62 }
 0x47e   : > { %14215 = vmatmul.mubr.msk.f32.gmra.mrb[22].mxu0 %vm944_vm2, %v21575_v48 }
 0x47f   : > { %14217 = vmatprep.mubr.msk.f32.mxu0 %vm944_vm2, %v21576_v23 }
 0x482   : > { %14218 = vmatmul.mubr.msk.f32.gmra.mrb[24].mxu0 %vm944_vm2, %v19602_v31 }
 0x483   : > { %14220 = vmatprep.mubr.msk.f32.mxu0 %vm944_vm2, %v19607_v57 }
 0x486   : > { %14221 = vmatmul.mubr.msk.f32.gmra.mrb[26].mxu0 %vm944_vm2, %v21577_v29 }
 0x487   : > { %14223 = vmatprep.mubr.msk.f32.mxu0 %vm944_vm2, %v20061_v56 }
 0x48a   : > { %14224 = vmatmul.mubr.msk.f32.gmra.mrb[28].mxu0 %vm944_vm2, %v20066_v37 }
 0x48b   : > { %14226 = vmatprep.mubr.msk.f32.mxu0 %vm944_vm2, %v21613_v52 }
 0x48e   : > { %14227 = vmatmul.mubr.msk.f32.gmra.mrb[30].mxu0 %vm944_vm2, %v21613_v52  ;;  %v21632_v52 = vld [vmem:[#allocation63_spill] sm:$0xff] }
 0x48f   : > { %14231 = vmatprep.mubr.msk.f32.mxu0 %vm944_vm2, %v21579_v22 }
 0x492   : > { %14232 = vmatmul.mubr.msk.f32.vlgmr.msra.gmra.mrb[0].mxu0 %vm944_vm2, %v19662_v12  ;;  %v21617_v12 = vld [vmem:[#allocation15_spill] sm:$0xff] }
 0x493   : > { %14234 = vmatprep.mubr.msk.f32.mxu0 %vm944_vm2, %v21580_v50  ;;  %v21627_v50 = vld [vmem:[#allocation37_spill] sm:$0xff] }
 0x496   : > { %14235 = vmatmul.mubr.msk.f32.gmra.mrb[2].mxu0 %vm944_vm2, %v19674_v45  ;;  %v21618_v45 = vld [vmem:[#allocation23_spill] sm:$0xff] }
 0x497   : > { %14237 = vmatprep.mubr.msk.f32.mxu0 %vm944_vm2, %v21581_v4 }
 0x49a   : > { %14238 = vmatmul.mubr.msk.f32.gmra.mrb[4].mxu0 %vm944_vm2, %v21614_v35 }
 0x49b   : > { %14240 = vmatprep.mubr.msk.f32.mxu0 %vm944_vm2, %v21615_v17 }
 0x49e   : > { %14241 = vmatmul.mubr.msk.f32.gmra.mrb[6].mxu0 %vm944_vm2, %v19701_v3  ;;  %v21621_v3 = vld [vmem:[#allocation36_spill] sm:$0xff] }
 0x49f   : > { %14243 = vmatprep.mubr.msk.f32.mxu0 %vm944_vm2, %v21616_v21  ;;  %v21633_v21 = vld [vmem:[#allocation40_spill] sm:$0xff] }
 0x4a2   : > { %14244 = vmatmul.mubr.msk.f32.gmra.mrb[8].mxu0 %vm944_vm2, %v19713_v30  ;;  %v21620_v30 = vld [vmem:[#allocation61_spill] sm:$0xff] }
 0x4a3   : > { %14246 = vmatprep.mubr.msk.f32.mxu0 %vm944_vm2, %v21617_v12 }
 0x4a6   : > { %14247 = vmatmul.mubr.msk.f32.gmra.mrb[10].mxu0 %vm944_vm2, %v19727_v5  ;;  %v21623_v5 = vld [vmem:[#allocation16_spill] sm:$0xff] }
 0x4a7   : > { %14249 = vmatprep.mubr.msk.f32.mxu0 %vm944_vm2, %v21618_v45 }
 0x4aa   : > { %14250 = vmatmul.mubr.msk.f32.gmra.mrb[12].mxu0 %vm944_vm2, %v21586_v40  ;;  %v21622_v40 = vld [vmem:[#allocation46_spill] sm:$0xff] }
 0x4ab   : > { %14252 = vmatprep.mubr.msk.f32.mxu0 %vm944_vm2, %v21619_v0  ;;  %v21634_v0 = vld [vmem:[#allocation65_spill] sm:$0xff] }
 0x4ae   : > { %14253 = vmatmul.mubr.msk.f32.gmra.mrb[14].mxu0 %vm944_vm2, %v19753_v63  ;;  %v21624_v63 = vld [vmem:[#allocation53_spill] sm:$0xff] }
 0x4af   : > { %14255 = vmatprep.mubr.msk.f32.mxu0 %vm944_vm2, %v21588_v18  ;;  %v21628_v18 = vld [vmem:[#allocation33_spill] sm:$0xff] }
 0x4b2   : > { %14256 = vmatmul.mubr.msk.f32.gmra.mrb[16].mxu0 %vm944_vm2, %v19766_v38  ;;  %v21625_v38 = vld [vmem:[#allocation19_spill] sm:$0xff] }
 0x4b3   : > { %14258 = vmatprep.mubr.msk.f32.mxu0 %vm944_vm2, %v21620_v30 }
 0x4b6   : > { %14259 = vmatmul.mubr.msk.f32.gmra.mrb[18].mxu0 %vm944_vm2, %v21621_v3 }
 0x4b7   : > { %14261 = vmatprep.mubr.msk.f32.mxu0 %vm944_vm2, %v21590_v55 }
 0x4ba   : > { %14262 = vmatmul.mubr.msk.f32.gmra.mrb[20].mxu0 %vm944_vm2, %v21622_v40  ;;  %v21635_v40 = vld [vmem:[#allocation18_spill] sm:$0xff] }
 0x4bb   : > { %14264 = vmatprep.mubr.msk.f32.mxu0 %vm944_vm2, %v21623_v5 }
 0x4be   : > { %14265 = vmatmul.mubr.msk.f32.gmra.mrb[22].mxu0 %vm944_vm2, %v19805_v20  ;;  %v10535_v20 = vld [vmem:[%s20800_s7] sm:$0xf] }
 0x4bf   : > { %14267 = vmatprep.mubr.msk.f32.mxu0 %vm944_vm2, %v21624_v63  ;;  %14329 = vmatprep.subr.msk.mxu1 %vm1009_vm0, %v10535_v20 }
 0x4c2   : > { %14268 = vmatmul.mubr.msk.f32.gmra.mrb[24].mxu0 %vm944_vm2, %v19818_v26 }
 0x4c3   : > { %14270 = vmatprep.mubr.msk.f32.mxu0 %vm944_vm2, %v19823_v60  ;;  %v21626_v60 = vld [vmem:[#allocation66_spill] sm:$0xff] }
 0x4c6   : > { %14271 = vmatmul.mubr.msk.f32.gmra.mrb[26].mxu0 %vm944_vm2, %v19828_v46 }
 0x4c7   : > { %14273 = vmatprep.mubr.msk.f32.mxu0 %vm944_vm2, %v20139_v16 }
 0x4ca   : > { %14274 = vmatmul.mubr.msk.f32.gmra.mrb[28].mxu0 %vm944_vm2, %v20144_v44  ;;  %v20359_v44 = vld [vmem:[%s20799_s6] sm:$0xf] }
 0x4cb   : > { %14276 = vmatprep.mubr.msk.f32.mxu0 %vm944_vm2, %v21625_v38 }
 0x4ce   : > { %14277 = vmatmul.mubr.msk.f32.gmra.mrb[30].mxu0 %vm944_vm2, %v21625_v38  ;;  %v21636_v38 = vld [vmem:[#allocation17_spill] sm:$0xff] }
 0x565   : > { %v14233_v26 = vpop.f32.mrb[0].mxu0 }
 0x566   : > { %v14479_v46 = vadd.f32 %v14233_v26, %v21626_v60  ;;  %v9954_v22 = vpop.f32.mrb[1].mxu0  ;;  %v21637_v60 = vld [vmem:[#allocation13_spill] sm:$0xff] }
 0x567   : > { %v14480_v4 = vadd.f32 %v9954_v22, %v21627_v50  ;;  %v21638_v50 = vld [vmem:[#allocation50_spill] sm:$0xff] }
 0x569   : > { %v14236_v16 = vpop.f32.mrb[2].mxu0  ;;  %14281 = vmatprep.mubr.msk.f32.mxu1 %vm944_vm2, %v14480_v4 }
 0x56a   : > { %v14481_v33 = vadd.f32 %v14236_v16, %v21628_v18  ;;  %v9964_v55 = vpop.f32.mrb[3].mxu0  ;;  %14282 = vmatmul.mubr.msk.f32.vlgmr.msra.gmra.mrb[32].mxu1 %vm944_vm2, %v14479_v46  ;;  %v21639_v18 = vld [vmem:[#allocation51_spill] sm:$0xff] }
 0x56b   : > { %v14482_v39 = vadd.f32 %v9964_v55, %v21629_v61  ;;  %14330 = vmatpush3.msk.msra.mxu1 %vm1009_vm0, %v10535_v20  ;;  %v21640_v61 = vld [vmem:[#allocation14_spill] sm:$0xff] }
 0x56c   : > { %14379 = vmatprep.subr.msk.mxu1 %vm1009_vm0, %v20359_v44 }
 0x56d   : > { %v14239_v14 = vpop.f32.mrb[4].mxu0  ;;  %14284 = vmatprep.mubr.msk.f32.mxu1 %vm944_vm2, %v14482_v39 }
 0x56e   : > { %v14483_v51 = vadd.f32 %v14239_v14, %v21630_v58  ;;  %v9974_v2 = vpop.f32.mrb[5].mxu0  ;;  %14285 = vmatmul.mubr.msk.f32.gmra.mrb[34].mxu1 %vm944_vm2, %v14481_v33  ;;  %v21641_v58 = vld [vmem:[#allocation60_spill] sm:$0xff] }
 0x56f   : > { %v14484_v47 = vadd.f32 %v9974_v2, %v21631_v19  ;;  %v21642_v19 = vld [vmem:[#allocation30_spill] sm:$0xff] }
 0x571   : > { %v14242_v36 = vpop.f32.mrb[6].mxu0  ;;  %14287 = vmatprep.mubr.msk.f32.mxu1 %vm944_vm2, %v14484_v47 }
 0x572   : > { %v14485_v35 = vadd.f32 %v14242_v36, %v21632_v52  ;;  %v9984_v17 = vpop.f32.mrb[7].mxu0  ;;  %14288 = vmatmul.mubr.msk.f32.gmra.mrb[36].mxu1 %vm944_vm2, %v14483_v51  ;;  %v21643_v52 = vld [vmem:[#allocation26_spill] sm:$0xff] }
 0x573   : > { %v14486_v12 = vadd.f32 %v9984_v17, %v21633_v21  ;;  %v21644_v21 = vld [vmem:[#allocation2_spill] sm:$0xff] }
 0x575   : > { %v14245_v45 = vpop.f32.mrb[8].mxu0  ;;  %14290 = vmatprep.mubr.msk.f32.mxu1 %vm944_vm2, %v14486_v12 }
 0x576   : > { %v14487_v30 = vadd.f32 %v14245_v45, %v21634_v0  ;;  %v9994_v3 = vpop.f32.mrb[9].mxu0  ;;  %14291 = vmatmul.mubr.msk.f32.gmra.mrb[38].mxu1 %vm944_vm2, %v14485_v35  ;;  %v21645_v0 = vld [vmem:[#allocation72_spill] sm:$0xff] }
 0x577   : > { %v14488_v5 = vadd.f32 %v9994_v3, %v21635_v40  ;;  %v21646_v40 = vld [vmem:[#allocation73_spill] sm:$0xff] }
 0x579   : > { %v14248_v63 = vpop.f32.mrb[10].mxu0  ;;  %14293 = vmatprep.mubr.msk.f32.mxu1 %vm944_vm2, %v14488_v5 }
 0x57a   : > { %v14489_v20 = vadd.f32 %v14248_v63, %v21636_v38  ;;  %v10004_v26 = vpop.f32.mrb[11].mxu0  ;;  %14294 = vmatmul.mubr.msk.f32.gmra.mrb[40].mxu1 %vm944_vm2, %v14487_v30  ;;  %v21647_v38 = vld [vmem:[#allocation74_spill] sm:$0xff] }
 0x57b   : > { %v14490_v46 = vadd.f32 %v10004_v26, %v21637_v60  ;;  %v21648_v60 = vld [vmem:[#allocation75_spill] sm:$0xff] }
 0x57d   : > { %v14251_v22 = vpop.f32.mrb[12].mxu0  ;;  %14296 = vmatprep.mubr.msk.f32.mxu1 %vm944_vm2, %v14490_v46 }
 0x57e   : > { %v14491_v4 = vadd.f32 %v14251_v22, %v21638_v50  ;;  %v10014_v16 = vpop.f32.mrb[13].mxu0  ;;  %14297 = vmatmul.mubr.msk.f32.gmra.mrb[42].mxu1 %vm944_vm2, %v14489_v20  ;;  %v21649_v50 = vld [vmem:[#allocation76_spill] sm:$0xff] }
 0x57f   : > { %v14492_v33 = vadd.f32 %v10014_v16, %v21639_v18  ;;  %v21650_v18 = vld [vmem:[#allocation77_spill] sm:$0xff] }
 0x581   : > { %v14254_v55 = vpop.f32.mrb[14].mxu0  ;;  %14299 = vmatprep.mubr.msk.f32.mxu1 %vm944_vm2, %v14492_v33 }
 0x582   : > { %v14493_v39 = vadd.f32 %v14254_v55, %v21640_v61  ;;  %v10024_v14 = vpop.f32.mrb[15].mxu0  ;;  %14300 = vmatmul.mubr.msk.f32.gmra.mrb[44].mxu1 %vm944_vm2, %v14491_v4  ;;  %v21651_v61 = vld [vmem:[#allocation78_spill] sm:$0xff] }
 0x583   : > { %v14494_v51 = vadd.f32 %v10024_v14, %v21641_v58  ;;  %v21652_v58 = vld [vmem:[#allocation79_spill] sm:$0xff] }
 0x585   : > { %v14257_v2 = vpop.f32.mrb[16].mxu0  ;;  %14302 = vmatprep.mubr.msk.f32.mxu1 %vm944_vm2, %v14494_v51 }
 0x586   : > { %v14495_v47 = vadd.f32 %v14257_v2, %v21642_v19  ;;  %v10034_v36 = vpop.f32.mrb[17].mxu0  ;;  %14303 = vmatmul.mubr.msk.f32.gmra.mrb[46].mxu1 %vm944_vm2, %v14493_v39  ;;  %v21653_v19 = vld [vmem:[#allocation80_spill] sm:$0xff] }
 0x587   : > { %v14496_v35 = vadd.f32 %v10034_v36, %v21643_v52  ;;  %v21654_v52 = vld [vmem:[#allocation81_spill] sm:$0xff] }
 0x589   : > { %v14260_v17 = vpop.f32.mrb[18].mxu0  ;;  %14305 = vmatprep.mubr.msk.f32.mxu1 %vm944_vm2, %v14496_v35 }
 0x58a   : > { %v14497_v12 = vadd.f32 %v14260_v17, %v21644_v21  ;;  %v10044_v45 = vpop.f32.mrb[19].mxu0  ;;  %14306 = vmatmul.mubr.msk.f32.gmra.mrb[48].mxu1 %vm944_vm2, %v14495_v47  ;;  %v21655_v21 = vld [vmem:[#allocation82_spill] sm:$0xff] }
 0x58b   : > { %v14498_v30 = vadd.f32 %v10044_v45, %v21645_v0  ;;  %v21656_v0 = vld [vmem:[#allocation83_spill] sm:$0xff] }
 0x58d   : > { %v14263_v3 = vpop.f32.mrb[20].mxu0  ;;  %14308 = vmatprep.mubr.msk.f32.mxu1 %vm944_vm2, %v14498_v30 }
 0x58e   : > { %v14499_v5 = vadd.f32 %v14263_v3, %v21646_v40  ;;  %v10054_v63 = vpop.f32.mrb[21].mxu0  ;;  %14309 = vmatmul.mubr.msk.f32.gmra.mrb[50].mxu1 %vm944_vm2, %v14497_v12  ;;  %v21657_v40 = vld [vmem:[#allocation84_spill] sm:$0xff] }
 0x58f   : > { %v14500_v20 = vadd.f32 %v10054_v63, %v21647_v38  ;;  %v21658_v63 = vld [vmem:[#allocation54_spill] sm:$0xff] }
 0x590   : > { %v11088_v38 = vld [vmem:[%s20801_s8] sm:$0xf] }
 0x591   : > { %v14266_v26 = vpop.f32.mrb[22].mxu0  ;;  %14311 = vmatprep.mubr.msk.f32.mxu1 %vm944_vm2, %v14500_v20  ;;  %v21659_v20 = vld [vmem:[#allocation67_spill] sm:$0xff] }
 0x592   : > { %v14501_v46 = vadd.f32 %v14266_v26, %v21648_v60  ;;  %v10064_v22 = vpop.f32.mrb[23].mxu0  ;;  %14312 = vmatmul.mubr.msk.f32.gmra.mrb[52].mxu1 %vm944_vm2, %v14499_v5  ;;  %v20652_v26 = vld [vmem:[%s15658_s20 + $0x1a2] sm:$0xff] }
 0x593   : > { %v14502_v4 = vadd.f32 %v10064_v22, %v21649_v50 }
 0x595   : > { %v14269_v16 = vpop.f32.mrb[24].mxu0  ;;  %14314 = vmatprep.mubr.msk.f32.mxu1 %vm944_vm2, %v14502_v4 }
 0x596   : > { %v14503_v33 = vadd.f32 %v14269_v16, %v21650_v18  ;;  %v10074_v55 = vpop.f32.mrb[25].mxu0  ;;  %14315 = vmatmul.mubr.msk.f32.gmra.mrb[54].mxu1 %vm944_vm2, %v14501_v46 }
 0x597   : > { %v14504_v39 = vadd.f32 %v10074_v55, %v21651_v61 }
 0x599   : > { %v14272_v14 = vpop.f32.mrb[26].mxu0  ;;  %14317 = vmatprep.mubr.msk.f32.mxu1 %vm944_vm2, %v14504_v39 }
 0x59a   : > { %v14505_v51 = vadd.f32 %v14272_v14, %v21652_v58  ;;  %v10084_v2 = vpop.f32.mrb[27].mxu0  ;;  %14318 = vmatmul.mubr.msk.f32.gmra.mrb[56].mxu1 %vm944_vm2, %v14503_v33 }
 0x59b   : > { %v14506_v47 = vadd.f32 %v10084_v2, %v21653_v19 }
 0x59d   : > { %v14275_v36 = vpop.f32.mrb[28].mxu0  ;;  %14320 = vmatprep.mubr.msk.f32.mxu1 %vm944_vm2, %v14506_v47 }
 0x59e   : > { %v14507_v35 = vadd.f32 %v14275_v36, %v21654_v52  ;;  %v10094_v17 = vpop.f32.mrb[29].mxu0  ;;  %14321 = vmatmul.mubr.msk.f32.gmra.mrb[58].mxu1 %vm944_vm2, %v14505_v51 }
 0x59f   : > { %v14508_v12 = vadd.f32 %v10094_v17, %v21655_v21 }
 0x5a1   : > { %v14278_v45 = vpop.f32.mrb[30].mxu0  ;;  %14323 = vmatprep.mubr.msk.f32.mxu1 %vm944_vm2, %v14508_v12 }
 0x5a2   : > { %v14509_v30 = vadd.f32 %v14278_v45, %v21656_v0  ;;  %v10104_v3 = vpop.f32.mrb[31].mxu0  ;;  %14324 = vmatmul.mubr.msk.f32.gmra.mrb[60].mxu1 %vm944_vm2, %v14507_v35 }
 0x5a3   : > { %v14510_v5 = vadd.f32 %v10104_v3, %v21657_v40 }
 0x5a5   : > { %14326 = vmatprep.mubr.msk.f32.mxu1 %vm944_vm2, %v14510_v5 }
 0x5a6   : > { %14327 = vmatmul.mubr.msk.f32.gmra.mrb[62].mxu1 %vm944_vm2, %v14509_v30 }
 0x5a7   : > { %14331 = vmatprep.mubr.msk.f32.mxu1 %vm944_vm2, %v21658_v63 }
 0x5aa   : > { %14332 = vmatmul.mubr.msk.f32.vlgmr.msra.gmra.mrb[64].mxu1 %vm944_vm2, %v21659_v20 }
 0x5ab   : > { %14334 = vmatprep.mubr.msk.f32.mxu1 %vm944_vm2, %v21599_v34  ;;  %14380 = vmatpush3.msk.msra.mxu1 %vm1009_vm0, %v20359_v44  ;;  %v20575_v34 = vld [vmem:[%s15658_s20 + $0xf2] sm:$0xff]  ;;  %v20645_v44 = vld [vmem:[%s15658_s20 + $0x19a] sm:$0xff] }
 0x5ac   : > { %14429 = vmatprep.subr.msk.mxu1 %vm1009_vm0, %v11088_v38 }
 0x5ae   : > { %14335 = vmatmul.mubr.msk.f32.gmra.mrb[66].mxu1 %vm944_vm2, %v21600_v10  ;;  %v20582_v10 = vld [vmem:[%s15658_s20 + $0xfa] sm:$0xff] }
 0x5af   : > { %14337 = vmatprep.mubr.msk.f32.mxu1 %vm944_vm2, %v21601_v32  ;;  %v20585_v32 = vld [vmem:[%s15658_s20 + $0x10a] sm:$0xff] }
 0x5b2   : > { %14338 = vmatmul.mubr.msk.f32.gmra.mrb[68].mxu1 %vm944_vm2, %v21602_v15  ;;  %v20592_v15 = vld [vmem:[%s15658_s20 + $0x112] sm:$0xff] }
 0x5b3   : > { %14340 = vmatprep.mubr.msk.f32.mxu1 %vm944_vm2, %v21603_v54  ;;  %v20595_v54 = vld [vmem:[%s15658_s20 + $0x122] sm:$0xff] }
 0x5b6   : > { %14341 = vmatmul.mubr.msk.f32.gmra.mrb[70].mxu1 %vm944_vm2, %v21604_v27  ;;  %v20602_v27 = vld [vmem:[%s15658_s20 + $0x12a] sm:$0xff] }
 0x5b7   : > { %14343 = vmatprep.mubr.msk.f32.mxu1 %vm944_vm2, %v21605_v25  ;;  %v20605_v25 = vld [vmem:[%s15658_s20 + $0x13a] sm:$0xff] }
 0x5ba   : > { %14344 = vmatmul.mubr.msk.f32.gmra.mrb[72].mxu1 %vm944_vm2, %v21606_v9  ;;  %v20612_v9 = vld [vmem:[%s15658_s20 + $0x142] sm:$0xff] }
 0x5bb   : > { %14346 = vmatprep.mubr.msk.f32.mxu1 %vm944_vm2, %v21607_v6  ;;  %v20615_v6 = vld [vmem:[%s15658_s20 + $0x152] sm:$0xff] }
 0x5be   : > { %14347 = vmatmul.mubr.msk.f32.gmra.mrb[74].mxu1 %vm944_vm2, %v21608_v24  ;;  %v20622_v24 = vld [vmem:[%s15658_s20 + $0x15a] sm:$0xff] }
 0x5bf   : > { %14349 = vmatprep.mubr.msk.f32.mxu1 %vm944_vm2, %v21609_v53  ;;  %v20625_v53 = vld [vmem:[%s15658_s20 + $0x16a] sm:$0xff] }
 0x5c2   : > { %14350 = vmatmul.mubr.msk.f32.gmra.mrb[76].mxu1 %vm944_vm2, %v21610_v8  ;;  %v20632_v8 = vld [vmem:[%s15658_s20 + $0x172] sm:$0xff] }
 0x5c3   : > { %14352 = vmatprep.mubr.msk.f32.mxu1 %vm944_vm2, %v21611_v43  ;;  %v20635_v43 = vld [vmem:[%s15658_s20 + $0x182] sm:$0xff] }
 0x5c6   : > { %14353 = vmatmul.mubr.msk.f32.gmra.mrb[78].mxu1 %vm944_vm2, %v21612_v13  ;;  %v20642_v13 = vld [vmem:[%s15658_s20 + $0x18a] sm:$0xff] }
 0x5c7   : > { %14355 = vmatprep.mubr.msk.f32.mxu1 %vm944_vm2, %v21569_v41  ;;  %v20535_v41 = vld [vmem:[%s15658_s20 + $0x92] sm:$0xff] }
 0x5ca   : > { %14356 = vmatmul.mubr.msk.f32.gmra.mrb[80].mxu1 %vm944_vm2, %v21570_v59  ;;  %v20542_v59 = vld [vmem:[%s15658_s20 + $0x9a] sm:$0xff] }
 0x5cb   : > { %14358 = vmatprep.mubr.msk.f32.mxu1 %vm944_vm2, %v21571_v49  ;;  %v20532_v49 = vld [vmem:[%s15658_s20 + $0x82] sm:$0xff] }
 0x5ce   : > { %14359 = vmatmul.mubr.msk.f32.gmra.mrb[82].mxu1 %vm944_vm2, %v21572_v1  ;;  %v20525_v1 = vld [vmem:[%s15658_s20 + $0x7a] sm:$0xff] }
 0x5cf   : > { %14361 = vmatprep.mubr.msk.f32.mxu1 %vm944_vm2, %v21573_v7  ;;  %v20494_v7 = vld [vmem:[%s15658_s20 + $0x32] sm:$0xff] }
 0x5d2   : > { %14362 = vmatmul.mubr.msk.f32.gmra.mrb[84].mxu1 %vm944_vm2, %v19533_v11  ;;  %v20501_v11 = vld [vmem:[%s15658_s20 + $0x3a] sm:$0xff] }
 0x5d3   : > { %14364 = vmatprep.mubr.msk.f32.mxu1 %vm944_vm2, %v19543_v42  ;;  %v20504_v42 = vld [vmem:[%s15658_s20 + $0x4a] sm:$0xff] }
 0x5d6   : > { %14365 = vmatmul.mubr.msk.f32.gmra.mrb[86].mxu1 %vm944_vm2, %v19565_v28  ;;  %v20512_v28 = vld [vmem:[%s15658_s20 + $0x52] sm:$0xff] }
 0x5d7   : > { %14367 = vmatprep.mubr.msk.f32.mxu1 %vm944_vm2, %v21574_v62  ;;  %v20545_v62 = vld [vmem:[%s15658_s20 + $0xaa] sm:$0xff] }
 0x5da   : > { %14368 = vmatmul.mubr.msk.f32.gmra.mrb[88].mxu1 %vm944_vm2, %v21575_v48  ;;  %v20552_v48 = vld [vmem:[%s15658_s20 + $0xb2] sm:$0xff] }
 0x5db   : > { %14370 = vmatprep.mubr.msk.f32.mxu1 %vm944_vm2, %v21576_v23  ;;  %v20555_v23 = vld [vmem:[%s15658_s20 + $0xc2] sm:$0xff] }
 0x5de   : > { %14371 = vmatmul.mubr.msk.f32.gmra.mrb[90].mxu1 %vm944_vm2, %v19602_v31  ;;  %v20515_v31 = vld [vmem:[%s15658_s20 + $0x62] sm:$0xff] }
 0x5df   : > { %14373 = vmatprep.mubr.msk.f32.mxu1 %vm944_vm2, %v19607_v57  ;;  %v20522_v57 = vld [vmem:[%s15658_s20 + $0x6a] sm:$0xff] }
 0x5e2   : > { %14374 = vmatmul.mubr.msk.f32.gmra.mrb[92].mxu1 %vm944_vm2, %v21577_v29  ;;  %v20562_v29 = vld [vmem:[%s15658_s20 + $0xca] sm:$0xff] }
 0x5e3   : > { %14376 = vmatprep.mubr.msk.f32.mxu1 %vm944_vm2, %v20061_v56  ;;  %v20565_v56 = vld [vmem:[%s15658_s20 + $0xda] sm:$0xff] }
 0x5e6   : > { %14377 = vmatmul.mubr.msk.f32.gmra.mrb[94].mxu1 %vm944_vm2, %v20066_v37  ;;  %v20572_v37 = vld [vmem:[%s15658_s20 + $0xe2] sm:$0xff]  ;;  %s12652_s20 = sshll.u32 %s21661_s10, 8 }
 0x5e7   : > { %14381 = vmatprep.mubr.msk.f32.mxu1 %vm944_vm2, %v20494_v7  ;;  %s20692_s14 = scalar_lea.vmem %s20802_s9, %s12652_s20 }
 0x5ea   : > { %14382 = vmatmul.mubr.msk.f32.vlgmr.msra.gmra.mrb[64].mxu1 %vm944_vm2, %v20501_v11 }
 0x5eb   : > { %14430 = vmatpush3.msk.msra.mxu1 %vm1009_vm0, %v11088_v38  ;;  %14384 = vmatprep.mubr.msk.f32.mxu1 %vm944_vm2, %v20504_v42 }
 0x5ee   : > { %14385 = vmatmul.mubr.msk.f32.gmra.mrb[66].mxu1 %vm944_vm2, %v20512_v28 }
 0x5ef   : > { %14387 = vmatprep.mubr.msk.f32.mxu1 %vm944_vm2, %v20515_v31 }
 0x5f2   : > { %14388 = vmatmul.mubr.msk.f32.gmra.mrb[68].mxu1 %vm944_vm2, %v20522_v57 }
 0x5f3   : > { %14390 = vmatprep.mubr.msk.f32.mxu1 %vm944_vm2, %v20525_v1 }
 0x5f6   : > { %14391 = vmatmul.mubr.msk.f32.gmra.mrb[70].mxu1 %vm944_vm2, %v20532_v49 }
 0x5f7   : > { %14393 = vmatprep.mubr.msk.f32.mxu1 %vm944_vm2, %v20535_v41 }
 0x5fa   : > { %14394 = vmatmul.mubr.msk.f32.gmra.mrb[72].mxu1 %vm944_vm2, %v20542_v59 }
 0x5fb   : > { %14396 = vmatprep.mubr.msk.f32.mxu1 %vm944_vm2, %v20545_v62 }
 0x5fe   : > { %14397 = vmatmul.mubr.msk.f32.gmra.mrb[74].mxu1 %vm944_vm2, %v20552_v48 }
 0x5ff   : > { %14399 = vmatprep.mubr.msk.f32.mxu1 %vm944_vm2, %v20555_v23 }
 0x602   : > { %14400 = vmatmul.mubr.msk.f32.gmra.mrb[76].mxu1 %vm944_vm2, %v20562_v29 }
 0x603   : > { %14402 = vmatprep.mubr.msk.f32.mxu1 %vm944_vm2, %v20565_v56 }
 0x606   : > { %14403 = vmatmul.mubr.msk.f32.gmra.mrb[78].mxu1 %vm944_vm2, %v20572_v37 }
 0x607   : > { %14405 = vmatprep.mubr.msk.f32.mxu1 %vm944_vm2, %v20575_v34 }
 0x60a   : > { %14406 = vmatmul.mubr.msk.f32.gmra.mrb[80].mxu1 %vm944_vm2, %v20582_v10 }
 0x60b   : > { %14408 = vmatprep.mubr.msk.f32.mxu1 %vm944_vm2, %v20585_v32 }
 0x60e   : > { %14409 = vmatmul.mubr.msk.f32.gmra.mrb[82].mxu1 %vm944_vm2, %v20592_v15 }
 0x60f   : > { %14411 = vmatprep.mubr.msk.f32.mxu1 %vm944_vm2, %v20595_v54 }
 0x612   : > { %14412 = vmatmul.mubr.msk.f32.gmra.mrb[84].mxu1 %vm944_vm2, %v20602_v27 }
 0x613   : > { %14414 = vmatprep.mubr.msk.f32.mxu1 %vm944_vm2, %v20605_v25 }
 0x616   : > { %14415 = vmatmul.mubr.msk.f32.gmra.mrb[86].mxu1 %vm944_vm2, %v20612_v9 }
 0x617   : > { %14417 = vmatprep.mubr.msk.f32.mxu1 %vm944_vm2, %v20615_v6 }
 0x61a   : > { %14418 = vmatmul.mubr.msk.f32.gmra.mrb[88].mxu1 %vm944_vm2, %v20622_v24 }
 0x61b   : > { %14420 = vmatprep.mubr.msk.f32.mxu1 %vm944_vm2, %v20625_v53 }
 0x61e   : > { %14421 = vmatmul.mubr.msk.f32.gmra.mrb[90].mxu1 %vm944_vm2, %v20632_v8 }
 0x61f   : > { %14423 = vmatprep.mubr.msk.f32.mxu1 %vm944_vm2, %v20635_v43 }
 0x622   : > { %14424 = vmatmul.mubr.msk.f32.gmra.mrb[92].mxu1 %vm944_vm2, %v20642_v13 }
 0x623   : > { %14426 = vmatprep.mubr.msk.f32.mxu1 %vm944_vm2, %v20645_v44 }
 0x626   : > { %14427 = vmatmul.mubr.msk.f32.gmra.mrb[94].mxu1 %vm944_vm2, %v20652_v26 }
 0x63d   : > { %v14283_v60 = vpop.f32.mrb[32].mxu1 }
 0x63e   : > { %v10311_v46 = vpop.f32.mrb[33].mxu1  ;;  %v10471_v50 = vmax.f32 %v14283_v60, 0.0 }
 0x63f   : > { %v10470_v22 = vmax.f32 %v10311_v46, 0.0 }
 0x641   : > { %v14286_v4 = vpop.f32.mrb[34].mxu1  ;;  %14431 = vmatprep.mubr.msk.f32.mxu1 %vm944_vm2, %v10470_v22 }
 0x642   : > { %v10321_v16 = vpop.f32.mrb[35].mxu1  ;;  %14432 = vmatmul.mubr.msk.f32.vlgmr.msra.gmra.mrb[64].mxu1 %vm944_vm2, %v10471_v50  ;;  %v10473_v33 = vmax.f32 %v14286_v4, 0.0 }
 0x643   : > { %v10472_v18 = vmax.f32 %v10321_v16, 0.0 }
 0x645   : > { %v14289_v55 = vpop.f32.mrb[36].mxu1  ;;  %14434 = vmatprep.mubr.msk.f32.mxu1 %vm944_vm2, %v10472_v18 }
 0x646   : > { %v10331_v61 = vpop.f32.mrb[37].mxu1  ;;  %14435 = vmatmul.mubr.msk.f32.gmra.mrb[66].mxu1 %vm944_vm2, %v10473_v33  ;;  %v10475_v14 = vmax.f32 %v14289_v55, 0.0 }
 0x647   : > { %v10474_v39 = vmax.f32 %v10331_v61, 0.0 }
 0x649   : > { %v14292_v58 = vpop.f32.mrb[38].mxu1  ;;  %14437 = vmatprep.mubr.msk.f32.mxu1 %vm944_vm2, %v10474_v39 }
 0x64a   : > { %v10341_v51 = vpop.f32.mrb[39].mxu1  ;;  %14438 = vmatmul.mubr.msk.f32.gmra.mrb[68].mxu1 %vm944_vm2, %v10475_v14  ;;  %v10477_v19 = vmax.f32 %v14292_v58, 0.0 }
 0x64b   : > { %v10476_v2 = vmax.f32 %v10341_v51, 0.0 }
 0x64d   : > { %v14295_v47 = vpop.f32.mrb[40].mxu1  ;;  %14440 = vmatprep.mubr.msk.f32.mxu1 %vm944_vm2, %v10476_v2 }
 0x64e   : > { %v10351_v36 = vpop.f32.mrb[41].mxu1  ;;  %14441 = vmatmul.mubr.msk.f32.gmra.mrb[70].mxu1 %vm944_vm2, %v10477_v19  ;;  %v10479_v35 = vmax.f32 %v14295_v47, 0.0 }
 0x64f   : > { %v10478_v52 = vmax.f32 %v10351_v36, 0.0 }
 0x651   : > { %v14298_v17 = vpop.f32.mrb[42].mxu1  ;;  %14443 = vmatprep.mubr.msk.f32.mxu1 %vm944_vm2, %v10478_v52 }
 0x652   : > { %v10361_v21 = vpop.f32.mrb[43].mxu1  ;;  %14444 = vmatmul.mubr.msk.f32.gmra.mrb[72].mxu1 %vm944_vm2, %v10479_v35  ;;  %v10481_v45 = vmax.f32 %v14298_v17, 0.0 }
 0x653   : > { %v10480_v12 = vmax.f32 %v10361_v21, 0.0 }
 0x655   : > { %v14301_v0 = vpop.f32.mrb[44].mxu1  ;;  %14446 = vmatprep.mubr.msk.f32.mxu1 %vm944_vm2, %v10480_v12 }
 0x656   : > { %v10371_v30 = vpop.f32.mrb[45].mxu1  ;;  %14447 = vmatmul.mubr.msk.f32.gmra.mrb[74].mxu1 %vm944_vm2, %v10481_v45  ;;  %v10483_v40 = vmax.f32 %v14301_v0, 0.0 }
 0x657   : > { %v10482_v3 = vmax.f32 %v10371_v30, 0.0 }
 0x659   : > { %v14304_v5 = vpop.f32.mrb[46].mxu1  ;;  %14449 = vmatprep.mubr.msk.f32.mxu1 %vm944_vm2, %v10482_v3 }
 0x65a   : > { %v10381_v63 = vpop.f32.mrb[47].mxu1  ;;  %14450 = vmatmul.mubr.msk.f32.gmra.mrb[76].mxu1 %vm944_vm2, %v10483_v40  ;;  %v10485_v20 = vmax.f32 %v14304_v5, 0.0 }
 0x65b   : > { %v10484_v38 = vmax.f32 %v10381_v63, 0.0 }
 0x65d   : > { %v14307_v60 = vpop.f32.mrb[48].mxu1  ;;  %14452 = vmatprep.mubr.msk.f32.mxu1 %vm944_vm2, %v10484_v38 }
 0x65e   : > { %v10391_v46 = vpop.f32.mrb[49].mxu1  ;;  %14453 = vmatmul.mubr.msk.f32.gmra.mrb[78].mxu1 %vm944_vm2, %v10485_v20  ;;  %v10487_v50 = vmax.f32 %v14307_v60, 0.0 }
 0x65f   : > { %v10486_v22 = vmax.f32 %v10391_v46, 0.0 }
 0x661   : > { %v14310_v4 = vpop.f32.mrb[50].mxu1  ;;  %14455 = vmatprep.mubr.msk.f32.mxu1 %vm944_vm2, %v10486_v22 }
 0x662   : > { %v10401_v16 = vpop.f32.mrb[51].mxu1  ;;  %14456 = vmatmul.mubr.msk.f32.gmra.mrb[80].mxu1 %vm944_vm2, %v10487_v50  ;;  %v10489_v33 = vmax.f32 %v14310_v4, 0.0 }
 0x663   : > { %v10488_v18 = vmax.f32 %v10401_v16, 0.0 }
 0x665   : > { %v14313_v55 = vpop.f32.mrb[52].mxu1  ;;  %14458 = vmatprep.mubr.msk.f32.mxu1 %vm944_vm2, %v10488_v18 }
 0x666   : > { %v10411_v61 = vpop.f32.mrb[53].mxu1  ;;  %14459 = vmatmul.mubr.msk.f32.gmra.mrb[82].mxu1 %vm944_vm2, %v10489_v33  ;;  %v10491_v14 = vmax.f32 %v14313_v55, 0.0 }
 0x667   : > { %v10490_v39 = vmax.f32 %v10411_v61, 0.0 }
 0x669   : > { %v14316_v58 = vpop.f32.mrb[54].mxu1  ;;  %14461 = vmatprep.mubr.msk.f32.mxu1 %vm944_vm2, %v10490_v39 }
 0x66a   : > { %v10421_v51 = vpop.f32.mrb[55].mxu1  ;;  %14462 = vmatmul.mubr.msk.f32.gmra.mrb[84].mxu1 %vm944_vm2, %v10491_v14  ;;  %v10493_v19 = vmax.f32 %v14316_v58, 0.0 }
 0x66b   : > { %v10492_v2 = vmax.f32 %v10421_v51, 0.0 }
 0x66d   : > { %v14319_v47 = vpop.f32.mrb[56].mxu1  ;;  %14464 = vmatprep.mubr.msk.f32.mxu1 %vm944_vm2, %v10492_v2 }
 0x66e   : > { %v10431_v36 = vpop.f32.mrb[57].mxu1  ;;  %14465 = vmatmul.mubr.msk.f32.gmra.mrb[86].mxu1 %vm944_vm2, %v10493_v19  ;;  %v10495_v35 = vmax.f32 %v14319_v47, 0.0 }
 0x66f   : > { %v10494_v52 = vmax.f32 %v10431_v36, 0.0 }
 0x671   : > { %v14322_v17 = vpop.f32.mrb[58].mxu1  ;;  %14467 = vmatprep.mubr.msk.f32.mxu1 %vm944_vm2, %v10494_v52 }
 0x672   : > { %v10441_v21 = vpop.f32.mrb[59].mxu1  ;;  %14468 = vmatmul.mubr.msk.f32.gmra.mrb[88].mxu1 %vm944_vm2, %v10495_v35  ;;  %v10497_v45 = vmax.f32 %v14322_v17, 0.0 }
 0x673   : > { %v10496_v12 = vmax.f32 %v10441_v21, 0.0 }
 0x675   : > { %v14325_v0 = vpop.f32.mrb[60].mxu1  ;;  %14470 = vmatprep.mubr.msk.f32.mxu1 %vm944_vm2, %v10496_v12 }
 0x676   : > { %v10451_v30 = vpop.f32.mrb[61].mxu1  ;;  %14471 = vmatmul.mubr.msk.f32.gmra.mrb[90].mxu1 %vm944_vm2, %v10497_v45  ;;  %v10499_v40 = vmax.f32 %v14325_v0, 0.0 }
 0x677   : > { %v10498_v3 = vmax.f32 %v10451_v30, 0.0 }
 0x679   : > { %v14328_v5 = vpop.f32.mrb[62].mxu1  ;;  %14473 = vmatprep.mubr.msk.f32.mxu1 %vm944_vm2, %v10498_v3 }
 0x67a   : > { %v10461_v63 = vpop.f32.mrb[63].mxu1  ;;  %14474 = vmatmul.mubr.msk.f32.gmra.mrb[92].mxu1 %vm944_vm2, %v10499_v40  ;;  %v10501_v20 = vmax.f32 %v14328_v5, 0.0 }
 0x67b   : > { %v10500_v38 = vmax.f32 %v10461_v63, 0.0 }
 0x67d   : > { %14476 = vmatprep.mubr.msk.f32.mxu1 %vm944_vm2, %v10500_v38 }
 0x67e   : > { %14477 = vmatmul.mubr.msk.f32.gmra.mrb[94].mxu1 %vm944_vm2, %v10501_v20 }
 0x715   : > { %v14433_v60 = vpop.f32.mrb[64].mxu1 }
 0x716   : > { %v11446_v46 = vadd.f32 %v14433_v60, %v20501_v11  ;;  %v11254_v22 = vpop.f32.mrb[65].mxu1 }
 0x717   : > { %v11445_v50 = vadd.f32 %v20494_v7, %v11254_v22 }
 0x718   : > { %11478 = vst.msk [vmem:[%s20692_s14 + $0x8] sm:$0xff] %vm944_vm2, %v11446_v46 }
 0x719   : > { %11477 = vst.msk [vmem:[%s20692_s14] sm:$0xff] %vm944_vm2, %v11445_v50  ;;  %v14436_v4 = vpop.f32.mrb[66].mxu1 }
 0x71a   : > { %v11448_v16 = vadd.f32 %v14436_v4, %v20512_v28  ;;  %v11264_v18 = vpop.f32.mrb[67].mxu1 }
 0x71b   : > { %v11447_v33 = vadd.f32 %v20504_v42, %v11264_v18 }
 0x71c   : > { %11480 = vst.msk [vmem:[%s20692_s14 + $0x18] sm:$0xff] %vm944_vm2, %v11448_v16 }
 0x71d   : > { %11479 = vst.msk [vmem:[%s20692_s14 + $0x10] sm:$0xff] %vm944_vm2, %v11447_v33  ;;  %v14439_v11 = vpop.f32.mrb[68].mxu1 }
 0x71e   : > { %v11450_v7 = vadd.f32 %v14439_v11, %v20522_v57  ;;  %v11274_v55 = vpop.f32.mrb[69].mxu1 }
 0x71f   : > { %v11449_v61 = vadd.f32 %v20515_v31, %v11274_v55 }
 0x720   : > { %11482 = vst.msk [vmem:[%s20692_s14 + $0x28] sm:$0xff] %vm944_vm2, %v11450_v7 }
 0x721   : > { %11481 = vst.msk [vmem:[%s20692_s14 + $0x20] sm:$0xff] %vm944_vm2, %v11449_v61  ;;  %v14442_v28 = vpop.f32.mrb[70].mxu1 }
 0x722   : > { %v11452_v42 = vadd.f32 %v14442_v28, %v20532_v49  ;;  %v11284_v39 = vpop.f32.mrb[71].mxu1 }
 0x723   : > { %v11451_v14 = vadd.f32 %v20525_v1, %v11284_v39 }
 0x724   : > { %11484 = vst.msk [vmem:[%s20692_s14 + $0x38] sm:$0xff] %vm944_vm2, %v11452_v42 }
 0x725   : > { %11483 = vst.msk [vmem:[%s20692_s14 + $0x30] sm:$0xff] %vm944_vm2, %v11451_v14  ;;  %v14445_v57 = vpop.f32.mrb[72].mxu1 }
 0x726   : > { %v11454_v31 = vadd.f32 %v14445_v57, %v20542_v59  ;;  %v11294_v58 = vpop.f32.mrb[73].mxu1 }
 0x727   : > { %v11453_v51 = vadd.f32 %v20535_v41, %v11294_v58 }
 0x728   : > { %11486 = vst.msk [vmem:[%s20692_s14 + $0x48] sm:$0xff] %vm944_vm2, %v11454_v31 }
 0x729   : > { %11485 = vst.msk [vmem:[%s20692_s14 + $0x40] sm:$0xff] %vm944_vm2, %v11453_v51  ;;  %v14448_v49 = vpop.f32.mrb[74].mxu1 }
 0x72a   : > { %v11456_v1 = vadd.f32 %v14448_v49, %v20552_v48  ;;  %v11304_v2 = vpop.f32.mrb[75].mxu1 }
 0x72b   : > { %v11455_v19 = vadd.f32 %v20545_v62, %v11304_v2 }
 0x72c   : > { %11488 = vst.msk [vmem:[%s20692_s14 + $0x58] sm:$0xff] %vm944_vm2, %v11456_v1 }
 0x72d   : > { %11487 = vst.msk [vmem:[%s20692_s14 + $0x50] sm:$0xff] %vm944_vm2, %v11455_v19  ;;  %v14451_v59 = vpop.f32.mrb[76].mxu1 }
 0x72e   : > { %v11458_v41 = vadd.f32 %v14451_v59, %v20562_v29  ;;  %v11314_v47 = vpop.f32.mrb[77].mxu1 }
 0x72f   : > { %v11457_v36 = vadd.f32 %v20555_v23, %v11314_v47 }
 0x730   : > { %11490 = vst.msk [vmem:[%s20692_s14 + $0x68] sm:$0xff] %vm944_vm2, %v11458_v41 }
 0x731   : > { %11489 = vst.msk [vmem:[%s20692_s14 + $0x60] sm:$0xff] %vm944_vm2, %v11457_v36  ;;  %v14454_v48 = vpop.f32.mrb[78].mxu1 }
 0x732   : > { %v11460_v62 = vadd.f32 %v14454_v48, %v20572_v37  ;;  %v11324_v52 = vpop.f32.mrb[79].mxu1 }
 0x733   : > { %v11459_v35 = vadd.f32 %v20565_v56, %v11324_v52 }
 0x734   : > { %11492 = vst.msk [vmem:[%s20692_s14 + $0x78] sm:$0xff] %vm944_vm2, %v11460_v62 }
 0x735   : > { %11491 = vst.msk [vmem:[%s20692_s14 + $0x70] sm:$0xff] %vm944_vm2, %v11459_v35  ;;  %v14457_v29 = vpop.f32.mrb[80].mxu1 }
 0x736   : > { %v11462_v23 = vadd.f32 %v14457_v29, %v20582_v10  ;;  %v11334_v17 = vpop.f32.mrb[81].mxu1 }
 0x737   : > { %v11461_v21 = vadd.f32 %v20575_v34, %v11334_v17 }
 0x738   : > { %11494 = vst.msk [vmem:[%s20692_s14 + $0x88] sm:$0xff] %vm944_vm2, %v11462_v23 }
 0x739   : > { %11493 = vst.msk [vmem:[%s20692_s14 + $0x80] sm:$0xff] %vm944_vm2, %v11461_v21  ;;  %v14460_v37 = vpop.f32.mrb[82].mxu1 }
 0x73a   : > { %v11464_v56 = vadd.f32 %v14460_v37, %v20592_v15  ;;  %v11344_v12 = vpop.f32.mrb[83].mxu1 }
 0x73b   : > { %v11463_v45 = vadd.f32 %v20585_v32, %v11344_v12 }
 0x73c   : > { %11496 = vst.msk [vmem:[%s20692_s14 + $0x98] sm:$0xff] %vm944_vm2, %v11464_v56 }
 0x73d   : > { %11495 = vst.msk [vmem:[%s20692_s14 + $0x90] sm:$0xff] %vm944_vm2, %v11463_v45  ;;  %v14463_v10 = vpop.f32.mrb[84].mxu1 }
 0x73e   : > { %v11466_v34 = vadd.f32 %v14463_v10, %v20602_v27  ;;  %v11354_v0 = vpop.f32.mrb[85].mxu1 }
 0x73f   : > { %v11465_v30 = vadd.f32 %v20595_v54, %v11354_v0 }
 0x740   : > { %11498 = vst.msk [vmem:[%s20692_s14 + $0xa8] sm:$0xff] %vm944_vm2, %v11466_v34 }
 0x741   : > { %11497 = vst.msk [vmem:[%s20692_s14 + $0xa0] sm:$0xff] %vm944_vm2, %v11465_v30  ;;  %v14466_v15 = vpop.f32.mrb[86].mxu1 }
 0x742   : > { %v11468_v32 = vadd.f32 %v14466_v15, %v20612_v9  ;;  %v11364_v3 = vpop.f32.mrb[87].mxu1 }
 0x743   : > { %v11467_v40 = vadd.f32 %v20605_v25, %v11364_v3 }
 0x744   : > { %11500 = vst.msk [vmem:[%s20692_s14 + $0xb8] sm:$0xff] %vm944_vm2, %v11468_v32 }
 0x745   : > { %11499 = vst.msk [vmem:[%s20692_s14 + $0xb0] sm:$0xff] %vm944_vm2, %v11467_v40  ;;  %v14469_v27 = vpop.f32.mrb[88].mxu1 }
 0x746   : > { %v11470_v54 = vadd.f32 %v14469_v27, %v20622_v24  ;;  %v11374_v5 = vpop.f32.mrb[89].mxu1 }
 0x747   : > { %v11469_v63 = vadd.f32 %v20615_v6, %v11374_v5 }
 0x748   : > { %11502 = vst.msk [vmem:[%s20692_s14 + $0xc8] sm:$0xff] %vm944_vm2, %v11470_v54 }
 0x749   : > { %11501 = vst.msk [vmem:[%s20692_s14 + $0xc0] sm:$0xff] %vm944_vm2, %v11469_v63  ;;  %v14472_v9 = vpop.f32.mrb[90].mxu1 }
 0x74a   : > { %v11472_v25 = vadd.f32 %v14472_v9, %v20632_v8  ;;  %v11384_v38 = vpop.f32.mrb[91].mxu1 }
 0x74b   : > { %v11471_v20 = vadd.f32 %v20625_v53, %v11384_v38 }
 0x74c   : > { %11504 = vst.msk [vmem:[%s20692_s14 + $0xd8] sm:$0xff] %vm944_vm2, %v11472_v25 }
 0x74d   : > { %11503 = vst.msk [vmem:[%s20692_s14 + $0xd0] sm:$0xff] %vm944_vm2, %v11471_v20  ;;  %v14475_v24 = vpop.f32.mrb[92].mxu1 }
 0x74e   : > { %v11474_v60 = vadd.f32 %v14475_v24, %v20642_v13  ;;  %v11394_v6 = vpop.f32.mrb[93].mxu1 }
 0x74f   : > { %v11473_v46 = vadd.f32 %v20635_v43, %v11394_v6 }
 0x750   : > { %11506 = vst.msk [vmem:[%s20692_s14 + $0xe8] sm:$0xff] %vm944_vm2, %v11474_v60 }
 0x751   : > { %11505 = vst.msk [vmem:[%s20692_s14 + $0xe0] sm:$0xff] %vm944_vm2, %v11473_v46  ;;  %v14478_v22 = vpop.f32.mrb[94].mxu1 }
 0x752   : > { %v11476_v8 = vadd.f32 %v14478_v22, %v20652_v26  ;;  %v11404_v50 = vpop.f32.mrb[95].mxu1 }
 0x753   : > { %v11475_v53 = vadd.f32 %v20645_v44, %v11404_v50 }
 0x754   : > { %11508 = vst.msk [vmem:[%s20692_s14 + $0xf8] sm:$0xff] %vm944_vm2, %v11476_v8 }
 0x755   : > { %11507 = vst.msk [vmem:[%s20692_s14 + $0xf0] sm:$0xff] %vm944_vm2, %v11475_v53 }
 0x756 PF: > { %s19_s30 = sadd.s32 1, %s15565_s30  }
 0x757   : > { %p16_p4 = scmp.ge.s32.totalorder %s19_s30, 4  }
 0x759   :  { %18 = sbr.rel (!%p16_p4) target bundleno = 1 (0x1), region = 88 }

</bundles_post_ra>
